<compile_context>
chip_gen: v7x
topology: tpu7x:2x2x1
jax: 0.10.0
libtpu: 0.0.40
codegen_flags: <defaults>
</compile_context>

<pallas_src>
import functools

import jax
import jax.numpy as jnp
from jax.experimental import pallas as pl
from jax.experimental.pallas import tpu as pltpu


# --------------------------------- kernel ------------------------------------

def resblock_kernel(x_ref, emb_ref, mask_ref, gmat_ref, vec_ref,
                    w1_ref, wemb_ref, w2_ref, out_ref, pad_ref,
                    *, WPA, BASE, SPAN, NPAD, inv_n):
    f32 = jnp.float32
    bf16 = jnp.bfloat16
    eps = 1e-5
    C = out_ref.shape[-1]

    mf = mask_ref[...]            # [SPAN, 1] f32: 1 on real pixels, 0 on pad cols
    gmat = gmat_ref[...]          # [C, C] bf16 same-group indicator (exact 0/1)

    gn1_g = vec_ref[0:1, :]
    gn1_b = vec_ref[1:2, :]
    b1 = vec_ref[2:3, :]
    bemb = vec_ref[3:4, :]
    gn2_g = vec_ref[4:5, :]
    gn2_b = vec_ref[5:6, :]
    b2 = vec_ref[6:7, :]

    def silu(v):
        # EUP exp + approximate reciprocal (free EUP slot) instead of f32 divide
        return v * pl.reciprocal(1.0 + jnp.exp(-v), approx=True)

    def group_sum(row):
        # Exact per-group sum broadcast back to channels: split the f32 [1,C]
        # row into hi+lo bf16 parts so the bf16 MXU pass loses no precision
        # (gmat entries are exactly representable); accumulation is f32.
        hi = row.astype(bf16)
        lo = (row - hi.astype(f32)).astype(bf16)
        return (jnp.dot(hi, gmat, preferred_element_type=f32)
                + jnp.dot(lo, gmat, preferred_element_type=f32))

    def gn_silu_to_scratch(v, gamma, beta, mask_input):
        # GroupNorm(32) over interior pixels (masked two-pass stats in f32) +
        # affine + SiLU; result cast to bf16 exactly once and written into the
        # padded conv scratch with the pad columns forced back to zero.
        vm = v * mf if mask_input else v          # x already has a zero border
        mean_c = group_sum(jnp.sum(vm, axis=0, keepdims=True)) * inv_n
        d = (v - mean_c) * mf
        var_c = group_sum(jnp.sum(d * d, axis=0, keepdims=True)) * inv_n
        scale_c = jax.lax.rsqrt(var_c + eps) * gamma     # folded per-channel scale
        act = silu(d * scale_c + beta)
        pad_ref[BASE:BASE + SPAN, :] = (act * mf).astype(bf16)

    def conv3x3(w_ref):
        # 3x3 conv as 9 shifted [SPAN,C] x [C,C] bf16 MXU matmuls with f32
        # accumulation, reading the bf16 scratch directly (input cast happened
        # once at the scratch write).  BASE/WPA/SPAN are multiples of 8, so the
        # dx==0 taps and the span store are sublane-aligned.
        acc = None
        t = 0
        for dy in (-1, 0, 1):
            for dx in (-1, 0, 1):
                s0 = BASE + dy * WPA + dx
                part = jnp.dot(pad_ref[s0:s0 + SPAN, :], w_ref[t],
                               preferred_element_type=f32)
                acc = part if acc is None else acc + part
                t += 1
        return acc

    # Zero only the scratch border rows (everything outside the span store).
    # ~80 short rows per step instead of a full-buffer zero fill.
    pad_ref[0:BASE, :] = jnp.zeros((BASE, C), bf16)
    pad_ref[BASE + SPAN:NPAD, :] = jnp.zeros((NPAD - BASE - SPAN, C), bf16)

    # ---- in_layers: GroupNorm(32, C) -> SiLU -> Conv3x3 ----
    gn_silu_to_scratch(x_ref[0], gn1_g, gn1_b, mask_input=False)
    h = conv3x3(w1_ref)                                   # [SPAN, C] f32

    # ---- emb_layers: SiLU -> Linear, folded with the conv1 bias ----
    e = silu(emb_ref[0])                                  # [1, E]
    e = jnp.dot(e.astype(bf16), wemb_ref[...], preferred_element_type=f32)
    h = h + (e + bemb + b1)                               # single [SPAN, C] add

    # ---- out_layers: GroupNorm -> SiLU -> (Dropout p=0) -> Conv3x3 ----
    gn_silu_to_scratch(h, gn2_g, gn2_b, mask_input=True)
    h2 = conv3x3(w2_ref)

    # ---- identity skip connection ----
    out_ref[0] = x_ref[0] + (h2 + b2)


# -------------------------------- wrapper ------------------------------------

def resblock_forward(x_nchw, emb, params, n_groups=32):
    B, C, H, W = x_nchw.shape
    E = emb.shape[-1]
    assert C % n_groups == 0, "GroupNorm(32) needs C % 32 == 0"
    assert C % 128 == 0, "lane-dense layout wants C % 128 == 0"
    cpg = C // n_groups
    f32, bf16 = jnp.float32, jnp.bfloat16

    # Aligned flat layout: row stride WPA (multiple of 8) with XL leading pad
    # columns per row, one pad row on top and enough pad rows at the bottom to
    # cover the furthest (+1,+1) shifted conv slice.  BASE (flat index of pixel
    # (0,0)), SPAN and WPA are multiples of 8 -> aligned conv operands / stores.
    XL = 8
    WPA = ((W + XL + 7) // 8) * 8
    BASE = WPA + XL
    SPAN = (H - 1) * WPA + W
    NPAD = (H + 2) * WPA
    while NPAD < BASE + SPAN + WPA + 1:
        NPAD += WPA
    rows = NPAD // WPA

    # NCHW -> channel-last aligned span slab [B, SPAN, C] with zero pad cols/rows
    x_nhwc = jnp.transpose(x_nchw, (0, 2, 3, 1)).astype(f32)
    x_grid = jnp.zeros((B, rows, WPA, C), f32).at[:, 1:1 + H, XL:XL + W, :].set(x_nhwc)
    x_span = x_grid.reshape(B, NPAD, C)[:, BASE:BASE + SPAN, :]

    # interior-pixel indicator over the span (tiny, grid-invariant operand)
    sidx = jnp.arange(SPAN)
    col = (sidx + BASE) % WPA
    mask = ((col >= XL) & (col < XL + W)).astype(f32).reshape(SPAN, 1)

    # same-group channel indicator (exact 0/1 -> bf16 is lossless)
    gidx = jnp.arange(C) // cpg
    gmat = (gidx[:, None] == gidx[None, :]).astype(bf16)

    # pack the small per-channel vectors into one operand
    vec = jnp.concatenate(
        [params['gn1_g'], params['gn1_b'], params['b1'], params['bemb'],
         params['gn2_g'], params['gn2_b'], params['b2'],
         jnp.zeros((1, C), f32)], axis=0)                    # [8, C]

    w1 = params['w1_taps'].astype(bf16)                      # [9, C, C]
    w2 = params['w2_taps'].astype(bf16)                      # [9, C, C]
    wemb = params['wemb'].astype(bf16)                       # [E, C]
    emb3 = emb.reshape(B, 1, E).astype(f32)

    kernel = functools.partial(resblock_kernel, WPA=WPA, BASE=BASE, SPAN=SPAN,
                               NPAD=NPAD, inv_n=1.0 / float(H * W * cpg))

    out_span = pl.pallas_call(
        kernel,
        out_shape=jax.ShapeDtypeStruct((B, SPAN, C), f32),
        grid_spec=pltpu.PrefetchScalarGridSpec(
            num_scalar_prefetch=0,
            grid=(B,),
            in_specs=[
                pl.BlockSpec((1, SPAN, C), lambda b: (b, 0, 0)),   # x (span layout)
                pl.BlockSpec((1, 1, E), lambda b: (b, 0, 0)),      # emb
                pl.BlockSpec((SPAN, 1), lambda b: (0, 0)),         # interior mask
                pl.BlockSpec((C, C), lambda b: (0, 0)),            # group matrix (bf16)
                pl.BlockSpec((8, C), lambda b: (0, 0)),            # packed vectors
                pl.BlockSpec((9, C, C), lambda b: (0, 0, 0)),      # conv1 taps (bf16)
                pl.BlockSpec((E, C), lambda b: (0, 0)),            # emb linear (bf16)
                pl.BlockSpec((9, C, C), lambda b: (0, 0, 0)),      # conv2 taps (bf16)
            ],
            out_specs=pl.BlockSpec((1, SPAN, C), lambda b: (b, 0, 0)),
            scratch_shapes=[pltpu.VMEM((NPAD, C), bf16)],    # shared padded conv input
        ),
        compiler_params=pltpu.CompilerParams(
            dimension_semantics=("parallel",),
            vmem_limit_bytes=32 * 1024 * 1024),
    )(x_span, emb3, mask, gmat, vec, w1, wemb, w2)

    # span layout -> NCHW interior
    out_full = jnp.zeros((B, NPAD, C), f32).at[:, BASE:BASE + SPAN, :].set(out_span)
    out_hw = out_full.reshape(B, rows, WPA, C)[:, 1:1 + H, XL:XL + W, :]
    return jnp.transpose(out_hw, (0, 3, 1, 2))


# ------------------------- pure-JAX reference (check) -------------------------

def _silu_ref(x):
    return x * jax.nn.sigmoid(x)


def reference_forward(x_nchw, emb, p, n_groups):
    f32, bf16 = jnp.float32, jnp.bfloat16
    B, C, H, W = x_nchw.shape
    cpg = C // n_groups
    x = x_nchw.astype(f32)

    def gn(z, g, b, eps=1e-5):
        zg = z.reshape(B, n_groups, cpg, H, W)
        mu = jnp.mean(zg, axis=(2, 3, 4), keepdims=True)
        var = jnp.mean((zg - mu) ** 2, axis=(2, 3, 4), keepdims=True)
        zn = ((zg - mu) * jax.lax.rsqrt(var + eps)).reshape(B, C, H, W)
        return zn * g.reshape(1, C, 1, 1) + b.reshape(1, C, 1, 1)

    def conv3(z, taps, b):
        # taps[t], t=(dy+1)*3+(dx+1), is the [Cin, Cout] weight of tap (dy, dx)
        w = jnp.transpose(taps.reshape(3, 3, C, C), (3, 2, 0, 1))   # [Cout,Cin,kh,kw]
        y = jax.lax.conv_general_dilated(
            z.astype(bf16), w.astype(bf16), window_strides=(1, 1),
            padding=((1, 1), (1, 1)),
            dimension_numbers=('NCHW', 'OIHW', 'NCHW'),
            preferred_element_type=f32)
        return y + b.reshape(1, C, 1, 1)

    h = conv3(_silu_ref(gn(x, p['gn1_g'], p['gn1_b'])), p['w1_taps'], p['b1'])
    e = jnp.dot(_silu_ref(emb.astype(f32)).astype(bf16), p['wemb'].astype(bf16),
                preferred_element_type=f32) + p['bemb']             # [B, C]
    h = h + e[:, :, None, None]
    h = conv3(_silu_ref(gn(h, p['gn2_g'], p['gn2_b'])), p['w2_taps'], p['b2'])
    return x + h


# ------------------------------ parameter init --------------------------------

def init_params(key, C, E):
    ks = jax.random.split(key, 10)

    def w(k, shape, scale=0.05):
        return scale * jax.random.normal(k, shape, jnp.float32)

    return {
        'gn1_g': 1.0 + 0.1 * jax.random.normal(ks[0], (1, C), jnp.float32),
        'gn1_b': 0.1 * jax.random.normal(ks[1], (1, C), jnp.float32),
        'w1_taps': w(ks[2], (9, C, C)),
        'b1': w(ks[3], (1, C)),
        'wemb': w(ks[4], (E, C)),
        'bemb': w(ks[5], (1, C)),
        'gn2_g': 1.0 + 0.1 * jax.random.normal(ks[6], (1, C), jnp.float32),
        'gn2_b': 0.1 * jax.random.normal(ks[7], (1, C), jnp.float32),
        # zero_module(conv) -> zeros in a fresh module; randomized here so the
        # full compute path is exercised by the correctness check.
        'w2_taps': w(ks[8], (9, C, C)),
        'b2': w(ks[9], (1, C)),
    }


# ----------------------------------- main -------------------------------------

if __name__ == "__main__":
    # GroupNorm(32, C) requires C % 32 == 0; C=128 keeps every vreg lane-dense.
    # B=2 keeps the 'parallel' batch grid able to feed both v7x TensorCores.
    B, C, H, W = 2, 128, 16, 16
    E = 128          # emb_channels
    n_groups = 32

    kx, ke, kp = jax.random.split(jax.random.PRNGKey(0), 3)
    x = jax.random.normal(kx, (B, C, H, W), jnp.float32)
    emb = jax.random.normal(ke, (B, E), jnp.float32)
    params = init_params(kp, C, E)

    out = resblock_forward(x, emb, params, n_groups)
    ref = reference_forward(x, emb, params, n_groups)
    jax.block_until_ready((out, ref))

    assert out.shape == (B, C, H, W)
    max_err = float(jnp.max(jnp.abs(out - ref)))
    assert max_err < 5e-2, f"kernel mismatch vs reference, max abs err = {max_err}"
    print("KERNEL_OK")
</pallas_src>

<mosaic_0001>
module attributes {stable_mosaic.version = 11 : i64} {
  func.func @resblock_kernel(%arg0: i32, %arg1: memref<1x376x128xf32, #tpu.memory_space<vmem>>, %arg2: memref<1x1x128xf32, #tpu.memory_space<vmem>>, %arg3: memref<376x1xf32, #tpu.memory_space<vmem>>, %arg4: memref<128x128xbf16, #tpu.memory_space<vmem>>, %arg5: memref<8x128xf32, #tpu.memory_space<vmem>>, %arg6: memref<9x128x128xbf16, #tpu.memory_space<vmem>>, %arg7: memref<128x128xbf16, #tpu.memory_space<vmem>>, %arg8: memref<9x128x128xbf16, #tpu.memory_space<vmem>>, %arg9: memref<1x376x128xf32, #tpu.memory_space<vmem>>, %arg10: memref<456x128xbf16, #tpu.memory_space<vmem>>) attributes {dimension_semantics = [#tpu.dimension_semantics<parallel>], iteration_bounds = array<i64: 2>, scalar_prefetch = 0 : i64, scratch_operands = 1 : i64, tpu.core_type = #tpu.core_type<tc>, window_params = [{transform_indices = @transform_0, window_bounds = array<i64: 1, 376, 128>}, {transform_indices = @transform_1, window_bounds = array<i64: 1, 1, 128>}, {pipeline_mode = #tpu.pipeline_mode<synchronous>, transform_indices = @transform_2, window_bounds = array<i64: 376, 1>}, {pipeline_mode = #tpu.pipeline_mode<synchronous>, transform_indices = @transform_3, window_bounds = array<i64: 128, 128>}, {pipeline_mode = #tpu.pipeline_mode<synchronous>, transform_indices = @transform_4, window_bounds = array<i64: 8, 128>}, {pipeline_mode = #tpu.pipeline_mode<synchronous>, transform_indices = @transform_5, window_bounds = array<i64: 9, 128, 128>}, {pipeline_mode = #tpu.pipeline_mode<synchronous>, transform_indices = @transform_6, window_bounds = array<i64: 128, 128>}, {pipeline_mode = #tpu.pipeline_mode<synchronous>, transform_indices = @transform_7, window_bounds = array<i64: 9, 128, 128>}, {transform_indices = @transform_8, window_bounds = array<i64: 1, 376, 128>}]} {
    %c0 = arith.constant 0 : index
    %c0_0 = arith.constant 0 : index
    %0 = vector.load %arg3[%c0, %c0_0] : memref<376x1xf32, #tpu.memory_space<vmem>>, vector<376x1xf32>
    %c0_1 = arith.constant 0 : index
    %c0_2 = arith.constant 0 : index
    %1 = vector.load %arg4[%c0_1, %c0_2] : memref<128x128xbf16, #tpu.memory_space<vmem>>, vector<128x128xbf16>
    %c0_3 = arith.constant 0 : index
    %c0_4 = arith.constant 0 : index
    %2 = vector.load %arg5[%c0_3, %c0_4] : memref<8x128xf32, #tpu.memory_space<vmem>>, vector<1x128xf32>
    %c1 = arith.constant 1 : index
    %c0_5 = arith.constant 0 : index
    %3 = vector.load %arg5[%c1, %c0_5] : memref<8x128xf32, #tpu.memory_space<vmem>>, vector<1x128xf32>
    %c2 = arith.constant 2 : index
    %c0_6 = arith.constant 0 : index
    %4 = vector.load %arg5[%c2, %c0_6] : memref<8x128xf32, #tpu.memory_space<vmem>>, vector<1x128xf32>
    %c3 = arith.constant 3 : index
    %c0_7 = arith.constant 0 : index
    %5 = vector.load %arg5[%c3, %c0_7] : memref<8x128xf32, #tpu.memory_space<vmem>>, vector<1x128xf32>
    %c4 = arith.constant 4 : index
    %c0_8 = arith.constant 0 : index
    %6 = vector.load %arg5[%c4, %c0_8] : memref<8x128xf32, #tpu.memory_space<vmem>>, vector<1x128xf32>
    %c5 = arith.constant 5 : index
    %c0_9 = arith.constant 0 : index
    %7 = vector.load %arg5[%c5, %c0_9] : memref<8x128xf32, #tpu.memory_space<vmem>>, vector<1x128xf32>
    %c6 = arith.constant 6 : index
    %c0_10 = arith.constant 0 : index
    %8 = vector.load %arg5[%c6, %c0_10] : memref<8x128xf32, #tpu.memory_space<vmem>>, vector<1x128xf32>
    %cst = arith.constant 0.000000e+00 : bf16
    %9 = vector.broadcast %cst : bf16 to vector<32x128xbf16>
    %c0_11 = arith.constant 0 : index
    %c0_12 = arith.constant 0 : index
    %10 = vector.load %arg10[%c0_11, %c0_12] : memref<456x128xbf16, #tpu.memory_space<vmem>>, vector<32x128xbf16>
    tpu.vector_store %arg10[%c0_11, %c0_12], %9 {strides = array<i32>} : memref<456x128xbf16, #tpu.memory_space<vmem>>, vector<32x128xbf16>,
    %cst_13 = arith.constant 0.000000e+00 : bf16
    %11 = vector.broadcast %cst_13 : bf16 to vector<48x128xbf16>
    %c408 = arith.constant 408 : index
    %c0_14 = arith.constant 0 : index
    %12 = vector.load %arg10[%c408, %c0_14] : memref<456x128xbf16, #tpu.memory_space<vmem>>, vector<48x128xbf16>
    tpu.vector_store %arg10[%c408, %c0_14], %11 {strides = array<i32>} : memref<456x128xbf16, #tpu.memory_space<vmem>>, vector<48x128xbf16>,
    %c0_15 = arith.constant 0 : index
    %c0_16 = arith.constant 0 : index
    %c0_17 = arith.constant 0 : index
    %13 = vector.load %arg1[%c0_15, %c0_16, %c0_17] : memref<1x376x128xf32, #tpu.memory_space<vmem>>, vector<1x376x128xf32>
    %14 = vector.shape_cast %13 : vector<1x376x128xf32> to vector<376x128xf32>
    %cst_18 = arith.constant dense<0.000000e+00> : vector<128xf32>
    %15 = vector.multi_reduction <add>, %14, %cst_18 [0] : vector<376x128xf32> to vector<128xf32>
    %16 = vector.shape_cast %15 : vector<128xf32> to vector<1x128xf32>
    %17 = arith.truncf %16 : vector<1x128xf32> to vector<1x128xbf16>
    %18 = arith.extf %17 : vector<1x128xbf16> to vector<1x128xf32>
    %19 = arith.subf %16, %18 : vector<1x128xf32>
    %20 = arith.truncf %19 : vector<1x128xf32> to vector<1x128xbf16>
    %cst_19 = arith.constant dense<0.000000e+00> : vector<1x128xf32>
    %21 = tpu.matmul %17, %1, %cst_19 {dimension_numbers = #tpu.dot_dimension_numbers<[1], [0], [0], [1], [0, 0, 1, 1], [], []>} : vector<1x128xbf16>, vector<128x128xbf16>, vector<1x128xf32> -> vector<1x128xf32>
    %cst_20 = arith.constant dense<0.000000e+00> : vector<1x128xf32>
    %22 = tpu.matmul %20, %1, %cst_20 {dimension_numbers = #tpu.dot_dimension_numbers<[1], [0], [0], [1], [0, 0, 1, 1], [], []>} : vector<1x128xbf16>, vector<128x128xbf16>, vector<1x128xf32> -> vector<1x128xf32>
    %23 = arith.addf %21, %22 : vector<1x128xf32>
    %cst_21 = arith.constant 9.765625E-4 : f32
    %24 = vector.broadcast %cst_21 : f32 to vector<1x128xf32>
    %25 = arith.mulf %23, %24 : vector<1x128xf32>
    %26 = vector.broadcast %25 : vector<1x128xf32> to vector<376x128xf32>
    %27 = arith.subf %14, %26 : vector<376x128xf32>
    %28 = vector.broadcast %0 : vector<376x1xf32> to vector<376x128xf32>
    %29 = arith.mulf %27, %28 : vector<376x128xf32>
    %30 = arith.mulf %29, %29 : vector<376x128xf32>
    %cst_22 = arith.constant dense<0.000000e+00> : vector<128xf32>
    %31 = vector.multi_reduction <add>, %30, %cst_22 [0] : vector<376x128xf32> to vector<128xf32>
    %32 = vector.shape_cast %31 : vector<128xf32> to vector<1x128xf32>
    %33 = arith.truncf %32 : vector<1x128xf32> to vector<1x128xbf16>
    %34 = arith.extf %33 : vector<1x128xbf16> to vector<1x128xf32>
    %35 = arith.subf %32, %34 : vector<1x128xf32>
    %36 = arith.truncf %35 : vector<1x128xf32> to vector<1x128xbf16>
    %cst_23 = arith.constant dense<0.000000e+00> : vector<1x128xf32>
    %37 = tpu.matmul %33, %1, %cst_23 {dimension_numbers = #tpu.dot_dimension_numbers<[1], [0], [0], [1], [0, 0, 1, 1], [], []>} : vector<1x128xbf16>, vector<128x128xbf16>, vector<1x128xf32> -> vector<1x128xf32>
    %cst_24 = arith.constant dense<0.000000e+00> : vector<1x128xf32>
    %38 = tpu.matmul %36, %1, %cst_24 {dimension_numbers = #tpu.dot_dimension_numbers<[1], [0], [0], [1], [0, 0, 1, 1], [], []>} : vector<1x128xbf16>, vector<128x128xbf16>, vector<1x128xf32> -> vector<1x128xf32>
    %39 = arith.addf %37, %38 : vector<1x128xf32>
    %cst_25 = arith.constant 9.765625E-4 : f32
    %40 = vector.broadcast %cst_25 : f32 to vector<1x128xf32>
    %41 = arith.mulf %39, %40 : vector<1x128xf32>
    %cst_26 = arith.constant 9.99999974E-6 : f32
    %42 = vector.broadcast %cst_26 : f32 to vector<1x128xf32>
    %43 = arith.addf %41, %42 : vector<1x128xf32>
    %44 = math.rsqrt %43 : vector<1x128xf32>
    %45 = arith.mulf %44, %2 : vector<1x128xf32>
    %46 = vector.broadcast %45 : vector<1x128xf32> to vector<376x128xf32>
    %47 = arith.mulf %29, %46 : vector<376x128xf32>
    %48 = vector.broadcast %3 : vector<1x128xf32> to vector<376x128xf32>
    %49 = arith.addf %47, %48 : vector<376x128xf32>
    %cst_27 = arith.constant 0.000000e+00 : f32
    %50 = vector.broadcast %cst_27 : f32 to vector<376x128xf32>
    %51 = arith.subf %50, %49 : vector<376x128xf32>
    %52 = math.exp %51 : vector<376x128xf32>
    %cst_28 = arith.constant 1.000000e+00 : f32
    %53 = vector.broadcast %cst_28 : f32 to vector<376x128xf32>
    %54 = arith.addf %53, %52 : vector<376x128xf32>
    %55 = tpu.reciprocal %54 {approx = true} : vector<376x128xf32> -> vector<376x128xf32>
    %56 = arith.mulf %49, %55 : vector<376x128xf32>
    %57 = vector.broadcast %0 : vector<376x1xf32> to vector<376x128xf32>
    %58 = arith.mulf %56, %57 : vector<376x128xf32>
    %59 = arith.truncf %58 : vector<376x128xf32> to vector<376x128xbf16>
    %c32 = arith.constant 32 : index
    %c0_29 = arith.constant 0 : index
    %60 = vector.load %arg10[%c32, %c0_29] : memref<456x128xbf16, #tpu.memory_space<vmem>>, vector<376x128xbf16>
    tpu.vector_store %arg10[%c32, %c0_29], %59 {strides = array<i32>} : memref<456x128xbf16, #tpu.memory_space<vmem>>, vector<376x128xbf16>,
    %c7 = arith.constant 7 : index
    %c0_30 = arith.constant 0 : index
    %61 = vector.load %arg10[%c7, %c0_30] : memref<456x128xbf16, #tpu.memory_space<vmem>>, vector<376x128xbf16>
    %c0_31 = arith.constant 0 : index
    %c0_32 = arith.constant 0 : index
    %c0_33 = arith.constant 0 : index
    %62 = vector.load %arg6[%c0_31, %c0_32, %c0_33] : memref<9x128x128xbf16, #tpu.memory_space<vmem>>, vector<1x128x128xbf16>
    %63 = vector.shape_cast %62 : vector<1x128x128xbf16> to vector<128x128xbf16>
    %cst_34 = arith.constant dense<0.000000e+00> : vector<376x128xf32>
    %64 = tpu.matmul %61, %63, %cst_34 {dimension_numbers = #tpu.dot_dimension_numbers<[1], [0], [0], [1], [0, 0, 1, 1], [], []>} : vector<376x128xbf16>, vector<128x128xbf16>, vector<376x128xf32> -> vector<376x128xf32>
    %c8 = arith.constant 8 : index
    %c0_35 = arith.constant 0 : index
    %65 = vector.load %arg10[%c8, %c0_35] : memref<456x128xbf16, #tpu.memory_space<vmem>>, vector<376x128xbf16>
    %c1_36 = arith.constant 1 : index
    %c0_37 = arith.constant 0 : index
    %c0_38 = arith.constant 0 : index
    %66 = vector.load %arg6[%c1_36, %c0_37, %c0_38] : memref<9x128x128xbf16, #tpu.memory_space<vmem>>, vector<1x128x128xbf16>
    %67 = vector.shape_cast %66 : vector<1x128x128xbf16> to vector<128x128xbf16>
    %cst_39 = arith.constant dense<0.000000e+00> : vector<376x128xf32>
    %68 = tpu.matmul %65, %67, %cst_39 {dimension_numbers = #tpu.dot_dimension_numbers<[1], [0], [0], [1], [0, 0, 1, 1], [], []>} : vector<376x128xbf16>, vector<128x128xbf16>, vector<376x128xf32> -> vector<376x128xf32>
    %69 = arith.addf %64, %68 : vector<376x128xf32>
    %c9 = arith.constant 9 : index
    %c0_40 = arith.constant 0 : index
    %70 = vector.load %arg10[%c9, %c0_40] : memref<456x128xbf16, #tpu.memory_space<vmem>>, vector<376x128xbf16>
    %c2_41 = arith.constant 2 : index
    %c0_42 = arith.constant 0 : index
    %c0_43 = arith.constant 0 : index
    %71 = vector.load %arg6[%c2_41, %c0_42, %c0_43] : memref<9x128x128xbf16, #tpu.memory_space<vmem>>, vector<1x128x128xbf16>
    %72 = vector.shape_cast %71 : vector<1x128x128xbf16> to vector<128x128xbf16>
    %cst_44 = arith.constant dense<0.000000e+00> : vector<376x128xf32>
    %73 = tpu.matmul %70, %72, %cst_44 {dimension_numbers = #tpu.dot_dimension_numbers<[1], [0], [0], [1], [0, 0, 1, 1], [], []>} : vector<376x128xbf16>, vector<128x128xbf16>, vector<376x128xf32> -> vector<376x128xf32>
    %74 = arith.addf %69, %73 : vector<376x128xf32>
    %c31 = arith.constant 31 : index
    %c0_45 = arith.constant 0 : index
    %75 = vector.load %arg10[%c31, %c0_45] : memref<456x128xbf16, #tpu.memory_space<vmem>>, vector<376x128xbf16>
    %c3_46 = arith.constant 3 : index
    %c0_47 = arith.constant 0 : index
    %c0_48 = arith.constant 0 : index
    %76 = vector.load %arg6[%c3_46, %c0_47, %c0_48] : memref<9x128x128xbf16, #tpu.memory_space<vmem>>, vector<1x128x128xbf16>
    %77 = vector.shape_cast %76 : vector<1x128x128xbf16> to vector<128x128xbf16>
    %cst_49 = arith.constant dense<0.000000e+00> : vector<376x128xf32>
    %78 = tpu.matmul %75, %77, %cst_49 {dimension_numbers = #tpu.dot_dimension_numbers<[1], [0], [0], [1], [0, 0, 1, 1], [], []>} : vector<376x128xbf16>, vector<128x128xbf16>, vector<376x128xf32> -> vector<376x128xf32>
    %79 = arith.addf %74, %78 : vector<376x128xf32>
    %c32_50 = arith.constant 32 : index
    %c0_51 = arith.constant 0 : index
    %80 = vector.load %arg10[%c32_50, %c0_51] : memref<456x128xbf16, #tpu.memory_space<vmem>>, vector<376x128xbf16>
    %c4_52 = arith.constant 4 : index
    %c0_53 = arith.constant 0 : index
    %c0_54 = arith.constant 0 : index
    %81 = vector.load %arg6[%c4_52, %c0_53, %c0_54] : memref<9x128x128xbf16, #tpu.memory_space<vmem>>, vector<1x128x128xbf16>
    %82 = vector.shape_cast %81 : vector<1x128x128xbf16> to vector<128x128xbf16>
    %cst_55 = arith.constant dense<0.000000e+00> : vector<376x128xf32>
    %83 = tpu.matmul %80, %82, %cst_55 {dimension_numbers = #tpu.dot_dimension_numbers<[1], [0], [0], [1], [0, 0, 1, 1], [], []>} : vector<376x128xbf16>, vector<128x128xbf16>, vector<376x128xf32> -> vector<376x128xf32>
    %84 = arith.addf %79, %83 : vector<376x128xf32>
    %c33 = arith.constant 33 : index
    %c0_56 = arith.constant 0 : index
    %85 = vector.load %arg10[%c33, %c0_56] : memref<456x128xbf16, #tpu.memory_space<vmem>>, vector<376x128xbf16>
    %c5_57 = arith.constant 5 : index
    %c0_58 = arith.constant 0 : index
    %c0_59 = arith.constant 0 : index
    %86 = vector.load %arg6[%c5_57, %c0_58, %c0_59] : memref<9x128x128xbf16, #tpu.memory_space<vmem>>, vector<1x128x128xbf16>
    %87 = vector.shape_cast %86 : vector<1x128x128xbf16> to vector<128x128xbf16>
    %cst_60 = arith.constant dense<0.000000e+00> : vector<376x128xf32>
    %88 = tpu.matmul %85, %87, %cst_60 {dimension_numbers = #tpu.dot_dimension_numbers<[1], [0], [0], [1], [0, 0, 1, 1], [], []>} : vector<376x128xbf16>, vector<128x128xbf16>, vector<376x128xf32> -> vector<376x128xf32>
    %89 = arith.addf %84, %88 : vector<376x128xf32>
    %c55 = arith.constant 55 : index
    %c0_61 = arith.constant 0 : index
    %90 = vector.load %arg10[%c55, %c0_61] : memref<456x128xbf16, #tpu.memory_space<vmem>>, vector<376x128xbf16>
    %c6_62 = arith.constant 6 : index
    %c0_63 = arith.constant 0 : index
    %c0_64 = arith.constant 0 : index
    %91 = vector.load %arg6[%c6_62, %c0_63, %c0_64] : memref<9x128x128xbf16, #tpu.memory_space<vmem>>, vector<1x128x128xbf16>
    %92 = vector.shape_cast %91 : vector<1x128x128xbf16> to vector<128x128xbf16>
    %cst_65 = arith.constant dense<0.000000e+00> : vector<376x128xf32>
    %93 = tpu.matmul %90, %92, %cst_65 {dimension_numbers = #tpu.dot_dimension_numbers<[1], [0], [0], [1], [0, 0, 1, 1], [], []>} : vector<376x128xbf16>, vector<128x128xbf16>, vector<376x128xf32> -> vector<376x128xf32>
    %94 = arith.addf %89, %93 : vector<376x128xf32>
    %c56 = arith.constant 56 : index
    %c0_66 = arith.constant 0 : index
    %95 = vector.load %arg10[%c56, %c0_66] : memref<456x128xbf16, #tpu.memory_space<vmem>>, vector<376x128xbf16>
    %c7_67 = arith.constant 7 : index
    %c0_68 = arith.constant 0 : index
    %c0_69 = arith.constant 0 : index
    %96 = vector.load %arg6[%c7_67, %c0_68, %c0_69] : memref<9x128x128xbf16, #tpu.memory_space<vmem>>, vector<1x128x128xbf16>
    %97 = vector.shape_cast %96 : vector<1x128x128xbf16> to vector<128x128xbf16>
    %cst_70 = arith.constant dense<0.000000e+00> : vector<376x128xf32>
    %98 = tpu.matmul %95, %97, %cst_70 {dimension_numbers = #tpu.dot_dimension_numbers<[1], [0], [0], [1], [0, 0, 1, 1], [], []>} : vector<376x128xbf16>, vector<128x128xbf16>, vector<376x128xf32> -> vector<376x128xf32>
    %99 = arith.addf %94, %98 : vector<376x128xf32>
    %c57 = arith.constant 57 : index
    %c0_71 = arith.constant 0 : index
    %100 = vector.load %arg10[%c57, %c0_71] : memref<456x128xbf16, #tpu.memory_space<vmem>>, vector<376x128xbf16>
    %c8_72 = arith.constant 8 : index
    %c0_73 = arith.constant 0 : index
    %c0_74 = arith.constant 0 : index
    %101 = vector.load %arg6[%c8_72, %c0_73, %c0_74] : memref<9x128x128xbf16, #tpu.memory_space<vmem>>, vector<1x128x128xbf16>
    %102 = vector.shape_cast %101 : vector<1x128x128xbf16> to vector<128x128xbf16>
    %cst_75 = arith.constant dense<0.000000e+00> : vector<376x128xf32>
    %103 = tpu.matmul %100, %102, %cst_75 {dimension_numbers = #tpu.dot_dimension_numbers<[1], [0], [0], [1], [0, 0, 1, 1], [], []>} : vector<376x128xbf16>, vector<128x128xbf16>, vector<376x128xf32> -> vector<376x128xf32>
    %104 = arith.addf %99, %103 : vector<376x128xf32>
    %c0_76 = arith.constant 0 : index
    %c0_77 = arith.constant 0 : index
    %c0_78 = arith.constant 0 : index
    %105 = vector.load %arg2[%c0_76, %c0_77, %c0_78] : memref<1x1x128xf32, #tpu.memory_space<vmem>>, vector<1x1x128xf32>
    %106 = vector.shape_cast %105 : vector<1x1x128xf32> to vector<1x128xf32>
    %cst_79 = arith.constant 0.000000e+00 : f32
    %107 = vector.broadcast %cst_79 : f32 to vector<1x128xf32>
    %108 = arith.subf %107, %106 : vector<1x128xf32>
    %109 = math.exp %108 : vector<1x128xf32>
    %cst_80 = arith.constant 1.000000e+00 : f32
    %110 = vector.broadcast %cst_80 : f32 to vector<1x128xf32>
    %111 = arith.addf %110, %109 : vector<1x128xf32>
    %112 = tpu.reciprocal %111 {approx = true} : vector<1x128xf32> -> vector<1x128xf32>
    %113 = arith.mulf %106, %112 : vector<1x128xf32>
    %114 = arith.truncf %113 : vector<1x128xf32> to vector<1x128xbf16>
    %c0_81 = arith.constant 0 : index
    %c0_82 = arith.constant 0 : index
    %115 = vector.load %arg7[%c0_81, %c0_82] : memref<128x128xbf16, #tpu.memory_space<vmem>>, vector<128x128xbf16>
    %cst_83 = arith.constant dense<0.000000e+00> : vector<1x128xf32>
    %116 = tpu.matmul %114, %115, %cst_83 {dimension_numbers = #tpu.dot_dimension_numbers<[1], [0], [0], [1], [0, 0, 1, 1], [], []>} : vector<1x128xbf16>, vector<128x128xbf16>, vector<1x128xf32> -> vector<1x128xf32>
    %117 = arith.addf %116, %5 : vector<1x128xf32>
    %118 = arith.addf %117, %4 : vector<1x128xf32>
    %119 = vector.broadcast %118 : vector<1x128xf32> to vector<376x128xf32>
    %120 = arith.addf %104, %119 : vector<376x128xf32>
    %121 = vector.broadcast %0 : vector<376x1xf32> to vector<376x128xf32>
    %122 = arith.mulf %120, %121 : vector<376x128xf32>
    %cst_84 = arith.constant dense<0.000000e+00> : vector<128xf32>
    %123 = vector.multi_reduction <add>, %122, %cst_84 [0] : vector<376x128xf32> to vector<128xf32>
    %124 = vector.shape_cast %123 : vector<128xf32> to vector<1x128xf32>
    %125 = arith.truncf %124 : vector<1x128xf32> to vector<1x128xbf16>
    %126 = arith.extf %125 : vector<1x128xbf16> to vector<1x128xf32>
    %127 = arith.subf %124, %126 : vector<1x128xf32>
    %128 = arith.truncf %127 : vector<1x128xf32> to vector<1x128xbf16>
    %cst_85 = arith.constant dense<0.000000e+00> : vector<1x128xf32>
    %129 = tpu.matmul %125, %1, %cst_85 {dimension_numbers = #tpu.dot_dimension_numbers<[1], [0], [0], [1], [0, 0, 1, 1], [], []>} : vector<1x128xbf16>, vector<128x128xbf16>, vector<1x128xf32> -> vector<1x128xf32>
    %cst_86 = arith.constant dense<0.000000e+00> : vector<1x128xf32>
    %130 = tpu.matmul %128, %1, %cst_86 {dimension_numbers = #tpu.dot_dimension_numbers<[1], [0], [0], [1], [0, 0, 1, 1], [], []>} : vector<1x128xbf16>, vector<128x128xbf16>, vector<1x128xf32> -> vector<1x128xf32>
    %131 = arith.addf %129, %130 : vector<1x128xf32>
    %cst_87 = arith.constant 9.765625E-4 : f32
    %132 = vector.broadcast %cst_87 : f32 to vector<1x128xf32>
    %133 = arith.mulf %131, %132 : vector<1x128xf32>
    %134 = vector.broadcast %133 : vector<1x128xf32> to vector<376x128xf32>
    %135 = arith.subf %120, %134 : vector<376x128xf32>
    %136 = vector.broadcast %0 : vector<376x1xf32> to vector<376x128xf32>
    %137 = arith.mulf %135, %136 : vector<376x128xf32>
    %138 = arith.mulf %137, %137 : vector<376x128xf32>
    %cst_88 = arith.constant dense<0.000000e+00> : vector<128xf32>
    %139 = vector.multi_reduction <add>, %138, %cst_88 [0] : vector<376x128xf32> to vector<128xf32>
    %140 = vector.shape_cast %139 : vector<128xf32> to vector<1x128xf32>
    %141 = arith.truncf %140 : vector<1x128xf32> to vector<1x128xbf16>
    %142 = arith.extf %141 : vector<1x128xbf16> to vector<1x128xf32>
    %143 = arith.subf %140, %142 : vector<1x128xf32>
    %144 = arith.truncf %143 : vector<1x128xf32> to vector<1x128xbf16>
    %cst_89 = arith.constant dense<0.000000e+00> : vector<1x128xf32>
    %145 = tpu.matmul %141, %1, %cst_89 {dimension_numbers = #tpu.dot_dimension_numbers<[1], [0], [0], [1], [0, 0, 1, 1], [], []>} : vector<1x128xbf16>, vector<128x128xbf16>, vector<1x128xf32> -> vector<1x128xf32>
    %cst_90 = arith.constant dense<0.000000e+00> : vector<1x128xf32>
    %146 = tpu.matmul %144, %1, %cst_90 {dimension_numbers = #tpu.dot_dimension_numbers<[1], [0], [0], [1], [0, 0, 1, 1], [], []>} : vector<1x128xbf16>, vector<128x128xbf16>, vector<1x128xf32> -> vector<1x128xf32>
    %147 = arith.addf %145, %146 : vector<1x128xf32>
    %cst_91 = arith.constant 9.765625E-4 : f32
    %148 = vector.broadcast %cst_91 : f32 to vector<1x128xf32>
    %149 = arith.mulf %147, %148 : vector<1x128xf32>
    %cst_92 = arith.constant 9.99999974E-6 : f32
    %150 = vector.broadcast %cst_92 : f32 to vector<1x128xf32>
    %151 = arith.addf %149, %150 : vector<1x128xf32>
    %152 = math.rsqrt %151 : vector<1x128xf32>
    %153 = arith.mulf %152, %6 : vector<1x128xf32>
    %154 = vector.broadcast %153 : vector<1x128xf32> to vector<376x128xf32>
    %155 = arith.mulf %137, %154 : vector<376x128xf32>
    %156 = vector.broadcast %7 : vector<1x128xf32> to vector<376x128xf32>
    %157 = arith.addf %155, %156 : vector<376x128xf32>
    %cst_93 = arith.constant 0.000000e+00 : f32
    %158 = vector.broadcast %cst_93 : f32 to vector<376x128xf32>
    %159 = arith.subf %158, %157 : vector<376x128xf32>
    %160 = math.exp %159 : vector<376x128xf32>
    %cst_94 = arith.constant 1.000000e+00 : f32
    %161 = vector.broadcast %cst_94 : f32 to vector<376x128xf32>
    %162 = arith.addf %161, %160 : vector<376x128xf32>
    %163 = tpu.reciprocal %162 {approx = true} : vector<376x128xf32> -> vector<376x128xf32>
    %164 = arith.mulf %157, %163 : vector<376x128xf32>
    %165 = vector.broadcast %0 : vector<376x1xf32> to vector<376x128xf32>
    %166 = arith.mulf %164, %165 : vector<376x128xf32>
    %167 = arith.truncf %166 : vector<376x128xf32> to vector<376x128xbf16>
    %c32_95 = arith.constant 32 : index
    %c0_96 = arith.constant 0 : index
    %168 = vector.load %arg10[%c32_95, %c0_96] : memref<456x128xbf16, #tpu.memory_space<vmem>>, vector<376x128xbf16>
    tpu.vector_store %arg10[%c32_95, %c0_96], %167 {strides = array<i32>} : memref<456x128xbf16, #tpu.memory_space<vmem>>, vector<376x128xbf16>,
    %c7_97 = arith.constant 7 : index
    %c0_98 = arith.constant 0 : index
    %169 = vector.load %arg10[%c7_97, %c0_98] : memref<456x128xbf16, #tpu.memory_space<vmem>>, vector<376x128xbf16>
    %c0_99 = arith.constant 0 : index
    %c0_100 = arith.constant 0 : index
    %c0_101 = arith.constant 0 : index
    %170 = vector.load %arg8[%c0_99, %c0_100, %c0_101] : memref<9x128x128xbf16, #tpu.memory_space<vmem>>, vector<1x128x128xbf16>
    %171 = vector.shape_cast %170 : vector<1x128x128xbf16> to vector<128x128xbf16>
    %cst_102 = arith.constant dense<0.000000e+00> : vector<376x128xf32>
    %172 = tpu.matmul %169, %171, %cst_102 {dimension_numbers = #tpu.dot_dimension_numbers<[1], [0], [0], [1], [0, 0, 1, 1], [], []>} : vector<376x128xbf16>, vector<128x128xbf16>, vector<376x128xf32> -> vector<376x128xf32>
    %c8_103 = arith.constant 8 : index
    %c0_104 = arith.constant 0 : index
    %173 = vector.load %arg10[%c8_103, %c0_104] : memref<456x128xbf16, #tpu.memory_space<vmem>>, vector<376x128xbf16>
    %c1_105 = arith.constant 1 : index
    %c0_106 = arith.constant 0 : index
    %c0_107 = arith.constant 0 : index
    %174 = vector.load %arg8[%c1_105, %c0_106, %c0_107] : memref<9x128x128xbf16, #tpu.memory_space<vmem>>, vector<1x128x128xbf16>
    %175 = vector.shape_cast %174 : vector<1x128x128xbf16> to vector<128x128xbf16>
    %cst_108 = arith.constant dense<0.000000e+00> : vector<376x128xf32>
    %176 = tpu.matmul %173, %175, %cst_108 {dimension_numbers = #tpu.dot_dimension_numbers<[1], [0], [0], [1], [0, 0, 1, 1], [], []>} : vector<376x128xbf16>, vector<128x128xbf16>, vector<376x128xf32> -> vector<376x128xf32>
    %177 = arith.addf %172, %176 : vector<376x128xf32>
    %c9_109 = arith.constant 9 : index
    %c0_110 = arith.constant 0 : index
    %178 = vector.load %arg10[%c9_109, %c0_110] : memref<456x128xbf16, #tpu.memory_space<vmem>>, vector<376x128xbf16>
    %c2_111 = arith.constant 2 : index
    %c0_112 = arith.constant 0 : index
    %c0_113 = arith.constant 0 : index
    %179 = vector.load %arg8[%c2_111, %c0_112, %c0_113] : memref<9x128x128xbf16, #tpu.memory_space<vmem>>, vector<1x128x128xbf16>
    %180 = vector.shape_cast %179 : vector<1x128x128xbf16> to vector<128x128xbf16>
    %cst_114 = arith.constant dense<0.000000e+00> : vector<376x128xf32>
    %181 = tpu.matmul %178, %180, %cst_114 {dimension_numbers = #tpu.dot_dimension_numbers<[1], [0], [0], [1], [0, 0, 1, 1], [], []>} : vector<376x128xbf16>, vector<128x128xbf16>, vector<376x128xf32> -> vector<376x128xf32>
    %182 = arith.addf %177, %181 : vector<376x128xf32>
    %c31_115 = arith.constant 31 : index
    %c0_116 = arith.constant 0 : index
    %183 = vector.load %arg10[%c31_115, %c0_116] : memref<456x128xbf16, #tpu.memory_space<vmem>>, vector<376x128xbf16>
    %c3_117 = arith.constant 3 : index
    %c0_118 = arith.constant 0 : index
    %c0_119 = arith.constant 0 : index
    %184 = vector.load %arg8[%c3_117, %c0_118, %c0_119] : memref<9x128x128xbf16, #tpu.memory_space<vmem>>, vector<1x128x128xbf16>
    %185 = vector.shape_cast %184 : vector<1x128x128xbf16> to vector<128x128xbf16>
    %cst_120 = arith.constant dense<0.000000e+00> : vector<376x128xf32>
    %186 = tpu.matmul %183, %185, %cst_120 {dimension_numbers = #tpu.dot_dimension_numbers<[1], [0], [0], [1], [0, 0, 1, 1], [], []>} : vector<376x128xbf16>, vector<128x128xbf16>, vector<376x128xf32> -> vector<376x128xf32>
    %187 = arith.addf %182, %186 : vector<376x128xf32>
    %c32_121 = arith.constant 32 : index
    %c0_122 = arith.constant 0 : index
    %188 = vector.load %arg10[%c32_121, %c0_122] : memref<456x128xbf16, #tpu.memory_space<vmem>>, vector<376x128xbf16>
    %c4_123 = arith.constant 4 : index
    %c0_124 = arith.constant 0 : index
    %c0_125 = arith.constant 0 : index
    %189 = vector.load %arg8[%c4_123, %c0_124, %c0_125] : memref<9x128x128xbf16, #tpu.memory_space<vmem>>, vector<1x128x128xbf16>
    %190 = vector.shape_cast %189 : vector<1x128x128xbf16> to vector<128x128xbf16>
    %cst_126 = arith.constant dense<0.000000e+00> : vector<376x128xf32>
    %191 = tpu.matmul %188, %190, %cst_126 {dimension_numbers = #tpu.dot_dimension_numbers<[1], [0], [0], [1], [0, 0, 1, 1], [], []>} : vector<376x128xbf16>, vector<128x128xbf16>, vector<376x128xf32> -> vector<376x128xf32>
    %192 = arith.addf %187, %191 : vector<376x128xf32>
    %c33_127 = arith.constant 33 : index
    %c0_128 = arith.constant 0 : index
    %193 = vector.load %arg10[%c33_127, %c0_128] : memref<456x128xbf16, #tpu.memory_space<vmem>>, vector<376x128xbf16>
    %c5_129 = arith.constant 5 : index
    %c0_130 = arith.constant 0 : index
    %c0_131 = arith.constant 0 : index
    %194 = vector.load %arg8[%c5_129, %c0_130, %c0_131] : memref<9x128x128xbf16, #tpu.memory_space<vmem>>, vector<1x128x128xbf16>
    %195 = vector.shape_cast %194 : vector<1x128x128xbf16> to vector<128x128xbf16>
    %cst_132 = arith.constant dense<0.000000e+00> : vector<376x128xf32>
    %196 = tpu.matmul %193, %195, %cst_132 {dimension_numbers = #tpu.dot_dimension_numbers<[1], [0], [0], [1], [0, 0, 1, 1], [], []>} : vector<376x128xbf16>, vector<128x128xbf16>, vector<376x128xf32> -> vector<376x128xf32>
    %197 = arith.addf %192, %196 : vector<376x128xf32>
    %c55_133 = arith.constant 55 : index
    %c0_134 = arith.constant 0 : index
    %198 = vector.load %arg10[%c55_133, %c0_134] : memref<456x128xbf16, #tpu.memory_space<vmem>>, vector<376x128xbf16>
    %c6_135 = arith.constant 6 : index
    %c0_136 = arith.constant 0 : index
    %c0_137 = arith.constant 0 : index
    %199 = vector.load %arg8[%c6_135, %c0_136, %c0_137] : memref<9x128x128xbf16, #tpu.memory_space<vmem>>, vector<1x128x128xbf16>
    %200 = vector.shape_cast %199 : vector<1x128x128xbf16> to vector<128x128xbf16>
    %cst_138 = arith.constant dense<0.000000e+00> : vector<376x128xf32>
    %201 = tpu.matmul %198, %200, %cst_138 {dimension_numbers = #tpu.dot_dimension_numbers<[1], [0], [0], [1], [0, 0, 1, 1], [], []>} : vector<376x128xbf16>, vector<128x128xbf16>, vector<376x128xf32> -> vector<376x128xf32>
    %202 = arith.addf %197, %201 : vector<376x128xf32>
    %c56_139 = arith.constant 56 : index
    %c0_140 = arith.constant 0 : index
    %203 = vector.load %arg10[%c56_139, %c0_140] : memref<456x128xbf16, #tpu.memory_space<vmem>>, vector<376x128xbf16>
    %c7_141 = arith.constant 7 : index
    %c0_142 = arith.constant 0 : index
    %c0_143 = arith.constant 0 : index
    %204 = vector.load %arg8[%c7_141, %c0_142, %c0_143] : memref<9x128x128xbf16, #tpu.memory_space<vmem>>, vector<1x128x128xbf16>
    %205 = vector.shape_cast %204 : vector<1x128x128xbf16> to vector<128x128xbf16>
    %cst_144 = arith.constant dense<0.000000e+00> : vector<376x128xf32>
    %206 = tpu.matmul %203, %205, %cst_144 {dimension_numbers = #tpu.dot_dimension_numbers<[1], [0], [0], [1], [0, 0, 1, 1], [], []>} : vector<376x128xbf16>, vector<128x128xbf16>, vector<376x128xf32> -> vector<376x128xf32>
    %207 = arith.addf %202, %206 : vector<376x128xf32>
    %c57_145 = arith.constant 57 : index
    %c0_146 = arith.constant 0 : index
    %208 = vector.load %arg10[%c57_145, %c0_146] : memref<456x128xbf16, #tpu.memory_space<vmem>>, vector<376x128xbf16>
    %c8_147 = arith.constant 8 : index
    %c0_148 = arith.constant 0 : index
    %c0_149 = arith.constant 0 : index
    %209 = vector.load %arg8[%c8_147, %c0_148, %c0_149] : memref<9x128x128xbf16, #tpu.memory_space<vmem>>, vector<1x128x128xbf16>
    %210 = vector.shape_cast %209 : vector<1x128x128xbf16> to vector<128x128xbf16>
    %cst_150 = arith.constant dense<0.000000e+00> : vector<376x128xf32>
    %211 = tpu.matmul %208, %210, %cst_150 {dimension_numbers = #tpu.dot_dimension_numbers<[1], [0], [0], [1], [0, 0, 1, 1], [], []>} : vector<376x128xbf16>, vector<128x128xbf16>, vector<376x128xf32> -> vector<376x128xf32>
    %212 = arith.addf %207, %211 : vector<376x128xf32>
    %c0_151 = arith.constant 0 : index
    %c0_152 = arith.constant 0 : index
    %c0_153 = arith.constant 0 : index
    %213 = vector.load %arg1[%c0_151, %c0_152, %c0_153] : memref<1x376x128xf32, #tpu.memory_space<vmem>>, vector<1x376x128xf32>
    %214 = vector.shape_cast %213 : vector<1x376x128xf32> to vector<376x128xf32>
    %215 = vector.broadcast %8 : vector<1x128xf32> to vector<376x128xf32>
    %216 = arith.addf %212, %215 : vector<376x128xf32>
    %217 = arith.addf %214, %216 : vector<376x128xf32>
    %c0_154 = arith.constant 0 : index
    %c0_155 = arith.constant 0 : index
    %c0_156 = arith.constant 0 : index
    %218 = vector.load %arg9[%c0_154, %c0_155, %c0_156] : memref<1x376x128xf32, #tpu.memory_space<vmem>>, vector<1x376x128xf32>
    %219 = vector.shape_cast %218 : vector<1x376x128xf32> to vector<376x128xf32>
    %220 = vector.shape_cast %217 : vector<376x128xf32> to vector<1x376x128xf32>
    tpu.vector_store %arg9[%c0_154, %c0_155, %c0_156], %220 {strides = array<i32>} : memref<1x376x128xf32, #tpu.memory_space<vmem>>, vector<1x376x128xf32>,
    return
  }
  func.func @transform_0(%arg0: i32) -> (i32, i32, i32) {
    %c0_i32 = arith.constant 0 : i32
    %c0_i32_0 = arith.constant 0 : i32
    %c0_i32_1 = arith.constant 0 : i32
    return %arg0, %c0_i32, %c0_i32_0 : i32, i32, i32
  }
  func.func @transform_1(%arg0: i32) -> (i32, i32, i32) {
    %c0_i32 = arith.constant 0 : i32
    %c0_i32_0 = arith.constant 0 : i32
    %c0_i32_1 = arith.constant 0 : i32
    return %arg0, %c0_i32, %c0_i32_0 : i32, i32, i32
  }
  func.func @transform_2(%arg0: i32) -> (i32, i32) {
    %c0_i32 = arith.constant 0 : i32
    %c0_i32_0 = arith.constant 0 : i32
    %c0_i32_1 = arith.constant 0 : i32
    return %c0_i32, %c0_i32_0 : i32, i32
  }
  func.func @transform_3(%arg0: i32) -> (i32, i32) {
    %c0_i32 = arith.constant 0 : i32
    %c0_i32_0 = arith.constant 0 : i32
    %c0_i32_1 = arith.constant 0 : i32
    return %c0_i32, %c0_i32_0 : i32, i32
  }
  func.func @transform_4(%arg0: i32) -> (i32, i32) {
    %c0_i32 = arith.constant 0 : i32
    %c0_i32_0 = arith.constant 0 : i32
    %c0_i32_1 = arith.constant 0 : i32
    return %c0_i32, %c0_i32_0 : i32, i32
  }
  func.func @transform_5(%arg0: i32) -> (i32, i32, i32) {
    %c0_i32 = arith.constant 0 : i32
    %c0_i32_0 = arith.constant 0 : i32
    %c0_i32_1 = arith.constant 0 : i32
    %c0_i32_2 = arith.constant 0 : i32
    return %c0_i32, %c0_i32_0, %c0_i32_1 : i32, i32, i32
  }
  func.func @transform_6(%arg0: i32) -> (i32, i32) {
    %c0_i32 = arith.constant 0 : i32
    %c0_i32_0 = arith.constant 0 : i32
    %c0_i32_1 = arith.constant 0 : i32
    return %c0_i32, %c0_i32_0 : i32, i32
  }
  func.func @transform_7(%arg0: i32) -> (i32, i32, i32) {
    %c0_i32 = arith.constant 0 : i32
    %c0_i32_0 = arith.constant 0 : i32
    %c0_i32_1 = arith.constant 0 : i32
    %c0_i32_2 = arith.constant 0 : i32
    return %c0_i32, %c0_i32_0, %c0_i32_1 : i32, i32, i32
  }
  func.func @transform_8(%arg0: i32) -> (i32, i32, i32) {
    %c0_i32 = arith.constant 0 : i32
    %c0_i32_0 = arith.constant 0 : i32
    %c0_i32_1 = arith.constant 0 : i32
    return %arg0, %c0_i32, %c0_i32_0 : i32, i32, i32
  }
}

</mosaic_0001>

<bundles_post_ra>
// kernel: tpu_custom_call.1
= control target key start
LH: loop header
LB: loop body
LE: loop exit
PB: predicated region body
PF: predicated region fallthrough
CT: control target
= control target key end

     0   :  { %s24992_s0 = inlined_call_operand.hbm [shape: f32[2,376,128], index: 0, kind: input, shape index: {}]   ;;  %s24993_s1 = inlined_call_operand.vmem [shape: f32[2,1,128], index: 1, kind: input, shape index: {}]   ;;  %s24994_s2 = inlined_call_operand.vmem [shape: f32[376,1], index: 2, kind: input, shape index: {}]   ;;  %s24995_s3 = inlined_call_operand.vmem [shape: bf16[128,128], index: 3, kind: input, shape index: {}]   ;;  %s24996_s4 = inlined_call_operand.vmem [shape: f32[8,128], index: 4, kind: input, shape index: {}]   ;;  %s24997_s5 = inlined_call_operand.hbm [shape: bf16[9,128,128], index: 5, kind: input, shape index: {}]   ;;  %s24998_s6 = inlined_call_operand.vmem [shape: bf16[128,128], index: 6, kind: input, shape index: {}]   ;;  %s24999_s7 = inlined_call_operand.hbm [shape: bf16[9,128,128], index: 7, kind: input, shape index: {}]   ;;  %s25000_s8 = inlined_call_operand.hbm [shape: f32[2,376,128], index: 8, kind: output, shape index: {}]  }
   0x1   :  { %25362 = sst [smem:[#allocation125_spill]] %s24997_s5 }
   0x2   :  { %25363 = sst [smem:[#allocation126_spill]] %s24999_s7 }
   0x3   :  { %13 = vsyncpa [#allocation4], 0 }
   0x4   :  { %15 = vsyncpa [#allocation4 + $0x1], 0 }
   0x5   :  { %16 = vsyncpa [#allocation7], 0 }
   0x6   :  { %17 = vsyncpa [#allocation5], 0 }
   0x7   :  { %19 = vsyncpa [#allocation5 + $0x1], 0  ;;  %s19544_s27 = smov 0   ;;  %s19546_s28 = smov 0  }
   0x8   :  { %s19548_s29 = smov 0   ;;  %s19550_s30 = smov 0  }
   0x9 LB: > { %s19565_s9 = sadd.s32 4294967295, %s19484_s30   ;;  %s14362_s10 = sadd.s32 4294967294, %s19484_s30   ;;  %s19484_s30 = sphi %s19550_s30, %s26216_s30   ;;  %s19480_s29 = sphi %s19548_s29, %s26215_s29   ;;  %s19476_s28 = sphi %s19546_s28, %s26214_s28   ;;  %s19472_s27 = sphi %s19544_s27, %s26213_s27  }
   0xa   : > { %p45_p0 = scmp.ne.s32.totalorder %s19476_s28, %s19472_s27  ;;  %p25001_p1 = scmp.eq.s32.totalorder %s19565_s9, 0 }
   0xb   : > { %p227_p3 = scmp.eq.s32.totalorder %s14362_s10, 1  ;;  %p14363_p5 = scmp.ge.s32.totalorder %s19484_s30, 1 }
   0xc   : > { %p19574_p4 = por %p25001_p1, %p45_p0  ;;  %p234_p7 = scmp.lt.s32.totalorder %s19484_s30, 3 }
   0xd   : > { %p19579_p6 = por %p227_p3, %p45_p0  ;;  %s19486_s14 = smov [#allocation6]  }
   0xe   : > { %s25364_s11 = scalar_select %p19574_p4, 1, 0 }
   0xf   : > { %s25365_s12 = scalar_select %p19579_p6, 1, 0 }
  0x10   : > { %p19584_p8 = pnand %p14363_p5, %p234_p7  ;;  %s255_s15 = sshll.u32 %s19486_s14, 4  ;;  %s19588_s15 = int_to_ptr.vmem [resolvable:$true] %s255_s15 }
  0x11   : > { %s19487_s17 = smov [#allocation8]   ;;  %s25368_s5 = sld [smem:[#allocation125_spill]] }
  0x12   : > { %p18174_p9 = pneg %p19584_p8  ;;  %s271_s18 = sshll.u32 %s19487_s17, 4  ;;  %s19599_s18 = int_to_ptr.vmem [resolvable:$true] %s271_s18 }
  0x14   : > { %p19595_p11 = pnand %p18174_p9, %p25001_p1 }
  0x16   : > { %p19330_p13 = pneg %p19595_p11 }
  0x17   : > { %s19328_s21 = scalar_lea.hbm %s25368_s5, 9216 }
  0x18   : > { %p19329_p12 = scmp.ne.s32.totalorder %s25368_s5, %s19328_s21  ;;  %p19335_p5 = scmp.lt.u32.totalorder %s19328_s21, %s25368_s5 }
  0x1a   : > { %p19331_p0 = pnand %p19330_p13, %p19329_p12 }
  0x1c   : > { %p19332_p3 = pneg %p19331_p0 }
  0x1e   : > { %p19337_p7 = pnand %p19335_p5, %p19332_p3 }
  0x20   : > { %19340 = shalt.err (!%p19337_p7)
}
  0x21   : > { %s19341_s26 = scalar_lea.vmem %s19588_s15, 9216  ;;  %p19349_p2 = scmp.lt.s32.totalorder %s19588_s15, %s19588_s15 }
  0x22   : > { %p19342_p9 = scmp.ne.s32.totalorder %s19588_s15, %s19341_s26  ;;  %p19350_p12 = scmp.lt.s32.totalorder %s19341_s26, %s19341_s26 }
  0x24   : > { %p19344_p10 = pnand %p19342_p9, %p19330_p13  ;;  %p19351_p0 = por %p19350_p12, %p19349_p2 }
  0x26   : > { %p19345_p1 = pneg %p19344_p10 }
  0x28   : > { %p19352_p6 = pnand %p19351_p0, %p19345_p1 }
  0x2a   : > { %19355 = shalt.err (!%p19352_p6)
}
  0x2b   : > { %s19488_s10 = smov 64   ;;  %s19489_s14 = smov 4  }
  0x2c   : > { %18177 = dma.hbm_to_vmem [thread:$0]  (!%p19595_p11), %s25368_s5, 9216, %s19588_s15, [#allocation7], %s19488_s10, %s19488_s10, %s19489_s14  }
  0x2d   : > { %s25369_s7 = sld [smem:[#allocation126_spill]] }
  0x33   : > { %s19356_s22 = scalar_lea.hbm %s25369_s7, 9216 }
  0x34   : > { %p19357_p2 = scmp.ne.s32.totalorder %s25369_s7, %s19356_s22  ;;  %p19363_p10 = scmp.lt.u32.totalorder %s19356_s22, %s25369_s7 }
  0x36   : > { %p19359_p1 = pnand %p19357_p2, %p19330_p13 }
  0x38   : > { %p19360_p6 = pneg %p19359_p1 }
  0x3a   : > { %p19365_p3 = pnand %p19363_p10, %p19360_p6 }
  0x3c   : > { %19368 = shalt.err (!%p19365_p3)
}
  0x3d   : > { %s19369_s15 = scalar_lea.vmem %s19599_s18, 9216  ;;  %p19377_p12 = scmp.lt.s32.totalorder %s19599_s18, %s19599_s18 }
  0x3e   : > { %p19370_p5 = scmp.ne.s32.totalorder %s19599_s18, %s19369_s15  ;;  %p19378_p0 = scmp.lt.s32.totalorder %s19369_s15, %s19369_s15 }
  0x40   : > { %p19372_p7 = pnand %p19370_p5, %p19330_p13  ;;  %p19379_p2 = por %p19378_p0, %p19377_p12 }
  0x42   : > { %p19373_p9 = pneg %p19372_p7 }
  0x44   : > { %p19380_p1 = pnand %p19379_p2, %p19373_p9 }
  0x46   : > { %19383 = shalt.err (!%p19380_p1)
}
  0x47   : > { %18180 = dma.hbm_to_vmem [thread:$0]  (!%p19595_p11), %s25369_s7, 9216, %s19599_s18, [#allocation7], %s19488_s10, %s19488_s10, %s19489_s14  }
  0x48   : > { %s19654_s20 = sadd.s32 1, %s19484_s30   ;;  %s32_s16 = sadd.s32 1, %s19480_s29 }
  0x49   : > { %s29_s21 = ssub.s32 %s19484_s30, %s19654_s20  ;;  %p39_p13 = scmp.ne.s32.totalorder %s19480_s29, %s19476_s28 }
  0x4a   : > { %p30_p6 = scmp.eq.s32.totalorder %s29_s21, 0  ;;  %p40_p10 = scmp.eq.s32.totalorder %s19484_s30, 0 }
  0x4b   : > { %p25370_p3 = scmp.eq.s32.totalorder %s19565_s9, 1  ;;  %p18191_p7 = scmp.lt.s32.totalorder %s19484_s30, 2 }
  0x4c   : > { %s19670_s23 = scalar_select %p30_p6, %s19480_s29, %s32_s16  }
  0x4d   : > { %p19664_p5 = por %p25370_p3, %p39_p13  ;;  %p41_p9 = por %p40_p10, %p39_p13 }
  0x4e   : > { %s285_s24 = sand.u32 1, %s19480_s29   ;;  %s18159_s18 = smul.u32 6016, %s19484_s30 }
  0x4f   : > { %s25371_s22 = scalar_select %p19664_p5, 1, 0 }
  0x50   : > { %s18158_s25 = smul.u32 376, %s285_s24  ;;  %p19674_p11 = pnand %p18191_p7, %p41_p9 }
  0x51   : > { %s19681_s15 = scalar_lea.hbm %s24992_s0, %s18159_s18  ;;  %s19685_s16 = scalar_lea.sflag [#allocation4], %s285_s24 }
  0x52   : > { %s289_s17 = scalar_lea.vmem [#allocation3], %s18158_s25  ;;  %s19384_s21 = scalar_lea.hbm %s19681_s15, 6016 }
  0x53   : > { %s296_s19 = sshll.u32 %s289_s17, 4  ;;  %p19385_p12 = scmp.ne.s32.totalorder %s19681_s15, %s19384_s21  ;;  %s19683_s19 = int_to_ptr.vmem [resolvable:$true] %s296_s19 }
  0x54   : > { %p19386_p0 = pneg %p19674_p11  ;;  %s19389_s26 = scalar_lea.hbm %s24992_s0, 12032 }
  0x55   : > { %p19390_p13 = scmp.lt.u32.totalorder %s19681_s15, %s24992_s0  ;;  %p19391_p6 = scmp.lt.u32.totalorder %s19389_s26, %s19384_s21 }
  0x56   : > { %p19387_p2 = pnand %p19386_p0, %p19385_p12  ;;  %p19393_p3 = scmp.lt.u32.totalorder %s19384_s21, %s19681_s15 }
  0x57   : > { %p19392_p10 = por %p19391_p6, %p19390_p13 }
  0x58   : > { %p19388_p1 = pneg %p19387_p2 }
  0x59   : > { %p19394_p7 = por %p19393_p3, %p19392_p10 }
  0x5b   : > { %p19395_p9 = pnand %p19394_p7, %p19388_p1 }
  0x5d   : > { %19398 = shalt.err (!%p19395_p9)
}
  0x5e   : > { %s19399_s24 = scalar_lea.vmem %s19683_s19, 6016  ;;  %s19490_s25 = smov [#allocation3]  }
  0x5f   : > { %p19400_p12 = scmp.ne.s32.totalorder %s19683_s19, %s19399_s24  ;;  %s19404_s17 = sshll.u32 %s19490_s25, 4  ;;  %s19405_s17 = int_to_ptr.vmem [resolvable:$false] %s19404_s17 }
  0x60   : > { %s19406_s5 = scalar_lea.vmem %s19405_s17, 12032  ;;  %p19407_p4 = scmp.lt.s32.totalorder %s19683_s19, %s19405_s17 }
  0x61   : > { %p19402_p2 = pnand %p19400_p12, %p19386_p0  ;;  %p19408_p13 = scmp.lt.s32.totalorder %s19406_s5, %s19399_s24 }
  0x63   : > { %p19403_p5 = pneg %p19402_p2  ;;  %p19409_p6 = por %p19408_p13, %p19407_p4 }
  0x65   : > { %p19410_p10 = pnand %p19409_p6, %p19403_p5 }
  0x67   : > { %19413 = shalt.err (!%p19410_p10)
}
  0x68   : > { %s19491_s7 = smov 128   ;;  %s19492_s21 = smov 8  }
  0x69   : > { %18184 = dma.hbm_to_vmem [thread:$0]  (!%p19674_p11), %s19681_s15, 6016, %s19683_s19, %s19685_s16, %s19491_s7, %s19491_s7, %s19492_s21  }
  0x6a   : > { %314 = sbr.rel (%p19584_p8) target bundleno = 3822 (0xeee), region = 52 }
  0x71   : > { %s19716_s18 = sand.u32 1, %s19476_s28   ;;  %p25373_p4 = scmp.ne.s32.totalorder %s25364_s11, 0 }
  0x72   : > { %s18160_s14 = smul.u32 376, %s19716_s18  ;;  %s317_s26 = scalar_lea.sflag [#allocation4], %s19716_s18 }
  0x74   : > { %s19722_s24 = scalar_lea.vmem [#allocation3], %s18160_s14 }
  0x75   : > { %19459 = dma.done.wait (%p25373_p4), %s317_s26, 6016  }
  0x76   : > { %19461 = vsyncadd (%p25373_p4), %s317_s26, 4294961280  ;;  %p25374_p5 = scmp.eq.s32.totalorder %s19565_s9, 0 }
  0x78   : > { %19463 = dma.done.wait (%p25374_p5), [#allocation7], 18432   ;;  %p25375_p8 = pmov %p25374_p5 }
  0x79   : > { %v25004_v0 = vmov 0.0   ;;  %vm19494_vm0 = vmmov 0   ;;  %v19741_v1 = vld [vmem:[%s24995_s3] sm:$0xff]   ;;  %v18241_v2 = vld [vmem:[%s24995_s3 + $0x8] sm:$0xff]   ;;  %v18242_v3 = vld [vmem:[%s24995_s3 + $0x10] sm:$0xff]   ;;  %v19495_v17 = vmov 0  }
  0x7a   : > { %19465 = vsyncadd (%p25375_p8), [#allocation7], 4294948864  ;;  %16090 = vmatprep.subr.bf16.mxu0 %v25004_v0  ;;  %16106 = vmatprep.mubr.msk.bf16.mxu0 %vm19494_vm0, %v25004_v0  ;;  %v448_v4 = vld [vmem:[%s19722_s24] sm:$0xff]  ;;  %v449_v5 = vld [vmem:[%s19722_s24 + $0x8] sm:$0xff]  ;;  %438 = vst [vmem:[#allocation2] sm:$0xf] %v19495_v17 }
  0x7b   : > { %16130 = vmatprep.subr.bf16.mxu1 %v25004_v0  ;;  %16146 = vmatprep.mubr.msk.bf16.mxu1 %vm19494_vm0, %v25004_v0  ;;  %v450_v6 = vld [vmem:[%s19722_s24 + $0x10] sm:$0xff]  ;;  %v495_v7 = vadd.f32 %v449_v5, %v448_v4  ;;  %v451_v9 = vld [vmem:[%s19722_s24 + $0x18] sm:$0xff]  ;;  %v452_v11 = vld [vmem:[%s19722_s24 + $0x20] sm:$0xff]  ;;  %439 = vst [vmem:[#allocation2 + $0x4] sm:$0xf] %v19495_v17  ;;  %p364_p11 = scmp.lt.s32.totalorder %s19565_s9, 1 }
  0x7c   : > { %16091 = vmatpush3.bf16.msra.mxu0 %v19741_v1  ;;  %16131 = vmatpush3.bf16.msra.mxu1 %v19741_v1  ;;  %v18243_v8 = vld [vmem:[%s24995_s3 + $0x18] sm:$0xff]   ;;  %v18244_v13 = vld [vmem:[%s24995_s3 + $0x20] sm:$0xff]   ;;  %440 = vst [vmem:[#allocation2 + $0x8] sm:$0xf] %v19495_v17  ;;  %441 = vst [vmem:[#allocation2 + $0xc] sm:$0xf] %v19495_v17 }
  0x7d   : > { %16092 = vmatprep.subr.bf16.mxu0 %v25004_v0  ;;  %16132 = vmatprep.subr.bf16.mxu1 %v25004_v0  ;;  %v496_v10 = vadd.f32 %v495_v7, %v450_v6  ;;  %v453_v14 = vld [vmem:[%s19722_s24 + $0x28] sm:$0xff]  ;;  %v454_v16 = vld [vmem:[%s19722_s24 + $0x30] sm:$0xff]  ;;  %442 = vst [vmem:[#allocation2 + $0xcc] sm:$0xf] %v19495_v17  ;;  %443 = vst [vmem:[#allocation2 + $0xd0] sm:$0xf] %v19495_v17 }
  0x7e   : > { %18238 = vset.pattern.permute.xlu0 %v19495_v17  ;;  %444 = vst [vmem:[#allocation2 + $0xd4] sm:$0xf] %v19495_v17  ;;  %445 = vst [vmem:[#allocation2 + $0xd8] sm:$0xf] %v19495_v17  ;;  %18239 = vset.pattern.permute.xlu1 %v19495_v17  ;;  %v18245_v19 = vld [vmem:[%s24995_s3 + $0x28] sm:$0xff]   ;;  %v455_v20 = vld [vmem:[%s19722_s24 + $0x38] sm:$0xff] }
  0x7f   : > { %v497_v12 = vadd.f32 %v496_v10, %v451_v9  ;;  %v456_v22 = vld [vmem:[%s19722_s24 + $0x40] sm:$0xff]  ;;  %v18246_v24 = vld [vmem:[%s24995_s3 + $0x30] sm:$0xff]   ;;  %vm2388_vm1 = vsmask.f32 4352  ;;  %vm3085_vm2 = vsmask.f32 7424 }
  0x80   : > { %16093 = vmatpush3.bf16.msra.mxu0 %v18241_v2  ;;  %16133 = vmatpush3.bf16.msra.mxu1 %v18241_v2  ;;  %v457_v25 = vld [vmem:[%s19722_s24 + $0x48] sm:$0xff]  ;;  %v458_v28 = vld [vmem:[%s19722_s24 + $0x50] sm:$0xff]  ;;  %v459_v33 = vld [vmem:[%s19722_s24 + $0x58] sm:$0xff]  ;;  %s365_s10 = scalar_select %p364_p11, %s19565_s9, 1 }
  0x81   : > { %16094 = vmatprep.subr.bf16.mxu0 %v25004_v0  ;;  %16134 = vmatprep.subr.bf16.mxu1 %v25004_v0  ;;  %v498_v15 = vadd.f32 %v497_v12, %v452_v11  ;;  %v368_v27 = vld [vmem:[%s24994_s2] sm:$0xff]  ;;  %v369_v30 = vld [vmem:[%s24994_s2 + $0x8] sm:$0xff]  ;;  %v370_v31 = vld [vmem:[%s24994_s2 + $0x10] sm:$0xff]  ;;  %s24767_s11 = scalar_lea.vmem [#allocation9], %s18160_s14  ;;  %s18161_s14 = smul.u32 6016, %s19565_s9 }
  0x82   : > { %733 = vperm.xlu0 %18238, %v368_v27   ;;  %v18247_v32 = vld [vmem:[%s24995_s3 + $0x38] sm:$0xff]   ;;  %743 = vperm.xlu1 %18239, %v370_v31   ;;  %v372_v38 = vld [vmem:[%s24994_s2 + $0x20] sm:$0xff]  ;;  %v373_v41 = vld [vmem:[%s24994_s2 + $0x28] sm:$0xff]  ;;  %s366_s16 = scalar_lea.vmem %s24993_s1, %s365_s10  ;;  %s14261_s13 = sshll.u32 %s24767_s11, 4  ;;  %s24947_s13 = int_to_ptr.vmem [resolvable:$true] %s14261_s13 }
  0x83   : > { %v499_v18 = vadd.f32 %v498_v15, %v453_v14  ;;  %v371_v35 = vld [vmem:[%s24994_s2 + $0x18] sm:$0xff]  ;;  %v461_v39 = vld [vmem:[%s19722_s24 + $0x68] sm:$0xff]  ;;  %s24944_s19 = scalar_lea.hbm %s25000_s8, %s18161_s14  ;;  %s14248_s9 = scalar_lea.sflag [#allocation5], %s19716_s18 }
  0x84   : > { %16095 = vmatpush3.bf16.msra.mxu0 %v18242_v3  ;;  %16135 = vmatpush3.bf16.msra.mxu1 %v18242_v3  ;;  %v460_v36 = vld [vmem:[%s19722_s24 + $0x60] sm:$0xff]  ;;  %v462_v42 = vld [vmem:[%s19722_s24 + $0x70] sm:$0xff]  ;;  %v463_v45 = vld [vmem:[%s19722_s24 + $0x78] sm:$0xff]  ;;  %p26210_p1 = scmp.ne.s32.totalorder %s25371_s22, 0 }
  0x85   : > { %16096 = vmatprep.subr.bf16.mxu0 %v25004_v0  ;;  %16136 = vmatprep.subr.bf16.mxu1 %v25004_v0  ;;  %v500_v21 = vadd.f32 %v499_v18, %v454_v16  ;;  %v374_v44 = vld [vmem:[%s24994_s2 + $0x30] sm:$0xff]  ;;  %v375_v47 = vld [vmem:[%s24994_s2 + $0x38] sm:$0xff]  ;;  %v376_v50 = vld [vmem:[%s24994_s2 + $0x40] sm:$0xff] }
  0x86   : > { %738 = vperm.xlu0 %18238, %v369_v30   ;;  %748 = vperm.xlu1 %18239, %v371_v35   ;;  %v464_v48 = vld [vmem:[%s19722_s24 + $0x80] sm:$0xff]  ;;  %v465_v51 = vld [vmem:[%s19722_s24 + $0x88] sm:$0xff]  ;;  %v466_v52 = vld [vmem:[%s19722_s24 + $0x90] sm:$0xff] }
  0x87   : > { %v501_v23 = vadd.f32 %v500_v21, %v455_v20  ;;  %v377_v54 = vld [vmem:[%s24994_s2 + $0x48] sm:$0xff]  ;;  %v467_v55 = vld [vmem:[%s19722_s24 + $0x98] sm:$0xff] }
  0x88   : > { %16097 = vmatpush3.bf16.msra.mxu0 %v18243_v8  ;;  %16137 = vmatpush3.bf16.msra.mxu1 %v18243_v8  ;;  %v378_v56 = vld [vmem:[%s24994_s2 + $0x50] sm:$0xff]  ;;  %v379_v58 = vld [vmem:[%s24994_s2 + $0x58] sm:$0xff]  ;;  %v380_v61 = vld [vmem:[%s24994_s2 + $0x60] sm:$0xff] }
  0x89   : > { %16098 = vmatprep.subr.bf16.mxu0 %v25004_v0  ;;  %16138 = vmatprep.subr.bf16.mxu1 %v25004_v0  ;;  %v502_v26 = vadd.f32 %v501_v23, %v456_v22  ;;  %v468_v59 = vld [vmem:[%s19722_s24 + $0xa0] sm:$0xff]  ;;  %v469_v62 = vld [vmem:[%s19722_s24 + $0xa8] sm:$0xff]  ;;  %v470_v3 = vld [vmem:[%s19722_s24 + $0xb0] sm:$0xff] }
  0x8a   : > { %753 = vperm.xlu0 %18238, %v372_v38   ;;  %758 = vperm.xlu1 %18239, %v373_v41   ;;  %v381_v2 = vld [vmem:[%s24994_s2 + $0x68] sm:$0xff]  ;;  %v382_v5 = vld [vmem:[%s24994_s2 + $0x70] sm:$0xff]  ;;  %v383_v8 = vld [vmem:[%s24994_s2 + $0x78] sm:$0xff] }
  0x8b   : > { %v503_v29 = vadd.f32 %v502_v26, %v457_v25  ;;  %v471_v6 = vld [vmem:[%s19722_s24 + $0xb8] sm:$0xff]  ;;  %v472_v9 = vld [vmem:[%s19722_s24 + $0xc0] sm:$0xff]  ;;  %v473_v12 = vld [vmem:[%s19722_s24 + $0xc8] sm:$0xff] }
  0x8c   : > { %16099 = vmatpush3.bf16.msra.mxu0 %v18244_v13  ;;  %16139 = vmatpush3.bf16.msra.mxu1 %v18244_v13  ;;  %v384_v11 = vld [vmem:[%s24994_s2 + $0x80] sm:$0xff]  ;;  %v385_v14 = vld [vmem:[%s24994_s2 + $0x88] sm:$0xff]  ;;  %v386_v17 = vld [vmem:[%s24994_s2 + $0x90] sm:$0xff] }
  0x8d   : > { %16100 = vmatprep.subr.bf16.mxu0 %v25004_v0  ;;  %16140 = vmatprep.subr.bf16.mxu1 %v25004_v0  ;;  %v504_v34 = vadd.f32 %v503_v29, %v458_v28  ;;  %v474_v15 = vld [vmem:[%s19722_s24 + $0xd0] sm:$0xff]  ;;  %v475_v18 = vld [vmem:[%s19722_s24 + $0xd8] sm:$0xff]  ;;  %v476_v21 = vld [vmem:[%s19722_s24 + $0xe0] sm:$0xff] }
  0x8e   : > { %763 = vperm.xlu0 %18238, %v374_v44   ;;  %768 = vperm.xlu1 %18239, %v375_v47   ;;  %v387_v20 = vld [vmem:[%s24994_s2 + $0x98] sm:$0xff]  ;;  %v388_v23 = vld [vmem:[%s24994_s2 + $0xa0] sm:$0xff]  ;;  %v389_v26 = vld [vmem:[%s24994_s2 + $0xa8] sm:$0xff] }
  0x8f   : > { %v505_v37 = vadd.f32 %v504_v34, %v459_v33  ;;  %v478_v27 = vld [vmem:[%s19722_s24 + $0xf0] sm:$0xff]  ;;  %v479_v30 = vld [vmem:[%s19722_s24 + $0xf8] sm:$0xff]  ;;  %v19887_v33 = vld [vmem:[%s19722_s24 + $0x100] sm:$0xff] }
  0x90   : > { %16101 = vmatpush3.bf16.msra.mxu0 %v18245_v19  ;;  %16141 = vmatpush3.bf16.msra.mxu1 %v18245_v19  ;;  %v390_v29 = vld [vmem:[%s24994_s2 + $0xb0] sm:$0xff]  ;;  %v392_v35 = vld [vmem:[%s24994_s2 + $0xc0] sm:$0xff]  ;;  %v393_v38 = vld [vmem:[%s24994_s2 + $0xc8] sm:$0xff] }
  0x91   : > { %16102 = vmatprep.subr.bf16.mxu0 %v25004_v0  ;;  %16142 = vmatprep.subr.bf16.mxu1 %v25004_v0  ;;  %v506_v40 = vadd.f32 %v505_v37, %v460_v36  ;;  %v19893_v36 = vld [vmem:[%s19722_s24 + $0x108] sm:$0xff]  ;;  %v395_v44 = vld [vmem:[%s24994_s2 + $0xd8] sm:$0xff] }
  0x92   : > { %773 = vperm.xlu0 %18238, %v376_v50   ;;  %778 = vperm.xlu1 %18239, %v377_v54   ;;  %v394_v41 = vld [vmem:[%s24994_s2 + $0xd0] sm:$0xff]  ;;  %v396_v47 = vld [vmem:[%s24994_s2 + $0xe0] sm:$0xff]  ;;  %v397_v50 = vld [vmem:[%s24994_s2 + $0xe8] sm:$0xff] }
  0x93   : > { %v507_v43 = vadd.f32 %v506_v40, %v461_v39  ;;  %v19899_v39 = vld [vmem:[%s19722_s24 + $0x110] sm:$0xff]  ;;  %v19934_v54 = vld [vmem:[%s19722_s24 + $0x138] sm:$0xff] }
  0x94   : > { %16103 = vmatpush3.bf16.msra.mxu0 %v18246_v24  ;;  %16143 = vmatpush3.bf16.msra.mxu1 %v18246_v24  ;;  %v477_v24 = vld [vmem:[%s19722_s24 + $0xe8] sm:$0xff] }
  0x95   : > { %16104 = vmatprep.subr.bf16.mxu0 %v25004_v0  ;;  %16144 = vmatprep.subr.bf16.mxu1 %v25004_v0  ;;  %v508_v46 = vadd.f32 %v507_v43, %v462_v42  ;;  %v19906_v42 = vld [vmem:[%s19722_s24 + $0x118] sm:$0xff] }
  0x96   : > { %783 = vperm.xlu0 %18238, %v378_v56   ;;  %788 = vperm.xlu1 %18239, %v379_v58   ;;  %v399_v56 = vld [vmem:[%s24994_s2 + $0xf8] sm:$0xff] }
  0x97   : > { %v509_v49 = vadd.f32 %v508_v46, %v463_v45  ;;  %v19913_v45 = vld [vmem:[%s19722_s24 + $0x120] sm:$0xff] }
  0x98   : > { %16105 = vmatpush3.bf16.msra.mxu0 %v18247_v32  ;;  %16145 = vmatpush3.bf16.msra.mxu1 %v18247_v32  ;;  %v391_v32 = vld [vmem:[%s24994_s2 + $0xb8] sm:$0xff] }
  0x99   : > { %16110 = vmatprep.subr.bf16.mxu0 %v25004_v0  ;;  %16150 = vmatprep.subr.bf16.mxu1 %v25004_v0  ;;  %v510_v53 = vadd.f32 %v509_v49, %v464_v48  ;;  %v19920_v48 = vld [vmem:[%s19722_s24 + $0x128] sm:$0xff] }
  0x9a   : > { %793 = vperm.xlu0 %18238, %v380_v61   ;;  %798 = vperm.xlu1 %18239, %v381_v2  }
  0x9b   : > { %v511_v57 = vadd.f32 %v510_v53, %v465_v51  ;;  %v19927_v51 = vld [vmem:[%s19722_s24 + $0x130] sm:$0xff] }
  0x9c   : > { %v398_v53 = vld [vmem:[%s24994_s2 + $0xf0] sm:$0xff] }
  0x9d   : > { %v512_v60 = vadd.f32 %v511_v57, %v466_v52  ;;  %v19941_v57 = vld [vmem:[%s19722_s24 + $0x140] sm:$0xff] }
  0x9e   : > { %803 = vperm.xlu0 %18238, %v382_v5   ;;  %808 = vperm.xlu1 %18239, %v383_v8  }
  0x9f   : > { %v513_v63 = vadd.f32 %v512_v60, %v467_v55  ;;  %v19948_v60 = vld [vmem:[%s19722_s24 + $0x148] sm:$0xff] }
  0xa1   : > { %v514_v4 = vadd.f32 %v513_v63, %v468_v59  ;;  %v400_v59 = vld [vmem:[%s24994_s2 + $0x100] sm:$0xff]  ;;  %v19955_v63 = vld [vmem:[%s19722_s24 + $0x150] sm:$0xff] }
  0xa2   : > { %813 = vperm.xlu0 %18238, %v384_v11   ;;  %818 = vperm.xlu1 %18239, %v385_v14  }
  0xa3   : > { %v515_v7 = vadd.f32 %v514_v4, %v469_v62  ;;  %v401_v62 = vld [vmem:[%s24994_s2 + $0x108] sm:$0xff]  ;;  %v19962_v4 = vld [vmem:[%s19722_s24 + $0x158] sm:$0xff] }
  0xa5   : > { %v516_v10 = vadd.f32 %v515_v7, %v470_v3  ;;  %v402_v3 = vld [vmem:[%s24994_s2 + $0x110] sm:$0xff]  ;;  %v19969_v7 = vld [vmem:[%s19722_s24 + $0x160] sm:$0xff] }
  0xa6   : > { %823 = vperm.xlu0 %18238, %v386_v17   ;;  %828 = vperm.xlu1 %18239, %v387_v20   ;;  %v407_v17 = vld [vmem:[%s24994_s2 + $0x138] sm:$0xff] }
  0xa7   : > { %v517_v13 = vadd.f32 %v516_v10, %v471_v6  ;;  %v403_v6 = vld [vmem:[%s24994_s2 + $0x118] sm:$0xff]  ;;  %v19976_v10 = vld [vmem:[%s19722_s24 + $0x168] sm:$0xff] }
  0xa9   : > { %v518_v16 = vadd.f32 %v517_v13, %v472_v9  ;;  %v404_v9 = vld [vmem:[%s24994_s2 + $0x120] sm:$0xff]  ;;  %v19983_v13 = vld [vmem:[%s19722_s24 + $0x170] sm:$0xff] }
  0xaa   : > { %833 = vperm.xlu0 %18238, %v388_v23   ;;  %838 = vperm.xlu1 %18239, %v389_v26   ;;  %v410_v23 = vld [vmem:[%s24994_s2 + $0x150] sm:$0xff] }
  0xab   : > { %v519_v19 = vadd.f32 %v518_v16, %v473_v12  ;;  %v405_v12 = vld [vmem:[%s24994_s2 + $0x128] sm:$0xff] }
  0xad   : > { %v520_v22 = vadd.f32 %v519_v19, %v474_v15  ;;  %v406_v15 = vld [vmem:[%s24994_s2 + $0x130] sm:$0xff]  ;;  %v408_v19 = vld [vmem:[%s24994_s2 + $0x140] sm:$0xff] }
  0xae   : > { %843 = vperm.xlu0 %18238, %v390_v29   ;;  %848 = vperm.xlu1 %18239, %v391_v32   ;;  %v413_v29 = vld [vmem:[%s24994_s2 + $0x168] sm:$0xff] }
  0xaf   : > { %v521_v25 = vadd.f32 %v520_v22, %v475_v18 }
  0xb1   : > { %v522_v28 = vadd.f32 %v521_v25, %v476_v21  ;;  %v409_v21 = vld [vmem:[%s24994_s2 + $0x148] sm:$0xff]  ;;  %v411_v25 = vld [vmem:[%s24994_s2 + $0x158] sm:$0xff] }
  0xb2   : > { %853 = vperm.xlu0 %18238, %v392_v35   ;;  %858 = vperm.xlu1 %18239, %v393_v38   ;;  %v20022_v38 = vld [vmem:[%s24995_s3 + $0x8] sm:$0xff]  }
  0xb3   : > { %v523_v31 = vadd.f32 %v522_v28, %v477_v24 }
  0xb5   : > { %v524_v34 = vadd.f32 %v523_v31, %v478_v27  ;;  %v412_v27 = vld [vmem:[%s24994_s2 + $0x160] sm:$0xff]  ;;  %v414_v31 = vld [vmem:[%s24994_s2 + $0x170] sm:$0xff] }
  0xb6   : > { %863 = vperm.xlu0 %18238, %v394_v41   ;;  %868 = vperm.xlu1 %18239, %v395_v44   ;;  %v20043_v41 = vld [vmem:[%s24995_s3 + $0x20] sm:$0xff]   ;;  %v20057_v44 = vld [vmem:[%s24995_s3 + $0x30] sm:$0xff]  }
  0xb7   : > { %v525_v37 = vadd.f32 %v524_v34, %v479_v30 }
  0xb9   : > { %v526_v40 = vadd.f32 %v525_v37, %v19887_v33 }
  0xba   : > { %873 = vperm.xlu0 %18238, %v396_v47   ;;  %878 = vperm.xlu1 %18239, %v397_v50  }
  0xbb   : > { %v527_v43 = vadd.f32 %v526_v40, %v19893_v36  ;;  %v20029_v40 = vld [vmem:[%s24995_s3 + $0x10] sm:$0xff]  }
  0xbd   : > { %v528_v46 = vadd.f32 %v527_v43, %v19899_v39  ;;  %v20050_v43 = vld [vmem:[%s24995_s3 + $0x28] sm:$0xff]  }
  0xbe   : > { %883 = vperm.xlu0 %18238, %v398_v53   ;;  %888 = vperm.xlu1 %18239, %v399_v56  }
  0xbf   : > { %v529_v49 = vadd.f32 %v528_v46, %v19906_v42  ;;  %v20064_v46 = vld [vmem:[%s24995_s3 + $0x38] sm:$0xff]  }
  0xc1   : > { %v530_v52 = vadd.f32 %v529_v49, %v19913_v45 }
  0xc2   : > { %893 = vperm.xlu0 %18238, %v400_v59   ;;  %898 = vperm.xlu1 %18239, %v401_v62  }
  0xc3   : > { %v531_v55 = vadd.f32 %v530_v52, %v19920_v48 }
  0xc5   : > { %v532_v58 = vadd.f32 %v531_v55, %v19927_v51 }
  0xc6   : > { %903 = vperm.xlu0 %18238, %v402_v3   ;;  %908 = vperm.xlu1 %18239, %v403_v6   ;;  %v680_v6 = vlaneseq }
  0xc7   : > { %v533_v61 = vadd.f32 %v532_v58, %v19934_v54 }
  0xc9   : > { %v534_v2 = vadd.f32 %v533_v61, %v19941_v57 }
  0xca   : > { %913 = vperm.xlu0 %18238, %v404_v9   ;;  %918 = vperm.xlu1 %18239, %v405_v12   ;;  %v681_v9 = vshrl.u32 %v680_v6, 7 }
  0xcb   : > { %v535_v5 = vadd.f32 %v534_v2, %v19948_v60 }
  0xcd   : > { %v536_v8 = vadd.f32 %v535_v5, %v19955_v63 }
  0xce   : > { %923 = vperm.xlu0 %18238, %v406_v15   ;;  %928 = vperm.xlu1 %18239, %v407_v17  }
  0xcf   : > { %v537_v11 = vadd.f32 %v536_v8, %v19962_v4 }
  0xd1   : > { %v538_v14 = vadd.f32 %v537_v11, %v19969_v7 }
  0xd2   : > { %933 = vperm.xlu0 %18238, %v408_v19   ;;  %938 = vperm.xlu1 %18239, %v409_v21   ;;  %v19223_v19 = vld [vmem:[%s19722_s24] sm:$0xff]  ;;  %v19224_v21 = vld [vmem:[%s19722_s24 + $0x8] sm:$0xff] }
  0xd3   : > { %v539_v16 = vadd.f32 %v538_v14, %v19976_v10  ;;  %v20091_v14 = vsub.s32 0, %v681_v9  ;;  %v19229_v9 = vld [vmem:[%s19722_s24 + $0x30] sm:$0xff] }
  0xd5   : > { %v540_v18 = vadd.f32 %v539_v16, %v19983_v13  ;;  %25388 = vst [vmem:[#allocation25_spill] sm:$0xff] %v20091_v14 }
  0xd6   : > { %943 = vperm.xlu0 %18238, %v410_v23   ;;  %948 = vperm.xlu1 %18239, %v411_v25  }
  0xd7   : > { %v541_v20 = vrot.slane %v540_v18, 4 }
  0xd9   : > { %v542_v22 = vadd.f32 %v541_v20, %v540_v18 }
  0xda   : > { %953 = vperm.xlu0 %18238, %v412_v27   ;;  %958 = vperm.xlu1 %18239, %v413_v29   ;;  %v19226_v29 = vld [vmem:[%s19722_s24 + $0x18] sm:$0xff] }
  0xdb   : > { %v543_v24 = vrot.slane %v542_v22, 2 }
  0xdd   : > { %v544_v26 = vadd.f32 %v543_v24, %v542_v22  ;;  %v19225_v24 = vld [vmem:[%s19722_s24 + $0x10] sm:$0xff] }
  0xde   : > { %963 = vperm.xlu0 %18238, %v414_v31  }
  0xdf   : > { %v545_v28 = vrot.slane %v544_v26, 1 }
  0xe1   : > { %v546_v30 = vadd.f32 %v545_v28, %v544_v26 }
  0xe3   : > { %v547_v32 = vpack.c.bf16 %v546_v30, %v546_v30 }
  0xe5   : > { %v548_v34 = vunpack.c.l.bf16 %v547_v32 }
  0xe7   : > { %v549_v35 = vsub.f32 %v546_v30, %v548_v34 }
  0xe9   : > { %v550_v37 = vpack.c.bf16 %v549_v35, %v549_v35 }
  0xeb   : > { %16107 = vmatmul.mubr.bf16.vlgmr.msra.gmra.mrb[0].mxu0 %v550_v37 }
  0xec   : > { %16111 = vmatpush3.bf16.msra.mxu0 %v19741_v1  ;;  %16126 = vmatprep.mubr.msk.bf16.mxu0 %vm19494_vm0, %v25004_v0  ;;  %v20036_v1 = vld [vmem:[%s24995_s3 + $0x18] sm:$0xff]  }
  0xed   : > { %16112 = vmatprep.subr.bf16.mxu0 %v25004_v0 }
  0xf0   : > { %16113 = vmatpush3.bf16.msra.mxu0 %v20022_v38 }
  0xf1   : > { %16114 = vmatprep.subr.bf16.mxu0 %v25004_v0 }
  0xf4   : > { %16115 = vmatpush3.bf16.msra.mxu0 %v20029_v40 }
  0xf5   : > { %16116 = vmatprep.subr.bf16.mxu0 %v25004_v0 }
  0xf8   : > { %16117 = vmatpush3.bf16.msra.mxu0 %v20036_v1 }
  0xf9   : > { %16118 = vmatprep.subr.bf16.mxu0 %v25004_v0 }
  0xfc   : > { %16119 = vmatpush3.bf16.msra.mxu0 %v20043_v41 }
  0xfd   : > { %16120 = vmatprep.subr.bf16.mxu0 %v25004_v0 }
 0x100   : > { %16121 = vmatpush3.bf16.msra.mxu0 %v20050_v43 }
 0x101   : > { %16122 = vmatprep.subr.bf16.mxu0 %v25004_v0  ;;  %v20067_v47 = vpop.permute.xlu0 %733  ;;  %v20069_v49 = vpop.permute.xlu1 %743 }
 0x102   : > { %25376 = vst [vmem:[#allocation13_spill] sm:$0xff] %v20067_v47  ;;  %25377 = vst [vmem:[#allocation14_spill] sm:$0xff] %v20069_v49 }
 0x104   : > { %16123 = vmatpush3.bf16.msra.mxu0 %v20057_v44 }
 0x105   : > { %16124 = vmatprep.subr.bf16.mxu0 %v25004_v0  ;;  %v20071_v50 = vpop.permute.xlu0 %738  ;;  %v20073_v52 = vpop.permute.xlu1 %748  ;;  %v19232_v0 = vld [vmem:[%s19722_s24 + $0x48] sm:$0xff] }
 0x106   : > { %25378 = vst [vmem:[#allocation15_spill] sm:$0xff] %v20071_v50  ;;  %25379 = vst [vmem:[#allocation16_spill] sm:$0xff] %v20073_v52 }
 0x108   : > { %16125 = vmatpush3.bf16.msra.mxu0 %v20064_v46 }
 0x109   : > { %v20075_v53 = vpop.permute.xlu0 %753  ;;  %v20077_v55 = vpop.permute.xlu1 %758 }
 0x10a   : > { %25380 = vst [vmem:[#allocation17_spill] sm:$0xff] %v20075_v53  ;;  %25381 = vst [vmem:[#allocation18_spill] sm:$0xff] %v20077_v55 }
 0x10b   : > { %16127 = vmatmul.mubr.bf16.vlgmr.msra.gmra.mrb[0].mxu0 %v547_v32  ;;  %v19227_v32 = vld [vmem:[%s19722_s24 + $0x20] sm:$0xff] }
 0x10d   : > { %v20079_v58 = vpop.permute.xlu0 %763  ;;  %v20081_v62 = vpop.permute.xlu1 %768 }
 0x10e   : > { %25382 = vst [vmem:[#allocation19_spill] sm:$0xff] %v20079_v58  ;;  %25383 = vst [vmem:[#allocation20_spill] sm:$0xff] %v20081_v62 }
 0x111   : > { %v20083_v3 = vpop.permute.xlu0 %773  ;;  %v20085_v5 = vpop.permute.xlu1 %778 }
 0x112   : > { %25384 = vst [vmem:[#allocation21_spill] sm:$0xff] %v20083_v3  ;;  %25385 = vst [vmem:[#allocation22_spill] sm:$0xff] %v20085_v5 }
 0x115   : > { %v20087_v8 = vpop.permute.xlu0 %783  ;;  %v20089_v11 = vpop.permute.xlu1 %788 }
 0x116   : > { %25386 = vst [vmem:[#allocation23_spill] sm:$0xff] %v20087_v8  ;;  %25387 = vst [vmem:[#allocation24_spill] sm:$0xff] %v20089_v11 }
 0x119   : > { %v20093_v15 = vpop.permute.xlu0 %793  ;;  %v20095_v16 = vpop.permute.xlu1 %798 }
 0x11a   : > { %25389 = vst [vmem:[#allocation26_spill] sm:$0xff] %v20093_v15  ;;  %25390 = vst [vmem:[#allocation27_spill] sm:$0xff] %v20095_v16 }
 0x11d   : > { %v20100_v18 = vpop.permute.xlu0 %803  ;;  %v20106_v23 = vpop.permute.xlu1 %808 }
 0x11e   : > { %25391 = vst [vmem:[#allocation28_spill] sm:$0xff] %v20100_v18  ;;  %25392 = vst [vmem:[#allocation29_spill] sm:$0xff] %v20106_v23 }
 0x121   : > { %v20116_v28 = vpop.permute.xlu0 %813  ;;  %v20120_v31 = vpop.permute.xlu1 %818 }
 0x122   : > { %25393 = vst [vmem:[#allocation30_spill] sm:$0xff] %v20116_v28  ;;  %25394 = vst [vmem:[#allocation31_spill] sm:$0xff] %v20120_v31 }
 0x125   : > { %v20136_v6 = vpop.permute.xlu0 %823 }
 0x126   : > { %25395 = vst [vmem:[#allocation32_spill] sm:$0xff] %v20136_v6 }
 0x1de   : > { %v673_v56 = vpop.f32.mrb[0].mxu0 }
 0x1df   : > { %v16128_v59 = vpop.f32.mrb[1].mxu0  ;;  %v679_v12 = vmul.f32 0.0009765625, %v673_v56 }
 0x1e0   : > { %v676_v61 = vpop.f32.mrb[2].mxu0  ;;  %v19228_v59 = vld [vmem:[%s19722_s24 + $0x28] sm:$0xff] }
 0x1e1   : > { %v16129_v2 = vpop.f32.mrb[3].mxu0  ;;  %v20098_v17 = vrot.slane %v679_v12, %v20091_v14 }
 0x1e3   : > { %v684_v20 = vsub.f32 %v19223_v19, %v20098_v17  ;;  %v685_v22 = vsub.f32 %v19224_v21, %v20098_v17  ;;  %v686_v25 = vsub.f32 %v19225_v24, %v20098_v17  ;;  %v687_v30 = vsub.f32 %v19226_v29, %v20098_v17  ;;  %v19230_v24 = vld [vmem:[%s19722_s24 + $0x38] sm:$0xff] }
 0x1e4   : > { %v688_v34 = vsub.f32 %v19227_v32, %v20098_v17  ;;  %v689_v61 = vsub.f32 %v19228_v59, %v20098_v17  ;;  %v690_v12 = vsub.f32 %v19229_v9, %v20098_v17  ;;  %v19231_v59 = vld [vmem:[%s19722_s24 + $0x40] sm:$0xff] }
 0x1e5   : > { %v20111_v26 = vmul.f32 %v20067_v47, %v684_v20  ;;  %v20114_v27 = vmul.f32 %v20071_v50, %v685_v22  ;;  %v20125_v35 = vmul.f32 %v20069_v49, %v686_v25  ;;  %v20134_v2 = vmul.f32 %v20073_v52, %v687_v30  ;;  %v20145_v22 = vpop.permute.xlu1 %828  ;;  %v19235_v52 = vld [vmem:[%s19722_s24 + $0x60] sm:$0xff]  ;;  %v19237_v49 = vld [vmem:[%s19722_s24 + $0x70] sm:$0xff]  ;;  %v19238_v50 = vld [vmem:[%s19722_s24 + $0x78] sm:$0xff] }
 0x1e6   : > { %v20141_v19 = vmul.f32 %v20075_v53, %v688_v34  ;;  %25396 = vst [vmem:[#allocation33_spill] sm:$0xff] %v20145_v22  ;;  %v691_v25 = vsub.f32 %v19230_v24, %v20098_v17  ;;  %v20150_v29 = vmul.f32 %v20077_v55, %v689_v61  ;;  %v692_v34 = vsub.f32 %v19231_v59, %v20098_v17  ;;  %v20161_v24 = vpop.permute.xlu0 %833  ;;  %v19234_v53 = vld [vmem:[%s19722_s24 + $0x58] sm:$0xff]  ;;  %v19240_v47 = vld [vmem:[%s19722_s24 + $0x88] sm:$0xff] }
 0x1e7   : > { %v1013_v37 = vmul.f32 %v20111_v26, %v20111_v26  ;;  %v1014_v56 = vmul.f32 %v20114_v27, %v20114_v27  ;;  %v1015_v20 = vmul.f32 %v20125_v35, %v20125_v35  ;;  %v1016_v30 = vmul.f32 %v20134_v2, %v20134_v2  ;;  %25397 = vst [vmem:[#allocation34_spill] sm:$0xff] %v20161_v24 }
 0x1e8   : > { %v20157_v9 = vmul.f32 %v20079_v58, %v690_v12  ;;  %v693_v61 = vsub.f32 %v19232_v0, %v20098_v17  ;;  %v20166_v55 = vmul.f32 %v20081_v62, %v691_v25  ;;  %v19233_v12 = vld [vmem:[%s19722_s24 + $0x50] sm:$0xff]  ;;  %v695_v25 = vsub.f32 %v19234_v53, %v20098_v17 }
 0x1e9   : > { %v1060_v21 = vadd.f32 %v1014_v56, %v1013_v37  ;;  %v1017_v37 = vmul.f32 %v20141_v19, %v20141_v19  ;;  %v20170_v59 = vpop.permute.xlu1 %838  ;;  %v694_v58 = vsub.f32 %v19233_v12, %v20098_v17 }
 0x1ea   : > { %25398 = vst [vmem:[#allocation35_spill] sm:$0xff] %v20170_v59  ;;  %v1019_v0 = vmul.f32 %v20157_v9, %v20157_v9  ;;  %v20182_v62 = vmul.f32 %v20085_v5, %v693_v61  ;;  %v20186_v12 = vpop.permute.xlu0 %843  ;;  %v19236_v61 = vld [vmem:[%s19722_s24 + $0x68] sm:$0xff] }
 0x1eb   : > { %v1061_v32 = vadd.f32 %v1060_v21, %v1015_v20  ;;  %v1018_v20 = vmul.f32 %v20150_v29, %v20150_v29  ;;  %25399 = vst [vmem:[#allocation36_spill] sm:$0xff] %v20186_v12  ;;  %v697_v5 = vsub.f32 %v19236_v61, %v20098_v17 }
 0x1ed   : > { %v1062_v56 = vadd.f32 %v1061_v32, %v1016_v30  ;;  %v20175_v30 = vmul.f32 %v20083_v3, %v692_v34  ;;  %v696_v34 = vsub.f32 %v19235_v52, %v20098_v17  ;;  %v20191_v3 = vmul.f32 %v20087_v8, %v694_v58 }
 0x1ee   : > { %v1022_v52 = vmul.f32 %v20182_v62, %v20182_v62  ;;  %v698_v58 = vsub.f32 %v19237_v49, %v20098_v17  ;;  %v20211_v61 = vpop.permute.xlu0 %853 }
 0x1ef   : > { %v1063_v21 = vadd.f32 %v1062_v56, %v1017_v37  ;;  %v1020_v37 = vmul.f32 %v20166_v55, %v20166_v55  ;;  %v1021_v53 = vmul.f32 %v20175_v30, %v20175_v30  ;;  %v20207_v8 = vmul.f32 %v20093_v15, %v696_v34  ;;  %25402 = vst [vmem:[#allocation39_spill] sm:$0xff] %v20211_v61  ;;  %v19239_v34 = vld [vmem:[%s19722_s24 + $0x80] sm:$0xff] }
 0x1f0   : > { %v700_v15 = vsub.f32 %v19239_v34, %v20098_v17 }
 0x1f1   : > { %v1064_v32 = vadd.f32 %v1063_v21, %v1018_v20  ;;  %v20195_v21 = vpop.permute.xlu1 %848 }
 0x1f2   : > { %25400 = vst [vmem:[#allocation37_spill] sm:$0xff] %v20195_v21  ;;  %v20236_v34 = vpop.permute.xlu0 %863 }
 0x1f3   : > { %v1065_v56 = vadd.f32 %v1064_v32, %v1019_v0  ;;  %v20200_v0 = vmul.f32 %v20089_v11, %v695_v25  ;;  %v699_v25 = vsub.f32 %v19238_v50, %v20098_v17  ;;  %v20216_v11 = vmul.f32 %v20095_v16, %v697_v5  ;;  %25406 = vst [vmem:[#allocation43_spill] sm:$0xff] %v20236_v34 }
 0x1f4   : > { %v1025_v50 = vmul.f32 %v20207_v8, %v20207_v8  ;;  %v701_v5 = vsub.f32 %v19240_v47, %v20098_v17 }
 0x1f5   : > { %v1066_v20 = vadd.f32 %v1065_v56, %v1020_v37  ;;  %25401 = vst [vmem:[#allocation38_spill] sm:$0xff] %v20200_v0  ;;  %v1023_v37 = vmul.f32 %v20191_v3, %v20191_v3  ;;  %25403 = vst [vmem:[#allocation40_spill] sm:$0xff] %v20216_v11  ;;  %v1024_v49 = vmul.f32 %v20200_v0, %v20200_v0  ;;  %v19241_v0 = vld [vmem:[%s19722_s24 + $0x90] sm:$0xff] }
 0x1f6   : > { %v20232_v16 = vmul.f32 %v20106_v23, %v699_v25  ;;  %v19242_v25 = vld [vmem:[%s19722_s24 + $0x98] sm:$0xff] }
 0x1f7   : > { %v1067_v32 = vadd.f32 %v1066_v20, %v1021_v53  ;;  %v20220_v20 = vpop.permute.xlu1 %858  ;;  %v703_v23 = vsub.f32 %v19242_v25, %v20098_v17  ;;  %v20261_v25 = vpop.permute.xlu0 %873 }
 0x1f8   : > { %25404 = vst [vmem:[#allocation41_spill] sm:$0xff] %v20220_v20  ;;  %25410 = vst [vmem:[#allocation47_spill] sm:$0xff] %v20261_v25 }
 0x1f9   : > { %v1068_v56 = vadd.f32 %v1067_v32, %v1022_v52  ;;  %v20225_v52 = vmul.f32 %v20100_v18, %v698_v58  ;;  %v702_v58 = vsub.f32 %v19241_v0, %v20098_v17  ;;  %v20241_v18 = vmul.f32 %v20116_v28, %v700_v15 }
 0x1fa   : > { %v1028_v0 = vmul.f32 %v20232_v16, %v20232_v16 }
 0x1fb   : > { %v1069_v53 = vadd.f32 %v1068_v56, %v1023_v37  ;;  %25405 = vst [vmem:[#allocation42_spill] sm:$0xff] %v20225_v52  ;;  %v1026_v37 = vmul.f32 %v20216_v11, %v20216_v11  ;;  %25407 = vst [vmem:[#allocation44_spill] sm:$0xff] %v20241_v18  ;;  %v1027_v47 = vmul.f32 %v20225_v52, %v20225_v52  ;;  %v19243_v11 = vld [vmem:[%s19722_s24 + $0xa0] sm:$0xff]  ;;  %v19244_v52 = vld [vmem:[%s19722_s24 + $0xa8] sm:$0xff] }
 0x1fc   : > { %v704_v15 = vsub.f32 %v19243_v11, %v20098_v17  ;;  %v20257_v28 = vmul.f32 %v20136_v6, %v702_v58  ;;  %v19245_v58 = vld [vmem:[%s19722_s24 + $0xb0] sm:$0xff] }
 0x1fd   : > { %v1070_v32 = vadd.f32 %v1069_v53, %v1024_v49  ;;  %v20245_v53 = vpop.permute.xlu1 %868  ;;  %v706_v6 = vsub.f32 %v19245_v58, %v20098_v17  ;;  %v20286_v58 = vpop.permute.xlu0 %883 }
 0x1fe   : > { %25408 = vst [vmem:[#allocation45_spill] sm:$0xff] %v20245_v53  ;;  %25414 = vst [vmem:[#allocation51_spill] sm:$0xff] %v20286_v58 }
 0x1ff   : > { %v1071_v56 = vadd.f32 %v1070_v32, %v1025_v50  ;;  %v20250_v50 = vmul.f32 %v20120_v31, %v701_v5  ;;  %v705_v5 = vsub.f32 %v19244_v52, %v20098_v17  ;;  %v20266_v31 = vmul.f32 %v20145_v22, %v703_v23 }
 0x200   : > { %v1031_v52 = vmul.f32 %v20257_v28, %v20257_v28 }
 0x201   : > { %v1072_v49 = vadd.f32 %v1071_v56, %v1026_v37  ;;  %25409 = vst [vmem:[#allocation46_spill] sm:$0xff] %v20250_v50  ;;  %v1029_v37 = vmul.f32 %v20241_v18, %v20241_v18  ;;  %25411 = vst [vmem:[#allocation48_spill] sm:$0xff] %v20266_v31  ;;  %v1030_v11 = vmul.f32 %v20250_v50, %v20250_v50  ;;  %v19246_v18 = vld [vmem:[%s19722_s24 + $0xb8] sm:$0xff]  ;;  %v19247_v50 = vld [vmem:[%s19722_s24 + $0xc0] sm:$0xff] }
 0x202   : > { %v707_v23 = vsub.f32 %v19246_v18, %v20098_v17  ;;  %v20282_v22 = vmul.f32 %v20170_v59, %v705_v5  ;;  %v19248_v5 = vld [vmem:[%s19722_s24 + $0xc8] sm:$0xff] }
 0x203   : > { %v1073_v32 = vadd.f32 %v1072_v49, %v1027_v47  ;;  %v20270_v49 = vpop.permute.xlu1 %878  ;;  %v709_v59 = vsub.f32 %v19248_v5, %v20098_v17  ;;  %v20311_v5 = vpop.permute.xlu0 %893 }
 0x204   : > { %25412 = vst [vmem:[#allocation49_spill] sm:$0xff] %v20270_v49  ;;  %25418 = vst [vmem:[#allocation55_spill] sm:$0xff] %v20311_v5 }
 0x205   : > { %v1074_v56 = vadd.f32 %v1073_v32, %v1028_v0  ;;  %v20275_v0 = vmul.f32 %v20161_v24, %v704_v15  ;;  %v708_v15 = vsub.f32 %v19247_v50, %v20098_v17  ;;  %v20291_v24 = vmul.f32 %v20186_v12, %v706_v6 }
 0x206   : > { %v1034_v50 = vmul.f32 %v20282_v22, %v20282_v22 }
 0x207   : > { %v1075_v47 = vadd.f32 %v1074_v56, %v1029_v37  ;;  %25413 = vst [vmem:[#allocation50_spill] sm:$0xff] %v20275_v0  ;;  %v1032_v37 = vmul.f32 %v20266_v31, %v20266_v31  ;;  %25415 = vst [vmem:[#allocation52_spill] sm:$0xff] %v20291_v24  ;;  %v1033_v18 = vmul.f32 %v20275_v0, %v20275_v0  ;;  %v19249_v31 = vld [vmem:[%s19722_s24 + $0xd0] sm:$0xff]  ;;  %v19250_v0 = vld [vmem:[%s19722_s24 + $0xd8] sm:$0xff] }
 0x208   : > { %v710_v6 = vsub.f32 %v19249_v31, %v20098_v17  ;;  %v20307_v12 = vmul.f32 %v20211_v61, %v708_v15  ;;  %v19251_v15 = vld [vmem:[%s19722_s24 + $0xe0] sm:$0xff] }
 0x209   : > { %v1076_v32 = vadd.f32 %v1075_v47, %v1030_v11  ;;  %v20295_v47 = vpop.permute.xlu1 %888  ;;  %v712_v61 = vsub.f32 %v19251_v15, %v20098_v17  ;;  %v19253_v15 = vld [vmem:[%s19722_s24 + $0xf0] sm:$0xff] }
 0x20a   : > { %25416 = vst [vmem:[#allocation53_spill] sm:$0xff] %v20295_v47 }
 0x20b   : > { %v1077_v56 = vadd.f32 %v1076_v32, %v1031_v52  ;;  %v20300_v52 = vmul.f32 %v20195_v21, %v707_v23  ;;  %v711_v23 = vsub.f32 %v19250_v0, %v20098_v17  ;;  %v20316_v21 = vmul.f32 %v20220_v20, %v709_v59 }
 0x20c   : > { %v1037_v0 = vmul.f32 %v20307_v12, %v20307_v12 }
 0x20d   : > { %v1078_v11 = vadd.f32 %v1077_v56, %v1032_v37  ;;  %25417 = vst [vmem:[#allocation54_spill] sm:$0xff] %v20300_v52  ;;  %v1035_v37 = vmul.f32 %v20291_v24, %v20291_v24  ;;  %25419 = vst [vmem:[#allocation56_spill] sm:$0xff] %v20316_v21  ;;  %v1036_v31 = vmul.f32 %v20300_v52, %v20300_v52  ;;  %v19252_v24 = vld [vmem:[%s19722_s24 + $0xe8] sm:$0xff]  ;;  %v20336_v52 = vpop.permute.xlu0 %903 }
 0x20e   : > { %v713_v59 = vsub.f32 %v19252_v24, %v20098_v17  ;;  %v20332_v20 = vmul.f32 %v20245_v53, %v711_v23  ;;  %25421 = vst [vmem:[#allocation58_spill] sm:$0xff] %v20336_v52  ;;  %v19254_v23 = vld [vmem:[%s19722_s24 + $0xf8] sm:$0xff] }
 0x20f   : > { %v1079_v32 = vadd.f32 %v1078_v11, %v1033_v18  ;;  %v20320_v11 = vpop.permute.xlu1 %898  ;;  %v715_v53 = vsub.f32 %v19254_v23, %v20098_v17 }
 0x210   : > { %25420 = vst [vmem:[#allocation57_spill] sm:$0xff] %v20320_v11 }
 0x211   : > { %v1080_v56 = vadd.f32 %v1079_v32, %v1034_v50  ;;  %v20325_v50 = vmul.f32 %v20236_v34, %v710_v6  ;;  %v714_v6 = vsub.f32 %v19253_v15, %v20098_v17  ;;  %v20341_v34 = vmul.f32 %v20261_v25, %v712_v61  ;;  %v20361_v25 = vpop.permute.xlu0 %913 }
 0x212   : > { %v716_v61 = vsub.f32 %v19887_v33, %v20098_v17  ;;  %25423 = vst [vmem:[#allocation60_spill] sm:$0xff] %v20361_v25  ;;  %v20366_v23 = vmul.f32 %v20295_v47, %v715_v53 }
 0x213   : > { %v1081_v18 = vadd.f32 %v1080_v56, %v1035_v37  ;;  %v1038_v37 = vmul.f32 %v20316_v21, %v20316_v21  ;;  %v20345_v24 = vpop.permute.xlu1 %908  ;;  %v20350_v21 = vmul.f32 %v20270_v49, %v713_v59  ;;  %v20357_v15 = vmul.f32 %v20286_v58, %v714_v6 }
 0x214   : > { %25422 = vst [vmem:[#allocation59_spill] sm:$0xff] %v20345_v24  ;;  %v717_v59 = vsub.f32 %v19893_v36, %v20098_v17  ;;  %v718_v6 = vsub.f32 %v19899_v39, %v20098_v17  ;;  %v20375_v58 = vmul.f32 %v20311_v5, %v716_v61  ;;  %v719_v36 = vsub.f32 %v19906_v42, %v20098_v17 }
 0x215   : > { %v1082_v32 = vadd.f32 %v1081_v18, %v1036_v31  ;;  %v1039_v31 = vmul.f32 %v20325_v50, %v20325_v50  ;;  %v20386_v47 = vpop.permute.xlu0 %923  ;;  %v720_v39 = vsub.f32 %v19913_v45, %v20098_v17  ;;  %v722_v45 = vsub.f32 %v19927_v51, %v20098_v17 }
 0x216   : > { %v20382_v53 = vmul.f32 %v20320_v11, %v717_v59  ;;  %25425 = vst [vmem:[#allocation62_spill] sm:$0xff] %v20386_v47  ;;  %v20391_v61 = vmul.f32 %v20336_v52, %v718_v6  ;;  %v721_v59 = vsub.f32 %v19920_v48, %v20098_v17  ;;  %v20400_v11 = vmul.f32 %v20345_v24, %v719_v36 }
 0x217   : > { %v1083_v56 = vadd.f32 %v1082_v32, %v1037_v0  ;;  %v1040_v0 = vmul.f32 %v20332_v20, %v20332_v20  ;;  %v20370_v33 = vpop.permute.xlu1 %918  ;;  %v20407_v6 = vmul.f32 %v20361_v25, %v720_v39  ;;  %v723_v48 = vsub.f32 %v19934_v54, %v20098_v17 }
 0x218   : > { %25424 = vst [vmem:[#allocation61_spill] sm:$0xff] %v20370_v33  ;;  %v20416_v36 = vmul.f32 %v20370_v33, %v721_v59  ;;  %v724_v39 = vsub.f32 %v19941_v57, %v20098_v17  ;;  %v20425_v25 = vmul.f32 %v20386_v47, %v722_v45  ;;  %v725_v54 = vsub.f32 %v19948_v60, %v20098_v17 }
 0x219   : > { %v1084_v18 = vadd.f32 %v1083_v56, %v1038_v37  ;;  %v1041_v37 = vmul.f32 %v20341_v34, %v20341_v34  ;;  %v20411_v52 = vpop.permute.xlu0 %933  ;;  %v726_v57 = vsub.f32 %v19955_v63, %v20098_v17  ;;  %v728_v63 = vsub.f32 %v19969_v7, %v20098_v17 }
 0x21a   : > { %25427 = vst [vmem:[#allocation64_spill] sm:$0xff] %v20411_v52  ;;  %v20441_v45 = vmul.f32 %v20411_v52, %v724_v39 }
 0x21b   : > { %v1085_v32 = vadd.f32 %v1084_v18, %v1039_v31  ;;  %v1042_v31 = vmul.f32 %v20350_v21, %v20350_v21  ;;  %v20395_v42 = vpop.permute.xlu1 %928 }
 0x21c   : > { %25426 = vst [vmem:[#allocation63_spill] sm:$0xff] %v20395_v42  ;;  %v20432_v59 = vmul.f32 %v20395_v42, %v723_v48 }
 0x21d   : > { %v1086_v56 = vadd.f32 %v1085_v32, %v1040_v0  ;;  %v1043_v0 = vmul.f32 %v20357_v15, %v20357_v15  ;;  %v20436_v33 = vpop.permute.xlu0 %943 }
 0x21e   : > { %25429 = vst [vmem:[#allocation66_spill] sm:$0xff] %v20436_v33  ;;  %v20457_v39 = vmul.f32 %v20436_v33, %v726_v57 }
 0x21f   : > { %v1087_v18 = vadd.f32 %v1086_v56, %v1041_v37  ;;  %v1044_v37 = vmul.f32 %v20366_v23, %v20366_v23  ;;  %v20420_v51 = vpop.permute.xlu1 %938 }
 0x220   : > { %25428 = vst [vmem:[#allocation65_spill] sm:$0xff] %v20420_v51  ;;  %v20448_v48 = vmul.f32 %v20420_v51, %v725_v54 }
 0x221   : > { %v1088_v32 = vadd.f32 %v1087_v18, %v1042_v31  ;;  %v1045_v31 = vmul.f32 %v20375_v58, %v20375_v58  ;;  %v20461_v52 = vpop.permute.xlu0 %953 }
 0x222   : > { %25431 = vst [vmem:[#allocation68_spill] sm:$0xff] %v20461_v52  ;;  %v1054_v54 = vmul.f32 %v20448_v48, %v20448_v48  ;;  %v20473_v57 = vmul.f32 %v20461_v52, %v728_v63 }
 0x223   : > { %v1089_v56 = vadd.f32 %v1088_v32, %v1043_v0  ;;  %v1046_v0 = vmul.f32 %v20382_v53, %v20382_v53  ;;  %v20445_v60 = vpop.permute.xlu1 %948 }
 0x224   : > { %25430 = vst [vmem:[#allocation67_spill] sm:$0xff] %v20445_v60  ;;  %v1057_v63 = vmul.f32 %v20473_v57, %v20473_v57 }
 0x225   : > { %v1090_v18 = vadd.f32 %v1089_v56, %v1044_v37  ;;  %v1047_v37 = vmul.f32 %v20391_v61, %v20391_v61 }
 0x227   : > { %v1091_v32 = vadd.f32 %v1090_v18, %v1045_v31  ;;  %v1048_v31 = vmul.f32 %v20400_v11, %v20400_v11  ;;  %v20470_v7 = vpop.permute.xlu1 %958 }
 0x228   : > { %25432 = vst [vmem:[#allocation69_spill] sm:$0xff] %v20470_v7 }
 0x229   : > { %v1092_v56 = vadd.f32 %v1091_v32, %v1046_v0  ;;  %v1049_v0 = vmul.f32 %v20407_v6, %v20407_v6 }
 0x22b   : > { %v1093_v18 = vadd.f32 %v1092_v56, %v1047_v37  ;;  %v1050_v37 = vmul.f32 %v20416_v36, %v20416_v36 }
 0x22d   : > { %v1094_v32 = vadd.f32 %v1093_v18, %v1048_v31  ;;  %v1051_v31 = vmul.f32 %v20425_v25, %v20425_v25 }
 0x22f   : > { %v1095_v56 = vadd.f32 %v1094_v32, %v1049_v0  ;;  %v1052_v0 = vmul.f32 %v20432_v59, %v20432_v59  ;;  %v727_v32 = vsub.f32 %v19962_v4, %v20098_v17 }
 0x231   : > { %v1096_v18 = vadd.f32 %v1095_v56, %v1050_v37  ;;  %v1053_v37 = vmul.f32 %v20441_v45, %v20441_v45  ;;  %v20466_v51 = vmul.f32 %v20445_v60, %v727_v32 }
 0x233   : > { %v1097_v42 = vadd.f32 %v1096_v18, %v1051_v31  ;;  %v729_v31 = vsub.f32 %v19976_v10, %v20098_v17  ;;  %v1056_v32 = vmul.f32 %v20466_v51, %v20466_v51  ;;  %v20484_v10 = vpop.permute.xlu0 %963 }
 0x234   : > { %25433 = vst [vmem:[#allocation70_spill] sm:$0xff] %v20484_v10 }
 0x235   : > { %v1098_v56 = vadd.f32 %v1097_v42, %v1052_v0  ;;  %v1055_v42 = vmul.f32 %v20457_v39, %v20457_v39  ;;  %v730_v0 = vsub.f32 %v19983_v13, %v20098_v17 }
 0x237   : > { %v1099_v4 = vadd.f32 %v1098_v56, %v1053_v37  ;;  %v20482_v37 = vmul.f32 %v20470_v7, %v729_v31  ;;  %v20489_v52 = vmul.f32 %v20484_v10, %v730_v0 }
 0x239   : > { %v1100_v18 = vadd.f32 %v1099_v4, %v1054_v54  ;;  %v1058_v54 = vmul.f32 %v20482_v37, %v20482_v37  ;;  %v1059_v17 = vmul.f32 %v20489_v52, %v20489_v52 }
 0x23b   : > { %v1101_v60 = vadd.f32 %v1100_v18, %v1055_v42 }
 0x23d   : > { %v1102_v56 = vadd.f32 %v1101_v60, %v1056_v32 }
 0x23f   : > { %v1103_v13 = vadd.f32 %v1102_v56, %v1057_v63  ;;  %v19255_v63 = vld [vmem:[%s24995_s3] sm:$0xff]   ;;  %v25434_v56 = vmov 0.0  }
 0x241   : > { %v1104_v4 = vadd.f32 %v1103_v13, %v1058_v54  ;;  %v18252_v13 = vld [vmem:[#allocation6 + $0x60] sm:$0xff]  }
 0x243   : > { %v1105_v42 = vadd.f32 %v1104_v4, %v1059_v17  ;;  %v18253_v4 = vld [vmem:[#allocation6 + $0x68] sm:$0xff]  }
 0x245   : > { %v1106_v31 = vrot.slane %v1105_v42, 4 }
 0x247   : > { %v1107_v18 = vadd.f32 %v1106_v31, %v1105_v42 }
 0x249   : > { %v1108_v7 = vrot.slane %v1107_v18, 2 }
 0x24b   : > { %v1109_v33 = vadd.f32 %v1108_v7, %v1107_v18  ;;  %v18251_v7 = vld [vmem:[#allocation6 + $0x58] sm:$0xff]  }
 0x24d   : > { %v1110_v47 = vrot.slane %v1109_v33, 1 }
 0x24f   : > { %v1111_v24 = vadd.f32 %v1110_v47, %v1109_v33  ;;  %v431_v33 = vld [vmem:[%s24996_s4] sm:$0x1] }
 0x251   : > { %v1112_v5 = vpack.c.bf16 %v1111_v24, %v1111_v24 }
 0x253   : > { %v1113_v60 = vunpack.c.l.bf16 %v1112_v5 }
 0x255   : > { %v1114_v32 = vsub.f32 %v1111_v24, %v1113_v60  ;;  %v18248_v24 = vld [vmem:[#allocation6 + $0x40] sm:$0xff]  }
 0x256   : > { %16170 = vmatprep.subr.bf16.mxu0 %v18248_v24 }
 0x257   : > { %v1115_v0 = vpack.c.bf16 %v1114_v32, %v1114_v32  ;;  %16171 = vmatpush3.bf16.msra.mxu0 %v18248_v24 }
 0x259   : > { %16147 = vmatmul.mubr.bf16.vlgmr.msra.gmra.mrb[0].mxu1 %v1115_v0 }
 0x25a   : > { %16151 = vmatpush3.bf16.msra.mxu1 %v19255_v63  ;;  %16166 = vmatprep.mubr.msk.bf16.mxu1 %vm19494_vm0, %v25434_v56  ;;  %v18254_v63 = vld [vmem:[#allocation6 + $0x70] sm:$0xff]  }
 0x25b   : > { %16152 = vmatprep.subr.bf16.mxu1 %v25434_v56 }
 0x25e   : > { %16153 = vmatpush3.bf16.msra.mxu1 %v20022_v38 }
 0x25f   : > { %16154 = vmatprep.subr.bf16.mxu1 %v25434_v56 }
 0x262   : > { %16155 = vmatpush3.bf16.msra.mxu1 %v20029_v40 }
 0x263   : > { %16156 = vmatprep.subr.bf16.mxu1 %v25434_v56 }
 0x266   : > { %16157 = vmatpush3.bf16.msra.mxu1 %v20036_v1 }
 0x267   : > { %16158 = vmatprep.subr.bf16.mxu1 %v25434_v56 }
 0x26a   : > { %16159 = vmatpush3.bf16.msra.mxu1 %v20043_v41 }
 0x26b   : > { %16160 = vmatprep.subr.bf16.mxu1 %v25434_v56 }
 0x26e   : > { %16161 = vmatpush3.bf16.msra.mxu1 %v20050_v43 }
 0x26f   : > { %16162 = vmatprep.subr.bf16.mxu1 %v25434_v56 }
 0x272   : > { %16163 = vmatpush3.bf16.msra.mxu1 %v20057_v44  ;;  %v18249_v44 = vld [vmem:[#allocation6 + $0x48] sm:$0xff]  }
 0x273   : > { %16164 = vmatprep.subr.bf16.mxu1 %v25434_v56  ;;  %16172 = vmatprep.subr.bf16.mxu0 %v18249_v44 }
 0x274   : > { %16173 = vmatpush3.bf16.msra.mxu0 %v18249_v44  ;;  %v25440_v44 = vld [vmem:[#allocation48_spill] sm:$0xff] }
 0x276   : > { %16165 = vmatpush3.bf16.msra.mxu1 %v20064_v46  ;;  %v18250_v46 = vld [vmem:[#allocation6 + $0x50] sm:$0xff]  }
 0x277   : > { %16746 = vmatprep.subr.bf16.mxu1 %v25434_v56  ;;  %16174 = vmatprep.subr.bf16.mxu0 %v18250_v46 }
 0x278   : > { %16175 = vmatpush3.bf16.msra.mxu0 %v18250_v46 }
 0x279   : > { %16167 = vmatmul.mubr.bf16.vlgmr.msra.gmra.mrb[0].mxu1 %v1112_v5  ;;  %16176 = vmatprep.subr.bf16.mxu0 %v18251_v7 }
 0x27a   : > { %16762 = vmatprep.mubr.msk.bf16.mxu1 %vm19494_vm0, %v25434_v56 }
 0x27c   : > { %16177 = vmatpush3.bf16.msra.mxu0 %v18251_v7  ;;  %v20585_v7 = vld [vmem:[#allocation6] sm:$0xff]  }
 0x27d   : > { %16178 = vmatprep.subr.bf16.mxu0 %v18252_v13 }
 0x280   : > { %16179 = vmatpush3.bf16.msra.mxu0 %v18252_v13 }
 0x281   : > { %16180 = vmatprep.subr.bf16.mxu0 %v18253_v4 }
 0x284   : > { %16181 = vmatpush3.bf16.msra.mxu0 %v18253_v4  ;;  %v25444_v4 = vld [vmem:[#allocation54_spill] sm:$0xff] }
 0x285   : > { %16182 = vmatprep.subr.bf16.mxu0 %v18254_v63 }
 0x288   : > { %16183 = vmatpush3.bf16.msra.mxu0 %v18254_v63 }
 0x34c   : > { %v1190_v38 = vpop.f32.mrb[0].mxu1 }
 0x34d   : > { %v16168_v40 = vpop.f32.mrb[1].mxu1  ;;  %v1196_v47 = vmul.f32 0.0009765625, %v1190_v38  ;;  %v18255_v38 = vld [vmem:[#allocation6 + $0x78] sm:$0xff]  }
 0x34e   : > { %v1193_v1 = vpop.f32.mrb[2].mxu1  ;;  %v25435_v40 = vld [vmem:[#allocation38_spill] sm:$0xff]  ;;  %16184 = vmatprep.subr.bf16.mxu0 %v18255_v38 }
 0x34f   : > { %v16169_v41 = vpop.f32.mrb[3].mxu1  ;;  %v1197_v43 = vadd.f32 1e-05, %v1196_v47  ;;  %25442 = vst [vmem:[#allocation38_spill] sm:$0xff] %v20585_v7  ;;  %16185 = vmatpush3.bf16.msra.mxu0 %v18255_v38 }
 0x350   : > { %v25436_v41 = vld [vmem:[#allocation40_spill] sm:$0xff]  ;;  %16234 = vmatprep.subr.bf16.mxu0 %v20585_v7 }
 0x351   : > { %18832 = vrsqrt.f32 %v1197_v43  ;;  %v25439_v43 = vld [vmem:[#allocation46_spill] sm:$0xff] }
 0x35b   : > { %v18833_v5 = vpop.eup %18832 }
 0x35c   : > { %v1199_v54 = vmul.f32 %v18833_v5, %v431_v33  ;;  %v25441_v5 = vld [vmem:[#allocation50_spill] sm:$0xff] }
 0x35e   : > { %v20521_v17 = vrot.slane %v1199_v54, %v20091_v14  ;;  %v25443_v54 = vld [vmem:[#allocation52_spill] sm:$0xff] }
 0x360   : > { %v1204_v42 = vmul.f32 %v20521_v17, %v20111_v26  ;;  %v1205_v31 = vmul.f32 %v20521_v17, %v20114_v27  ;;  %v1206_v18 = vmul.f32 %v20521_v17, %v20125_v35  ;;  %v1207_v60 = vmul.f32 %v20521_v17, %v20134_v2 }
 0x361   : > { %v1208_v32 = vmul.f32 %v20521_v17, %v20141_v19  ;;  %v1209_v0 = vmul.f32 %v20521_v17, %v20150_v29  ;;  %v1210_v26 = vmul.f32 %v20521_v17, %v20157_v9  ;;  %v1211_v27 = vmul.f32 %v20521_v17, %v20166_v55  ;;  %v25437_v55 = vld [vmem:[#allocation42_spill] sm:$0xff] }
 0x362   : > { %v1212_v35 = vmul.f32 %v20521_v17, %v20175_v30  ;;  %v1213_v2 = vmul.f32 %v20521_v17, %v20182_v62  ;;  %v1214_v19 = vmul.f32 %v20521_v17, %v20191_v3  ;;  %v1215_v29 = vmul.f32 %v20521_v17, %v25435_v40  ;;  %v25438_v3 = vld [vmem:[#allocation44_spill] sm:$0xff] }
 0x363   : > { %v1216_v1 = vmul.f32 %v20521_v17, %v20207_v8  ;;  %v20551_v9 = vmul.f32 %v20521_v17, %v25436_v41  ;;  %v20555_v30 = vmul.f32 %v20521_v17, %v25437_v55  ;;  %v20559_v62 = vmul.f32 %v20521_v17, %v20232_v16  ;;  %v25445_v40 = vld [vmem:[#allocation56_spill] sm:$0xff] }
 0x364   : > { %v20563_v47 = vmul.f32 %v20521_v17, %v25438_v3  ;;  %v20567_v8 = vmul.f32 %v20521_v17, %v25439_v43  ;;  %v20571_v24 = vmul.f32 %v20521_v17, %v20257_v28  ;;  %v20575_v46 = vmul.f32 %v20521_v17, %v25440_v44  ;;  %v20590_v28 = vld [vmem:[%s24996_s4 + $0x1] ss:$0 sm:$0xff] }
 0x365   : > { %v20579_v16 = vmul.f32 %v20521_v17, %v25441_v5  ;;  %v20583_v33 = vmul.f32 %v20521_v17, %v20282_v22  ;;  %v20594_v13 = vmul.f32 %v20521_v17, %v25443_v54  ;;  %v20598_v63 = vmul.f32 %v20521_v17, %v25444_v4  ;;  %v20719_v4 = vld [vmem:[#allocation2 + $0x8] sm:$0xf] }
 0x366   : > { %v20602_v22 = vmul.f32 %v20521_v17, %v20307_v12  ;;  %v20606_v41 = vmul.f32 %v20521_v17, %v25445_v40  ;;  %v20610_v55 = vmul.f32 %v20521_v17, %v20325_v50  ;;  %v20614_v3 = vmul.f32 %v20521_v17, %v20332_v20 }
 0x367   : > { %v20618_v43 = vmul.f32 %v20521_v17, %v20341_v34  ;;  %v20622_v12 = vmul.f32 %v20521_v17, %v20350_v21  ;;  %v20626_v44 = vmul.f32 %v20521_v17, %v20357_v15  ;;  %v20630_v50 = vmul.f32 %v20521_v17, %v20366_v23 }
 0x368   : > { %v20634_v20 = vmul.f32 %v20521_v17, %v20375_v58  ;;  %v20638_v34 = vmul.f32 %v20521_v17, %v20382_v53  ;;  %v20642_v21 = vmul.f32 %v20521_v17, %v20391_v61  ;;  %v20646_v15 = vmul.f32 %v20521_v17, %v20400_v11 }
 0x369   : > { %v20649_v23 = vadd.f32 %v20590_v28, %v1204_v42  ;;  %v20652_v5 = vadd.f32 %v20590_v28, %v1205_v31  ;;  %v20657_v58 = vmul.f32 %v20521_v17, %v20407_v6  ;;  %v20661_v53 = vmul.f32 %v20521_v17, %v20416_v36 }
 0x36a   : > { %v20664_v61 = vadd.f32 %v20590_v28, %v1206_v18  ;;  %v20667_v11 = vadd.f32 %v20590_v28, %v1207_v60  ;;  %v20671_v42 = vmul.f32 %v20521_v17, %v20425_v25  ;;  %v20675_v31 = vmul.f32 %v20521_v17, %v20432_v59 }
 0x36b   : > { %v20679_v6 = vmul.f32 %v20521_v17, %v20441_v45  ;;  %v20682_v36 = vadd.f32 %v20590_v28, %v1208_v32  ;;  %v20686_v18 = vmul.f32 %v20521_v17, %v20448_v48  ;;  %v20690_v60 = vmul.f32 %v20521_v17, %v20457_v39 }
 0x36c   : > { %v20694_v25 = vmul.f32 %v20521_v17, %v20466_v51  ;;  %v20697_v59 = vadd.f32 %v20590_v28, %v1209_v0  ;;  %v20701_v45 = vmul.f32 %v20521_v17, %v20473_v57  ;;  %v20704_v32 = vadd.f32 %v20590_v28, %v1210_v26  ;;  %v20717_v57 = vld [vmem:[#allocation2 + $0x4] sm:$0xf] }
 0x36d   : > { %25446 = vst [vmem:[#allocation40_spill] sm:$0xff] %v20682_v36  ;;  %v1302_v48 = vsub.f32 0.0, %v20649_v23  ;;  %v1303_v38 = vsub.f32 0.0, %v20652_v5  ;;  %v20710_v39 = vmul.f32 %v20521_v17, %v20482_v37  ;;  %v20713_v51 = vadd.f32 %v20590_v28, %v1211_v27 }
 0x36e   : > { %25447 = vst [vmem:[#allocation42_spill] sm:$0xff] %v20697_v59  ;;  %25448 = vst [vmem:[#allocation44_spill] sm:$0xff] %v20704_v32  ;;  %v1304_v0 = vsub.f32 0.0, %v20664_v61  ;;  %v1305_v54 = vsub.f32 0.0, %v20667_v11  ;;  %v20723_v26 = vmul.f32 %v20521_v17, %v20489_v52  ;;  %v20726_v40 = vadd.f32 %v20590_v28, %v1212_v35 }
 0x36f   : > { %v20729_v37 = vadd.f32 %v20590_v28, %v1213_v2  ;;  %v1306_v27 = vsub.f32 0.0, %v20682_v36  ;;  %v20733_v14 = vadd.f32 %v20590_v28, %v1214_v19  ;;  %v20736_v56 = vadd.f32 %v20590_v28, %v1215_v29 }
 0x370   : > { %v20739_v10 = vadd.f32 %v20590_v28, %v1216_v1  ;;  %v1307_v52 = vsub.f32 0.0, %v20697_v59  ;;  %v1308_v17 = vsub.f32 0.0, %v20704_v32  ;;  %v1349_v35 = vmul.f32 1.442695, %v1302_v48 }
 0x371   : > { %v1351_v49 = vmul.f32 1.442695, %v1303_v38  ;;  %v14427_v2 = vcombine.low %v20717_v57, %v20719_v4  ;;  %v20747_v7 = vadd.f32 %v20590_v28, %v20551_v9  ;;  %v1309_v19 = vsub.f32 0.0, %v20713_v51 }
 0x372   : > { %v1353_v29 = vmul.f32 1.442695, %v1304_v0  ;;  %v1355_v36 = vmul.f32 1.442695, %v1305_v54  ;;  %v20752_v1 = vadd.f32 %v20590_v28, %v20555_v30  ;;  %v1310_v59 = vsub.f32 0.0, %v20726_v40 }
 0x373   : > { %25449 = vst [vmem:[#allocation46_spill] sm:$0xff] %v20747_v7  ;;  %v1357_v32 = vmul.f32 1.442695, %v1306_v27  ;;  %18834 = vpow2.f32 %v1349_v35  ;;  %16186 = vmatprep.mubr.bf16.mxu0 %v14427_v2  ;;  %v20757_v48 = vadd.f32 %v20590_v28, %v20559_v62  ;;  %v1311_v9 = vsub.f32 0.0, %v20729_v37 }
 0x374   : > { %25450 = vst [vmem:[#allocation48_spill] sm:$0xff] %v20752_v1  ;;  %v1359_v38 = vmul.f32 1.442695, %v1307_v52  ;;  %18836 = vpow2.f32 %v1351_v49  ;;  %v20762_v0 = vadd.f32 %v20590_v28, %v20563_v47  ;;  %v1312_v30 = vsub.f32 0.0, %v20733_v14 }
 0x375   : > { %25451 = vst [vmem:[#allocation50_spill] sm:$0xff] %v20757_v48  ;;  %v1361_v54 = vmul.f32 1.442695, %v1308_v17  ;;  %18838 = vpow2.f32 %v1353_v29  ;;  %v20767_v27 = vadd.f32 %v20590_v28, %v20567_v8  ;;  %v1313_v35 = vsub.f32 0.0, %v20736_v56 }
 0x376   : > { %25452 = vst [vmem:[#allocation52_spill] sm:$0xff] %v20762_v0  ;;  %v1363_v62 = vmul.f32 1.442695, %v1309_v19  ;;  %18840 = vpow2.f32 %v1355_v36  ;;  %v20772_v52 = vadd.f32 %v20590_v28, %v20571_v24  ;;  %v1314_v49 = vsub.f32 0.0, %v20739_v10 }
 0x377   : > { %25453 = vst [vmem:[#allocation54_spill] sm:$0xff] %v20767_v27  ;;  %v1365_v47 = vmul.f32 1.442695, %v1310_v59  ;;  %18842 = vpow2.f32 %v1357_v32  ;;  %v20777_v17 = vadd.f32 %v20590_v28, %v20575_v46  ;;  %v1315_v2 = vsub.f32 0.0, %v20747_v7 }
 0x378   : > { %25454 = vst [vmem:[#allocation56_spill] sm:$0xff] %v20772_v52  ;;  %v1367_v8 = vmul.f32 1.442695, %v1311_v9  ;;  %18844 = vpow2.f32 %v1359_v38  ;;  %v20782_v19 = vadd.f32 %v20590_v28, %v20579_v16  ;;  %v1316_v36 = vsub.f32 0.0, %v20752_v1 }
 0x379   : > { %25455 = vst [vmem:[#allocation71_spill] sm:$0xff] %v20777_v17  ;;  %v1369_v24 = vmul.f32 1.442695, %v1312_v30  ;;  %18846 = vpow2.f32 %v1361_v54  ;;  %v20787_v59 = vadd.f32 %v20590_v28, %v20583_v33  ;;  %v1317_v32 = vsub.f32 0.0, %v20757_v48 }
 0x37a   : > { %25456 = vst [vmem:[#allocation72_spill] sm:$0xff] %v20782_v19  ;;  %v1371_v46 = vmul.f32 1.442695, %v1313_v35  ;;  %18848 = vpow2.f32 %v1363_v62  ;;  %v20792_v29 = vadd.f32 %v20590_v28, %v20594_v13  ;;  %v1318_v9 = vsub.f32 0.0, %v20762_v0 }
 0x37b   : > { %25457 = vst [vmem:[#allocation73_spill] sm:$0xff] %v20787_v59  ;;  %v1373_v16 = vmul.f32 1.442695, %v1314_v49  ;;  %18850 = vpow2.f32 %v1365_v47  ;;  %v20797_v38 = vadd.f32 %v20590_v28, %v20598_v63  ;;  %v1319_v30 = vsub.f32 0.0, %v20767_v27 }
 0x37c   : > { %25458 = vst [vmem:[#allocation74_spill] sm:$0xff] %v20792_v29  ;;  %v1375_v33 = vmul.f32 1.442695, %v1315_v2  ;;  %18852 = vpow2.f32 %v1367_v8  ;;  %v20804_v35 = vadd.f32 %v20590_v28, %v20602_v22  ;;  %v1320_v13 = vsub.f32 0.0, %v20772_v52 }
 0x37d   : > { %25459 = vst [vmem:[#allocation75_spill] sm:$0xff] %v20797_v38  ;;  %v20800_v54 = vpop.eup %18834  ;;  %v1377_v62 = vmul.f32 1.442695, %v1316_v36  ;;  %18854 = vpow2.f32 %v1369_v24  ;;  %v20811_v63 = vadd.f32 %v20590_v28, %v20606_v41  ;;  %v1321_v47 = vsub.f32 0.0, %v20777_v17  ;;  %v20821_v24 = vld [vmem:[#allocation2 + $0xc] sm:$0xf] }
 0x37e   : > { %25460 = vst [vmem:[#allocation76_spill] sm:$0xff] %v20804_v35  ;;  %v20807_v49 = vpop.eup %18836  ;;  %v1379_v2 = vmul.f32 1.442695, %v1317_v32  ;;  %18856 = vpow2.f32 %v1371_v46  ;;  %v20818_v22 = vadd.f32 %v20590_v28, %v20610_v55  ;;  %v1322_v52 = vsub.f32 0.0, %v20782_v19  ;;  %25463 = vst [vmem:[#allocation79_spill] sm:$0xff] %v20821_v24 }
 0x37f   : > { %25461 = vst [vmem:[#allocation77_spill] sm:$0xff] %v20811_v63  ;;  %v20814_v8 = vpop.eup %18838  ;;  %v1381_v36 = vmul.f32 1.442695, %v1318_v9  ;;  %18858 = vpow2.f32 %v1373_v16  ;;  %v20827_v41 = vadd.f32 %v20590_v28, %v20614_v3  ;;  %v1323_v32 = vsub.f32 0.0, %v20787_v59 }
 0x380   : > { %25462 = vst [vmem:[#allocation78_spill] sm:$0xff] %v20818_v22  ;;  %v20823_v27 = vpop.eup %18840  ;;  %v1383_v46 = vmul.f32 1.442695, %v1319_v30  ;;  %18860 = vpow2.f32 %v1375_v33  ;;  %v20834_v55 = vadd.f32 %v20590_v28, %v20618_v43  ;;  %v1324_v9 = vsub.f32 0.0, %v20792_v29 }
 0x381   : > { %25464 = vst [vmem:[#allocation80_spill] sm:$0xff] %v20827_v41  ;;  %v20830_v17 = vpop.eup %18842  ;;  %v1385_v16 = vmul.f32 1.442695, %v1320_v13  ;;  %18862 = vpow2.f32 %v1377_v62  ;;  %v1325_v0 = vsub.f32 0.0, %v20797_v38  ;;  %v1387_v3 = vmul.f32 1.442695, %v1321_v47 }
 0x382   : > { %25465 = vst [vmem:[#allocation81_spill] sm:$0xff] %v20834_v55  ;;  %v20837_v19 = vpop.eup %18844  ;;  %18864 = vpow2.f32 %v1379_v2  ;;  %v20842_v30 = vcombine.low %v20719_v4, %v20821_v24  ;;  %v20848_v43 = vadd.f32 %v20590_v28, %v20622_v12  ;;  %v1326_v29 = vsub.f32 0.0, %v20804_v35 }
 0x383   : > { %v20844_v33 = vpop.eup %18846  ;;  %v1389_v13 = vmul.f32 1.442695, %v1322_v52  ;;  %18866 = vpow2.f32 %v1381_v36  ;;  %v20855_v47 = vadd.f32 %v20590_v28, %v20626_v44  ;;  %v1327_v2 = vsub.f32 0.0, %v20811_v63 }
 0x384   : > { %25466 = vst [vmem:[#allocation82_spill] sm:$0xff] %v20848_v43  ;;  %v20851_v62 = vpop.eup %18848  ;;  %v1391_v4 = vmul.f32 1.442695, %v1323_v32  ;;  %18868 = vpow2.f32 %v1383_v46  ;;  %v20862_v12 = vadd.f32 %v20590_v28, %v20630_v50  ;;  %v1328_v35 = vsub.f32 0.0, %v20818_v22 }
 0x385   : > { %25467 = vst [vmem:[#allocation83_spill] sm:$0xff] %v20855_v47  ;;  %v20858_v38 = vpop.eup %18850  ;;  %v1393_v52 = vmul.f32 1.442695, %v1324_v9  ;;  %18870 = vpow2.f32 %v1385_v16  ;;  %v20869_v44 = vadd.f32 %v20590_v28, %v20634_v20  ;;  %v1329_v63 = vsub.f32 0.0, %v20827_v41 }
 0x386   : > { %25468 = vst [vmem:[#allocation84_spill] sm:$0xff] %v20862_v12  ;;  %v20865_v36 = vpop.eup %18852  ;;  %v1395_v32 = vmul.f32 1.442695, %v1325_v0  ;;  %18872 = vpow2.f32 %v1387_v3  ;;  %v20876_v50 = vadd.f32 %v20590_v28, %v20638_v34  ;;  %v1330_v22 = vsub.f32 0.0, %v20834_v55 }
 0x387   : > { %25469 = vst [vmem:[#allocation85_spill] sm:$0xff] %v20869_v44  ;;  %v20872_v46 = vpop.eup %18854  ;;  %v1397_v9 = vmul.f32 1.442695, %v1326_v29  ;;  %18874 = vpow2.f32 %v1389_v13  ;;  %v20883_v20 = vadd.f32 %v20590_v28, %v20642_v21  ;;  %v1331_v41 = vsub.f32 0.0, %v20848_v43 }
 0x388   : > { %25470 = vst [vmem:[#allocation86_spill] sm:$0xff] %v20876_v50  ;;  %v20879_v16 = vpop.eup %18856  ;;  %v1399_v0 = vmul.f32 1.442695, %v1327_v2  ;;  %18876 = vpow2.f32 %v1391_v4  ;;  %v20890_v34 = vadd.f32 %v20590_v28, %v20646_v15  ;;  %v1332_v55 = vsub.f32 0.0, %v20855_v47 }
 0x389   : > { %25471 = vst [vmem:[#allocation87_spill] sm:$0xff] %v20883_v20  ;;  %v20886_v3 = vpop.eup %18858  ;;  %v1401_v29 = vmul.f32 1.442695, %v1328_v35  ;;  %18878 = vpow2.f32 %v1393_v52  ;;  %v20897_v21 = vadd.f32 %v20590_v28, %v20657_v58  ;;  %v1333_v43 = vsub.f32 0.0, %v20862_v12 }
 0x38a   : > { %25472 = vst [vmem:[#allocation88_spill] sm:$0xff] %v20890_v34  ;;  %v20893_v13 = vpop.eup %18860  ;;  %v1403_v2 = vmul.f32 1.442695, %v1329_v63  ;;  %18880 = vpow2.f32 %v1395_v32  ;;  %v20904_v15 = vadd.f32 %v20590_v28, %v20661_v53  ;;  %v1334_v47 = vsub.f32 0.0, %v20869_v44 }
 0x38b   : > { %25473 = vst [vmem:[#allocation89_spill] sm:$0xff] %v20897_v21  ;;  %v20900_v4 = vpop.eup %18862  ;;  %v1405_v35 = vmul.f32 1.442695, %v1330_v22  ;;  %18882 = vpow2.f32 %v1397_v9  ;;  %v20911_v58 = vadd.f32 %v20590_v28, %v20671_v42  ;;  %v1335_v12 = vsub.f32 0.0, %v20876_v50 }
 0x38c   : > { %25474 = vst [vmem:[#allocation90_spill] sm:$0xff] %v20904_v15  ;;  %v20907_v52 = vpop.eup %18864  ;;  %v1407_v63 = vmul.f32 1.442695, %v1331_v41  ;;  %18884 = vpow2.f32 %v1399_v0  ;;  %v20918_v53 = vadd.f32 %v20590_v28, %v20675_v31  ;;  %v1336_v44 = vsub.f32 0.0, %v20883_v20 }
 0x38d   : > { %25475 = vst [vmem:[#allocation91_spill] sm:$0xff] %v20911_v58  ;;  %v20914_v32 = vpop.eup %18866  ;;  %v1409_v22 = vmul.f32 1.442695, %v1332_v55  ;;  %18886 = vpow2.f32 %v1401_v29  ;;  %v20925_v42 = vadd.f32 %v20590_v28, %v20679_v6  ;;  %v1337_v50 = vsub.f32 0.0, %v20890_v34 }
 0x38e   : > { %25476 = vst [vmem:[#allocation92_spill] sm:$0xff] %v20918_v53  ;;  %v20921_v9 = vpop.eup %18868  ;;  %v1411_v41 = vmul.f32 1.442695, %v1333_v43  ;;  %18888 = vpow2.f32 %v1403_v2  ;;  %v20932_v31 = vadd.f32 %v20590_v28, %v20686_v18  ;;  %v1338_v20 = vsub.f32 0.0, %v20897_v21 }
 0x38f   : > { %25477 = vst [vmem:[#allocation93_spill] sm:$0xff] %v20925_v42  ;;  %v20928_v0 = vpop.eup %18870  ;;  %v1413_v55 = vmul.f32 1.442695, %v1334_v47  ;;  %18890 = vpow2.f32 %v1405_v35  ;;  %v20939_v6 = vadd.f32 %v20590_v28, %v20690_v60  ;;  %v1339_v34 = vsub.f32 0.0, %v20904_v15 }
 0x390   : > { %25478 = vst [vmem:[#allocation94_spill] sm:$0xff] %v20932_v31  ;;  %v20935_v29 = vpop.eup %18872  ;;  %v1415_v43 = vmul.f32 1.442695, %v1335_v12  ;;  %18892 = vpow2.f32 %v1407_v63  ;;  %v20946_v18 = vadd.f32 %v20590_v28, %v20694_v25  ;;  %v1340_v21 = vsub.f32 0.0, %v20911_v58  ;;  %v1867_v63 = vld [vmem:[#allocation2] sm:$0x8] }
 0x391   : > { %25479 = vst [vmem:[#allocation95_spill] sm:$0xff] %v20939_v6  ;;  %v20942_v2 = vpop.eup %18874  ;;  %v1417_v47 = vmul.f32 1.442695, %v1336_v44  ;;  %18894 = vpow2.f32 %v1409_v22  ;;  %v20953_v60 = vadd.f32 %v20590_v28, %v20701_v45  ;;  %v1341_v15 = vsub.f32 0.0, %v20918_v53 }
 0x392   : > { %25480 = vst [vmem:[#allocation96_spill] sm:$0xff] %v20946_v18  ;;  %v20949_v35 = vpop.eup %18876  ;;  %v1419_v12 = vmul.f32 1.442695, %v1337_v50  ;;  %18896 = vpow2.f32 %v1411_v41  ;;  %v20960_v25 = vadd.f32 %v20590_v28, %v20710_v39  ;;  %v1342_v44 = vsub.f32 0.0, %v20925_v42 }
 0x393   : > { %25481 = vst [vmem:[#allocation97_spill] sm:$0xff] %v20953_v60  ;;  %v20956_v59 = vpop.eup %18878  ;;  %v1421_v22 = vmul.f32 1.442695, %v1338_v20  ;;  %18898 = vpow2.f32 %v1413_v55  ;;  %v20967_v45 = vadd.f32 %v20590_v28, %v20723_v26  ;;  %v1343_v50 = vsub.f32 0.0, %v20932_v31 }
 0x394   : > { %25482 = vst [vmem:[#allocation98_spill] sm:$0xff] %v20960_v25  ;;  %v20963_v58 = vpop.eup %18880  ;;  %v1423_v41 = vmul.f32 1.442695, %v1339_v34  ;;  %18900 = vpow2.f32 %v1415_v43  ;;  %v1344_v24 = vsub.f32 0.0, %v20939_v6  ;;  %v1425_v39 = vmul.f32 1.442695, %v1340_v21 }
 0x395   : > { %25483 = vst [vmem:[#allocation99_spill] sm:$0xff] %v20967_v45  ;;  %v20970_v53 = vpop.eup %18882  ;;  %18902 = vpow2.f32 %v1417_v47  ;;  %v14459_v42 = vcombine.low %v1867_v63, %v20717_v57  ;;  %v1345_v55 = vsub.f32 0.0, %v20946_v18  ;;  %v1346_v48 = vsub.f32 0.0, %v20953_v60 }
 0x396   : > { %v20974_v20 = vpop.eup %18884  ;;  %v1427_v28 = vmul.f32 1.442695, %v1341_v15  ;;  %18904 = vpow2.f32 %v1419_v12  ;;  %v1429_v34 = vmul.f32 1.442695, %v1342_v44  ;;  %v2398_v43 = vshrl.u32 %v20842_v30, 16 }
 0x397   : > { %v20978_v26 = vpop.eup %18886  ;;  %18906 = vpow2.f32 %v1421_v22  ;;  %v2401_v6 = vshll.u32 %v20842_v30, 16  ;;  %v1347_v57 = vsub.f32 0.0, %v20960_v25  ;;  %v1348_v47 = vsub.f32 0.0, %v20967_v45 }
 0x398   : > { %v20982_v21 = vpop.eup %18888  ;;  %v1431_v63 = vmul.f32 1.442695, %v1343_v50  ;;  %18908 = vpow2.f32 %v1423_v41  ;;  %v1433_v15 = vmul.f32 1.442695, %v1344_v24  ;;  %v2390_v12 = vshrl.u32 %v14459_v42, 16 }
 0x399   : > { %v20986_v18 = vpop.eup %18890  ;;  %18910 = vpow2.f32 %v1425_v39  ;;  %v2393_v60 = vshll.u32 %v14459_v42, 16  ;;  %v1435_v22 = vmul.f32 1.442695, %v1345_v55  ;;  %v1437_v30 = vmul.f32 1.442695, %v1346_v48 }
 0x39a   : > { %v20988_v44 = vpop.eup %18892  ;;  %18912 = vpow2.f32 %v1427_v28  ;;  %v2400_v1 = vrot.slane %v2398_v43, 3  ;;  %v2403_v25 = vrot.slane %v2401_v6, 4  ;;  %v1439_v50 = vmul.f32 1.442695, %v1347_v57 }
 0x39b   : > { %v20990_v31 = vpop.eup %18894  ;;  %18914 = vpow2.f32 %v1429_v34  ;;  %v1441_v24 = vmul.f32 1.442695, %v1348_v47  ;;  %v2392_v39 = vrot.slane %v2390_v12, 3  ;;  %v2395_v42 = vrot.slane %v2393_v60, 4 }
 0x39c   : > { %v20992_v7 = vpop.eup %18896  ;;  %18916 = vpow2.f32 %v1431_v63  ;;  %v1443_v55 = vadd.f32 1.0, %v20800_v54  ;;  %v1444_v48 = vadd.f32 1.0, %v20807_v49  ;;  %v21002_v34 = vor.u32 %v2403_v25, %v2400_v1 }
 0x39d   : > { %v20994_v41 = vpop.eup %18898  ;;  %18918 = vpow2.f32 %v1433_v15  ;;  %v2396_v6 = vor.u32 %v2395_v42, %v2392_v39  ;;  %v1445_v57 = vadd.f32 1.0, %v20814_v8  ;;  %v1446_v47 = vadd.f32 1.0, %v20823_v27 }
 0x39e   : > { %v20996_v45 = vpop.eup %18900  ;;  %18920 = vpow2.f32 %v1435_v22  ;;  %v1447_v1 = vadd.f32 1.0, %v20830_v17  ;;  %v1448_v25 = vadd.f32 1.0, %v20837_v19  ;;  %v1449_v15 = vadd.f32 1.0, %v20844_v33 }
 0x39f   : > { %v20999_v28 = vpop.eup %18902  ;;  %18922 = vpow2.f32 %v1437_v30  ;;  %v21012_v54 = vsel %vm2388_vm1, %v2396_v6, %v21002_v34  ;;  %v1450_v12 = vadd.f32 1.0, %v20851_v62  ;;  %v1451_v22 = vadd.f32 1.0, %v20858_v38 }
 0x3a0   : > { %v21004_v43 = vpop.eup %18904  ;;  %18924 = vpow2.f32 %v1439_v50  ;;  %v1452_v17 = vadd.f32 1.0, %v20865_v36  ;;  %v1453_v50 = vadd.f32 1.0, %v20872_v46  ;;  %v1454_v19 = vadd.f32 1.0, %v20879_v16 }
 0x3a1   : > { %v21007_v60 = vpop.eup %18906  ;;  %18926 = vpow2.f32 %v1441_v24  ;;  %v1455_v33 = vadd.f32 1.0, %v20886_v3  ;;  %v1456_v39 = vadd.f32 1.0, %v20893_v13  ;;  %v1457_v62 = vadd.f32 1.0, %v20900_v4 }
 0x3a2   : > { %v21014_v63 = vpop.eup %18908  ;;  %18928 = vrcp.f32 %v1443_v55  ;;  %v1458_v42 = vadd.f32 1.0, %v20907_v52  ;;  %v1459_v36 = vadd.f32 1.0, %v20914_v32  ;;  %v1460_v46 = vadd.f32 1.0, %v20921_v9 }
 0x3a3   : > { %v21017_v49 = vpop.eup %18910  ;;  %18930 = vrcp.f32 %v1444_v48  ;;  %v1461_v55 = vadd.f32 1.0, %v20928_v0  ;;  %v1462_v3 = vadd.f32 1.0, %v20935_v29  ;;  %v21047_v13 = vadd.f32 1.0, %v20942_v2 }
 0x3a4   : > { %v21020_v8 = vpop.eup %18912  ;;  %18932 = vrcp.f32 %v1445_v57  ;;  %v21052_v48 = vadd.f32 1.0, %v20949_v35  ;;  %v21055_v52 = vadd.f32 1.0, %v20956_v59  ;;  %v21058_v32 = vadd.f32 1.0, %v20963_v58 }
 0x3a5   : > { %v21023_v27 = vpop.eup %18914  ;;  %18934 = vrcp.f32 %v1446_v47  ;;  %v21063_v0 = vadd.f32 1.0, %v20970_v53  ;;  %v21066_v29 = vadd.f32 1.0, %v20974_v20  ;;  %v21069_v2 = vadd.f32 1.0, %v20978_v26 }
 0x3a6   : > { %v21027_v30 = vpop.eup %18916  ;;  %18936 = vrcp.f32 %v1447_v1  ;;  %v21072_v59 = vadd.f32 1.0, %v20982_v21  ;;  %v21075_v58 = vadd.f32 1.0, %v20986_v18  ;;  %v21078_v6 = vadd.f32 1.0, %v20988_v44 }
 0x3a7   : > { %v21032_v24 = vpop.eup %18918  ;;  %18938 = vrcp.f32 %v1448_v25  ;;  %v21081_v57 = vadd.f32 1.0, %v20990_v31  ;;  %v21084_v20 = vadd.f32 1.0, %v20992_v7  ;;  %v21088_v21 = vadd.f32 1.0, %v20994_v41  ;;  %v25484_v25 = vld [vmem:[#allocation13_spill] sm:$0xff]  ;;  %v25485_v41 = vld [vmem:[#allocation15_spill] sm:$0xff] }
 0x3a8   : > { %v21037_v38 = vpop.eup %18920  ;;  %18940 = vrcp.f32 %v1449_v15  ;;  %v21091_v18 = vadd.f32 1.0, %v20996_v45  ;;  %v21095_v31 = vadd.f32 1.0, %v20999_v28  ;;  %v25486_v28 = vld [vmem:[#allocation40_spill] sm:$0xff] }
 0x3a9   : > { %v21042_v16 = vpop.eup %18922  ;;  %18942 = vrcp.f32 %v1450_v12  ;;  %v21100_v12 = vadd.f32 1.0, %v21004_v43  ;;  %v25489_v43 = vld [vmem:[#allocation16_spill] sm:$0xff] }
 0x3aa   : > { %v21049_v4 = vpop.eup %18924  ;;  %18944 = vrcp.f32 %v1451_v22 }
 0x3ab   : > { %v21060_v9 = vpop.eup %18926  ;;  %18946 = vrcp.f32 %v1452_v17 }
 0x3ac   : > { %v18929_v35 = vpop.eup %18928  ;;  %18948 = vrcp.f32 %v1453_v50 }
 0x3ad   : > { %v18931_v53 = vpop.eup %18930  ;;  %18950 = vrcp.f32 %v1454_v19  ;;  %v1537_v26 = vmul.f32 %v18929_v35, %v20649_v23  ;;  %v25487_v19 = vld [vmem:[#allocation14_spill] sm:$0xff] }
 0x3ae   : > { %v18933_v47 = vpop.eup %18932  ;;  %18952 = vrcp.f32 %v1455_v33  ;;  %v1538_v44 = vmul.f32 %v18931_v53, %v20652_v5  ;;  %v21105_v5 = vadd.f32 1.0, %v21007_v60 }
 0x3af   : > { %v18935_v1 = vpop.eup %18934  ;;  %18954 = vrcp.f32 %v1456_v39  ;;  %v1539_v7 = vmul.f32 %v18933_v47, %v20664_v61  ;;  %v1584_v15 = vmul.f32 %v1537_v26, %v25484_v25  ;;  %v25488_v39 = vld [vmem:[#allocation42_spill] sm:$0xff]  ;;  %v25490_v47 = vld [vmem:[#allocation44_spill] sm:$0xff] }
 0x3b0   : > { %v18937_v23 = vpop.eup %18936  ;;  %18956 = vrcp.f32 %v1457_v62  ;;  %v1540_v45 = vmul.f32 %v18935_v1, %v20667_v11  ;;  %v1585_v22 = vmul.f32 %v1538_v44, %v25485_v41  ;;  %v21112_v11 = vadd.f32 1.0, %v21014_v63  ;;  %v25491_v44 = vld [vmem:[#allocation17_spill] sm:$0xff] }
 0x3b1   : > { %v18939_v17 = vpop.eup %18938  ;;  %18958 = vrcp.f32 %v1458_v42  ;;  %v1541_v50 = vmul.f32 %v18937_v23, %v25486_v28  ;;  %v1586_v61 = vmul.f32 %v1539_v7, %v25487_v19  ;;  %v25492_v23 = vld [vmem:[#allocation18_spill] sm:$0xff] }
 0x3b2   : > { %v18941_v33 = vpop.eup %18940  ;;  %18960 = vrcp.f32 %v1459_v36  ;;  %v1542_v35 = vmul.f32 %v18939_v17, %v25488_v39  ;;  %v1587_v53 = vmul.f32 %v1540_v45, %v25489_v43  ;;  %v15160_v62 = vpack.c.bf16 %v1585_v22, %v1584_v15  ;;  %v18313_v43 = vld [vmem:[#allocation6 + $0x88] sm:$0xff]  }
 0x3b3   : > { %v18943_v26 = vpop.eup %18942  ;;  %18962 = vrcp.f32 %v1460_v46  ;;  %v1543_v60 = vmul.f32 %v18941_v33, %v25490_v47  ;;  %v1588_v42 = vmul.f32 %v1541_v50, %v25491_v44  ;;  %v21119_v15 = vadd.f32 1.0, %v21017_v49  ;;  %v25493_v46 = vld [vmem:[#allocation19_spill] sm:$0xff]  ;;  %v25494_v50 = vld [vmem:[#allocation20_spill] sm:$0xff] }
 0x3b4   : > { %v18945_v1 = vpop.eup %18944  ;;  %18964 = vrcp.f32 %v1461_v55  ;;  %v1544_v7 = vmul.f32 %v18943_v26, %v20713_v51  ;;  %v1589_v36 = vmul.f32 %v1542_v35, %v25492_v23  ;;  %15387 = vst [vmem:[#allocation2 + $0x10] sm:$0xff] %v15160_v62   ;;  %v15165_v17 = vpack.c.bf16 %v1587_v53, %v1586_v61 }
 0x3b5   : > { %v18947_v28 = vpop.eup %18946  ;;  %18966 = vrcp.f32 %v1462_v3  ;;  %v1545_v63 = vmul.f32 %v18945_v1, %v20726_v40  ;;  %v1590_v45 = vmul.f32 %v1543_v60, %v25493_v46  ;;  %v21127_v61 = vadd.f32 1.0, %v21020_v8  ;;  %v25495_v40 = vld [vmem:[#allocation21_spill] sm:$0xff] }
 0x3b6   : > { %v18949_v22 = vpop.eup %18948  ;;  %18968 = vrcp.f32 %v21047_v13  ;;  %v1546_v55 = vmul.f32 %v18947_v28, %v20729_v37  ;;  %v1591_v51 = vmul.f32 %v1544_v7, %v25494_v50  ;;  %15388 = vst [vmem:[#allocation2 + $0x18] sm:$0xff] %v15165_v17   ;;  %v15170_v33 = vpack.c.bf16 %v1589_v36, %v1588_v42  ;;  %v25496_v37 = vld [vmem:[#allocation22_spill] sm:$0xff] }
 0x3b7   : > { %v18951_v39 = vpop.eup %18950  ;;  %18970 = vrcp.f32 %v21052_v48  ;;  %v1547_v49 = vmul.f32 %v18949_v22, %v20733_v14  ;;  %v1592_v3 = vmul.f32 %v1545_v63, %v25495_v40  ;;  %v21136_v47 = vadd.f32 1.0, %v21023_v27  ;;  %v25497_v14 = vld [vmem:[#allocation23_spill] sm:$0xff]  ;;  %v25500_v27 = vld [vmem:[#allocation48_spill] sm:$0xff] }
 0x3b8   : > { %v18953_v35 = vpop.eup %18952  ;;  %18972 = vrcp.f32 %v21055_v52  ;;  %v1548_v13 = vmul.f32 %v18951_v39, %v20736_v56  ;;  %v1593_v53 = vmul.f32 %v1546_v55, %v25496_v37  ;;  %15389 = vst [vmem:[#allocation2 + $0x20] sm:$0xff] %v15170_v33   ;;  %v15175_v62 = vpack.c.bf16 %v1591_v51, %v1590_v45  ;;  %v25498_v52 = vld [vmem:[#allocation46_spill] sm:$0xff]  ;;  %v25499_v56 = vld [vmem:[#allocation24_spill] sm:$0xff]  ;;  %v25503_v55 = vld [vmem:[#allocation27_spill] sm:$0xff] }
 0x3b9   : > { %v18955_v26 = vpop.eup %18954  ;;  %18974 = vrcp.f32 %v21058_v32  ;;  %v1549_v8 = vmul.f32 %v18953_v35, %v20739_v10  ;;  %v1594_v48 = vmul.f32 %v1547_v49, %v25497_v14  ;;  %v21145_v17 = vadd.f32 1.0, %v21027_v30  ;;  %v25501_v10 = vld [vmem:[#allocation26_spill] sm:$0xff] }
 0x3ba   : > { %v18957_v60 = vpop.eup %18956  ;;  %18976 = vrcp.f32 %v21063_v0  ;;  %v1550_v42 = vmul.f32 %v18955_v26, %v25498_v52  ;;  %v1595_v1 = vmul.f32 %v1548_v13, %v25499_v56  ;;  %15390 = vst [vmem:[#allocation2 + $0x28] sm:$0xff] %v15175_v62   ;;  %v15180_v7 = vpack.c.bf16 %v1593_v53, %v1592_v3  ;;  %v25502_v0 = vld [vmem:[#allocation50_spill] sm:$0xff]  ;;  %v25505_v3 = vld [vmem:[#allocation28_spill] sm:$0xff]  ;;  %v25506_v13 = vld [vmem:[#allocation79_spill] sm:$0xff] }
 0x3bb   : > { %v18959_v36 = vpop.eup %18958  ;;  %18978 = vrcp.f32 %v21066_v29  ;;  %v1551_v32 = vmul.f32 %v18957_v60, %v25500_v27  ;;  %v1596_v28 = vmul.f32 %v1549_v8, %v25501_v10  ;;  %v21150_v63 = vld [vmem:[#allocation2 + $0x10] sm:$0xf]  ;;  %v21155_v39 = vld [vmem:[#allocation2 + $0x14] sm:$0xf]  ;;  %v25504_v29 = vld [vmem:[#allocation52_spill] sm:$0xff] }
 0x3bc   : > { %v18961_v45 = vpop.eup %18960  ;;  %18980 = vrcp.f32 %v21069_v2  ;;  %v1552_v22 = vmul.f32 %v18959_v36, %v25502_v0  ;;  %v1597_v51 = vmul.f32 %v1550_v42, %v25503_v55  ;;  %15391 = vst [vmem:[#allocation2 + $0x30] sm:$0xff] %v15180_v7   ;;  %v15185_v33 = vpack.c.bf16 %v1595_v1, %v1594_v48  ;;  %v18267_v2 = vld [vmem:[#allocation6 + $0x8] sm:$0xff]   ;;  %v25507_v8 = vld [vmem:[#allocation54_spill] sm:$0xff]  ;;  %v25508_v60 = vld [vmem:[#allocation29_spill] sm:$0xff] }
 0x3bd   : > { %v18963_v30 = vpop.eup %18962  ;;  %18982 = vrcp.f32 %v21072_v59  ;;  %v1553_v49 = vmul.f32 %v18961_v45, %v25504_v29  ;;  %v1598_v35 = vmul.f32 %v1551_v32, %v25505_v3  ;;  %v14428_v53 = vcombine.low %v25506_v13, %v21150_v63  ;;  %v21162_v62 = vld [vmem:[#allocation2 + $0x18] sm:$0xf]  ;;  %v25509_v1 = vld [vmem:[#allocation56_spill] sm:$0xff]  ;;  %v25510_v36 = vld [vmem:[#allocation30_spill] sm:$0xff] }
 0x3be   : > { %v18965_v26 = vpop.eup %18964  ;;  %18984 = vrcp.f32 %v21075_v58  ;;  %v1554_v48 = vmul.f32 %v18963_v30, %v25507_v8  ;;  %v1599_v52 = vmul.f32 %v1552_v22, %v25508_v60  ;;  %15392 = vst [vmem:[#allocation2 + $0x38] sm:$0xff] %v15185_v33   ;;  %v15190_v42 = vpack.c.bf16 %v1597_v51, %v1596_v28  ;;  %v25511_v58 = vld [vmem:[#allocation71_spill] sm:$0xff]  ;;  %v25513_v51 = vld [vmem:[#allocation38_spill] sm:$0xff]  ;;  %v25514_v29 = vld [vmem:[#allocation72_spill] sm:$0xff] }
 0x3bf   : > { %v18967_v59 = vpop.eup %18966  ;;  %18986 = vrcp.f32 %v21078_v6  ;;  %v1555_v7 = vmul.f32 %v18965_v26, %v25509_v1  ;;  %v1600_v27 = vmul.f32 %v1553_v49, %v25510_v36  ;;  %16187 = vmatmul.mubr.bf16.vlgmr.msra.gmra.mrb[4].mxu0 %v14428_v53  ;;  %v14429_v32 = vcombine.low %v21155_v39, %v21162_v62  ;;  %v25512_v30 = vld [vmem:[#allocation31_spill] sm:$0xff]  ;;  %v25515_v13 = vld [vmem:[#allocation32_spill] sm:$0xff]  ;;  %v25516_v8 = vld [vmem:[#allocation73_spill] sm:$0xff] }
 0x3c0   : > { %v18969_v45 = vpop.eup %18968  ;;  %18988 = vrcp.f32 %v21081_v57  ;;  %v1556_v0 = vmul.f32 %v18967_v59, %v25511_v58  ;;  %v1601_v22 = vmul.f32 %v1554_v48, %v25512_v30  ;;  %15393 = vst [vmem:[#allocation2 + $0x40] sm:$0xff] %v15190_v42   ;;  %v15195_v28 = vpack.c.bf16 %v1599_v52, %v1598_v35  ;;  %16235 = vmatpush3.bf16.msra.mxu0 %v25513_v51  ;;  %v18272_v57 = vld [vmem:[#allocation6 + $0x10] sm:$0xff]   ;;  %v25521_v51 = vld [vmem:[#allocation35_spill] sm:$0xff] }
 0x3c1   : > { %v18971_v6 = vpop.eup %18970  ;;  %v21177_v33 = vadd.f32 1.0, %v21032_v24  ;;  %18990 = vrcp.f32 %v21084_v20  ;;  %v1557_v49 = vmul.f32 %v18969_v45, %v25514_v29  ;;  %v1602_v53 = vmul.f32 %v1555_v7, %v25515_v13  ;;  %16190 = vmatprep.mubr.bf16.mxu0 %v14429_v32  ;;  %16236 = vmatprep.subr.bf16.mxu0 %v18267_v2  ;;  %v25517_v48 = vld [vmem:[#allocation33_spill] sm:$0xff]  ;;  %v25518_v20 = vld [vmem:[#allocation74_spill] sm:$0xff] }
 0x3c2   : > { %v18973_v26 = vpop.eup %18972  ;;  %18992 = vrcp.f32 %v21088_v21  ;;  %v1558_v35 = vmul.f32 %v18971_v6, %v25516_v8  ;;  %v1603_v52 = vmul.f32 %v1556_v0, %v25517_v48  ;;  %15394 = vst [vmem:[#allocation2 + $0x48] sm:$0xff] %v15195_v28   ;;  %v15200_v42 = vpack.c.bf16 %v1601_v22, %v1600_v27  ;;  %v25519_v7 = vld [vmem:[#allocation34_spill] sm:$0xff]  ;;  %v25520_v21 = vld [vmem:[#allocation75_spill] sm:$0xff]  ;;  %v25523_v28 = vld [vmem:[#allocation36_spill] sm:$0xff] }
 0x3c3   : > { %v18975_v24 = vpop.eup %18974  ;;  %v21186_v59 = vadd.f32 1.0, %v21037_v38  ;;  %18994 = vrcp.f32 %v21091_v18  ;;  %v1559_v1 = vmul.f32 %v18973_v26, %v25518_v20  ;;  %v1604_v32 = vmul.f32 %v1557_v49, %v25519_v7  ;;  %v25522_v18 = vld [vmem:[#allocation76_spill] sm:$0xff]  ;;  %v18281_v49 = vld [vmem:[#allocation6 + $0x18] sm:$0xff]  }
 0x3c4   : > { %v18977_v45 = vpop.eup %18976  ;;  %18996 = vrcp.f32 %v21095_v31  ;;  %v1560_v58 = vmul.f32 %v18975_v24, %v25520_v21  ;;  %v1605_v6 = vmul.f32 %v1558_v35, %v25521_v51  ;;  %15395 = vst [vmem:[#allocation2 + $0x50] sm:$0xff] %v15200_v42   ;;  %v15205_v0 = vpack.c.bf16 %v1603_v52, %v1602_v53  ;;  %16237 = vmatpush3.bf16.msra.mxu0 %v18267_v2  ;;  %v25524_v31 = vld [vmem:[#allocation77_spill] sm:$0xff]  ;;  %v25527_v24 = vld [vmem:[#allocation39_spill] sm:$0xff] }
 0x3c5   : > { %v18979_v27 = vpop.eup %18978  ;;  %v1487_v38 = vadd.f32 1.0, %v21042_v16  ;;  %18998 = vrcp.f32 %v21100_v12  ;;  %v1561_v22 = vmul.f32 %v18977_v45, %v25522_v18  ;;  %v1606_v29 = vmul.f32 %v1559_v1, %v25523_v28  ;;  %16238 = vmatprep.subr.bf16.mxu0 %v18272_v57  ;;  %v25525_v35 = vld [vmem:[#allocation37_spill] sm:$0xff]  ;;  %v25526_v12 = vld [vmem:[#allocation78_spill] sm:$0xff]  ;;  %v21205_v1 = vld [vmem:[#allocation2 + $0x1c] sm:$0xf] }
 0x3c6   : > { %v18981_v26 = vpop.eup %18980  ;;  %19000 = vrcp.f32 %v21105_v5  ;;  %v1562_v8 = vmul.f32 %v18979_v27, %v25524_v31  ;;  %v1607_v42 = vmul.f32 %v1560_v58, %v25525_v35  ;;  %15396 = vst [vmem:[#allocation2 + $0x58] sm:$0xff] %v15205_v0   ;;  %v15210_v2 = vpack.c.bf16 %v1605_v6, %v1604_v32  ;;  %v25528_v5 = vld [vmem:[#allocation80_spill] sm:$0xff]  ;;  %v25529_v27 = vld [vmem:[#allocation41_spill] sm:$0xff] }
 0x3c7   : > { %v18983_v53 = vpop.eup %18982  ;;  %v1488_v16 = vadd.f32 1.0, %v21049_v4  ;;  %19002 = vrcp.f32 %v21112_v11  ;;  %v1563_v52 = vmul.f32 %v18981_v26, %v25526_v12  ;;  %v1608_v20 = vmul.f32 %v1561_v22, %v25527_v24  ;;  %v21210_v6 = vld [vmem:[#allocation2 + $0x20] sm:$0xf]  ;;  %v25530_v0 = vld [vmem:[#allocation81_spill] sm:$0xff]  ;;  %v25531_v22 = vld [vmem:[#allocation43_spill] sm:$0xff] }
 0x3c8   : > { %v18985_v45 = vpop.eup %18984  ;;  %19004 = vrcp.f32 %v21119_v15  ;;  %v1564_v21 = vmul.f32 %v18983_v53, %v25528_v5  ;;  %v1609_v58 = vmul.f32 %v1562_v8, %v25529_v27  ;;  %15397 = vst [vmem:[#allocation2 + $0x60] sm:$0xff] %v15210_v2   ;;  %v15215_v32 = vpack.c.bf16 %v1607_v42, %v1606_v29  ;;  %16239 = vmatpush3.bf16.msra.mxu0 %v18272_v57  ;;  %v18286_v15 = vld [vmem:[#allocation6 + $0x20] sm:$0xff]   ;;  %v25532_v8 = vld [vmem:[#allocation82_spill] sm:$0xff]  ;;  %v25533_v29 = vld [vmem:[#allocation45_spill] sm:$0xff] }
 0x3c9   : > { %v18987_v4 = vpop.eup %18986  ;;  %v1489_v11 = vadd.f32 1.0, %v21060_v9  ;;  %19006 = vrcp.f32 %v21127_v61  ;;  %v1565_v18 = vmul.f32 %v18985_v45, %v25530_v0  ;;  %v1610_v26 = vmul.f32 %v1563_v52, %v25531_v22  ;;  %16240 = vmatprep.subr.bf16.mxu0 %v18281_v49  ;;  %v25534_v9 = vld [vmem:[#allocation83_spill] sm:$0xff]  ;;  %v25553_v22 = vld [vmem:[#allocation61_spill] sm:$0xff]  ;;  %v21270_v35 = vld [vmem:[#allocation2 + $0x3c] sm:$0xf] }
 0x3ca   : > { %v18989_v31 = vpop.eup %18988  ;;  %19008 = vrcp.f32 %v21136_v47  ;;  %v1566_v2 = vmul.f32 %v18987_v4, %v25532_v8  ;;  %v1611_v42 = vmul.f32 %v1564_v21, %v25533_v29  ;;  %15398 = vst [vmem:[#allocation2 + $0x68] sm:$0xff] %v15215_v32   ;;  %v15220_v57 = vpack.c.bf16 %v1609_v58, %v1608_v20  ;;  %v25535_v12 = vld [vmem:[#allocation47_spill] sm:$0xff]  ;;  %v25536_v47 = vld [vmem:[#allocation84_spill] sm:$0xff]  ;;  %v25537_v4 = vld [vmem:[#allocation49_spill] sm:$0xff] }
 0x3cb   : > { %v18991_v53 = vpop.eup %18990  ;;  %19010 = vrcp.f32 %v21145_v17  ;;  %v1567_v61 = vmul.f32 %v18989_v31, %v25534_v9  ;;  %v1612_v45 = vmul.f32 %v1565_v18, %v25535_v12  ;;  %v14430_v52 = vcombine.low %v21205_v1, %v21210_v6  ;;  %v21227_v20 = vld [vmem:[#allocation2 + $0x24] sm:$0xf]  ;;  %v21229_v58 = vld [vmem:[#allocation2 + $0x28] sm:$0xf]  ;;  %v25539_v31 = vld [vmem:[#allocation51_spill] sm:$0xff] }
 0x3cc   : > { %v18993_v5 = vpop.eup %18992  ;;  %19012 = vrcp.f32 %v21177_v33  ;;  %v1568_v0 = vmul.f32 %v18991_v53, %v25536_v47  ;;  %v1613_v8 = vmul.f32 %v1566_v2, %v25537_v4  ;;  %15399 = vst [vmem:[#allocation2 + $0x70] sm:$0xff] %v15220_v57   ;;  %v15225_v21 = vpack.c.bf16 %v1611_v42, %v1610_v26  ;;  %16241 = vmatpush3.bf16.msra.mxu0 %v18281_v49  ;;  %v25538_v32 = vld [vmem:[#allocation85_spill] sm:$0xff]  ;;  %v25540_v53 = vld [vmem:[#allocation86_spill] sm:$0xff]  ;;  %v18295_v47 = vld [vmem:[#allocation6 + $0x28] sm:$0xff]  }
 0x3cd   : > { %v18995_v17 = vpop.eup %18994  ;;  %19014 = vrcp.f32 %v21186_v59  ;;  %v1569_v18 = vmul.f32 %v18993_v5, %v25538_v32  ;;  %v1614_v9 = vmul.f32 %v1567_v61, %v25539_v31  ;;  %16191 = vmatmul.mubr.bf16.gmra.mrb[8].mxu0 %v14430_v52  ;;  %16242 = vmatprep.subr.bf16.mxu0 %v18286_v15  ;;  %v25541_v57 = vld [vmem:[#allocation53_spill] sm:$0xff]  ;;  %v25542_v49 = vld [vmem:[#allocation87_spill] sm:$0xff]  ;;  %v14431_v61 = vcombine.low %v21227_v20, %v21229_v58  ;;  %v25544_v5 = vld [vmem:[#allocation88_spill] sm:$0xff] }
 0x3ce   : > { %v18997_v33 = vpop.eup %18996  ;;  %19016 = vrcp.f32 %v1487_v38  ;;  %v1570_v2 = vmul.f32 %v18995_v17, %v25540_v53  ;;  %v1615_v26 = vmul.f32 %v1568_v0, %v25541_v57  ;;  %15400 = vst [vmem:[#allocation2 + $0x78] sm:$0xff] %v15225_v21   ;;  %v15230_v42 = vpack.c.bf16 %v1613_v8, %v1612_v45  ;;  %v25543_v59 = vld [vmem:[#allocation55_spill] sm:$0xff]  ;;  %v25545_v32 = vld [vmem:[#allocation57_spill] sm:$0xff]  ;;  %v21242_v21 = vld [vmem:[#allocation2 + $0x2c] sm:$0xf] }
 0x3cf   : > { %v18999_v4 = vpop.eup %18998  ;;  %19018 = vrcp.f32 %v1488_v16  ;;  %v1571_v12 = vmul.f32 %v18997_v33, %v25542_v49  ;;  %v1616_v29 = vmul.f32 %v1569_v18, %v25543_v59  ;;  %v21244_v45 = vld [vmem:[#allocation2 + $0x30] sm:$0xf]  ;;  %v25546_v8 = vld [vmem:[#allocation89_spill] sm:$0xff]  ;;  %16194 = vmatprep.mubr.bf16.mxu0 %v14431_v61  ;;  %v21248_v49 = vld [vmem:[#allocation2 + $0x34] sm:$0xf]  ;;  %v14461_v60 = vcombine.low %v21150_v63, %v21155_v39 }
 0x3d0   : > { %v19001_v52 = vpop.eup %19000  ;;  %19020 = vrcp.f32 %v1489_v11  ;;  %v1572_v38 = vmul.f32 %v18999_v4, %v25544_v5  ;;  %v1617_v17 = vmul.f32 %v1570_v2, %v25545_v32  ;;  %15401 = vst [vmem:[#allocation2 + $0x80] sm:$0xff] %v15230_v42   ;;  %v15235_v0 = vpack.c.bf16 %v1615_v26, %v1614_v9  ;;  %16243 = vmatpush3.bf16.msra.mxu0 %v18286_v15  ;;  %v25547_v18 = vld [vmem:[#allocation58_spill] sm:$0xff]  ;;  %v21250_v11 = vld [vmem:[#allocation2 + $0x38] sm:$0xf]  ;;  %v25551_v57 = vld [vmem:[#allocation60_spill] sm:$0xff] }
 0x3d1   : > { %v19003_v16 = vpop.eup %19002  ;;  %v1573_v33 = vmul.f32 %v19001_v52, %v25546_v8  ;;  %v1618_v53 = vmul.f32 %v1571_v12, %v25547_v18  ;;  %v25548_v5 = vld [vmem:[#allocation90_spill] sm:$0xff]  ;;  %v25549_v42 = vld [vmem:[#allocation59_spill] sm:$0xff]  ;;  %16244 = vmatprep.subr.bf16.mxu0 %v18295_v47  ;;  %v14432_v12 = vcombine.low %v21242_v21, %v21244_v45  ;;  %v18300_v61 = vld [vmem:[#allocation6 + $0x30] sm:$0xff]   ;;  %v2410_v10 = vshll.u32 %v14461_v60, 16 }
 0x3d2   : > { %v19005_v4 = vpop.eup %19004  ;;  %v1574_v2 = vmul.f32 %v19003_v16, %v25548_v5  ;;  %v1619_v9 = vmul.f32 %v1572_v38, %v25549_v42  ;;  %15402 = vst [vmem:[#allocation2 + $0x88] sm:$0xff] %v15235_v0   ;;  %v15240_v26 = vpack.c.bf16 %v1617_v17, %v1616_v29  ;;  %v25550_v15 = vld [vmem:[#allocation91_spill] sm:$0xff]  ;;  %v25552_v18 = vld [vmem:[#allocation92_spill] sm:$0xff]  ;;  %v14433_v29 = vcombine.low %v21248_v49, %v21250_v11  ;;  %v25554_v17 = vld [vmem:[#allocation93_spill] sm:$0xff] }
 0x3d3   : > { %v19007_v32 = vpop.eup %19006  ;;  %v1575_v59 = vmul.f32 %v19005_v4, %v25550_v15  ;;  %v1620_v52 = vmul.f32 %v1573_v33, %v25551_v57  ;;  %v25555_v4 = vld [vmem:[#allocation62_spill] sm:$0xff]  ;;  %v25557_v24 = vld [vmem:[#allocation63_spill] sm:$0xff]  ;;  %v2412_v40 = vrot.slane %v2410_v10, 4  ;;  %v14463_v50 = vcombine.low %v21210_v6, %v21227_v20 }
 0x3d4   : > { %v19009_v8 = vpop.eup %19008  ;;  %v1576_v31 = vmul.f32 %v19007_v32, %v25552_v18  ;;  %v1621_v27 = vmul.f32 %v1574_v2, %v25553_v22  ;;  %15403 = vst [vmem:[#allocation2 + $0x90] sm:$0xff] %v15240_v26   ;;  %v15245_v16 = vpack.c.bf16 %v1619_v9, %v1618_v53  ;;  %16245 = vmatpush3.bf16.msra.mxu0 %v18295_v47  ;;  %v18309_v5 = vld [vmem:[#allocation6 + $0x38] sm:$0xff]   ;;  %v25558_v2 = vld [vmem:[#allocation95_spill] sm:$0xff]  ;;  %v25559_v26 = vld [vmem:[#allocation64_spill] sm:$0xff] }
 0x3d5   : > { %v19011_v38 = vpop.eup %19010  ;;  %v1577_v0 = vmul.f32 %v19009_v8, %v25554_v17  ;;  %v1622_v33 = vmul.f32 %v1575_v59, %v25555_v4  ;;  %16195 = vmatmul.mubr.bf16.gmra.mrb[12].mxu0 %v14432_v12  ;;  %v25556_v57 = vld [vmem:[#allocation94_spill] sm:$0xff]  ;;  %16246 = vmatprep.subr.bf16.mxu0 %v18300_v61  ;;  %v25560_v8 = vld [vmem:[#allocation96_spill] sm:$0xff]  ;;  %v25561_v59 = vld [vmem:[#allocation65_spill] sm:$0xff]  ;;  %v14464_v46 = vcombine.low %v21229_v58, %v21242_v21 }
 0x3d6   : > { %v19013_v15 = vpop.eup %19012  ;;  %v1578_v42 = vmul.f32 %v19011_v38, %v25556_v57  ;;  %v1623_v32 = vmul.f32 %v1576_v31, %v25557_v24  ;;  %15404 = vst [vmem:[#allocation2 + $0x98] sm:$0xff] %v15245_v16   ;;  %v15250_v18 = vpack.c.bf16 %v1621_v27, %v1620_v52  ;;  %16198 = vmatprep.mubr.bf16.mxu0 %v14433_v29  ;;  %v21272_v57 = vld [vmem:[#allocation2 + $0x40] sm:$0xf]  ;;  %v25562_v31 = vld [vmem:[#allocation97_spill] sm:$0xff]  ;;  %v25563_v16 = vld [vmem:[#allocation66_spill] sm:$0xff] }
 0x3d7   : > { %v19015_v53 = vpop.eup %19014  ;;  %v1579_v9 = vmul.f32 %v19013_v15, %v25558_v2  ;;  %v1624_v47 = vmul.f32 %v1577_v0, %v25559_v26  ;;  %v21276_v38 = vld [vmem:[#allocation2 + $0x44] sm:$0xf]  ;;  %v21278_v0 = vld [vmem:[#allocation2 + $0x48] sm:$0xf]  ;;  %v25566_v2 = vld [vmem:[#allocation99_spill] sm:$0xff]  ;;  %v2434_v23 = vshrl.u32 %v14464_v46, 16  ;;  %v14465_v10 = vcombine.low %v21244_v45, %v21248_v49 }
 0x3d8   : > { %v19017_v22 = vpop.eup %19016  ;;  %v1580_v17 = vmul.f32 %v19015_v53, %v25560_v8  ;;  %v1625_v12 = vmul.f32 %v1578_v42, %v25561_v59  ;;  %15405 = vst [vmem:[#allocation2 + $0xa0] sm:$0xff] %v15250_v18   ;;  %v15255_v4 = vpack.c.bf16 %v1623_v32, %v1622_v33  ;;  %16247 = vmatpush3.bf16.msra.mxu0 %v18300_v61  ;;  %v25564_v53 = vld [vmem:[#allocation98_spill] sm:$0xff]  ;;  %v25565_v18 = vld [vmem:[#allocation67_spill] sm:$0xff]  ;;  %v25567_v61 = vld [vmem:[#allocation68_spill] sm:$0xff]  ;;  %v2437_v44 = vshll.u32 %v14464_v46, 16 }
 0x3d9   : > { %v19019_v27 = vpop.eup %19018  ;;  %v1581_v52 = vmul.f32 %v19017_v22, %v25562_v31  ;;  %v1626_v29 = vmul.f32 %v1579_v9, %v25563_v16  ;;  %16248 = vmatprep.subr.bf16.mxu0 %v18309_v5  ;;  %v14434_v22 = vcombine.low %v21270_v35, %v21272_v57  ;;  %v21286_v9 = vld [vmem:[#allocation6 + $0x80] sm:$0xff]   ;;  %v25568_v31 = vld [vmem:[#allocation69_spill] sm:$0xff]  ;;  %v2443_v21 = vshrl.u32 %v14465_v10, 16 }
 0x3da   : > { %v19021_v15 = vpop.eup %19020  ;;  %v1582_v42 = vmul.f32 %v19019_v27, %v25564_v53  ;;  %v1627_v33 = vmul.f32 %v1580_v17, %v25565_v18  ;;  %15406 = vst [vmem:[#allocation2 + $0xa8] sm:$0xff] %v15255_v4   ;;  %v15260_v32 = vpack.c.bf16 %v1625_v12, %v1624_v47  ;;  %v14435_v27 = vcombine.low %v21276_v38, %v21278_v0  ;;  %v25569_v17 = vld [vmem:[#allocation70_spill] sm:$0xff]  ;;  %v21299_v53 = vld [vmem:[#allocation2 + $0x58] sm:$0xf]  ;;  %v18314_v46 = vld [vmem:[#allocation6 + $0x90] sm:$0xff]  }
 0x3db   : > { %v1583_v8 = vmul.f32 %v19021_v15, %v25566_v2  ;;  %v1628_v59 = vmul.f32 %v1581_v52, %v25567_v61  ;;  %v21293_v52 = vld [vmem:[#allocation2 + $0x4c] sm:$0xf]  ;;  %v21295_v15 = vld [vmem:[#allocation2 + $0x50] sm:$0xf]  ;;  %v2446_v45 = vshll.u32 %v14465_v10, 16  ;;  %v18317_v10 = vld [vmem:[#allocation6 + $0xa8] sm:$0xff]  }
 0x3dc   : > { %v1629_v16 = vmul.f32 %v1582_v42, %v25568_v31  ;;  %15407 = vst [vmem:[#allocation2 + $0xb0] sm:$0xff] %v15260_v32   ;;  %v15265_v26 = vpack.c.bf16 %v1627_v33, %v1626_v29  ;;  %16249 = vmatpush3.bf16.msra.mxu0 %v18309_v5  ;;  %v21297_v29 = vld [vmem:[#allocation2 + $0x54] sm:$0xf]  ;;  %v14436_v5 = vcombine.low %v21293_v52, %v21295_v15  ;;  %v21309_v42 = vld [vmem:[#allocation2 + $0x64] sm:$0xf] }
 0x3dd   : > { %v1630_v4 = vmul.f32 %v1583_v8, %v25569_v17  ;;  %16199 = vmatmul.mubr.bf16.gmra.mrb[16].mxu0 %v14434_v22  ;;  %16298 = vmatprep.subr.bf16.mxu0 %v21286_v9  ;;  %v21311_v33 = vld [vmem:[#allocation2 + $0x68] sm:$0xf]  ;;  %v21317_v8 = vld [vmem:[#allocation2 + $0x6c] sm:$0xf]  ;;  %v21319_v22 = vld [vmem:[#allocation2 + $0x70] sm:$0xf] }
 0x3de   : > { %15408 = vst [vmem:[#allocation2 + $0xb8] sm:$0xff] %v15265_v26   ;;  %v15270_v47 = vpack.c.bf16 %v1629_v16, %v1628_v59  ;;  %16202 = vmatprep.mubr.bf16.mxu0 %v14435_v27  ;;  %v14437_v26 = vcombine.low %v21297_v29, %v21299_v53  ;;  %v21305_v59 = vld [vmem:[#allocation2 + $0x5c] sm:$0xf]  ;;  %v21307_v16 = vld [vmem:[#allocation2 + $0x60] sm:$0xf]  ;;  %v14439_v2 = vcombine.low %v21309_v42, %v21311_v33 }
 0x3df   : > { %v15109_v12 = vpack.c.bf16 %v1630_v4, %v1630_v4  ;;  %v14438_v32 = vcombine.low %v21305_v59, %v21307_v16  ;;  %v21321_v27 = vld [vmem:[#allocation2 + $0x74] sm:$0xf]  ;;  %v21323_v4 = vld [vmem:[#allocation2 + $0x78] sm:$0xf]  ;;  %v21341_v61 = vld [vmem:[#allocation2 + $0x8c] sm:$0xf] }
 0x3e0   : > { %15409 = vst [vmem:[#allocation2 + $0xc0] sm:$0xff] %v15270_v47   ;;  %v14440_v47 = vcombine.low %v21317_v8, %v21319_v22  ;;  %v21347_v18 = vld [vmem:[#allocation2 + $0x98] sm:$0xf]  ;;  %v21353_v51 = vld [vmem:[#allocation2 + $0x9c] sm:$0xf] }
 0x3e1   : > { %1866 = vst [vmem:[#allocation2 + $0xc8] sm:$0xf] %v15109_v12  ;;  %v14441_v12 = vcombine.low %v21321_v27, %v21323_v4  ;;  %v21359_v7 = vld [vmem:[#allocation2 + $0xa8] sm:$0xf]  ;;  %v21365_v30 = vld [vmem:[#allocation2 + $0xac] sm:$0xf] }
 0x3e3   : > { %v21626_v25 = vld [vmem:[#allocation2 + $0xb4] sm:$0xf] }
 0x3e4   : > { %25576 = vst [vmem:[#allocation52_spill] sm:$0xff] %v21626_v25 }
 0x3e5   : > { %16203 = vmatmul.mubr.bf16.gmra.mrb[20].mxu0 %v14436_v5  ;;  %v21329_v5 = vld [vmem:[#allocation2 + $0x7c] sm:$0xf]  ;;  %v21371_v36 = vld [vmem:[#allocation2 + $0xb8] sm:$0xf] }
 0x3e6   : > { %16206 = vmatprep.mubr.bf16.mxu0 %v14437_v26  ;;  %v21331_v26 = vld [vmem:[#allocation2 + $0x80] sm:$0xf]  ;;  %v21381_v56 = vld [vmem:[#allocation2 + $0xbc] sm:$0xf] }
 0x3e7   : > { %v14442_v17 = vcombine.low %v21329_v5, %v21331_v26  ;;  %v14450_v63 = vcombine.low %v21381_v56, %v21381_v56 }
 0x3ed   : > { %16207 = vmatmul.mubr.bf16.gmra.mrb[24].mxu0 %v14438_v32  ;;  %v21333_v32 = vld [vmem:[#allocation2 + $0x84] sm:$0xf] }
 0x3ee   : > { %16210 = vmatprep.mubr.bf16.mxu0 %v14439_v2  ;;  %v21335_v2 = vld [vmem:[#allocation2 + $0x88] sm:$0xf] }
 0x3ef   : > { %v14443_v31 = vcombine.low %v21333_v32, %v21335_v2 }
 0x3f5   : > { %16211 = vmatmul.mubr.bf16.gmra.mrb[28].mxu0 %v14440_v47  ;;  %v21343_v47 = vld [vmem:[#allocation2 + $0x90] sm:$0xf] }
 0x3f6   : > { %16214 = vmatprep.mubr.bf16.mxu0 %v14441_v12  ;;  %v21345_v12 = vld [vmem:[#allocation2 + $0x94] sm:$0xf]  ;;  %v14444_v24 = vcombine.low %v21341_v61, %v21343_v47 }
 0x3f7   : > { %v14445_v28 = vcombine.low %v21345_v12, %v21347_v18 }
 0x3fd   : > { %16215 = vmatmul.mubr.bf16.gmra.mrb[32].mxu0 %v14442_v17  ;;  %v21355_v17 = vld [vmem:[#allocation2 + $0xa0] sm:$0xf] }
 0x3fe   : > { %16218 = vmatprep.mubr.bf16.mxu0 %v14443_v31  ;;  %v21357_v31 = vld [vmem:[#allocation2 + $0xa4] sm:$0xf]  ;;  %v14446_v48 = vcombine.low %v21353_v51, %v21355_v17 }
 0x3ff   : > { %v14447_v13 = vcombine.low %v21357_v31, %v21359_v7 }
 0x405   : > { %16219 = vmatmul.mubr.bf16.gmra.mrb[36].mxu0 %v14444_v24  ;;  %v21367_v24 = vld [vmem:[#allocation2 + $0xb0] sm:$0xf] }
 0x406   : > { %16222 = vmatprep.mubr.bf16.mxu0 %v14445_v28  ;;  %v21369_v28 = vld [vmem:[#allocation2 + $0xb4] sm:$0xf]  ;;  %v14448_v3 = vcombine.low %v21365_v30, %v21367_v24 }
 0x407   : > { %v14449_v55 = vcombine.low %v21369_v28, %v21371_v36 }
 0x40d   : > { %16223 = vmatmul.mubr.bf16.gmra.mrb[40].mxu0 %v14446_v48  ;;  %v2407_v48 = vshrl.u32 %v14461_v60, 16  ;;  %v2425_v60 = vshrl.u32 %v14463_v50, 16 }
 0x40e   : > { %16226 = vmatprep.mubr.bf16.mxu0 %v14447_v13  ;;  %v14462_v13 = vcombine.low %v21162_v62, %v21205_v1  ;;  %v2428_v1 = vshll.u32 %v14463_v50, 16  ;;  %v2439_v50 = vrot.slane %v2437_v44, 4  ;;  %v2445_v44 = vrot.slane %v2443_v21, 3 }
 0x40f   : > { %v2409_v39 = vrot.slane %v2407_v48, 3  ;;  %v2427_v20 = vrot.slane %v2425_v60, 3 }
 0x410   : > { %v2416_v14 = vshrl.u32 %v14462_v13, 16  ;;  %v2419_v37 = vshll.u32 %v14462_v13, 16  ;;  %v2430_v58 = vrot.slane %v2428_v1, 4 }
 0x411   : > { %v2413_v62 = vor.u32 %v2412_v40, %v2409_v39  ;;  %v2436_v40 = vrot.slane %v2434_v23, 3 }
 0x413   : > { %v2414_v6 = vsel %vm2388_vm1, %v21002_v34, %v2413_v62  ;;  %v2440_v49 = vor.u32 %v2439_v50, %v2436_v40  ;;  %v18318_v50 = vld [vmem:[#allocation6 + $0xb0] sm:$0xff]  }
 0x415   : > { %16227 = vmatmul.mubr.bf16.gmra.mrb[44].mxu0 %v14448_v3  ;;  %v2418_v3 = vrot.slane %v2416_v14, 3  ;;  %v2431_v14 = vor.u32 %v2430_v58, %v2427_v20  ;;  %v14470_v58 = vcombine.low %v21299_v53, %v21305_v59  ;;  %v18319_v53 = vld [vmem:[#allocation6 + $0xb8] sm:$0xff]   ;;  %v14472_v59 = vcombine.low %v21311_v33, %v21317_v8 }
 0x416   : > { %16230 = vmatprep.mubr.bf16.mxu0 %v14449_v55  ;;  %v2421_v55 = vrot.slane %v2419_v37, 4  ;;  %v14466_v37 = vcombine.low %v21250_v11, %v21270_v35  ;;  %v14467_v35 = vcombine.low %v21272_v57, %v21276_v38  ;;  %v2448_v11 = vrot.slane %v2446_v45, 4 }
 0x417   : > { %v2441_v39 = vsel %vm2388_vm1, %v2431_v14, %v2440_v49  ;;  %v2491_v45 = vshll.u32 %v14470_v58, 16  ;;  %v2506_v8 = vshrl.u32 %v14472_v59, 16 }
 0x418   : > { %v2422_v13 = vor.u32 %v2421_v55, %v2418_v3  ;;  %v2452_v34 = vshrl.u32 %v14466_v37, 16  ;;  %v2455_v48 = vshll.u32 %v14466_v37, 16  ;;  %v2461_v60 = vshrl.u32 %v14467_v35, 16 }
 0x419   : > { %v2464_v1 = vshll.u32 %v14467_v35, 16 }
 0x41a   : > { %v2432_v23 = vsel %vm2388_vm1, %v2422_v13, %v2431_v14  ;;  %v2454_v3 = vrot.slane %v2452_v34, 3  ;;  %v2457_v55 = vrot.slane %v2455_v48, 4 }
 0x41b   : > { %v2466_v20 = vrot.slane %v2464_v1, 4 }
 0x41c   : > { %v2458_v57 = vor.u32 %v2457_v55, %v2454_v3  ;;  %v14474_v3 = vcombine.low %v21323_v4, %v21329_v5 }
 0x41d   : > { %16231 = vmatmul.mubr.bf16.gmra.mrb[48].mxu0 %v14450_v63  ;;  %v18315_v63 = vld [vmem:[#allocation6 + $0x98] sm:$0xff]  }
 0x41e   : > { %16250 = vmatprep.mubr.bf16.mxu0 %v21012_v54  ;;  %v2423_v54 = vsel %vm2388_vm1, %v2413_v62, %v2422_v13  ;;  %v2449_v62 = vor.u32 %v2448_v11, %v2445_v44  ;;  %v2493_v44 = vrot.slane %v2491_v45, 4  ;;  %v14473_v11 = vcombine.low %v21319_v22, %v21321_v27 }
 0x41f   : > { %v2508_v27 = vrot.slane %v2506_v8, 3  ;;  %v14477_v45 = vcombine.low %v21343_v47, %v21345_v12  ;;  %v14479_v47 = vcombine.low %v21355_v17, %v21357_v31  ;;  %v14481_v17 = vcombine.low %v21367_v24, %v21369_v28 }
 0x420   : > { %v2459_v37 = vsel %vm2388_vm1, %v2449_v62, %v2458_v57  ;;  %v2518_v1 = vshll.u32 %v14473_v11, 16 }
 0x422   : > { %v2520_v4 = vrot.slane %v2518_v1, 4 }
 0x425   : > { %16251 = vmatmul.mubr.bf16.vlgmr.msra.gmra.mrb[4].mxu0 %v2414_v6  ;;  %v2463_v6 = vrot.slane %v2461_v60, 3  ;;  %v2515_v60 = vshrl.u32 %v14473_v11, 16 }
 0x426   : > { %16299 = vmatpush3.bf16.msra.mxu0 %v21286_v9  ;;  %16254 = vmatprep.mubr.bf16.mxu0 %v2423_v54  ;;  %v14468_v9 = vcombine.low %v21278_v0, %v21293_v52  ;;  %v14469_v0 = vcombine.low %v21295_v15, %v21297_v29  ;;  %v2450_v52 = vsel %vm2388_vm1, %v2440_v49, %v2449_v62  ;;  %v2488_v29 = vshrl.u32 %v14470_v58, 16 }
 0x427   : > { %16300 = vmatprep.subr.bf16.mxu0 %v18313_v43  ;;  %v14471_v49 = vcombine.low %v21307_v16, %v21309_v42  ;;  %v14475_v58 = vcombine.low %v21331_v26, %v21333_v32 }
 0x428   : > { %v2470_v38 = vshrl.u32 %v14468_v9, 16  ;;  %v2473_v13 = vshll.u32 %v14468_v9, 16  ;;  %v2479_v14 = vshrl.u32 %v14469_v0, 16  ;;  %v2482_v21 = vshll.u32 %v14469_v0, 16  ;;  %v21418_v9 = vld [vmem:[#allocation6 + $0xc0] sm:$0xff]  }
 0x429   : > { %v2497_v16 = vshrl.u32 %v14471_v49, 16  ;;  %v2500_v42 = vshll.u32 %v14471_v49, 16  ;;  %v2517_v0 = vrot.slane %v2515_v60, 3 }
 0x42a   : > { %16301 = vmatpush3.bf16.msra.mxu0 %v18313_v43  ;;  %v18316_v43 = vld [vmem:[#allocation6 + $0xa0] sm:$0xff]   ;;  %v2472_v54 = vrot.slane %v2470_v38, 3  ;;  %v2475_v40 = vrot.slane %v2473_v13, 4  ;;  %v2481_v48 = vrot.slane %v2479_v14, 3  ;;  %v2524_v13 = vshrl.u32 %v14474_v3, 16 }
 0x42b   : > { %16302 = vmatprep.subr.bf16.mxu0 %v18314_v46  ;;  %v2502_v62 = vrot.slane %v2500_v42, 4  ;;  %v2536_v14 = vshll.u32 %v14475_v58, 16 }
 0x42c   : > { %v2476_v15 = vor.u32 %v2475_v40, %v2472_v54  ;;  %v14476_v54 = vcombine.low %v21335_v2, %v21341_v61  ;;  %v14478_v61 = vcombine.low %v21347_v18, %v21353_v51  ;;  %v14480_v51 = vcombine.low %v21359_v7, %v21365_v30 }
 0x42d   : > { %16255 = vmatmul.mubr.bf16.gmra.mrb[8].mxu0 %v2432_v23  ;;  %v2490_v23 = vrot.slane %v2488_v29, 3  ;;  %v2538_v49 = vrot.slane %v2536_v14, 4  ;;  %v14482_v30 = vcombine.low %v21371_v36, %v21381_v56 }
 0x42e   : > { %16258 = vmatprep.mubr.bf16.mxu0 %v2441_v39  ;;  %16303 = vmatpush3.bf16.msra.mxu0 %v18314_v46  ;;  %v2467_v46 = vor.u32 %v2466_v20, %v2463_v6  ;;  %v2509_v39 = vshll.u32 %v14472_v59, 16  ;;  %v2526_v6 = vrot.slane %v2524_v13, 3  ;;  %v2545_v29 = vshll.u32 %v14476_v54, 16 }
 0x42f   : > { %16304 = vmatprep.subr.bf16.mxu0 %v18315_v63  ;;  %v2494_v55 = vor.u32 %v2493_v44, %v2490_v23  ;;  %v2560_v23 = vshrl.u32 %v14478_v61, 16  ;;  %v2563_v44 = vshll.u32 %v14478_v61, 16  ;;  %v2590_v13 = vshll.u32 %v14481_v17, 16 }
 0x430   : > { %v2468_v34 = vsel %vm2388_vm1, %v2458_v57, %v2467_v46  ;;  %v2477_v35 = vsel %vm2388_vm1, %v2467_v46, %v2476_v15  ;;  %v2511_v57 = vrot.slane %v2509_v39, 4  ;;  %v2533_v46 = vshrl.u32 %v14475_v58, 16 }
 0x431   : > { %v2547_v59 = vrot.slane %v2545_v29, 4  ;;  %v2562_v42 = vrot.slane %v2560_v23, 3  ;;  %v2569_v39 = vshrl.u32 %v14479_v47, 16 }
 0x432   : > { %16305 = vmatpush3.bf16.msra.mxu0 %v18315_v63  ;;  %v2484_v63 = vrot.slane %v2482_v21, 4  ;;  %v2535_v32 = vrot.slane %v2533_v46, 3 }
 0x433   : > { %16306 = vmatprep.subr.bf16.mxu0 %v18316_v43  ;;  %v2571_v60 = vrot.slane %v2569_v39, 3 }
 0x434   : > { %v2485_v33 = vor.u32 %v2484_v63, %v2481_v48  ;;  %v2551_v48 = vshrl.u32 %v14477_v45, 16  ;;  %v2554_v63 = vshll.u32 %v14477_v45, 16 }
 0x435   : > { %16259 = vmatmul.mubr.bf16.gmra.mrb[12].mxu0 %v2450_v52  ;;  %v2512_v52 = vor.u32 %v2511_v57, %v2508_v27 }
 0x436   : > { %16262 = vmatprep.mubr.bf16.mxu0 %v2459_v37  ;;  %16307 = vmatpush3.bf16.msra.mxu0 %v18316_v43  ;;  %v2499_v43 = vrot.slane %v2497_v16, 3  ;;  %v2486_v22 = vsel %vm2388_vm1, %v2476_v15, %v2485_v33  ;;  %v2495_v38 = vsel %vm2388_vm1, %v2485_v33, %v2494_v55  ;;  %v2542_v15 = vshrl.u32 %v14476_v54, 16 }
 0x437   : > { %16308 = vmatprep.subr.bf16.mxu0 %v18317_v10  ;;  %v2553_v11 = vrot.slane %v2551_v48, 3  ;;  %v2556_v16 = vrot.slane %v2554_v63, 4  ;;  %v2565_v33 = vrot.slane %v2563_v44, 4  ;;  %v18326_v44 = vld [vmem:[#allocation2 + $0x2c] sm:$0xff]  }
 0x438   : > { %v2503_v5 = vor.u32 %v2502_v62, %v2499_v43  ;;  %v2578_v43 = vshrl.u32 %v14480_v51, 16  ;;  %v2581_v62 = vshll.u32 %v14480_v51, 16  ;;  %v18328_v51 = vld [vmem:[#allocation2 + $0x34] sm:$0xff]  }
 0x439   : > { %v2557_v8 = vor.u32 %v2556_v16, %v2553_v11 }
 0x43a   : > { %16309 = vmatpush3.bf16.msra.mxu0 %v18317_v10  ;;  %v2527_v10 = vshll.u32 %v14474_v3, 16  ;;  %v2504_v37 = vsel %vm2388_vm1, %v2494_v55, %v2503_v5  ;;  %v2513_v40 = vsel %vm2388_vm1, %v2503_v5, %v2512_v52  ;;  %v2572_v3 = vshll.u32 %v14479_v47, 16  ;;  %v18327_v47 = vld [vmem:[#allocation6 + $0xc8] sm:$0xff]  }
 0x43b   : > { %16310 = vmatprep.subr.bf16.mxu0 %v18318_v50  ;;  %v2566_v55 = vor.u32 %v2565_v33, %v2562_v42  ;;  %v2583_v27 = vrot.slane %v2581_v62, 4  ;;  %v2592_v5 = vrot.slane %v2590_v13, 4  ;;  %v3126_v33 = vshll.u32 %v18326_v44, 16  ;;  %v18329_v62 = vld [vmem:[#allocation2 + $0x3c] sm:$0xff]  }
 0x43c   : > { %v2529_v20 = vrot.slane %v2527_v10, 4  ;;  %v2574_v1 = vrot.slane %v2572_v3, 4 }
 0x43d   : > { %16263 = vmatmul.mubr.bf16.gmra.mrb[16].mxu0 %v2468_v34  ;;  %v2539_v34 = vor.u32 %v2538_v49, %v2535_v32  ;;  %v2567_v7 = vsel %vm2388_vm1, %v2557_v8, %v2566_v55  ;;  %v18324_v32 = vld [vmem:[#allocation2 + $0x1c] sm:$0xff]  }
 0x43e   : > { %16266 = vmatprep.mubr.bf16.mxu0 %v2477_v35  ;;  %16311 = vmatpush3.bf16.msra.mxu0 %v18318_v50  ;;  %v2521_v50 = vor.u32 %v2520_v4, %v2517_v0  ;;  %v2530_v21 = vor.u32 %v2529_v20, %v2526_v6  ;;  %v2575_v57 = vor.u32 %v2574_v1, %v2571_v60  ;;  %v2596_v0 = vshrl.u32 %v14482_v30, 16  ;;  %v18320_v6 = vld [vmem:[#allocation2 + $0x4] sm:$0xff]  }
 0x43f   : > { %16312 = vmatprep.subr.bf16.mxu0 %v18319_v53  ;;  %v2599_v4 = vshll.u32 %v14482_v30, 16  ;;  %v3089_v54 = vshll.u32 %v18320_v6, 16  ;;  %v3087_v46 = vshrl.u32 %v18320_v6, 16  ;;  %v18331_v1 = vld [vmem:[#allocation2 + $0x44] sm:$0xff]   ;;  %v3130_v30 = vshrl.u32 %v18326_v44, 16 }
 0x440   : > { %v2522_v26 = vsel %vm2388_vm1, %v2512_v52, %v2521_v50  ;;  %v2531_v2 = vsel %vm2388_vm1, %v2521_v50, %v2530_v21  ;;  %v2540_v12 = vsel %vm2388_vm1, %v2530_v21, %v2539_v34  ;;  %v2576_v24 = vsel %vm2388_vm1, %v2566_v55, %v2575_v57 }
 0x441   : > { %v2598_v56 = vrot.slane %v2596_v0, 3  ;;  %v2601_v36 = vrot.slane %v2599_v4, 4  ;;  %v3091_v14 = vrot.slane %v3089_v54, 1  ;;  %v3134_v55 = vshll.u32 %v18328_v51, 16  ;;  %v18332_v0 = vld [vmem:[#allocation2 + $0x4c] sm:$0xff]   ;;  %v18343_v4 = vld [vmem:[#allocation6 + $0xe8] sm:$0xff]  }
 0x442   : > { %16313 = vmatpush3.bf16.msra.mxu0 %v18319_v53  ;;  %v2544_v53 = vrot.slane %v2542_v15, 3  ;;  %v18323_v15 = vld [vmem:[#allocation2 + $0x14] sm:$0xff]   ;;  %v3150_v13 = vshll.u32 %v18331_v1, 16  ;;  %v3158_v6 = vshll.u32 %v18332_v0, 16 }
 0x443   : > { %16362 = vmatprep.subr.bf16.mxu0 %v21418_v9  ;;  %v2602_v58 = vor.u32 %v2601_v36, %v2598_v56  ;;  %v3092_v29 = vor.u32 %v3091_v14, %v3087_v46  ;;  %v3146_v56 = vshrl.u32 %v18329_v62, 16  ;;  %v3154_v36 = vshrl.u32 %v18331_v1, 16  ;;  %v18351_v46 = vld [vmem:[#allocation6 + $0xf8] sm:$0xff]  }
 0x444   : > { %v2548_v35 = vor.u32 %v2547_v59, %v2544_v53  ;;  %v3106_v59 = vshrl.u32 %v18323_v15, 16  ;;  %v18342_v1 = vld [vmem:[#allocation2 + $0x8c] sm:$0xff]  }
 0x445   : > { %16267 = vmatmul.mubr.bf16.gmra.mrb[20].mxu0 %v2486_v22  ;;  %v2580_v22 = vrot.slane %v2578_v43, 3  ;;  %v3128_v43 = vrot.slane %v3126_v33, 1 }
 0x446   : > { %16270 = vmatprep.mubr.bf16.mxu0 %v2495_v38  ;;  %v2549_v18 = vsel %vm2388_vm1, %v2539_v34, %v2548_v35  ;;  %v2558_v31 = vsel %vm2388_vm1, %v2548_v35, %v2557_v8  ;;  %v2587_v38 = vshrl.u32 %v14481_v17, 16  ;;  %v3110_v34 = vshll.u32 %v18324_v32, 16  ;;  %v18330_v8 = vld [vmem:[#allocation6 + $0xd0] sm:$0xff]   ;;  %v18335_v17 = vld [vmem:[#allocation6 + $0xd8] sm:$0xff]  }
 0x447   : > { %v2584_v10 = vor.u32 %v2583_v27, %v2580_v22  ;;  %v3142_v22 = vshll.u32 %v18329_v62, 16  ;;  %v18338_v27 = vld [vmem:[#allocation6 + $0xe0] sm:$0xff]  }
 0x448   : > { %v2589_v28 = vrot.slane %v2587_v38, 3  ;;  %v3112_v23 = vrot.slane %v3110_v34, 1  ;;  %v18337_v34 = vld [vmem:[#allocation2 + $0x6c] sm:$0xff]  }
 0x449   : > { %v2585_v52 = vsel %vm2388_vm1, %v2575_v57, %v2584_v10  ;;  %v3132_v57 = vor.u32 %v3130_v30, %v3128_v43 }
 0x44a   : > { %v2593_v20 = vor.u32 %v2592_v5, %v2589_v28  ;;  %v3152_v5 = vrot.slane %v3150_v13, 1  ;;  %v3222_v13 = vshll.u32 %v18342_v1, 16 }
 0x44c   : > { %v2603_v50 = vsel %vm2388_vm1, %v2593_v20, %v2602_v58 }
 0x44d   : > { %16271 = vmatmul.mubr.bf16.gmra.mrb[24].mxu0 %v2504_v37  ;;  %v18321_v37 = vld [vmem:[#allocation2 + $0xc] sm:$0xff]  }
 0x44e   : > { %16274 = vmatprep.mubr.bf16.mxu0 %v2513_v40  ;;  %v2594_v40 = vsel %vm2388_vm1, %v2584_v10, %v2593_v20  ;;  %v3094_v21 = vshll.u32 %v18321_v37, 16  ;;  %v3098_v53 = vshrl.u32 %v18321_v37, 16  ;;  %v3144_v10 = vrot.slane %v3142_v22, 1  ;;  %v18346_v20 = vld [vmem:[#allocation6 + $0xf0] sm:$0xff]  }
 0x44f   : > { %v3156_v37 = vor.u32 %v3154_v36, %v3152_v5  ;;  %v18347_v36 = vld [vmem:[#allocation2 + $0xa4] sm:$0xff]  }
 0x450   : > { %v3096_v45 = vrot.slane %v3094_v21, 1 }
 0x452   : > { %v3097_v49 = vsel %vm3085_vm2, %v3092_v29, %v3096_v45  ;;  %v3100_v48 = vor.u32 %v3098_v53, %v3096_v45  ;;  %v18336_v29 = vld [vmem:[#allocation2 + $0x64] sm:$0xff]   ;;  %v3162_v45 = vshrl.u32 %v18332_v0, 16 }
 0x453   : > { %v3182_v53 = vshll.u32 %v18336_v29, 16 }
 0x455   : > { %16275 = vmatmul.mubr.bf16.gmra.mrb[28].mxu0 %v2522_v26  ;;  %v3102_v26 = vshll.u32 %v18323_v15, 16 }
 0x456   : > { %16278 = vmatprep.mubr.bf16.mxu0 %v2531_v2  ;;  %v18325_v2 = vld [vmem:[#allocation2 + $0x24] sm:$0xff]  }
 0x457   : > { %v3104_v61 = vrot.slane %v3102_v26, 1  ;;  %v3118_v35 = vshll.u32 %v18325_v2, 16  ;;  %v3122_v42 = vshrl.u32 %v18325_v2, 16 }
 0x459   : > { %v3108_v63 = vor.u32 %v3106_v59, %v3104_v61  ;;  %v3120_v16 = vrot.slane %v3118_v35, 1  ;;  %v3184_v35 = vrot.slane %v3182_v53, 1 }
 0x45b   : > { %v3113_v11 = vsel %vm3085_vm2, %v3108_v63, %v3112_v23  ;;  %v3124_v3 = vor.u32 %v3122_v42, %v3120_v16  ;;  %v18340_v42 = vld [vmem:[#allocation2 + $0x7c] sm:$0xff]  }
 0x45c   : > { %v3206_v62 = vshll.u32 %v18340_v42, 16 }
 0x45d   : > { %16279 = vmatmul.mubr.bf16.gmra.mrb[32].mxu0 %v2540_v12  ;;  %v3105_v12 = vsel %vm3085_vm2, %v3100_v48, %v3104_v61  ;;  %v3129_v60 = vsel %vm3085_vm2, %v3124_v3, %v3128_v43  ;;  %v18341_v3 = vld [vmem:[#allocation2 + $0x84] sm:$0xff]  }
 0x45e   : > { %16282 = vmatprep.mubr.bf16.mxu0 %v2549_v18  ;;  %v3114_v18 = vshrl.u32 %v18324_v32, 16 }
 0x460   : > { %v3116_v39 = vor.u32 %v3114_v18, %v3112_v23  ;;  %v18339_v23 = vld [vmem:[#allocation2 + $0x74] sm:$0xff]  }
 0x461   : > { %v3202_v43 = vshrl.u32 %v18339_v23, 16 }
 0x465   : > { %16283 = vmatmul.mubr.bf16.gmra.mrb[36].mxu0 %v2558_v31  ;;  %v3121_v31 = vsel %vm3085_vm2, %v3116_v39, %v3120_v16 }
 0x466   : > { %16286 = vmatprep.mubr.bf16.mxu0 %v2567_v7  ;;  %v3138_v7 = vshrl.u32 %v18328_v51, 16  ;;  %v3198_v51 = vshll.u32 %v18339_v23, 16  ;;  %v18350_v23 = vld [vmem:[#allocation2 + $0xbc] sm:$0x1f]  }
 0x468   : > { %v3200_v39 = vrot.slane %v3198_v51, 1 }
 0x46d   : > { %16287 = vmatmul.mubr.bf16.gmra.mrb[40].mxu0 %v2576_v24 }
 0x46e   : > { %16290 = vmatprep.mubr.bf16.mxu0 %v2585_v52  ;;  %v18333_v52 = vld [vmem:[#allocation2 + $0x54] sm:$0xff]  }
 0x46f   : > { %v3166_v54 = vshll.u32 %v18333_v52, 16  ;;  %v3170_v26 = vshrl.u32 %v18333_v52, 16 }
 0x471   : > { %v3168_v15 = vrot.slane %v3166_v54, 1 }
 0x473   : > { %v3172_v2 = vor.u32 %v3170_v26, %v3168_v15  ;;  %v3250_v26 = vshrl.u32 %v18347_v36, 16 }
 0x475   : > { %16291 = vmatmul.mubr.bf16.gmra.mrb[44].mxu0 %v2594_v40  ;;  %v3160_v40 = vrot.slane %v3158_v6, 1  ;;  %v3226_v6 = vshrl.u32 %v18342_v1, 16 }
 0x476   : > { %16294 = vmatprep.mubr.bf16.mxu0 %v2603_v50  ;;  %v18334_v50 = vld [vmem:[#allocation2 + $0x5c] sm:$0xff]  }
 0x477   : > { %v3161_v21 = vsel %vm3085_vm2, %v3156_v37, %v3160_v40  ;;  %v3174_v32 = vshll.u32 %v18334_v50, 16  ;;  %v3164_v61 = vor.u32 %v3162_v45, %v3160_v40  ;;  %v3178_v44 = vshrl.u32 %v18334_v50, 16 }
 0x478   : > { %v3246_v40 = vshll.u32 %v18347_v36, 16  ;;  %v21503_v36 = vld [vmem:[#allocation2 + $0x30] sm:$0xf] }
 0x479   : > { %v3176_v59 = vrot.slane %v3174_v32, 1  ;;  %v3169_v48 = vsel %vm3085_vm2, %v3164_v61, %v3168_v15 }
 0x47a   : > { %v3248_v15 = vrot.slane %v3246_v40, 1 }
 0x47b   : > { %v3177_v63 = vsel %vm3085_vm2, %v3172_v2, %v3176_v59 }
 0x47c   : > { %v3252_v2 = vor.u32 %v3250_v26, %v3248_v15 }
 0x47d   : > { %16295 = vmatmul.mubr.bf16.gmra.mrb[52].mxu0 %v2602_v58  ;;  %v3148_v58 = vor.u32 %v3146_v56, %v3144_v10 }
 0x47e   : > { %16314 = vmatprep.mubr.bf16.mxu0 %v3097_v49  ;;  %v21463_v49 = vld [vmem:[#allocation6 + $0x100] sm:$0xff]  }
 0x47f   : > { %v3153_v14 = vsel %vm3085_vm2, %v3148_v58, %v3152_v5 }
 0x485   : > { %16315 = vmatmul.mubr.bf16.vlgmr.msra.gmra.mrb[4].mxu0 %v3105_v12  ;;  %v3190_v12 = vshll.u32 %v18337_v34, 16 }
 0x486   : > { %16363 = vmatpush3.bf16.msra.mxu0 %v21418_v9  ;;  %16318 = vmatprep.mubr.bf16.mxu0 %v3113_v11  ;;  %v3136_v9 = vrot.slane %v3134_v55, 1  ;;  %v3180_v11 = vor.u32 %v3178_v44, %v3176_v59  ;;  %v3194_v55 = vshrl.u32 %v18337_v34, 16  ;;  %v3620_v59 = vld [vmem:[#allocation2 + $0xc] sm:$0x8]  ;;  %v21476_v34 = vld [vmem:[#allocation2 + $0x10] sm:$0xf] }
 0x487   : > { %16364 = vmatprep.subr.bf16.mxu0 %v18327_v47  ;;  %v3192_v18 = vrot.slane %v3190_v12, 1 }
 0x488   : > { %v3140_v38 = vor.u32 %v3138_v7, %v3136_v9  ;;  %v3137_v24 = vsel %vm3085_vm2, %v3132_v57, %v3136_v9  ;;  %v3185_v33 = vsel %vm3085_vm2, %v3180_v11, %v3184_v35  ;;  %v3208_v9 = vrot.slane %v3206_v62, 1  ;;  %v21487_v62 = vld [vmem:[#allocation2 + $0x1c] sm:$0xf] }
 0x489   : > { %v3210_v57 = vshrl.u32 %v18340_v42, 16  ;;  %v3270_v42 = vshll.u32 %v18350_v23, 16 }
 0x48a   : > { %16365 = vmatpush3.bf16.msra.mxu0 %v18327_v47  ;;  %v3145_v28 = vsel %vm3085_vm2, %v3140_v38, %v3144_v10  ;;  %v3186_v47 = vshrl.u32 %v18336_v29, 16  ;;  %v3218_v38 = vshrl.u32 %v18341_v3, 16  ;;  %v18349_v29 = vld [vmem:[#allocation2 + $0xb4] sm:$0xff]  }
 0x48b   : > { %16366 = vmatprep.subr.bf16.mxu0 %v18330_v8  ;;  %v3212_v10 = vor.u32 %v3210_v57, %v3208_v9  ;;  %v3262_v53 = vshll.u32 %v18349_v29, 16 }
 0x48c   : > { %v3188_v16 = vor.u32 %v3186_v47, %v3184_v35  ;;  %v14523_v47 = vcombine.low %v3620_v59, %v21476_v34  ;;  %v21518_v59 = vld [vmem:[#allocation2 + $0x44] sm:$0xf] }
 0x48d   : > { %16319 = vmatmul.mubr.bf16.gmra.mrb[8].mxu0 %v3121_v31  ;;  %v3204_v31 = vor.u32 %v3202_v43, %v3200_v39  ;;  %v3264_v11 = vrot.slane %v3262_v53, 1  ;;  %v21516_v53 = vld [vmem:[#allocation2 + $0x40] sm:$0xf] }
 0x48e   : > { %16322 = vmatprep.mubr.bf16.mxu0 %v3129_v60  ;;  %16367 = vmatpush3.bf16.msra.mxu0 %v18330_v8  ;;  %v3193_v8 = vsel %vm3085_vm2, %v3188_v16, %v3192_v18  ;;  %v3214_v60 = vshll.u32 %v18341_v3, 16 }
 0x48f   : > { %16368 = vmatprep.subr.bf16.mxu0 %v18335_v17  ;;  %v3209_v7 = vsel %vm3085_vm2, %v3204_v31, %v3208_v9  ;;  %v21491_v31 = vld [vmem:[#allocation2 + $0x24] sm:$0xf]  ;;  %v3272_v9 = vrot.slane %v3270_v42, 1 }
 0x490   : > { %v3216_v22 = vrot.slane %v3214_v60, 1  ;;  %v21493_v60 = vld [vmem:[#allocation2 + $0x28] sm:$0xf] }
 0x492   : > { %16369 = vmatpush3.bf16.msra.mxu0 %v18335_v17  ;;  %v3196_v17 = vor.u32 %v3194_v55, %v3192_v18  ;;  %v3220_v0 = vor.u32 %v3218_v38, %v3216_v22  ;;  %v3217_v5 = vsel %vm3085_vm2, %v3212_v10, %v3216_v22  ;;  %v3266_v18 = vshrl.u32 %v18349_v29, 16 }
 0x493   : > { %16370 = vmatprep.subr.bf16.mxu0 %v18338_v27  ;;  %v3274_v10 = vshrl.u32 %v18350_v23, 16  ;;  %v18359_v23 = vld [vmem:[#allocation6 + $0x108] sm:$0xff]  }
 0x494   : > { %v3201_v30 = vsel %vm3085_vm2, %v3196_v17, %v3200_v39  ;;  %v3809_v39 = vshll.u32 %v14523_v47, 16  ;;  %v3268_v3 = vor.u32 %v3266_v18, %v3264_v11  ;;  %v21489_v17 = vld [vmem:[#allocation2 + $0x20] sm:$0xf] }
 0x495   : > { %16323 = vmatmul.mubr.bf16.gmra.mrb[12].mxu0 %v3137_v24  ;;  %v3224_v24 = vrot.slane %v3222_v13, 1  ;;  %v14525_v22 = vcombine.low %v21487_v62, %v21489_v17  ;;  %v14526_v13 = vcombine.low %v21491_v31, %v21493_v60 }
 0x496   : > { %16326 = vmatprep.mubr.bf16.mxu0 %v3145_v28  ;;  %16371 = vmatpush3.bf16.msra.mxu0 %v18338_v27  ;;  %v18344_v27 = vld [vmem:[#allocation2 + $0x94] sm:$0xff]   ;;  %v18345_v28 = vld [vmem:[#allocation2 + $0x9c] sm:$0xff]  }
 0x497   : > { %16372 = vmatprep.subr.bf16.mxu0 %v18343_v4  ;;  %v3225_v52 = vsel %vm3085_vm2, %v3220_v0, %v3224_v24  ;;  %v3238_v58 = vshll.u32 %v18345_v28, 16  ;;  %v3228_v37 = vor.u32 %v3226_v6, %v3224_v24  ;;  %v3242_v45 = vshrl.u32 %v18345_v28, 16  ;;  %v21505_v6 = vld [vmem:[#allocation2 + $0x34] sm:$0xf] }
 0x498   : > { %v3823_v0 = vshrl.u32 %v14525_v22, 16 }
 0x499   : > { %v3240_v50 = vrot.slane %v3238_v58, 1  ;;  %v3276_v58 = vor.u32 %v3274_v10, %v3272_v9 }
 0x49a   : > { %16373 = vmatpush3.bf16.msra.mxu0 %v18343_v4  ;;  %v3230_v4 = vshll.u32 %v18344_v27, 16 }
 0x49b   : > { %16374 = vmatprep.subr.bf16.mxu0 %v18346_v20  ;;  %v3244_v61 = vor.u32 %v3242_v45, %v3240_v50 }
 0x49c   : > { %v3232_v56 = vrot.slane %v3230_v4, 1  ;;  %v3826_v4 = vshll.u32 %v14525_v22, 16  ;;  %v21535_v22 = vld [vmem:[#allocation2 + $0x58] sm:$0xf] }
 0x49d   : > { %16327 = vmatmul.mubr.bf16.gmra.mrb[16].mxu0 %v3153_v14  ;;  %v3249_v44 = vsel %vm3085_vm2, %v3244_v61, %v3248_v15 }
 0x49e   : > { %16330 = vmatprep.mubr.bf16.mxu0 %v3161_v21  ;;  %16375 = vmatpush3.bf16.msra.mxu0 %v18346_v20  ;;  %v3234_v20 = vshrl.u32 %v18344_v27, 16  ;;  %v3233_v14 = vsel %vm3085_vm2, %v3228_v37, %v3232_v56  ;;  %v3273_v27 = vsel %vm3085_vm2, %v3268_v3, %v3272_v9  ;;  %v3825_v37 = vrot.slane %v3823_v0, 3 }
 0x49f   : > { %16376 = vmatprep.subr.bf16.mxu0 %v18351_v46 }
 0x4a0   : > { %v3236_v54 = vor.u32 %v3234_v20, %v3232_v56  ;;  %v21501_v56 = vld [vmem:[#allocation2 + $0x2c] sm:$0xf]  ;;  %v21507_v20 = vld [vmem:[#allocation2 + $0x38] sm:$0xf] }
 0x4a1   : > { %v14527_v40 = vcombine.low %v21501_v56, %v21503_v36 }
 0x4a2   : > { %16377 = vmatpush3.bf16.msra.mxu0 %v18351_v46  ;;  %v18348_v46 = vld [vmem:[#allocation2 + $0xac] sm:$0xff]   ;;  %v3241_v21 = vsel %vm3085_vm2, %v3236_v54, %v3240_v50  ;;  %v3828_v54 = vrot.slane %v3826_v4, 4 }
 0x4a3   : > { %16426 = vmatprep.subr.bf16.mxu0 %v21463_v49  ;;  %v3254_v32 = vshll.u32 %v18348_v46, 16  ;;  %v3258_v51 = vshrl.u32 %v18348_v46, 16  ;;  %v3841_v29 = vshrl.u32 %v14527_v40, 16  ;;  %v3844_v45 = vshll.u32 %v14527_v40, 16 }
 0x4a4   : > { %v3829_v15 = vor.u32 %v3828_v54, %v3825_v37  ;;  %v21545_v54 = vld [vmem:[#allocation2 + $0x5c] sm:$0xf] }
 0x4a5   : > { %16331 = vmatmul.mubr.bf16.gmra.mrb[20].mxu0 %v3169_v48  ;;  %v21478_v48 = vld [vmem:[#allocation2 + $0x14] sm:$0xf]  ;;  %v3256_v35 = vrot.slane %v3254_v32, 1 }
 0x4a6   : > { %16334 = vmatprep.mubr.bf16.mxu0 %v3177_v63  ;;  %v21480_v63 = vld [vmem:[#allocation2 + $0x18] sm:$0xf] }
 0x4a7   : > { %v3257_v12 = vsel %vm3085_vm2, %v3252_v2, %v3256_v35  ;;  %v14524_v16 = vcombine.low %v21478_v48, %v21480_v63  ;;  %v21514_v2 = vld [vmem:[#allocation2 + $0x3c] sm:$0xf] }
 0x4a9   : > { %v3814_v55 = vshrl.u32 %v14524_v16, 16  ;;  %v3817_v43 = vshll.u32 %v14524_v16, 16 }
 0x4ab   : > { %v3816_v57 = vrot.slane %v3814_v55, 3  ;;  %v3819_v38 = vrot.slane %v3817_v43, 4 }
 0x4ad   : > { %16335 = vmatmul.mubr.bf16.gmra.mrb[24].mxu0 %v3185_v33  ;;  %v3260_v33 = vor.u32 %v3258_v51, %v3256_v35  ;;  %v3820_v28 = vor.u32 %v3819_v38, %v3816_v57  ;;  %v21520_v35 = vld [vmem:[#allocation2 + $0x48] sm:$0xf] }
 0x4ae   : > { %16338 = vmatprep.mubr.bf16.mxu0 %v3193_v8  ;;  %v3806_v8 = vshrl.u32 %v14523_v47, 16  ;;  %v3843_v47 = vrot.slane %v3841_v29, 3  ;;  %v14530_v42 = vcombine.low %v21518_v59, %v21520_v35  ;;  %v21551_v29 = vld [vmem:[#allocation2 + $0x64] sm:$0xf] }
 0x4af   : > { %v3265_v1 = vsel %vm3085_vm2, %v3260_v33, %v3264_v11  ;;  %v14529_v11 = vcombine.low %v21514_v2, %v21516_v53  ;;  %v18362_v33 = vld [vmem:[#allocation6 + $0x110] sm:$0xff]  }
 0x4b0   : > { %v3868_v43 = vshrl.u32 %v14530_v42, 16  ;;  %v3871_v9 = vshll.u32 %v14530_v42, 16 }
 0x4b1   : > { %v3862_v3 = vshll.u32 %v14529_v11, 16 }
 0x4b2   : > { %v3870_v0 = vrot.slane %v3868_v43, 3  ;;  %v3873_v4 = vrot.slane %v3871_v9, 4  ;;  %v21563_v43 = vld [vmem:[#allocation2 + $0x6c] sm:$0xf]  ;;  %v21565_v9 = vld [vmem:[#allocation2 + $0x70] sm:$0xf] }
 0x4b3   : > { %v3864_v38 = vrot.slane %v3862_v3, 4 }
 0x4b5   : > { %16339 = vmatmul.mubr.bf16.gmra.mrb[28].mxu0 %v3201_v30  ;;  %v3808_v30 = vrot.slane %v3806_v8, 3 }
 0x4b6   : > { %16342 = vmatprep.mubr.bf16.mxu0 %v3209_v7  ;;  %v3811_v7 = vrot.slane %v3809_v39, 4  ;;  %v3859_v39 = vshrl.u32 %v14529_v11, 16 }
 0x4b8   : > { %v3812_v24 = vor.u32 %v3811_v7, %v3808_v30  ;;  %v21531_v30 = vld [vmem:[#allocation2 + $0x50] sm:$0xf]  ;;  %v21533_v7 = vld [vmem:[#allocation2 + $0x54] sm:$0xf]  ;;  %v3861_v57 = vrot.slane %v3859_v39, 3 }
 0x4ba   : > { %v3821_v50 = vsel %vm2388_vm1, %v3812_v24, %v3820_v28  ;;  %v14532_v24 = vcombine.low %v21533_v7, %v21535_v22 }
 0x4bd   : > { %16343 = vmatmul.mubr.bf16.gmra.mrb[32].mxu0 %v3217_v5  ;;  %v3832_v5 = vshrl.u32 %v14526_v13, 16 }
 0x4be   : > { %16346 = vmatprep.mubr.bf16.mxu0 %v3225_v52  ;;  %v3835_v52 = vshll.u32 %v14526_v13, 16 }
 0x4bf   : > { %v3834_v46 = vrot.slane %v3832_v5, 3 }
 0x4c5   : > { %16347 = vmatmul.mubr.bf16.gmra.mrb[36].mxu0 %v3233_v14  ;;  %v3837_v14 = vrot.slane %v3835_v52, 4  ;;  %v3865_v52 = vor.u32 %v3864_v38, %v3861_v57  ;;  %v18383_v57 = vld [vmem:[#allocation6 + $0x138] sm:$0xff]  }
 0x4c6   : > { %16350 = vmatprep.mubr.bf16.mxu0 %v3241_v21  ;;  %v14528_v21 = vcombine.low %v21505_v6, %v21507_v20 }
 0x4c7   : > { %v3838_v26 = vor.u32 %v3837_v14, %v3834_v46  ;;  %v3886_v46 = vshrl.u32 %v14532_v24, 16  ;;  %v3889_v14 = vshll.u32 %v14532_v24, 16 }
 0x4c8   : > { %v3850_v32 = vshrl.u32 %v14528_v21, 16  ;;  %v3853_v61 = vshll.u32 %v14528_v21, 16  ;;  %v21549_v21 = vld [vmem:[#allocation2 + $0x60] sm:$0xf] }
 0x4c9   : > { %v3839_v16 = vsel %vm2388_vm1, %v3829_v15, %v3838_v26  ;;  %v3888_v11 = vrot.slane %v3886_v46, 3 }
 0x4ca   : > { %v3852_v51 = vrot.slane %v3850_v32, 3  ;;  %v3855_v18 = vrot.slane %v3853_v61, 4  ;;  %v18375_v32 = vld [vmem:[#allocation6 + $0x128] sm:$0xff]  }
 0x4cc   : > { %v3856_v55 = vor.u32 %v3855_v18, %v3852_v51  ;;  %v18378_v18 = vld [vmem:[#allocation6 + $0x130] sm:$0xff]  }
 0x4cd   : > { %16351 = vmatmul.mubr.bf16.gmra.mrb[40].mxu0 %v3249_v44  ;;  %v3830_v44 = vsel %vm2388_vm1, %v3820_v28, %v3829_v15  ;;  %v18370_v28 = vld [vmem:[#allocation6 + $0x120] sm:$0xff]  }
 0x4ce   : > { %16354 = vmatprep.mubr.bf16.mxu0 %v3257_v12  ;;  %v3846_v12 = vrot.slane %v3844_v45, 4  ;;  %v21553_v45 = vld [vmem:[#allocation2 + $0x68] sm:$0xf]  ;;  %v3866_v61 = vsel %vm2388_vm1, %v3856_v55, %v3865_v52 }
 0x4cf   : > { %v14534_v51 = vcombine.low %v21551_v29, %v21553_v45 }
 0x4d0   : > { %v3847_v8 = vor.u32 %v3846_v12, %v3843_v47  ;;  %v14533_v47 = vcombine.low %v21545_v54, %v21549_v21 }
 0x4d1   : > { %v3904_v3 = vshrl.u32 %v14534_v51, 16 }
 0x4d2   : > { %v3857_v10 = vsel %vm2388_vm1, %v3847_v8, %v3856_v55  ;;  %v3907_v55 = vshll.u32 %v14534_v51, 16 }
 0x4d3   : > { %v3906_v24 = vrot.slane %v3904_v3, 3 }
 0x4d5   : > { %16355 = vmatmul.mubr.bf16.gmra.mrb[44].mxu0 %v3265_v1  ;;  %v21529_v1 = vld [vmem:[#allocation2 + $0x4c] sm:$0xf] }
 0x4d6   : > { %16358 = vmatprep.mubr.bf16.mxu0 %v3273_v27  ;;  %v3848_v27 = vsel %vm2388_vm1, %v3838_v26, %v3847_v8  ;;  %v14531_v13 = vcombine.low %v21529_v1, %v21531_v30  ;;  %v3898_v8 = vshll.u32 %v14533_v47, 16 }
 0x4d8   : > { %v3880_v37 = vshll.u32 %v14531_v13, 16 }
 0x4dd   : > { %16359 = vmatmul.mubr.bf16.gmra.mrb[56].mxu0 %v3276_v58  ;;  %v3877_v58 = vshrl.u32 %v14531_v13, 16 }
 0x4de   : > { %16378 = vmatprep.mubr.bf16.mxu0 %v3821_v50  ;;  %v3874_v50 = vor.u32 %v3873_v4, %v3870_v0  ;;  %v14535_v0 = vcombine.low %v21563_v43, %v21565_v9 }
 0x4e0   : > { %v3875_v12 = vsel %vm2388_vm1, %v3865_v52, %v3874_v50  ;;  %v3916_v46 = vshll.u32 %v14535_v0, 16 }
 0x4e5   : > { %16379 = vmatmul.mubr.bf16.vlgmr.msra.gmra.mrb[4].mxu0 %v3830_v44  ;;  %v3882_v44 = vrot.slane %v3880_v37, 4 }
 0x4e6   : > { %16427 = vmatpush3.bf16.msra.mxu0 %v21463_v49  ;;  %16382 = vmatprep.mubr.bf16.mxu0 %v3839_v16  ;;  %v18367_v49 = vld [vmem:[#allocation6 + $0x118] sm:$0xff]   ;;  %v3891_v16 = vrot.slane %v3889_v14, 4 }
 0x4e7   : > { %16428 = vmatprep.subr.bf16.mxu0 %v18359_v23 }
 0x4e8   : > { %v3892_v39 = vor.u32 %v3891_v16, %v3888_v11  ;;  %v3918_v16 = vrot.slane %v3916_v46, 4 }
 0x4ea   : > { %16429 = vmatpush3.bf16.msra.mxu0 %v18359_v23  ;;  %v3879_v23 = vrot.slane %v3877_v58, 3  ;;  %v21577_v58 = vld [vmem:[#allocation6 + $0x140] sm:$0xff]  }
 0x4eb   : > { %16430 = vmatprep.subr.bf16.mxu0 %v18362_v33 }
 0x4ec   : > { %v3883_v42 = vor.u32 %v3882_v44, %v3879_v23  ;;  %v21581_v23 = vld [vmem:[#allocation2 + $0x80] sm:$0xf]  ;;  %v21583_v44 = vld [vmem:[#allocation2 + $0x84] sm:$0xf] }
 0x4ed   : > { %16383 = vmatmul.mubr.bf16.gmra.mrb[8].mxu0 %v3848_v27  ;;  %v21569_v27 = vld [vmem:[#allocation2 + $0x78] sm:$0xf] }
 0x4ee   : > { %16386 = vmatprep.mubr.bf16.mxu0 %v3857_v10  ;;  %16431 = vmatpush3.bf16.msra.mxu0 %v18362_v33  ;;  %v3895_v33 = vshrl.u32 %v14533_v47, 16  ;;  %v3884_v38 = vsel %vm2388_vm1, %v3874_v50, %v3883_v42  ;;  %v3900_v10 = vrot.slane %v3898_v8, 4  ;;  %v3893_v4 = vsel %vm2388_vm1, %v3883_v42, %v3892_v39  ;;  %v21585_v47 = vld [vmem:[#allocation2 + $0x88] sm:$0xf] }
 0x4ef   : > { %16432 = vmatprep.subr.bf16.mxu0 %v18367_v49  ;;  %v3913_v50 = vshrl.u32 %v14535_v0, 16  ;;  %v14538_v8 = vcombine.low %v21583_v44, %v21585_v47  ;;  %v21596_v0 = vld [vmem:[#allocation2 + $0x90] sm:$0xf] }
 0x4f0   : > { %v21543_v5 = vpop.f32.mrb[48].mxu0  ;;  %v3897_v13 = vrot.slane %v3895_v33, 3 }
 0x4f1   : > { %v21547_v40 = vpop.f32.mrb[49].mxu0  ;;  %v3915_v11 = vrot.slane %v3913_v50, 3 }
 0x4f2   : > { %v16233_v15 = vpop.f32.mrb[50].mxu0  ;;  %16433 = vmatpush3.bf16.msra.mxu0 %v18367_v49  ;;  %v21567_v49 = vld [vmem:[#allocation2 + $0x74] sm:$0xf]  ;;  %v3901_v37 = vor.u32 %v3900_v10, %v3897_v13  ;;  %v3940_v13 = vshrl.u32 %v14538_v8, 16  ;;  %v21594_v10 = vld [vmem:[#allocation2 + $0x8c] sm:$0xf] }
 0x4f3   : > { %v21555_v26 = vpop.f32.mrb[51].mxu0  ;;  %16434 = vmatprep.subr.bf16.mxu0 %v18370_v28  ;;  %v14536_v52 = vcombine.low %v21567_v49, %v21569_v27  ;;  %v3919_v3 = vor.u32 %v3918_v16, %v3915_v11  ;;  %v14539_v50 = vcombine.low %v21594_v10, %v21596_v0 }
 0x4f5   : > { %16387 = vmatmul.mubr.bf16.gmra.mrb[12].mxu0 %v3866_v61  ;;  %v3922_v15 = vshrl.u32 %v14536_v52, 16  ;;  %v21579_v61 = vld [vmem:[#allocation2 + $0x7c] sm:$0xf]  ;;  %v3949_v16 = vshrl.u32 %v14539_v50, 16 }
 0x4f6   : > { %16390 = vmatprep.mubr.bf16.mxu0 %v3875_v12  ;;  %16435 = vmatpush3.bf16.msra.mxu0 %v18370_v28  ;;  %v3909_v28 = vrot.slane %v3907_v55, 4  ;;  %v3902_v12 = vsel %vm2388_vm1, %v3892_v39, %v3901_v37  ;;  %v14537_v51 = vcombine.low %v21579_v61, %v21581_v23  ;;  %v3943_v39 = vshll.u32 %v14538_v8, 16  ;;  %v21610_v8 = vld [vmem:[#allocation2 + $0xa0] sm:$0xf] }
 0x4f7   : > { %16436 = vmatprep.subr.bf16.mxu0 %v18375_v32  ;;  %v3924_v42 = vrot.slane %v3922_v15, 3  ;;  %v3942_v15 = vrot.slane %v3940_v13, 3  ;;  %25571 = vst [vmem:[#allocation42_spill] sm:$0xff] %v21610_v8  ;;  %v3951_v13 = vrot.slane %v3949_v16, 3  ;;  %v21622_v16 = vld [vmem:[#allocation2 + $0xac] sm:$0xf] }
 0x4f8   : > { %v3910_v14 = vor.u32 %v3909_v28, %v3906_v24  ;;  %v3931_v55 = vshrl.u32 %v14537_v51, 16  ;;  %v21600_v24 = vld [vmem:[#allocation2 + $0x98] sm:$0xf]  ;;  %25574 = vst [vmem:[#allocation48_spill] sm:$0xff] %v21622_v16 }
 0x4f9   : > { %25570 = vst [vmem:[#allocation40_spill] sm:$0xff] %v21600_v24 }
 0x4fa   : > { %16437 = vmatpush3.bf16.msra.mxu0 %v18375_v32  ;;  %v3925_v32 = vshll.u32 %v14536_v52, 16  ;;  %v3920_v28 = vsel %vm2388_vm1, %v3910_v14, %v3919_v3  ;;  %v3933_v52 = vrot.slane %v3931_v55, 3  ;;  %v21612_v55 = vld [vmem:[#allocation2 + $0xa4] sm:$0xf] }
 0x4fb   : > { %16438 = vmatprep.subr.bf16.mxu0 %v18378_v18  ;;  %25572 = vst [vmem:[#allocation44_spill] sm:$0xff] %v21612_v55 }
 0x4fc   : > { %v3927_v33 = vrot.slane %v3925_v32, 4  ;;  %v3945_v32 = vrot.slane %v3943_v39, 4 }
 0x4fd   : > { %16391 = vmatmul.mubr.bf16.gmra.mrb[16].mxu0 %v3884_v38 }
 0x4fe   : > { %16394 = vmatprep.mubr.bf16.mxu0 %v3893_v4  ;;  %16439 = vmatpush3.bf16.msra.mxu0 %v18378_v18  ;;  %v3911_v18 = vsel %vm2388_vm1, %v3901_v37, %v3910_v14  ;;  %v3928_v38 = vor.u32 %v3927_v33, %v3924_v42  ;;  %v21598_v4 = vld [vmem:[#allocation2 + $0x94] sm:$0xf]  ;;  %v21608_v33 = vld [vmem:[#allocation2 + $0x9c] sm:$0xf] }
 0x4ff   : > { %16440 = vmatprep.subr.bf16.mxu0 %v18383_v57 }
 0x500   : > { %v3929_v46 = vsel %vm2388_vm1, %v3919_v3, %v3928_v38 }
 0x502   : > { %16441 = vmatpush3.bf16.msra.mxu0 %v18383_v57  ;;  %v3934_v57 = vshll.u32 %v14537_v51, 16  ;;  %v3952_v51 = vshll.u32 %v14539_v50, 16 }
 0x503   : > { %16490 = vmatprep.subr.bf16.mxu0 %v21577_v58 }
 0x504   : > { %v3936_v37 = vrot.slane %v3934_v57, 4  ;;  %v21614_v57 = vld [vmem:[#allocation2 + $0xa8] sm:$0xf]  ;;  %v3954_v39 = vrot.slane %v3952_v51, 4  ;;  %v21624_v51 = vld [vmem:[#allocation2 + $0xb0] sm:$0xf] }
 0x505   : > { %16395 = vmatmul.mubr.bf16.gmra.mrb[20].mxu0 %v3902_v12  ;;  %v14540_v12 = vcombine.low %v21598_v4, %v21600_v24  ;;  %25573 = vst [vmem:[#allocation46_spill] sm:$0xff] %v21614_v57  ;;  %25575 = vst [vmem:[#allocation50_spill] sm:$0xff] %v21624_v51 }
 0x506   : > { %16398 = vmatprep.mubr.bf16.mxu0 %v3911_v18  ;;  %v3937_v11 = vor.u32 %v3936_v37, %v3933_v52  ;;  %v3946_v18 = vor.u32 %v3945_v32, %v3942_v15  ;;  %v3955_v15 = vor.u32 %v3954_v39, %v3951_v13  ;;  %v14543_v13 = vcombine.low %v21622_v16, %v21624_v51  ;;  %v21640_v51 = vld [vmem:[#allocation2 + $0xc4] sm:$0xf] }
 0x507   : > { %v3958_v42 = vshrl.u32 %v14540_v12, 16  ;;  %v3961_v14 = vshll.u32 %v14540_v12, 16 }
 0x508   : > { %v3938_v3 = vsel %vm2388_vm1, %v3928_v38, %v3937_v11  ;;  %v3947_v52 = vsel %vm2388_vm1, %v3937_v11, %v3946_v18  ;;  %v3956_v11 = vsel %vm2388_vm1, %v3946_v18, %v3955_v15 }
 0x509   : > { %v3960_v37 = vrot.slane %v3958_v42, 3  ;;  %v3963_v50 = vrot.slane %v3961_v14, 4 }
 0x50b   : > { %v3964_v19 = vor.u32 %v3963_v50, %v3960_v37 }
 0x50d   : > { %16399 = vmatmul.mubr.bf16.gmra.mrb[24].mxu0 %v3920_v28  ;;  %v14541_v28 = vcombine.low %v21608_v33, %v21610_v8  ;;  %v3965_v39 = vsel %vm2388_vm1, %v3955_v15, %v3964_v19 }
 0x50e   : > { %16402 = vmatprep.mubr.bf16.mxu0 %v3929_v46  ;;  %v14542_v46 = vcombine.low %v21612_v55, %v21614_v57  ;;  %v3988_v57 = vshll.u32 %v14543_v13, 16 }
 0x50f   : > { %v3967_v32 = vshrl.u32 %v14541_v28, 16  ;;  %v3970_v12 = vshll.u32 %v14541_v28, 16 }
 0x510   : > { %v3976_v41 = vshrl.u32 %v14542_v46, 16  ;;  %v3979_v38 = vshll.u32 %v14542_v46, 16  ;;  %v3985_v46 = vshrl.u32 %v14543_v13, 16 }
 0x511   : > { %v3969_v42 = vrot.slane %v3967_v32, 3  ;;  %v3972_v14 = vrot.slane %v3970_v12, 4  ;;  %v21636_v32 = vld [vmem:[#allocation2 + $0xbc] sm:$0xf]  ;;  %v21638_v12 = vld [vmem:[#allocation2 + $0xc0] sm:$0xf] }
 0x512   : > { %v3978_v28 = vrot.slane %v3976_v41, 3  ;;  %25578 = vst [vmem:[#allocation54_spill] sm:$0xff] %v21638_v12  ;;  %v3987_v15 = vrot.slane %v3985_v46, 3 }
 0x513   : > { %v3973_v50 = vor.u32 %v3972_v14, %v3969_v42  ;;  %v14545_v42 = vcombine.low %v21636_v32, %v21638_v12 }
 0x515   : > { %16403 = vmatmul.mubr.bf16.gmra.mrb[28].mxu0 %v3938_v3  ;;  %v21628_v3 = vld [vmem:[#allocation2 + $0xb8] sm:$0xf]  ;;  %v3974_v41 = vsel %vm2388_vm1, %v3964_v19, %v3973_v50 }
 0x516   : > { %16406 = vmatprep.mubr.bf16.mxu0 %v3947_v52  ;;  %25577 = vst [vmem:[#allocation79_spill] sm:$0xff] %v21628_v3  ;;  %v3981_v52 = vrot.slane %v3979_v38, 4  ;;  %v14544_v37 = vcombine.low %v21626_v25, %v21628_v3  ;;  %v3990_v38 = vrot.slane %v3988_v57, 4  ;;  %v4006_v3 = vshll.u32 %v14545_v42, 16 }
 0x518   : > { %v3982_v8 = vor.u32 %v3981_v52, %v3978_v28  ;;  %v3994_v55 = vshrl.u32 %v14544_v37, 16  ;;  %v3997_v18 = vshll.u32 %v14544_v37, 16  ;;  %v3991_v52 = vor.u32 %v3990_v38, %v3987_v15 }
 0x519   : > { %v4003_v37 = vshrl.u32 %v14545_v42, 16  ;;  %v4008_v24 = vrot.slane %v4006_v3, 4  ;;  %v14555_v38 = vcombine.low %v21476_v34, %v21478_v48  ;;  %v18390_v3 = vld [vmem:[#allocation6 + $0x148] sm:$0xff]   ;;  %v18398_v34 = vld [vmem:[#allocation6 + $0x158] sm:$0xff]   ;;  %v14559_v48 = vcombine.low %v21503_v36, %v21505_v6 }
 0x51a   : > { %v3983_v14 = vsel %vm2388_vm1, %v3973_v50, %v3982_v8  ;;  %v3996_v13 = vrot.slane %v3994_v55, 3  ;;  %v3992_v57 = vsel %vm2388_vm1, %v3982_v8, %v3991_v52  ;;  %v14556_v8 = vcombine.low %v21480_v63, %v21487_v62  ;;  %v18401_v63 = vld [vmem:[#allocation6 + $0x160] sm:$0xff]   ;;  %v18406_v36 = vld [vmem:[#allocation6 + $0x168] sm:$0xff]  }
 0x51b   : > { %v4005_v46 = vrot.slane %v4003_v37, 3  ;;  %v14561_v42 = vcombine.low %v21516_v53, %v21518_v59  ;;  %v14564_v53 = vcombine.low %v21535_v22, %v21545_v54  ;;  %v14565_v59 = vcombine.low %v21549_v21, %v21551_v29  ;;  %v25579_v21 = vld [vmem:[#allocation40_spill] sm:$0xff] }
 0x51c   : > { %v14570_v22 = vcombine.low %v21585_v47, %v21594_v10  ;;  %v14571_v54 = vcombine.low %v21596_v0, %v21598_v4  ;;  %v14572_v29 = vcombine.low %v25579_v21, %v21608_v33  ;;  %v18416_v47 = vld [vmem:[#allocation2 + $0x10] sm:$0xff]   ;;  %v18419_v37 = vld [vmem:[#allocation2 + $0x20] sm:$0xff]  }
 0x51d   : > { %16407 = vmatmul.mubr.bf16.gmra.mrb[32].mxu0 %v3956_v11  ;;  %v21642_v11 = vld [vmem:[#allocation2 + $0xc8] sm:$0xf]  ;;  %v4935_v10 = vshll.u32 %v18416_v47, 16  ;;  %v25586_v0 = vld [vmem:[#allocation79_spill] sm:$0xff]  ;;  %v25587_v33 = vld [vmem:[#allocation54_spill] sm:$0xff] }
 0x51e   : > { %16410 = vmatprep.mubr.bf16.mxu0 %v3965_v39  ;;  %v3999_v39 = vrot.slane %v3997_v18, 4  ;;  %v14546_v28 = vcombine.low %v21640_v51, %v21642_v11  ;;  %v4009_v18 = vor.u32 %v4008_v24, %v4005_v46  ;;  %v14558_v24 = vcombine.low %v21493_v60, %v21501_v56 }
 0x51f   : > { %v14560_v56 = vcombine.low %v21507_v20, %v21514_v2  ;;  %v14563_v20 = vcombine.low %v21531_v30, %v21533_v7  ;;  %v18418_v2 = vld [vmem:[#allocation6 + $0x180] sm:$0xff]   ;;  %v14568_v30 = vcombine.low %v21569_v27, %v21579_v61  ;;  %v14569_v7 = vcombine.low %v21581_v23, %v21583_v44  ;;  %v25584_v61 = vld [vmem:[#allocation52_spill] sm:$0xff]  ;;  %v25585_v23 = vld [vmem:[#allocation50_spill] sm:$0xff] }
 0x520   : > { %v4000_v25 = vor.u32 %v3999_v39, %v3996_v13  ;;  %v4012_v16 = vshrl.u32 %v14546_v28, 16  ;;  %v4015_v19 = vshll.u32 %v14546_v28, 16  ;;  %v18414_v13 = vld [vmem:[#allocation6 + $0x178] sm:$0xff]   ;;  %v14575_v44 = vcombine.low %v25585_v23, %v25584_v61  ;;  %v18417_v39 = vld [vmem:[#allocation2 + $0x18] sm:$0xff]  }
 0x521   : > { %v14576_v4 = vcombine.low %v25586_v0, %v21636_v32  ;;  %v14577_v28 = vcombine.low %v25587_v33, %v21640_v51  ;;  %v4952_v51 = vshrl.u32 %v18419_v37, 16 }
 0x522   : > { %v4014_v50 = vrot.slane %v4012_v16, 3  ;;  %v4017_v55 = vrot.slane %v4015_v19, 4  ;;  %v14557_v16 = vcombine.low %v21489_v17, %v21491_v31  ;;  %v4933_v19 = vshrl.u32 %v18416_v47, 16  ;;  %v18439_v47 = vld [vmem:[#allocation6 + $0x1a8] sm:$0xff]  }
 0x524   : > { %v4018_v12 = vor.u32 %v4017_v55, %v4014_v50  ;;  %v14578_v50 = vcombine.low %v21642_v11, %v21642_v11 }
 0x525   : > { %16411 = vmatmul.mubr.bf16.gmra.mrb[36].mxu0 %v3974_v41  ;;  %v4001_v41 = vsel %vm2388_vm1, %v3991_v52, %v4000_v25  ;;  %v4937_v52 = vrot.slane %v4935_v10, 1 }
 0x526   : > { %16414 = vmatprep.mubr.bf16.mxu0 %v3983_v14  ;;  %v4010_v14 = vsel %vm2388_vm1, %v4000_v25, %v4009_v18  ;;  %v4019_v15 = vsel %vm2388_vm1, %v4009_v18, %v4018_v12  ;;  %v18393_v25 = vld [vmem:[#allocation6 + $0x150] sm:$0xff]  }
 0x527   : > { %v4938_v46 = vor.u32 %v4937_v52, %v4933_v19  ;;  %v18420_v18 = vld [vmem:[#allocation2 + $0x28] sm:$0xff]  }
 0x528   : > { %v18442_v52 = vld [vmem:[#allocation6 + $0x1b0] sm:$0xff]  }
 0x52d   : > { %16415 = vmatmul.mubr.bf16.gmra.mrb[40].mxu0 %v3992_v57  ;;  %v4940_v57 = vshll.u32 %v18417_v39, 16 }
 0x52e   : > { %16418 = vmatprep.mubr.bf16.mxu0 %v4001_v41  ;;  %v4948_v41 = vshll.u32 %v18419_v37, 16 }
 0x52f   : > { %v4942_v55 = vrot.slane %v4940_v57, 1 }
 0x531   : > { %v4943_v32 = vsel %vm3085_vm2, %v4938_v46, %v4942_v55  ;;  %v18430_v46 = vld [vmem:[#allocation2 + $0x68] sm:$0xff]  }
 0x535   : > { %16419 = vmatmul.mubr.bf16.gmra.mrb[44].mxu0 %v4010_v14  ;;  %v4950_v14 = vrot.slane %v4948_v41, 1  ;;  %v18447_v41 = vld [vmem:[#allocation6 + $0x1b8] sm:$0xff]  }
 0x536   : > { %16422 = vmatprep.mubr.bf16.mxu0 %v4019_v15  ;;  %v18421_v15 = vld [vmem:[#allocation2 + $0x30] sm:$0xff]  }
 0x53d   : > { %16423 = vmatmul.mubr.bf16.gmra.mrb[60].mxu0 %v4018_v12 }
 0x53e   : > { %16442 = vmatprep.mubr.bf16.mxu0 %v14555_v38  ;;  %v4944_v38 = vshrl.u32 %v18417_v39, 16  ;;  %v18429_v39 = vld [vmem:[#allocation2 + $0x60] sm:$0xff]  }
 0x53f   : > { %v5012_v57 = vshll.u32 %v18429_v39, 16 }
 0x545   : > { %16443 = vmatmul.mubr.bf16.vlgmr.msra.gmra.mrb[4].mxu0 %v14556_v8  ;;  %v4956_v8 = vshll.u32 %v18420_v18, 16 }
 0x546   : > { %16491 = vmatpush3.bf16.msra.mxu0 %v21577_v58  ;;  %16446 = vmatprep.mubr.bf16.mxu0 %v14557_v16  ;;  %v4954_v16 = vor.u32 %v4952_v51, %v4950_v14  ;;  %v21730_v51 = vld [vmem:[#allocation6 + $0x1c0] sm:$0xff]  }
 0x547   : > { %16492 = vmatprep.subr.bf16.mxu0 %v18390_v3 }
 0x54a   : > { %16493 = vmatpush3.bf16.msra.mxu0 %v18390_v3  ;;  %v4946_v3 = vor.u32 %v4944_v38, %v4942_v55  ;;  %v5020_v38 = vshll.u32 %v18430_v46, 16 }
 0x54b   : > { %16494 = vmatprep.subr.bf16.mxu0 %v18393_v25 }
 0x54d   : > { %16447 = vmatmul.mubr.bf16.gmra.mrb[8].mxu0 %v14558_v24  ;;  %v4958_v24 = vrot.slane %v4956_v8, 1 }
 0x54e   : > { %16450 = vmatprep.mubr.bf16.mxu0 %v14559_v48  ;;  %16495 = vmatpush3.bf16.msra.mxu0 %v18393_v25  ;;  %v4964_v25 = vshll.u32 %v18421_v15, 16  ;;  %v18423_v48 = vld [vmem:[#allocation6 + $0x188] sm:$0xff]  }
 0x54f   : > { %16496 = vmatprep.subr.bf16.mxu0 %v18398_v34  ;;  %v4959_v11 = vsel %vm3085_vm2, %v4954_v16, %v4958_v24 }
 0x550   : > { %v16296_v62 = vpop.f32.mrb[52].mxu0 }
 0x551   : > { %v21666_v17 = vadd.f32 %v16296_v62, %v21543_v5  ;;  %v2886_v31 = vpop.f32.mrb[53].mxu0  ;;  %v18409_v5 = vld [vmem:[#allocation6 + $0x170] sm:$0xff]   ;;  %v4966_v62 = vrot.slane %v4964_v25, 1  ;;  %v5022_v25 = vrot.slane %v5020_v38, 1 }
 0x552   : > { %v21669_v58 = vadd.f32 %v2886_v31, %v21547_v40  ;;  %v16297_v12 = vpop.f32.mrb[54].mxu0  ;;  %16497 = vmatpush3.bf16.msra.mxu0 %v18398_v34  ;;  %v14562_v40 = vcombine.low %v21520_v35, %v21529_v1  ;;  %v14566_v35 = vcombine.low %v21553_v45, %v21563_v43  ;;  %v14567_v1 = vcombine.low %v21565_v9, %v21567_v49  ;;  %v25580_v45 = vld [vmem:[#allocation44_spill] sm:$0xff]  ;;  %v25583_v49 = vld [vmem:[#allocation46_spill] sm:$0xff] }
 0x553   : > { %v2889_v60 = vpop.f32.mrb[55].mxu0  ;;  %16498 = vmatprep.subr.bf16.mxu0 %v18401_v63  ;;  %v25582_v9 = vld [vmem:[#allocation48_spill] sm:$0xff]  ;;  %v4960_v12 = vshrl.u32 %v18420_v18, 16  ;;  %v5014_v18 = vrot.slane %v5012_v57, 1 }
 0x554   : > { %v21674_v6 = vadd.f32 %v2889_v60, %v21555_v26  ;;  %v25581_v26 = vld [vmem:[#allocation42_spill] sm:$0xff]  ;;  %v14574_v27 = vcombine.low %v25583_v49, %v25582_v9  ;;  %v18422_v34 = vld [vmem:[#allocation2 + $0x38] sm:$0xff]   ;;  %v18424_v31 = vld [vmem:[#allocation2 + $0x40] sm:$0xff]   ;;  %v4968_v60 = vshrl.u32 %v18421_v15, 16  ;;  %v5016_v15 = vshrl.u32 %v18429_v39, 16 }
 0x555   : > { %16451 = vmatmul.mubr.bf16.gmra.mrb[12].mxu0 %v14560_v56  ;;  %v14573_v43 = vcombine.low %v25581_v26, %v25580_v45  ;;  %v4972_v56 = vshll.u32 %v18422_v34, 16 }
 0x556   : > { %16454 = vmatprep.mubr.bf16.mxu0 %v14561_v42  ;;  %16499 = vmatpush3.bf16.msra.mxu0 %v18401_v63  ;;  %v4951_v63 = vsel %vm3085_vm2, %v4946_v3, %v4950_v14  ;;  %v4962_v42 = vor.u32 %v4960_v12, %v4958_v24  ;;  %v5018_v3 = vor.u32 %v5016_v15, %v5014_v18  ;;  %v18433_v24 = vld [vmem:[#allocation2 + $0x78] sm:$0xff]  }
 0x557   : > { %16500 = vmatprep.subr.bf16.mxu0 %v18406_v36  ;;  %v5036_v12 = vshll.u32 %v18433_v24, 16 }
 0x55a   : > { %16501 = vmatpush3.bf16.msra.mxu0 %v18406_v36  ;;  %v18426_v36 = vld [vmem:[#allocation6 + $0x190] sm:$0xff]  }
 0x55b   : > { %16502 = vmatprep.subr.bf16.mxu0 %v18409_v5 }
 0x55d   : > { %16455 = vmatmul.mubr.bf16.gmra.mrb[16].mxu0 %v14562_v40  ;;  %v4980_v40 = vshll.u32 %v18424_v31, 16 }
 0x55e   : > { %16458 = vmatprep.mubr.bf16.mxu0 %v14563_v20  ;;  %16503 = vmatpush3.bf16.msra.mxu0 %v18409_v5  ;;  %v4970_v5 = vor.u32 %v4968_v60, %v4966_v62  ;;  %v18425_v20 = vld [vmem:[#allocation2 + $0x48] sm:$0xff]  }
 0x55f   : > { %16504 = vmatprep.subr.bf16.mxu0 %v18414_v13 }
 0x562   : > { %16505 = vmatpush3.bf16.msra.mxu0 %v18414_v13  ;;  %v4974_v13 = vrot.slane %v4972_v56, 1 }
 0x563   : > { %16554 = vmatprep.subr.bf16.mxu0 %v18418_v2 }
 0x565   : > { %16459 = vmatmul.mubr.bf16.gmra.mrb[20].mxu0 %v14564_v53  ;;  %v18431_v53 = vld [vmem:[#allocation6 + $0x198] sm:$0xff]  }
 0x566   : > { %16462 = vmatprep.mubr.bf16.mxu0 %v14565_v59  ;;  %v4967_v59 = vsel %vm3085_vm2, %v4962_v42, %v4966_v62  ;;  %v5024_v62 = vshrl.u32 %v18430_v46, 16  ;;  %v5038_v42 = vrot.slane %v5036_v12, 1 }
 0x568   : > { %v5026_v60 = vor.u32 %v5024_v62, %v5022_v25 }
 0x56d   : > { %16463 = vmatmul.mubr.bf16.gmra.mrb[24].mxu0 %v14566_v35  ;;  %v4975_v35 = vsel %vm3085_vm2, %v4970_v5, %v4974_v13  ;;  %v18436_v5 = vld [vmem:[#allocation2 + $0x88] sm:$0xff]  }
 0x56e   : > { %16466 = vmatprep.mubr.bf16.mxu0 %v14567_v1  ;;  %v18427_v1 = vld [vmem:[#allocation2 + $0x50] sm:$0xff]  }
 0x56f   : > { %v4996_v9 = vshll.u32 %v18427_v1, 16  ;;  %v5000_v33 = vshrl.u32 %v18427_v1, 16 }
 0x575   : > { %16467 = vmatmul.mubr.bf16.gmra.mrb[28].mxu0 %v14568_v30  ;;  %v4976_v30 = vshrl.u32 %v18422_v34, 16 }
 0x576   : > { %16470 = vmatprep.mubr.bf16.mxu0 %v14569_v7  ;;  %v4984_v7 = vshrl.u32 %v18424_v31, 16 }
 0x57d   : > { %16471 = vmatmul.mubr.bf16.gmra.mrb[32].mxu0 %v14570_v22  ;;  %v4988_v22 = vshll.u32 %v18425_v20, 16 }
 0x57e   : > { %16474 = vmatprep.mubr.bf16.mxu0 %v14571_v54  ;;  %v18434_v54 = vld [vmem:[#allocation6 + $0x1a0] sm:$0xff]  }
 0x57f   : > { %v4990_v23 = vrot.slane %v4988_v22, 1 }
 0x585   : > { %16475 = vmatmul.mubr.bf16.gmra.mrb[36].mxu0 %v14572_v29  ;;  %v4978_v29 = vor.u32 %v4976_v30, %v4974_v13 }
 0x586   : > { %16478 = vmatprep.mubr.bf16.mxu0 %v14573_v43 }
 0x58d   : > { %16479 = vmatmul.mubr.bf16.gmra.mrb[40].mxu0 %v14574_v27 }
 0x58e   : > { %16482 = vmatprep.mubr.bf16.mxu0 %v14575_v44  ;;  %v18428_v44 = vld [vmem:[#allocation2 + $0x58] sm:$0xff]  }
 0x58f   : > { %v5008_v14 = vshrl.u32 %v18428_v44, 16 }
 0x595   : > { %16483 = vmatmul.mubr.bf16.gmra.mrb[44].mxu0 %v14576_v4  ;;  %v4998_v4 = vrot.slane %v4996_v9, 1  ;;  %v5056_v9 = vshrl.u32 %v18436_v5, 16 }
 0x596   : > { %16486 = vmatprep.mubr.bf16.mxu0 %v14577_v28  ;;  %v5004_v28 = vshll.u32 %v18428_v44, 16 }
 0x597   : > { %v5002_v19 = vor.u32 %v5000_v33, %v4998_v4  ;;  %v18443_v33 = vld [vmem:[#allocation2 + $0xb0] sm:$0xff]  }
 0x598   : > { %v5096_v15 = vshrl.u32 %v18443_v33, 16 }
 0x59d   : > { %16487 = vmatmul.mubr.bf16.gmra.mrb[64].mxu0 %v14578_v50 }
 0x59e   : > { %16506 = vmatprep.mubr.bf16.mxu0 %v4943_v32  ;;  %v18432_v32 = vld [vmem:[#allocation2 + $0x70] sm:$0xff]  }
 0x59f   : > { %v5028_v16 = vshll.u32 %v18432_v32, 16  ;;  %v5032_v31 = vshrl.u32 %v18432_v32, 16 }
 0x5a5   : > { %16507 = vmatmul.mubr.bf16.vlgmr.msra.gmra.mrb[4].mxu0 %v4951_v63  ;;  %v5030_v63 = vrot.slane %v5028_v16, 1 }
 0x5a6   : > { %16555 = vmatpush3.bf16.msra.mxu0 %v18418_v2  ;;  %16510 = vmatprep.mubr.bf16.mxu0 %v4959_v11  ;;  %v4982_v2 = vrot.slane %v4980_v40, 1  ;;  %v18435_v11 = vld [vmem:[#allocation2 + $0x80] sm:$0xff]  }
 0x5a7   : > { %16556 = vmatprep.subr.bf16.mxu0 %v18423_v48  ;;  %v5034_v56 = vor.u32 %v5032_v31, %v5030_v63  ;;  %v5031_v40 = vsel %vm3085_vm2, %v5026_v60, %v5030_v63  ;;  %v21747_v63 = vld [vmem:[#allocation2 + $0x24] sm:$0xf] }
 0x5a8   : > { %v4986_v43 = vor.u32 %v4984_v7, %v4982_v2  ;;  %v4983_v0 = vsel %vm3085_vm2, %v4978_v29, %v4982_v2  ;;  %v5052_v2 = vshll.u32 %v18436_v5, 16 }
 0x5a9   : > { %v5039_v13 = vsel %vm3085_vm2, %v5034_v56, %v5038_v42 }
 0x5aa   : > { %16557 = vmatpush3.bf16.msra.mxu0 %v18423_v48  ;;  %v5023_v48 = vsel %vm3085_vm2, %v5018_v3, %v5022_v25  ;;  %v5054_v22 = vrot.slane %v5052_v2, 1  ;;  %v18446_v25 = vld [vmem:[#allocation2 + $0xc8] sm:$0x1f]  }
 0x5ab   : > { %16558 = vmatprep.subr.bf16.mxu0 %v18426_v36  ;;  %v5116_v5 = vshll.u32 %v18446_v25, 16 }
 0x5ad   : > { %16511 = vmatmul.mubr.bf16.gmra.mrb[8].mxu0 %v4967_v59  ;;  %v5040_v59 = vshrl.u32 %v18433_v24, 16  ;;  %v5466_v24 = vld [vmem:[#allocation2 + $0x18] sm:$0x8] }
 0x5ae   : > { %16514 = vmatprep.mubr.bf16.mxu0 %v4975_v35  ;;  %16559 = vmatpush3.bf16.msra.mxu0 %v18426_v36  ;;  %v5044_v36 = vshll.u32 %v18435_v11, 16  ;;  %v5048_v35 = vshrl.u32 %v18435_v11, 16 }
 0x5af   : > { %16560 = vmatprep.subr.bf16.mxu0 %v18431_v53  ;;  %v5042_v1 = vor.u32 %v5040_v59, %v5038_v42  ;;  %v21758_v59 = vld [vmem:[#allocation2 + $0x30] sm:$0xf] }
 0x5b0   : > { %v16360_v21 = vpop.f32.mrb[56].mxu0 }
 0x5b1   : > { %v21718_v45 = vadd.f32 %v16360_v21, %v21666_v17  ;;  %v3559_v26 = vpop.f32.mrb[57].mxu0  ;;  %v4991_v17 = vsel %vm3085_vm2, %v4986_v43, %v4990_v23  ;;  %v18440_v43 = vld [vmem:[#allocation2 + $0xa0] sm:$0xff]  }
 0x5b2   : > { %v21721_v49 = vadd.f32 %v3559_v26, %v21669_v58  ;;  %v16361_v27 = vpop.f32.mrb[58].mxu0  ;;  %16561 = vmatpush3.bf16.msra.mxu0 %v18431_v53  ;;  %v4992_v58 = vshrl.u32 %v18425_v20, 16  ;;  %v5046_v20 = vrot.slane %v5044_v36, 1  ;;  %v18437_v53 = vld [vmem:[#allocation2 + $0x90] sm:$0xff]  }
 0x5b3   : > { %v3562_v61 = vpop.f32.mrb[59].mxu0  ;;  %16562 = vmatprep.subr.bf16.mxu0 %v18434_v54  ;;  %v5060_v7 = vshll.u32 %v18437_v53, 16  ;;  %v5064_v27 = vshrl.u32 %v18437_v53, 16  ;;  %v21756_v53 = vld [vmem:[#allocation2 + $0x2c] sm:$0xf] }
 0x5b4   : > { %v21724_v10 = vadd.f32 %v3562_v61, %v21674_v6  ;;  %v4994_v37 = vor.u32 %v4992_v58, %v4990_v23  ;;  %v5006_v6 = vrot.slane %v5004_v28, 1  ;;  %v5050_v30 = vor.u32 %v5048_v35, %v5046_v20 }
 0x5b5   : > { %16515 = vmatmul.mubr.bf16.gmra.mrb[12].mxu0 %v4983_v0  ;;  %v5047_v21 = vsel %vm3085_vm2, %v5042_v1, %v5046_v20  ;;  %v5062_v26 = vrot.slane %v5060_v7, 1  ;;  %v5058_v23 = vor.u32 %v5056_v9, %v5054_v22  ;;  %v21754_v20 = vld [vmem:[#allocation2 + $0x28] sm:$0xf]  ;;  %v21760_v7 = vld [vmem:[#allocation2 + $0x34] sm:$0xf] }
 0x5b6   : > { %16518 = vmatprep.mubr.bf16.mxu0 %v4991_v17  ;;  %16563 = vmatpush3.bf16.msra.mxu0 %v18434_v54  ;;  %v4999_v50 = vsel %vm3085_vm2, %v4994_v37, %v4998_v4  ;;  %v5007_v55 = vsel %vm3085_vm2, %v5002_v19, %v5006_v6  ;;  %v5010_v8 = vor.u32 %v5008_v14, %v5006_v6  ;;  %v18438_v54 = vld [vmem:[#allocation2 + $0x98] sm:$0xff]   ;;  %v18441_v17 = vld [vmem:[#allocation2 + $0xa8] sm:$0xff]   ;;  %v5092_v6 = vshll.u32 %v18443_v33, 16 }
 0x5b7   : > { %16564 = vmatprep.subr.bf16.mxu0 %v18439_v47  ;;  %v5055_v29 = vsel %vm3085_vm2, %v5050_v30, %v5054_v22  ;;  %v5068_v61 = vshll.u32 %v18438_v54, 16  ;;  %v5066_v44 = vor.u32 %v5064_v27, %v5062_v26  ;;  %v5063_v4 = vsel %vm3085_vm2, %v5058_v23, %v5062_v26  ;;  %v21770_v33 = vld [vmem:[#allocation2 + $0x3c] sm:$0xf] }
 0x5b8   : > { %v5015_v34 = vsel %vm3085_vm2, %v5010_v8, %v5014_v18  ;;  %v5072_v28 = vshrl.u32 %v18438_v54, 16  ;;  %v5084_v37 = vshll.u32 %v18441_v17, 16  ;;  %v5094_v32 = vrot.slane %v5092_v6, 1 }
 0x5b9   : > { %v5070_v0 = vrot.slane %v5068_v61, 1  ;;  %v5088_v14 = vshrl.u32 %v18441_v17, 16  ;;  %v5118_v22 = vrot.slane %v5116_v5, 1  ;;  %v14622_v26 = vcombine.low %v21758_v59, %v21760_v7 }
 0x5ba   : > { %16565 = vmatpush3.bf16.msra.mxu0 %v18439_v47  ;;  %v5076_v47 = vshll.u32 %v18440_v43, 16  ;;  %v5086_v46 = vrot.slane %v5084_v37, 1  ;;  %v5098_v16 = vor.u32 %v5096_v15, %v5094_v32  ;;  %v5120_v23 = vshrl.u32 %v18446_v25, 16  ;;  %v21785_v25 = vld [vmem:[#allocation2 + $0x50] sm:$0xf] }
 0x5bb   : > { %16566 = vmatprep.subr.bf16.mxu0 %v18442_v52  ;;  %v5071_v39 = vsel %vm3085_vm2, %v5066_v44, %v5070_v0  ;;  %v5074_v19 = vor.u32 %v5072_v28, %v5070_v0  ;;  %v21772_v28 = vld [vmem:[#allocation2 + $0x40] sm:$0xf] }
 0x5bc   : > { %v5078_v58 = vrot.slane %v5076_v47, 1  ;;  %v5090_v8 = vor.u32 %v5088_v14, %v5086_v46  ;;  %v5122_v37 = vor.u32 %v5120_v23, %v5118_v22 }
 0x5bd   : > { %16519 = vmatmul.mubr.bf16.gmra.mrb[16].mxu0 %v4999_v50 }
 0x5be   : > { %16522 = vmatprep.mubr.bf16.mxu0 %v5007_v55  ;;  %16567 = vmatpush3.bf16.msra.mxu0 %v18442_v52  ;;  %v5080_v52 = vshrl.u32 %v18440_v43, 16  ;;  %v5079_v50 = vsel %vm3085_vm2, %v5074_v19, %v5078_v58  ;;  %v18445_v55 = vld [vmem:[#allocation2 + $0xc0] sm:$0xff]   ;;  %v5095_v62 = vsel %vm3085_vm2, %v5090_v8, %v5094_v32 }
 0x5bf   : > { %16568 = vmatprep.subr.bf16.mxu0 %v18447_v41  ;;  %v5108_v3 = vshll.u32 %v18445_v55, 16  ;;  %v5112_v42 = vshrl.u32 %v18445_v55, 16 }
 0x5c0   : > { %v5082_v57 = vor.u32 %v5080_v52, %v5078_v58  ;;  %v21768_v58 = vld [vmem:[#allocation2 + $0x38] sm:$0xf]  ;;  %v21774_v52 = vld [vmem:[#allocation2 + $0x44] sm:$0xf] }
 0x5c1   : > { %v5110_v31 = vrot.slane %v5108_v3, 1  ;;  %v14623_v6 = vcombine.low %v21768_v58, %v21770_v33  ;;  %v14624_v55 = vcombine.low %v21772_v28, %v21774_v52  ;;  %v21781_v3 = vld [vmem:[#allocation2 + $0x48] sm:$0xf] }
 0x5c2   : > { %16569 = vmatpush3.bf16.msra.mxu0 %v18447_v41  ;;  %v18444_v41 = vld [vmem:[#allocation2 + $0xb8] sm:$0xff]   ;;  %v5087_v18 = vsel %vm3085_vm2, %v5082_v57, %v5086_v46 }
 0x5c3   : > { %16618 = vmatprep.subr.bf16.mxu0 %v21730_v51  ;;  %v5100_v38 = vshll.u32 %v18444_v41, 16  ;;  %v5104_v36 = vshrl.u32 %v18444_v41, 16  ;;  %v5687_v32 = vshrl.u32 %v14623_v6, 16  ;;  %v5690_v14 = vshll.u32 %v14623_v6, 16  ;;  %v21812_v6 = vld [vmem:[#allocation2 + $0x6c] sm:$0xf] }
 0x5c4   : > { %v5699_v8 = vshll.u32 %v14624_v55, 16 }
 0x5c5   : > { %16523 = vmatmul.mubr.bf16.gmra.mrb[20].mxu0 %v5015_v34  ;;  %v21743_v34 = vld [vmem:[#allocation2 + $0x1c] sm:$0xf]  ;;  %v5102_v11 = vrot.slane %v5100_v38, 1  ;;  %v5696_v38 = vshrl.u32 %v14624_v55, 16 }
 0x5c6   : > { %16526 = vmatprep.mubr.bf16.mxu0 %v5023_v48  ;;  %v21745_v48 = vld [vmem:[#allocation2 + $0x20] sm:$0xf]  ;;  %v14619_v60 = vcombine.low %v5466_v24, %v21743_v34  ;;  %v21787_v24 = vld [vmem:[#allocation2 + $0x54] sm:$0xf] }
 0x5c7   : > { %v5103_v12 = vsel %vm3085_vm2, %v5098_v16, %v5102_v11  ;;  %v14620_v56 = vcombine.low %v21745_v48, %v21747_v63  ;;  %v21783_v16 = vld [vmem:[#allocation2 + $0x4c] sm:$0xf]  ;;  %v14626_v5 = vcombine.low %v21785_v25, %v21787_v24 }
 0x5c8   : > { %v5652_v35 = vshrl.u32 %v14619_v60, 16  ;;  %v5655_v2 = vshll.u32 %v14619_v60, 16  ;;  %v14625_v60 = vcombine.low %v21781_v3, %v21783_v16 }
 0x5c9   : > { %v5660_v1 = vshrl.u32 %v14620_v56, 16  ;;  %v5663_v30 = vshll.u32 %v14620_v56, 16 }
 0x5ca   : > { %v5654_v43 = vrot.slane %v5652_v35, 3  ;;  %v5657_v9 = vrot.slane %v5655_v2, 4  ;;  %v5705_v35 = vshrl.u32 %v14625_v60, 16  ;;  %v5708_v2 = vshll.u32 %v14625_v60, 16 }
 0x5cb   : > { %v5662_v27 = vrot.slane %v5660_v1, 3  ;;  %v5665_v61 = vrot.slane %v5663_v30, 4  ;;  %v5714_v30 = vshrl.u32 %v14626_v5, 16 }
 0x5cc   : > { %v5658_v0 = vor.u32 %v5657_v9, %v5654_v43  ;;  %v5707_v9 = vrot.slane %v5705_v35, 3 }
 0x5cd   : > { %16527 = vmatmul.mubr.bf16.gmra.mrb[24].mxu0 %v5031_v40  ;;  %v5106_v40 = vor.u32 %v5104_v36, %v5102_v11  ;;  %v5666_v17 = vor.u32 %v5665_v61, %v5662_v27  ;;  %v18455_v11 = vld [vmem:[#allocation6 + $0x1c8] sm:$0xff]   ;;  %v5698_v36 = vrot.slane %v5696_v38, 3  ;;  %v5710_v27 = vrot.slane %v5708_v2, 4  ;;  %v21822_v38 = vld [vmem:[#allocation2 + $0x74] sm:$0xf] }
 0x5ce   : > { %16530 = vmatprep.mubr.bf16.mxu0 %v5039_v13  ;;  %v5114_v13 = vor.u32 %v5112_v42, %v5110_v31  ;;  %v5701_v42 = vrot.slane %v5699_v8, 4 }
 0x5cf   : > { %v5111_v54 = vsel %vm3085_vm2, %v5106_v40, %v5110_v31  ;;  %v5667_v46 = vsel %vm2388_vm1, %v5658_v0, %v5666_v17  ;;  %v5689_v31 = vrot.slane %v5687_v32, 3  ;;  %v18458_v40 = vld [vmem:[#allocation6 + $0x1d0] sm:$0xff]  }
 0x5d0   : > { %v5702_v1 = vor.u32 %v5701_v42, %v5698_v36 }
 0x5d5   : > { %16531 = vmatmul.mubr.bf16.gmra.mrb[28].mxu0 %v5047_v21  ;;  %v5119_v21 = vsel %vm3085_vm2, %v5114_v13, %v5118_v22  ;;  %v5717_v22 = vshll.u32 %v14626_v5, 16  ;;  %v18474_v5 = vld [vmem:[#allocation6 + $0x1f0] sm:$0xff]  }
 0x5d6   : > { %16534 = vmatprep.mubr.bf16.mxu0 %v5055_v29  ;;  %v14621_v29 = vcombine.low %v21754_v20, %v21756_v53 }
 0x5d8   : > { %v5669_v44 = vshrl.u32 %v14621_v29, 16  ;;  %v5672_v47 = vshll.u32 %v14621_v29, 16  ;;  %v21800_v29 = vld [vmem:[#allocation2 + $0x60] sm:$0xf] }
 0x5da   : > { %v5671_v19 = vrot.slane %v5669_v44, 3  ;;  %v5674_v57 = vrot.slane %v5672_v47, 4  ;;  %v5716_v44 = vrot.slane %v5714_v30, 3  ;;  %v5719_v47 = vrot.slane %v5717_v22, 4  ;;  %v21833_v30 = vld [vmem:[#allocation2 + $0x78] sm:$0xf] }
 0x5db   : > { %v21835_v22 = vld [vmem:[#allocation2 + $0x7c] sm:$0xf] }
 0x5dd   : > { %16535 = vmatmul.mubr.bf16.gmra.mrb[32].mxu0 %v5063_v4  ;;  %v5678_v4 = vshrl.u32 %v14622_v26, 16 }
 0x5de   : > { %16538 = vmatprep.mubr.bf16.mxu0 %v5071_v39  ;;  %v5681_v39 = vshll.u32 %v14622_v26, 16  ;;  %v21802_v26 = vld [vmem:[#allocation2 + $0x64] sm:$0xf] }
 0x5df   : > { %v5680_v41 = vrot.slane %v5678_v4, 3  ;;  %v14628_v0 = vcombine.low %v21800_v29, %v21802_v26  ;;  %v18466_v4 = vld [vmem:[#allocation6 + $0x1e0] sm:$0xff]  }
 0x5e1   : > { %v5732_v55 = vshrl.u32 %v14628_v0, 16 }
 0x5e5   : > { %16539 = vmatmul.mubr.bf16.gmra.mrb[36].mxu0 %v5079_v50  ;;  %v5683_v50 = vrot.slane %v5681_v39, 4 }
 0x5e6   : > { %16542 = vmatprep.mubr.bf16.mxu0 %v5087_v18  ;;  %v5675_v18 = vor.u32 %v5674_v57, %v5671_v19 }
 0x5e7   : > { %v5684_v15 = vor.u32 %v5683_v50, %v5680_v41  ;;  %v5720_v50 = vor.u32 %v5719_v47, %v5716_v44  ;;  %v14631_v44 = vcombine.low %v21833_v30, %v21835_v22 }
 0x5e9   : > { %v5685_v56 = vsel %vm2388_vm1, %v5675_v18, %v5684_v15 }
 0x5ed   : > { %16543 = vmatmul.mubr.bf16.gmra.mrb[40].mxu0 %v5095_v62  ;;  %v5676_v62 = vsel %vm2388_vm1, %v5666_v17, %v5675_v18  ;;  %v21810_v17 = vld [vmem:[#allocation2 + $0x68] sm:$0xf]  ;;  %v5735_v18 = vshll.u32 %v14628_v0, 16 }
 0x5ee   : > { %16546 = vmatprep.mubr.bf16.mxu0 %v5103_v12  ;;  %v5692_v12 = vrot.slane %v5690_v14, 4 }
 0x5ef   : > { %v5737_v36 = vrot.slane %v5735_v18, 4 }
 0x5f0   : > { %v5693_v13 = vor.u32 %v5692_v12, %v5689_v31 }
 0x5f2   : > { %v5694_v43 = vsel %vm2388_vm1, %v5684_v15, %v5693_v13  ;;  %v5703_v23 = vsel %vm2388_vm1, %v5693_v13, %v5702_v1  ;;  %v21820_v15 = vld [vmem:[#allocation2 + $0x70] sm:$0xf] }
 0x5f3   : > { %v14630_v42 = vcombine.low %v21820_v15, %v21822_v38 }
 0x5f5   : > { %16547 = vmatmul.mubr.bf16.gmra.mrb[44].mxu0 %v5111_v54  ;;  %v21796_v54 = vld [vmem:[#allocation2 + $0x58] sm:$0xf]  ;;  %v5750_v2 = vshrl.u32 %v14630_v42, 16 }
 0x5f6   : > { %16550 = vmatprep.mubr.bf16.mxu0 %v5119_v21  ;;  %v21798_v21 = vld [vmem:[#allocation2 + $0x5c] sm:$0xf] }
 0x5f7   : > { %v14627_v61 = vcombine.low %v21796_v54, %v21798_v21  ;;  %v5752_v0 = vrot.slane %v5750_v2, 3 }
 0x5f9   : > { %v5723_v19 = vshrl.u32 %v14627_v61, 16  ;;  %v5726_v57 = vshll.u32 %v14627_v61, 16 }
 0x5fb   : > { %v5725_v12 = vrot.slane %v5723_v19, 3  ;;  %v21850_v19 = vld [vmem:[#allocation6 + $0x200] sm:$0xff]  }
 0x5fd   : > { %16551 = vmatmul.mubr.bf16.gmra.mrb[68].mxu0 %v5122_v37  ;;  %v5711_v37 = vor.u32 %v5710_v27, %v5707_v9  ;;  %v18479_v9 = vld [vmem:[#allocation6 + $0x1f8] sm:$0xff]  }
 0x5fe   : > { %16570 = vmatprep.mubr.bf16.mxu0 %v5667_v46 }
 0x5ff   : > { %v5712_v31 = vsel %vm2388_vm1, %v5702_v1, %v5711_v37  ;;  %v5721_v60 = vsel %vm2388_vm1, %v5711_v37, %v5720_v50  ;;  %v5753_v1 = vshll.u32 %v14630_v42, 16  ;;  %v18503_v37 = vld [vmem:[%s24998_s6] sm:$0xff]  }
 0x600   : > { %16747 = vmatpush3.bf16.msra.mxu1 %v18503_v37 }
 0x605   : > { %16571 = vmatmul.mubr.bf16.vlgmr.msra.gmra.mrb[4].mxu0 %v5676_v62 }
 0x606   : > { %16619 = vmatpush3.bf16.msra.mxu0 %v21730_v51  ;;  %16574 = vmatprep.mubr.bf16.mxu0 %v5685_v56  ;;  %v18463_v51 = vld [vmem:[#allocation6 + $0x1d8] sm:$0xff]   ;;  %v5734_v56 = vrot.slane %v5732_v55, 3 }
 0x607   : > { %16620 = vmatprep.subr.bf16.mxu0 %v18455_v11  ;;  %v18504_v55 = vld [vmem:[%s24998_s6 + $0x8] sm:$0xff]  }
 0x608   : > { %v5738_v35 = vor.u32 %v5737_v36, %v5734_v56 }
 0x60a   : > { %16621 = vmatpush3.bf16.msra.mxu0 %v18455_v11  ;;  %v14629_v11 = vcombine.low %v21810_v17, %v21812_v6 }
 0x60b   : > { %16622 = vmatprep.subr.bf16.mxu0 %v18458_v40 }
 0x60c   : > { %v5741_v13 = vshrl.u32 %v14629_v11, 16 }
 0x60d   : > { %16575 = vmatmul.mubr.bf16.gmra.mrb[8].mxu0 %v5694_v43  ;;  %v21839_v43 = vld [vmem:[#allocation2 + $0x84] sm:$0xf] }
 0x60e   : > { %16578 = vmatprep.mubr.bf16.mxu0 %v5703_v23  ;;  %16623 = vmatpush3.bf16.msra.mxu0 %v18458_v40  ;;  %v5743_v61 = vrot.slane %v5741_v13, 3 }
 0x60f   : > { %16624 = vmatprep.subr.bf16.mxu0 %v18463_v51 }
 0x610   : > { %v16424_v39 = vpop.f32.mrb[60].mxu0 }
 0x611   : > { %v21815_v46 = vadd.f32 %v16424_v39, %v21718_v45  ;;  %v4302_v41 = vpop.f32.mrb[61].mxu0  ;;  %v18471_v45 = vld [vmem:[#allocation6 + $0x1e8] sm:$0xff]  }
 0x612   : > { %v21818_v32 = vadd.f32 %v4302_v41, %v21721_v49  ;;  %v16425_v14 = vpop.f32.mrb[62].mxu0  ;;  %16625 = vmatpush3.bf16.msra.mxu0 %v18463_v51  ;;  %v5728_v49 = vrot.slane %v5726_v57, 4  ;;  %v21837_v51 = vld [vmem:[#allocation2 + $0x80] sm:$0xf]  ;;  %v5759_v41 = vshrl.u32 %v14631_v44, 16 }
 0x613   : > { %v4305_v8 = vpop.f32.mrb[63].mxu0  ;;  %16626 = vmatprep.subr.bf16.mxu0 %v18466_v4  ;;  %v14632_v39 = vcombine.low %v21837_v51, %v21839_v43 }
 0x614   : > { %v21827_v62 = vadd.f32 %v4305_v8, %v21724_v10  ;;  %v5729_v40 = vor.u32 %v5728_v49, %v5725_v12  ;;  %v5744_v10 = vshll.u32 %v14629_v11, 16  ;;  %v21855_v11 = vld [vmem:[#allocation2 + $0x88] sm:$0xf]  ;;  %v21860_v12 = vld [vmem:[#allocation2 + $0x90] sm:$0xf]  ;;  %v5761_v56 = vrot.slane %v5759_v41, 3 }
 0x615   : > { %16579 = vmatmul.mubr.bf16.gmra.mrb[12].mxu0 %v5712_v31  ;;  %v5768_v14 = vshrl.u32 %v14632_v39, 16  ;;  %v5771_v8 = vshll.u32 %v14632_v39, 16  ;;  %v25588_v31 = vmov 0.0   ;;  %v21862_v49 = vld [vmem:[#allocation2 + $0x94] sm:$0xf] }
 0x616   : > { %16582 = vmatprep.mubr.bf16.mxu0 %v5721_v60  ;;  %16627 = vmatpush3.bf16.msra.mxu0 %v18466_v4  ;;  %v5730_v27 = vsel %vm2388_vm1, %v5720_v50, %v5729_v40  ;;  %v5746_v23 = vrot.slane %v5744_v10, 4  ;;  %v5739_v47 = vsel %vm2388_vm1, %v5729_v40, %v5738_v35  ;;  %v5755_v4 = vrot.slane %v5753_v1, 4  ;;  %v21885_v39 = vld [vmem:[#allocation2 + $0xa4] sm:$0xf] }
 0x617   : > { %16628 = vmatprep.subr.bf16.mxu0 %v18471_v45  ;;  %v5762_v50 = vshll.u32 %v14631_v44, 16  ;;  %16748 = vmatprep.subr.bf16.mxu1 %v25588_v31  ;;  %v5770_v40 = vrot.slane %v5768_v14, 3  ;;  %v5773_v13 = vrot.slane %v5771_v8, 4  ;;  %v14634_v10 = vcombine.low %v21860_v12, %v21862_v49  ;;  %25589 = vst [vmem:[#allocation56_spill] sm:$0xff] %v21885_v39 }
 0x618   : > { %v5747_v57 = vor.u32 %v5746_v23, %v5743_v61  ;;  %v5756_v18 = vor.u32 %v5755_v4, %v5752_v0  ;;  %16749 = vmatpush3.bf16.msra.mxu1 %v18504_v55  ;;  %v21880_v0 = vld [vmem:[#allocation2 + $0x9c] sm:$0xf]  ;;  %v21883_v4 = vld [vmem:[#allocation2 + $0xa0] sm:$0xf] }
 0x619   : > { %v5764_v36 = vrot.slane %v5762_v50, 4  ;;  %16750 = vmatprep.subr.bf16.mxu1 %v25588_v31  ;;  %v5774_v61 = vor.u32 %v5773_v13, %v5770_v40  ;;  %v5786_v23 = vshrl.u32 %v14634_v10, 16  ;;  %v5789_v44 = vshll.u32 %v14634_v10, 16 }
 0x61a   : > { %16629 = vmatpush3.bf16.msra.mxu0 %v18471_v45  ;;  %v21857_v45 = vld [vmem:[#allocation2 + $0x8c] sm:$0xf]  ;;  %v5748_v60 = vsel %vm2388_vm1, %v5738_v35, %v5747_v57  ;;  %v18507_v35 = vld [vmem:[%s24998_s6 + $0x10] sm:$0xff]  }
 0x61b   : > { %16630 = vmatprep.subr.bf16.mxu0 %v18474_v5  ;;  %v14633_v42 = vcombine.low %v21855_v11, %v21857_v45  ;;  %v5765_v2 = vor.u32 %v5764_v36, %v5761_v56  ;;  %v5788_v14 = vrot.slane %v5786_v23, 3  ;;  %v5791_v8 = vrot.slane %v5789_v44, 4 }
 0x61c   : > { %16751 = vmatpush3.bf16.msra.mxu1 %v18507_v35  ;;  %v21900_v35 = vld [vmem:[#allocation2 + $0xa8] sm:$0xf] }
 0x61d   : > { %16583 = vmatmul.mubr.bf16.gmra.mrb[16].mxu0 %v5730_v27  ;;  %v5777_v1 = vshrl.u32 %v14633_v42, 16  ;;  %v18509_v27 = vld [vmem:[%s24998_s6 + $0x18] sm:$0xff]   ;;  %16752 = vmatprep.subr.bf16.mxu1 %v25588_v31  ;;  %v5766_v37 = vsel %vm2388_vm1, %v5756_v18, %v5765_v2  ;;  %v5775_v55 = vsel %vm2388_vm1, %v5765_v2, %v5774_v61  ;;  %v5792_v40 = vor.u32 %v5791_v8, %v5788_v14  ;;  %v21902_v2 = vld [vmem:[#allocation2 + $0xac] sm:$0xf] }
 0x61e   : > { %16586 = vmatprep.mubr.bf16.mxu0 %v5739_v47  ;;  %16631 = vmatpush3.bf16.msra.mxu0 %v18474_v5  ;;  %v5757_v5 = vsel %vm2388_vm1, %v5747_v57, %v5756_v18  ;;  %v21878_v47 = vld [vmem:[#allocation2 + $0x98] sm:$0xf]  ;;  %v18512_v18 = vld [vmem:[%s24998_s6 + $0x20] sm:$0xff]   ;;  %25590 = vst [vmem:[#allocation71_spill] sm:$0xff] %v21900_v35  ;;  %25591 = vst [vmem:[#allocation38_spill] sm:$0xff] %v21902_v2 }
 0x61f   : > { %16632 = vmatprep.subr.bf16.mxu0 %v18479_v9  ;;  %v5779_v57 = vrot.slane %v5777_v1, 3  ;;  %v14635_v50 = vcombine.low %v21878_v47, %v21880_v0  ;;  %v21905_v1 = vld [vmem:[#allocation2 + $0xb0] sm:$0xf]  ;;  %v21919_v14 = vld [vmem:[#allocation2 + $0xb8] sm:$0xf] }
 0x620   : > { %16753 = vmatpush3.bf16.msra.mxu1 %v18509_v27  ;;  %25592 = vst [vmem:[#allocation72_spill] sm:$0xff] %v21905_v1  ;;  %25594 = vst [vmem:[#allocation74_spill] sm:$0xff] %v21919_v14 }
 0x621   : > { %16754 = vmatprep.subr.bf16.mxu1 %v25588_v31  ;;  %v5795_v36 = vshrl.u32 %v14635_v50, 16 }
 0x622   : > { %16633 = vmatpush3.bf16.msra.mxu0 %v18479_v9  ;;  %v5780_v9 = vshll.u32 %v14633_v42, 16  ;;  %v5798_v42 = vshll.u32 %v14635_v50, 16 }
 0x623   : > { %16682 = vmatprep.subr.bf16.mxu0 %v21850_v19  ;;  %v5797_v23 = vrot.slane %v5795_v36, 3  ;;  %v21921_v36 = vld [vmem:[#allocation2 + $0xbc] sm:$0xf] }
 0x624   : > { %v5782_v41 = vrot.slane %v5780_v9, 4  ;;  %16755 = vmatpush3.bf16.msra.mxu1 %v18512_v18  ;;  %v21907_v9 = vld [vmem:[#allocation2 + $0xb4] sm:$0xf]  ;;  %v5800_v44 = vrot.slane %v5798_v42, 4  ;;  %25595 = vst [vmem:[#allocation75_spill] sm:$0xff] %v21921_v36 }
 0x625   : > { %16587 = vmatmul.mubr.bf16.gmra.mrb[20].mxu0 %v5748_v60  ;;  %v14636_v60 = vcombine.low %v21883_v4, %v21885_v39  ;;  %16756 = vmatprep.subr.bf16.mxu1 %v25588_v31  ;;  %25593 = vst [vmem:[#allocation73_spill] sm:$0xff] %v21907_v9 }
 0x626   : > { %16590 = vmatprep.mubr.bf16.mxu0 %v5757_v5  ;;  %v5783_v56 = vor.u32 %v5782_v41, %v5779_v57  ;;  %v18513_v5 = vld [vmem:[%s24998_s6 + $0x28] sm:$0xff]   ;;  %v5801_v8 = vor.u32 %v5800_v44, %v5797_v23  ;;  %v14639_v23 = vcombine.low %v21919_v14, %v21921_v36 }
 0x627   : > { %v5804_v13 = vshrl.u32 %v14636_v60, 16  ;;  %v5807_v10 = vshll.u32 %v14636_v60, 16 }
 0x628   : > { %v5784_v27 = vsel %vm2388_vm1, %v5774_v61, %v5783_v56  ;;  %16757 = vmatpush3.bf16.msra.mxu1 %v18513_v5  ;;  %v5793_v57 = vsel %vm2388_vm1, %v5783_v56, %v5792_v40  ;;  %v18516_v61 = vld [vmem:[%s24998_s6 + $0x30] sm:$0xff]   ;;  %v18518_v56 = vld [vmem:[%s24998_s6 + $0x38] sm:$0xff]   ;;  %v5802_v44 = vsel %vm2388_vm1, %v5792_v40, %v5801_v8  ;;  %v5834_v14 = vshll.u32 %v14639_v23, 16 }
 0x629   : > { %v5806_v41 = vrot.slane %v5804_v13, 3  ;;  %v5809_v50 = vrot.slane %v5807_v10, 4  ;;  %16758 = vmatprep.subr.bf16.mxu1 %v25588_v31  ;;  %v21927_v10 = vld [vmem:[#allocation2 + $0xc0] sm:$0xf] }
 0x62a   : > { %25596 = vst [vmem:[#allocation76_spill] sm:$0xff] %v21927_v10 }
 0x62b   : > { %v5810_v42 = vor.u32 %v5809_v50, %v5806_v41 }
 0x62c   : > { %16759 = vmatpush3.bf16.msra.mxu1 %v18516_v61 }
 0x62d   : > { %16591 = vmatmul.mubr.bf16.gmra.mrb[24].mxu0 %v5766_v37  ;;  %v14637_v37 = vcombine.low %v21900_v35, %v21902_v2  ;;  %16760 = vmatprep.subr.bf16.mxu1 %v25588_v31  ;;  %v5811_v41 = vsel %vm2388_vm1, %v5801_v8, %v5810_v42  ;;  %v21944_v8 = vld [vmem:[#allocation2 + $0xd0] sm:$0xf] }
 0x62e   : > { %16594 = vmatprep.mubr.bf16.mxu0 %v5775_v55  ;;  %v14638_v55 = vcombine.low %v21905_v1, %v21907_v9  ;;  %v5831_v9 = vshrl.u32 %v14639_v23, 16 }
 0x62f   : > { %v5813_v60 = vshrl.u32 %v14637_v37, 16  ;;  %v5816_v18 = vshll.u32 %v14637_v37, 16 }
 0x630   : > { %v5822_v5 = vshrl.u32 %v14638_v55, 16  ;;  %v5825_v13 = vshll.u32 %v14638_v55, 16  ;;  %16761 = vmatpush3.bf16.msra.mxu1 %v18518_v56  ;;  %v21940_v56 = vld [vmem:[#allocation2 + $0xc8] sm:$0xf] }
 0x631   : > { %v5815_v37 = vrot.slane %v5813_v60, 3  ;;  %16766 = vmatprep.subr.bf16.mxu1 %v25588_v31  ;;  %25598 = vst [vmem:[#allocation78_spill] sm:$0xff] %v21940_v56 }
 0x632   : > { %v5824_v50 = vrot.slane %v5822_v5, 3  ;;  %v5827_v55 = vrot.slane %v5825_v13, 4  ;;  %v21946_v5 = vld [vmem:[#allocation2 + $0xd4] sm:$0xf]  ;;  %v5833_v13 = vrot.slane %v5831_v9, 3 }
 0x633   : > { %25600 = vst [vmem:[#allocation81_spill] sm:$0xff] %v21946_v5 }
 0x634   : > { %v5828_v40 = vor.u32 %v5827_v55, %v5824_v50 }
 0x635   : > { %16595 = vmatmul.mubr.bf16.gmra.mrb[28].mxu0 %v5784_v27  ;;  %v21929_v27 = vld [vmem:[#allocation2 + $0xc4] sm:$0xf] }
 0x636   : > { %16598 = vmatprep.mubr.bf16.mxu0 %v5793_v57  ;;  %25597 = vst [vmem:[#allocation77_spill] sm:$0xff] %v21929_v27  ;;  %v5818_v57 = vrot.slane %v5816_v18, 4  ;;  %v14640_v61 = vcombine.low %v21927_v10, %v21929_v27  ;;  %v14642_v10 = vcombine.low %v21944_v8, %v21946_v5 }
 0x638   : > { %v5819_v36 = vor.u32 %v5818_v57, %v5815_v37  ;;  %v5840_v60 = vshrl.u32 %v14640_v61, 16  ;;  %v5843_v18 = vshll.u32 %v14640_v61, 16  ;;  %v5836_v37 = vrot.slane %v5834_v14, 4 }
 0x639   : > { %v5858_v14 = vshrl.u32 %v14642_v10, 16  ;;  %v5861_v35 = vshll.u32 %v14642_v10, 16 }
 0x63a   : > { %v5820_v23 = vsel %vm2388_vm1, %v5810_v42, %v5819_v36  ;;  %v5829_v55 = vsel %vm2388_vm1, %v5819_v36, %v5828_v40  ;;  %v5842_v61 = vrot.slane %v5840_v60, 3  ;;  %v5845_v27 = vrot.slane %v5843_v18, 4 }
 0x63b   : > { %v5837_v1 = vor.u32 %v5836_v37, %v5833_v13  ;;  %v5860_v60 = vrot.slane %v5858_v14, 3  ;;  %v5863_v18 = vrot.slane %v5861_v35, 4  ;;  %v22036_v14 = vld [vmem:[%s24995_s3 + $0x30] sm:$0xff]  }
 0x63c   : > { %v5846_v42 = vor.u32 %v5845_v27, %v5842_v61  ;;  %v14652_v27 = vcombine.low %v21747_v63, %v21754_v20  ;;  %v14654_v63 = vcombine.low %v21760_v7, %v21768_v58  ;;  %v18494_v20 = vld [vmem:[#allocation6 + $0x218] sm:$0xff]   ;;  %v18502_v61 = vld [vmem:[#allocation6 + $0x228] sm:$0xff]  }
 0x63d   : > { %16599 = vmatmul.mubr.bf16.gmra.mrb[32].mxu0 %v5802_v44  ;;  %v21942_v44 = vld [vmem:[#allocation2 + $0xcc] sm:$0xf] }
 0x63e   : > { %16602 = vmatprep.mubr.bf16.mxu0 %v5811_v41  ;;  %25599 = vst [vmem:[#allocation80_spill] sm:$0xff] %v21942_v44  ;;  %v7312_v41 = vld [vmem:[%s366_s16] sm:$0x1]  ;;  %v14641_v57 = vcombine.low %v21940_v56, %v21942_v44  ;;  %v5838_v56 = vsel %vm2388_vm1, %v5828_v40, %v5837_v1  ;;  %v5847_v36 = vsel %vm2388_vm1, %v5837_v1, %v5846_v42  ;;  %s19496_s16 = smov [#allocation9]  }
 0x63f   : > { %v7313_v50 = vsub.f32 0.0, %v7312_v41  ;;  %v18486_v40 = vld [vmem:[#allocation6 + $0x208] sm:$0xff]   ;;  %s19418_s25 = sshll.u32 %s19496_s16, 4  ;;  %s19419_s25 = int_to_ptr.vmem [resolvable:$false] %s19418_s25 }
 0x640   : > { %v5849_v9 = vshrl.u32 %v14641_v57, 16  ;;  %v5852_v39 = vshll.u32 %v14641_v57, 16  ;;  %s19420_s17 = scalar_lea.vmem %s19419_s25, 12032  ;;  %p19421_p9 = scmp.lt.s32.totalorder %s24947_s13, %s19419_s25 }
 0x641   : > { %v7314_v2 = vmul.f32 1.442695, %v7313_v50 }
 0x642   : > { %v5851_v44 = vrot.slane %v5849_v9, 3 }
 0x643   : > { %19022 = vpow2.f32 %v7314_v2 }
 0x645   : > { %16603 = vmatmul.mubr.bf16.gmra.mrb[36].mxu0 %v5820_v23  ;;  %v5854_v23 = vrot.slane %v5852_v39, 4  ;;  %v14651_v39 = vcombine.low %v21743_v34, %v21745_v48  ;;  %v18489_v34 = vld [vmem:[#allocation6 + $0x210] sm:$0xff]  }
 0x646   : > { %16606 = vmatprep.mubr.bf16.mxu0 %v5829_v55  ;;  %v5864_v55 = vor.u32 %v5863_v18, %v5860_v60  ;;  %v21980_v48 = vld [vmem:[%s24995_s3 + $0x8] sm:$0xff]   ;;  %v14665_v60 = vcombine.low %v21857_v45, %v21860_v12  ;;  %v25607_v12 = vld [vmem:[#allocation76_spill] sm:$0xff]  ;;  %v25608_v18 = vld [vmem:[#allocation75_spill] sm:$0xff] }
 0x647   : > { %v5855_v5 = vor.u32 %v5854_v23, %v5851_v44  ;;  %v21970_v44 = vld [vmem:[%s24995_s3] sm:$0xff]   ;;  %v14663_v23 = vcombine.low %v21835_v22, %v21837_v51  ;;  %v25604_v22 = vld [vmem:[#allocation38_spill] sm:$0xff] }
 0x649   : > { %v5856_v37 = vsel %vm2388_vm1, %v5846_v42, %v5855_v5  ;;  %v5865_v2 = vsel %vm2388_vm1, %v5855_v5, %v5864_v55  ;;  %v14657_v42 = vcombine.low %v21783_v16, %v21785_v25  ;;  %v14658_v16 = vcombine.low %v21787_v24, %v21796_v54  ;;  %v18515_v25 = vld [vmem:[#allocation6 + $0x238] sm:$0xff]   ;;  %v22043_v24 = vld [vmem:[%s24995_s3 + $0x38] sm:$0xff]  }
 0x64a   : > { %v14660_v54 = vcombine.low %v21802_v26, %v21810_v17  ;;  %v14666_v26 = vcombine.low %v21862_v49, %v21878_v47  ;;  %v14667_v17 = vcombine.low %v21880_v0, %v21883_v4  ;;  %v18520_v49 = vld [vmem:[#allocation2 + $0x1c] sm:$0xff]  }
 0x64b   : > { %v6781_v47 = vshll.u32 %v18520_v49, 16  ;;  %v25609_v0 = vld [vmem:[#allocation80_spill] sm:$0xff] }
 0x64c   : > { %v14673_v4 = vcombine.low %v25609_v0, %v21944_v8 }
 0x64d   : > { %16607 = vmatmul.mubr.bf16.gmra.mrb[40].mxu0 %v5838_v56  ;;  %v19023_v50 = vpop.eup %19022  ;;  %v14653_v56 = vcombine.low %v21756_v53, %v21758_v59  ;;  %v14655_v53 = vcombine.low %v21770_v33, %v21772_v28  ;;  %v21991_v59 = vld [vmem:[%s24995_s3 + $0x10] sm:$0xff]   ;;  %v22001_v33 = vld [vmem:[%s24995_s3 + $0x18] sm:$0xff]  }
 0x64e   : > { %16610 = vmatprep.mubr.bf16.mxu0 %v5847_v36  ;;  %v7316_v13 = vadd.f32 1.0, %v19023_v50  ;;  %v14664_v36 = vcombine.low %v21839_v43, %v21855_v11  ;;  %v25605_v43 = vld [vmem:[#allocation74_spill] sm:$0xff]  ;;  %v25606_v11 = vld [vmem:[#allocation73_spill] sm:$0xff] }
 0x64f   : > { %v14670_v45 = vcombine.low %v25606_v11, %v25605_v43  ;;  %v25610_v50 = vld [vmem:[#allocation78_spill] sm:$0xff] }
 0x650   : > { %19024 = vrcp.f32 %v7316_v13  ;;  %v25611_v13 = vld [vmem:[#allocation77_spill] sm:$0xff] }
 0x655   : > { %16611 = vmatmul.mubr.bf16.gmra.mrb[44].mxu0 %v5856_v37  ;;  %v14672_v37 = vcombine.low %v25611_v13, %v25610_v50 }
 0x656   : > { %16614 = vmatprep.mubr.bf16.mxu0 %v5865_v2  ;;  %v18521_v2 = vld [vmem:[#allocation2 + $0x24] sm:$0xff]  }
 0x65a   : > { %v19025_v1 = vpop.eup %19024 }
 0x65b   : > { %v7318_v10 = vmul.f32 %v19025_v1, %v7312_v41  ;;  %v18522_v1 = vld [vmem:[#allocation2 + $0x2c] sm:$0xff]  }
 0x65d   : > { %16615 = vmatmul.mubr.bf16.gmra.mrb[72].mxu0 %v5864_v55  ;;  %v7319_v35 = vpack.c.bf16 %v7318_v10, %v7318_v10  ;;  %v14671_v55 = vcombine.low %v25608_v18, %v25607_v12  ;;  %v6779_v10 = vshrl.u32 %v18520_v49, 16 }
 0x65e   : > { %16634 = vmatprep.mubr.bf16.mxu0 %v14651_v39  ;;  %v6783_v39 = vrot.slane %v6781_v47, 1 }
 0x65f   : > { %16763 = vmatmul.mubr.bf16.vlgmr.msra.gmra.mrb[4].mxu1 %v7319_v35  ;;  %v6786_v35 = vshll.u32 %v18521_v2, 16 }
 0x660   : > { %16767 = vmatpush3.bf16.msra.mxu1 %v21970_v44  ;;  %16782 = vmatprep.mubr.msk.bf16.mxu1 %vm19494_vm0, %v25588_v31 }
 0x661   : > { %16768 = vmatprep.subr.bf16.mxu1 %v25588_v31 }
 0x664   : > { %16769 = vmatpush3.bf16.msra.mxu1 %v21980_v48 }
 0x665   : > { %16635 = vmatmul.mubr.bf16.vlgmr.msra.gmra.mrb[4].mxu0 %v14652_v27  ;;  %16770 = vmatprep.subr.bf16.mxu1 %v25588_v31  ;;  %v25612_v27 = vld [vmem:[#allocation81_spill] sm:$0xff] }
 0x666   : > { %16683 = vmatpush3.bf16.msra.mxu0 %v21850_v19  ;;  %16638 = vmatprep.mubr.bf16.mxu0 %v14653_v56  ;;  %v18497_v19 = vld [vmem:[#allocation6 + $0x220] sm:$0xff]   ;;  %v6784_v56 = vor.u32 %v6783_v39, %v6779_v10  ;;  %v18530_v10 = vld [vmem:[#allocation2 + $0x6c] sm:$0xff]  }
 0x667   : > { %16684 = vmatprep.subr.bf16.mxu0 %v18486_v40 }
 0x668   : > { %16771 = vmatpush3.bf16.msra.mxu1 %v21991_v59 }
 0x669   : > { %16772 = vmatprep.subr.bf16.mxu1 %v25588_v31 }
 0x66a   : > { %16685 = vmatpush3.bf16.msra.mxu0 %v18486_v40  ;;  %v14674_v40 = vcombine.low %v25612_v27, %v25612_v27 }
 0x66b   : > { %16686 = vmatprep.subr.bf16.mxu0 %v18489_v34 }
 0x66c   : > { %16773 = vmatpush3.bf16.msra.mxu1 %v22001_v33 }
 0x66d   : > { %16639 = vmatmul.mubr.bf16.gmra.mrb[8].mxu0 %v14654_v63  ;;  %16774 = vmatprep.subr.bf16.mxu1 %v25588_v31  ;;  %v6788_v63 = vrot.slane %v6786_v35, 1 }
 0x66e   : > { %16642 = vmatprep.mubr.bf16.mxu0 %v14655_v53  ;;  %16687 = vmatpush3.bf16.msra.mxu0 %v18489_v34  ;;  %v6794_v34 = vshll.u32 %v18522_v1, 16 }
 0x66f   : > { %16688 = vmatprep.subr.bf16.mxu0 %v18494_v20  ;;  %v6789_v8 = vsel %vm3085_vm2, %v6784_v56, %v6788_v63 }
 0x670   : > { %v16488_v7 = vpop.f32.mrb[64].mxu0  ;;  %v6796_v53 = vrot.slane %v6794_v34, 1  ;;  %v6858_v34 = vshll.u32 %v18530_v10, 16 }
 0x671   : > { %v21996_v58 = vadd.f32 %v16488_v7, %v21815_v46  ;;  %v4686_v5 = vpop.f32.mrb[65].mxu0  ;;  %v14656_v46 = vcombine.low %v21774_v52, %v21781_v3  ;;  %v18508_v52 = vld [vmem:[#allocation6 + $0x230] sm:$0xff]   ;;  %v6790_v7 = vshrl.u32 %v18521_v2, 16 }
 0x672   : > { %v22005_v28 = vadd.f32 %v4686_v5, %v21818_v32  ;;  %v16489_v41 = vpop.f32.mrb[66].mxu0  ;;  %16689 = vmatpush3.bf16.msra.mxu0 %v18494_v20  ;;  %v22018_v32 = vld [vmem:[%s24995_s3 + $0x20] sm:$0xff]   ;;  %v22025_v3 = vld [vmem:[%s24995_s3 + $0x28] sm:$0xff]   ;;  %v18523_v20 = vld [vmem:[#allocation2 + $0x34] sm:$0xff]   ;;  %v6798_v5 = vshrl.u32 %v18522_v1, 16 }
 0x673   : > { %v4689_v57 = vpop.f32.mrb[67].mxu0  ;;  %16690 = vmatprep.subr.bf16.mxu0 %v18497_v19  ;;  %16775 = vmatpush3.bf16.msra.mxu1 %v22018_v32  ;;  %v6802_v41 = vshll.u32 %v18523_v20, 16 }
 0x674   : > { %v22011_v9 = vadd.f32 %v4689_v57, %v21827_v62  ;;  %16776 = vmatprep.subr.bf16.mxu1 %v25588_v31  ;;  %v14659_v62 = vcombine.low %v21798_v21, %v21800_v29  ;;  %v14661_v21 = vcombine.low %v21812_v6, %v21820_v15  ;;  %v14662_v29 = vcombine.low %v21822_v38, %v21833_v30  ;;  %v25601_v6 = vld [vmem:[#allocation71_spill] sm:$0xff]  ;;  %v25602_v15 = vld [vmem:[#allocation56_spill] sm:$0xff] }
 0x675   : > { %16643 = vmatmul.mubr.bf16.gmra.mrb[12].mxu0 %v14656_v46  ;;  %v14668_v38 = vcombine.low %v25602_v15, %v25601_v6  ;;  %v25603_v30 = vld [vmem:[#allocation72_spill] sm:$0xff]  ;;  %v6792_v57 = vor.u32 %v6790_v7, %v6788_v63  ;;  %v6800_v46 = vor.u32 %v6798_v5, %v6796_v53  ;;  %v18527_v6 = vld [vmem:[#allocation2 + $0x54] sm:$0xff]   ;;  %v6862_v5 = vshrl.u32 %v18530_v10, 16 }
 0x676   : > { %16646 = vmatprep.mubr.bf16.mxu0 %v14657_v42  ;;  %16691 = vmatpush3.bf16.msra.mxu0 %v18497_v19  ;;  %v14669_v51 = vcombine.low %v25604_v22, %v25603_v30  ;;  %v18524_v19 = vld [vmem:[#allocation2 + $0x3c] sm:$0xff]   ;;  %v6804_v42 = vrot.slane %v6802_v41, 1  ;;  %v6834_v11 = vshll.u32 %v18527_v6, 16  ;;  %v6838_v35 = vshrl.u32 %v18527_v6, 16  ;;  %v18535_v6 = vld [vmem:[#allocation2 + $0x94] sm:$0xff]  }
 0x677   : > { %16692 = vmatprep.subr.bf16.mxu0 %v18502_v61  ;;  %16777 = vmatpush3.bf16.msra.mxu1 %v22025_v3  ;;  %v18528_v22 = vld [vmem:[#allocation2 + $0x5c] sm:$0xff]  }
 0x678   : > { %16778 = vmatprep.subr.bf16.mxu1 %v25588_v31  ;;  %v6842_v47 = vshll.u32 %v18528_v22, 16  ;;  %v6836_v13 = vrot.slane %v6834_v11, 1  ;;  %v6846_v27 = vshrl.u32 %v18528_v22, 16  ;;  %v18536_v22 = vld [vmem:[#allocation2 + $0x9c] sm:$0xff]   ;;  %v6898_v11 = vshll.u32 %v18535_v6, 16 }
 0x67a   : > { %16693 = vmatpush3.bf16.msra.mxu0 %v18502_v61  ;;  %v6810_v61 = vshll.u32 %v18524_v19, 16 }
 0x67b   : > { %16694 = vmatprep.subr.bf16.mxu0 %v18508_v52  ;;  %16779 = vmatpush3.bf16.msra.mxu1 %v22036_v14 }
 0x67c   : > { %16780 = vmatprep.subr.bf16.mxu1 %v25588_v31 }
 0x67d   : > { %16647 = vmatmul.mubr.bf16.gmra.mrb[16].mxu0 %v14658_v16  ;;  %v6797_v16 = vsel %vm3085_vm2, %v6792_v57, %v6796_v53  ;;  %v6860_v53 = vrot.slane %v6858_v34, 1 }
 0x67e   : > { %16650 = vmatprep.mubr.bf16.mxu0 %v14659_v62  ;;  %16695 = vmatpush3.bf16.msra.mxu0 %v18508_v52  ;;  %v18525_v52 = vld [vmem:[#allocation2 + $0x44] sm:$0xff]   ;;  %v6812_v62 = vrot.slane %v6810_v61, 1 }
 0x67f   : > { %16696 = vmatprep.subr.bf16.mxu0 %v18515_v25  ;;  %16781 = vmatpush3.bf16.msra.mxu1 %v22043_v24 }
 0x680   : > { %16786 = vmatprep.subr.bf16.mxu1 %v25588_v31 }
 0x682   : > { %16697 = vmatpush3.bf16.msra.mxu0 %v18515_v25  ;;  %v6805_v25 = vsel %vm3085_vm2, %v6800_v46, %v6804_v42  ;;  %v6864_v46 = vor.u32 %v6862_v5, %v6860_v53 }
 0x685   : > { %16651 = vmatmul.mubr.bf16.gmra.mrb[20].mxu0 %v14660_v54  ;;  %v18526_v54 = vld [vmem:[#allocation2 + $0x4c] sm:$0xff]  }
 0x686   : > { %16654 = vmatprep.mubr.bf16.mxu0 %v14661_v21  ;;  %v6806_v21 = vshrl.u32 %v18523_v20, 16  ;;  %v6830_v43 = vshrl.u32 %v18526_v54, 16  ;;  %v18531_v20 = vld [vmem:[#allocation2 + $0x74] sm:$0xff]  }
 0x687   : > { %v6866_v41 = vshll.u32 %v18531_v20, 16 }
 0x68d   : > { %16655 = vmatmul.mubr.bf16.gmra.mrb[24].mxu0 %v14662_v29  ;;  %v6814_v29 = vshrl.u32 %v18524_v19, 16  ;;  %v18532_v19 = vld [vmem:[#allocation2 + $0x7c] sm:$0xff]  }
 0x68e   : > { %16658 = vmatprep.mubr.bf16.mxu0 %v14663_v23  ;;  %v6818_v23 = vshll.u32 %v18525_v52, 16  ;;  %v6874_v61 = vshll.u32 %v18532_v19, 16 }
 0x695   : > { %16659 = vmatmul.mubr.bf16.gmra.mrb[28].mxu0 %v14664_v36  ;;  %v6808_v36 = vor.u32 %v6806_v21, %v6804_v42  ;;  %v6868_v42 = vrot.slane %v6866_v41, 1  ;;  %v6870_v21 = vshrl.u32 %v18531_v20, 16  ;;  %v18540_v20 = vld [vmem:[#allocation2 + $0xbc] sm:$0xff]  }
 0x696   : > { %16662 = vmatprep.mubr.bf16.mxu0 %v14665_v60  ;;  %v6816_v60 = vor.u32 %v6814_v29, %v6812_v62  ;;  %v6878_v29 = vshrl.u32 %v18532_v19, 16  ;;  %v6938_v5 = vshll.u32 %v18540_v20, 16 }
 0x697   : > { %v6813_v15 = vsel %vm3085_vm2, %v6808_v36, %v6812_v62  ;;  %v6876_v62 = vrot.slane %v6874_v61, 1  ;;  %v6872_v36 = vor.u32 %v6870_v21, %v6868_v42 }
 0x69d   : > { %16663 = vmatmul.mubr.bf16.gmra.mrb[32].mxu0 %v14666_v26  ;;  %v6826_v26 = vshll.u32 %v18526_v54, 16  ;;  %v18534_v54 = vld [vmem:[#allocation2 + $0x8c] sm:$0xff]  }
 0x69e   : > { %16666 = vmatprep.mubr.bf16.mxu0 %v14667_v17  ;;  %v6820_v17 = vrot.slane %v6818_v23, 1 }
 0x69f   : > { %v6828_v30 = vrot.slane %v6826_v26, 1  ;;  %v6890_v26 = vshll.u32 %v18534_v54, 16 }
 0x6a1   : > { %v6832_v49 = vor.u32 %v6830_v43, %v6828_v30  ;;  %v6894_v43 = vshrl.u32 %v18534_v54, 16  ;;  %v18543_v54 = vld [vmem:[#allocation2 + $0xd4] sm:$0x1f]  }
 0x6a3   : > { %v6837_v1 = vsel %vm3085_vm2, %v6832_v49, %v6836_v13  ;;  %v6900_v49 = vrot.slane %v6898_v11, 1 }
 0x6a5   : > { %16667 = vmatmul.mubr.bf16.gmra.mrb[36].mxu0 %v14668_v38  ;;  %v6821_v38 = vsel %vm3085_vm2, %v6816_v60, %v6820_v17  ;;  %v6880_v60 = vor.u32 %v6878_v29, %v6876_v62 }
 0x6a6   : > { %16670 = vmatprep.mubr.bf16.mxu0 %v14669_v51  ;;  %v6822_v51 = vshrl.u32 %v18525_v52, 16  ;;  %v18533_v52 = vld [vmem:[#allocation2 + $0x84] sm:$0xff]  }
 0x6a7   : > { %v6882_v23 = vshll.u32 %v18533_v52, 16 }
 0x6a8   : > { %v6824_v12 = vor.u32 %v6822_v51, %v6820_v17  ;;  %v6886_v51 = vshrl.u32 %v18533_v52, 16  ;;  %v18542_v52 = vld [vmem:[#allocation2 + $0xcc] sm:$0xff]  }
 0x6a9   : > { %v6884_v17 = vrot.slane %v6882_v23, 1  ;;  %v6954_v23 = vshll.u32 %v18542_v52, 16 }
 0x6aa   : > { %v6829_v39 = vsel %vm3085_vm2, %v6824_v12, %v6828_v30  ;;  %v6892_v30 = vrot.slane %v6890_v26, 1  ;;  %v6962_v26 = vshll.u32 %v18543_v54, 16 }
 0x6ac   : > { %v6896_v12 = vor.u32 %v6894_v43, %v6892_v30 }
 0x6ad   : > { %16671 = vmatmul.mubr.bf16.gmra.mrb[40].mxu0 %v14670_v45 }
 0x6ae   : > { %16674 = vmatprep.mubr.bf16.mxu0 %v14671_v55 }
 0x6b5   : > { %16675 = vmatmul.mubr.bf16.gmra.mrb[44].mxu0 %v14672_v37  ;;  %v18529_v37 = vld [vmem:[#allocation2 + $0x64] sm:$0xff]  }
 0x6b6   : > { %16678 = vmatprep.mubr.bf16.mxu0 %v14673_v4  ;;  %v6854_v7 = vshrl.u32 %v18529_v37, 16 }
 0x6bd   : > { %16679 = vmatmul.mubr.bf16.gmra.mrb[76].mxu0 %v14674_v40  ;;  %v6850_v40 = vshll.u32 %v18529_v37, 16  ;;  %v18538_v37 = vld [vmem:[#allocation2 + $0xac] sm:$0xff]  }
 0x6be   : > { %16698 = vmatprep.mubr.bf16.mxu0 %v6789_v8 }
 0x6bf   : > { %v6852_v63 = vrot.slane %v6850_v40, 1 }
 0x6c1   : > { %v6856_v57 = vor.u32 %v6854_v7, %v6852_v63 }
 0x6c5   : > { %16699 = vmatmul.mubr.bf16.vlgmr.msra.gmra.mrb[4].mxu0 %v6797_v16  ;;  %v6861_v16 = vsel %vm3085_vm2, %v6856_v57, %v6860_v53  ;;  %v18541_v57 = vld [vmem:[#allocation2 + $0xc4] sm:$0xff]  }
 0x6c6   : > { %16702 = vmatprep.mubr.bf16.mxu0 %v6805_v25  ;;  %v6869_v25 = vsel %vm3085_vm2, %v6864_v46, %v6868_v42  ;;  %v6940_v42 = vrot.slane %v6938_v5, 1 }
 0x6cd   : > { %16703 = vmatmul.mubr.bf16.gmra.mrb[8].mxu0 %v6813_v15  ;;  %v6877_v15 = vsel %vm3085_vm2, %v6872_v36, %v6876_v62  ;;  %v6946_v62 = vshll.u32 %v18541_v57, 16 }
 0x6ce   : > { %16706 = vmatprep.mubr.bf16.mxu0 %v6821_v38  ;;  %v6885_v38 = vsel %vm3085_vm2, %v6880_v60, %v6884_v17  ;;  %v6958_v60 = vshrl.u32 %v18542_v52, 16 }
 0x6cf   : > { %v6948_v36 = vrot.slane %v6946_v62, 1  ;;  %v25616_v62 = vld [vmem:[#allocation14_spill] sm:$0xff] }
 0x6d0   : > { %v16552_v45 = vpop.f32.mrb[68].mxu0 }
 0x6d1   : > { %v22083_v18 = vadd.f32 %v16552_v45, %v21996_v58  ;;  %v5405_v55 = vpop.f32.mrb[69].mxu0  ;;  %v6844_v58 = vrot.slane %v6842_v47, 1  ;;  %v6888_v45 = vor.u32 %v6886_v51, %v6884_v17  ;;  %v18537_v47 = vld [vmem:[#allocation2 + $0xa4] sm:$0xff]  }
 0x6d2   : > { %v22086_v0 = vadd.f32 %v5405_v55, %v22005_v28  ;;  %v16553_v4 = vpop.f32.mrb[70].mxu0  ;;  %v6840_v28 = vor.u32 %v6838_v35, %v6836_v13  ;;  %v6906_v55 = vshll.u32 %v18536_v22, 16 }
 0x6d3   : > { %v5408_v50 = vpop.f32.mrb[71].mxu0  ;;  %v6848_v56 = vor.u32 %v6846_v27, %v6844_v58  ;;  %v6893_v4 = vsel %vm3085_vm2, %v6888_v45, %v6892_v30  ;;  %v6922_v27 = vshll.u32 %v18538_v37, 16  ;;  %v6966_v45 = vshrl.u32 %v18543_v54, 16 }
 0x6d4   : > { %v22089_v2 = vadd.f32 %v5408_v50, %v22011_v9  ;;  %v6845_v8 = vsel %vm3085_vm2, %v6840_v28, %v6844_v58  ;;  %v6901_v50 = vsel %vm3085_vm2, %v6896_v12, %v6900_v49  ;;  %v6908_v13 = vrot.slane %v6906_v55, 1  ;;  %v18539_v28 = vld [vmem:[#allocation2 + $0xb4] sm:$0xff]  }
 0x6d5   : > { %16707 = vmatmul.mubr.bf16.gmra.mrb[12].mxu0 %v6829_v39  ;;  %v6853_v9 = vsel %vm3085_vm2, %v6848_v56, %v6852_v63  ;;  %v6902_v39 = vshrl.u32 %v18535_v6, 16  ;;  %v6914_v58 = vshll.u32 %v18537_v47, 16  ;;  %v6924_v63 = vrot.slane %v6922_v27, 1 }
 0x6d6   : > { %16710 = vmatprep.mubr.bf16.mxu0 %v6837_v1  ;;  %v6910_v1 = vshrl.u32 %v18536_v22, 16  ;;  %v6930_v53 = vshll.u32 %v18539_v28, 16  ;;  %v6964_v22 = vrot.slane %v6962_v26, 1 }
 0x6d7   : > { %v6904_v10 = vor.u32 %v6902_v39, %v6900_v49  ;;  %v6916_v40 = vrot.slane %v6914_v58, 1 }
 0x6d8   : > { %v6912_v35 = vor.u32 %v6910_v1, %v6908_v13  ;;  %v6932_v41 = vrot.slane %v6930_v53, 1  ;;  %v6968_v12 = vor.u32 %v6966_v45, %v6964_v22 }
 0x6d9   : > { %v6909_v56 = vsel %vm3085_vm2, %v6904_v10, %v6908_v13 }
 0x6da   : > { %v6917_v34 = vsel %vm3085_vm2, %v6912_v35, %v6916_v40  ;;  %v434_v35 = vld [vmem:[%s24996_s4 + $0x3] sm:$0x1] }
 0x6dd   : > { %16711 = vmatmul.mubr.bf16.gmra.mrb[16].mxu0 %v6845_v8  ;;  %v6918_v8 = vshrl.u32 %v18537_v47, 16 }
 0x6de   : > { %16714 = vmatprep.mubr.bf16.mxu0 %v6853_v9  ;;  %v6926_v9 = vshrl.u32 %v18538_v37, 16 }
 0x6df   : > { %v6920_v19 = vor.u32 %v6918_v8, %v6916_v40  ;;  %v25613_v8 = vld [vmem:[#allocation25_spill] sm:$0xff] }
 0x6e0   : > { %v6928_v7 = vor.u32 %v6926_v9, %v6924_v63 }
 0x6e1   : > { %v6925_v46 = vsel %vm3085_vm2, %v6920_v19, %v6924_v63 }
 0x6e2   : > { %v6933_v61 = vsel %vm3085_vm2, %v6928_v7, %v6932_v41 }
 0x6e5   : > { %16715 = vmatmul.mubr.bf16.gmra.mrb[20].mxu0 %v6861_v16  ;;  %v6934_v16 = vshrl.u32 %v18539_v28, 16 }
 0x6e6   : > { %16718 = vmatprep.mubr.bf16.mxu0 %v6869_v25  ;;  %v6942_v25 = vshrl.u32 %v18540_v20, 16 }
 0x6e7   : > { %v6936_v21 = vor.u32 %v6934_v16, %v6932_v41  ;;  %v25615_v16 = vld [vmem:[#allocation15_spill] sm:$0xff] }
 0x6e8   : > { %v6944_v29 = vor.u32 %v6942_v25, %v6940_v42 }
 0x6e9   : > { %v6941_v17 = vsel %vm3085_vm2, %v6936_v21, %v6940_v42 }
 0x6ea   : > { %v6949_v6 = vsel %vm3085_vm2, %v6944_v29, %v6948_v36 }
 0x6ed   : > { %16719 = vmatmul.mubr.bf16.gmra.mrb[24].mxu0 %v6877_v15  ;;  %v6956_v15 = vrot.slane %v6954_v23, 1 }
 0x6ee   : > { %16722 = vmatprep.mubr.bf16.mxu0 %v6885_v38  ;;  %v6950_v38 = vshrl.u32 %v18541_v57, 16 }
 0x6ef   : > { %v6960_v30 = vor.u32 %v6958_v60, %v6956_v15 }
 0x6f0   : > { %v6952_v51 = vor.u32 %v6950_v38, %v6948_v36  ;;  %v25617_v36 = vld [vmem:[#allocation16_spill] sm:$0xff] }
 0x6f1   : > { %v6965_v43 = vsel %vm3085_vm2, %v6960_v30, %v6964_v22  ;;  %v25618_v30 = vld [vmem:[#allocation17_spill] sm:$0xff] }
 0x6f2   : > { %v6957_v11 = vsel %vm3085_vm2, %v6952_v51, %v6956_v15 }
 0x6f5   : > { %16723 = vmatmul.mubr.bf16.gmra.mrb[28].mxu0 %v6893_v4 }
 0x6f6   : > { %16726 = vmatprep.mubr.bf16.mxu0 %v6901_v50 }
 0x6fd   : > { %16727 = vmatmul.mubr.bf16.gmra.mrb[32].mxu0 %v6909_v56 }
 0x6fe   : > { %16730 = vmatprep.mubr.bf16.mxu0 %v6917_v34 }
 0x705   : > { %16731 = vmatmul.mubr.bf16.gmra.mrb[36].mxu0 %v6925_v46 }
 0x706   : > { %16734 = vmatprep.mubr.bf16.mxu0 %v6933_v61  ;;  %v25614_v61 = vld [vmem:[#allocation13_spill] sm:$0xff] }
 0x70d   : > { %16735 = vmatmul.mubr.bf16.gmra.mrb[40].mxu0 %v6941_v17 }
 0x70e   : > { %16738 = vmatprep.mubr.bf16.mxu0 %v6949_v6 }
 0x715   : > { %16739 = vmatmul.mubr.bf16.gmra.mrb[44].mxu0 %v6957_v11 }
 0x716   : > { %16742 = vmatprep.mubr.bf16.mxu0 %v6965_v43 }
 0x71d   : > { %16743 = vmatmul.mubr.bf16.gmra.mrb[80].mxu0 %v6968_v12  ;;  %v25619_v12 = vld [vmem:[#allocation18_spill] sm:$0xff] }
 0x730   : > { %v16616_v55 = vpop.f32.mrb[72].mxu0 }
 0x731   : > { %v6208_v49 = vadd.f32 %v16616_v55, %v22083_v18  ;;  %v6148_v47 = vpop.f32.mrb[73].mxu0  ;;  %v433_v18 = vld [vmem:[%s24996_s4 + $0x2] sm:$0x1] }
 0x732   : > { %v6206_v4 = vadd.f32 %v6148_v47, %v22086_v0  ;;  %v16617_v50 = vpop.f32.mrb[74].mxu0  ;;  %v7418_v39 = vpop.f32.mrb[4].mxu1 }
 0x733   : > { %v6151_v13 = vpop.f32.mrb[75].mxu0  ;;  %v16764_v1 = vpop.f32.mrb[5].mxu1  ;;  %v7419_v27 = vadd.f32 %v7418_v39, %v434_v35 }
 0x734   : > { %v6207_v37 = vadd.f32 %v6151_v13, %v22089_v2  ;;  %v7421_v58 = vpop.f32.mrb[6].mxu1 }
 0x735   : > { %v16765_v10 = vpop.f32.mrb[7].mxu1  ;;  %v7424_v34 = vadd.f32 %v7419_v27, %v433_v18  ;;  %v25622_v18 = vld [vmem:[#allocation21_spill] sm:$0xff] }
 0x737   : > { %v22125_v9 = vrot.slane %v7424_v34, %v25613_v8 }
 0x790   : > { %v16680_v40 = vpop.f32.mrb[76].mxu0 }
 0x791   : > { %v22118_v28 = vadd.f32 %v16680_v40, %v6208_v49  ;;  %v6532_v0 = vpop.f32.mrb[77].mxu0  ;;  %v25620_v49 = vld [vmem:[#allocation19_spill] sm:$0xff] }
 0x792   : > { %v22120_v56 = vadd.f32 %v6532_v0, %v6206_v4  ;;  %v16681_v2 = vpop.f32.mrb[78].mxu0 }
 0x793   : > { %v6535_v63 = vpop.f32.mrb[79].mxu0 }
 0x794   : > { %v22122_v20 = vadd.f32 %v6535_v63, %v6207_v37  ;;  %v25621_v37 = vld [vmem:[#allocation20_spill] sm:$0xff] }
 0x798   : > { %v16700_v53 = vpop.f32.mrb[4].mxu0 }
 0x799   : > { %v7075_v19 = vpop.f32.mrb[5].mxu0  ;;  %v22131_v57 = vadd.f32 %v16700_v53, %v22125_v9  ;;  %v25623_v53 = vld [vmem:[#allocation22_spill] sm:$0xff] }
 0x79a   : > { %v22128_v7 = vadd.f32 %v22125_v9, %v7075_v19  ;;  %v16701_v5 = vpop.f32.mrb[6].mxu0 }
 0x79b   : > { %v7078_v41 = vpop.f32.mrb[7].mxu0  ;;  %v22139_v52 = vadd.f32 %v16701_v5, %v22125_v9  ;;  %v7478_v54 = vmul.f32 %v22131_v57, %v25616_v62  ;;  %v25624_v5 = vld [vmem:[#allocation23_spill] sm:$0xff] }
 0x79c   : > { %v22134_v46 = vadd.f32 %v22125_v9, %v7078_v41  ;;  %v7476_v42 = vmul.f32 %v22128_v7, %v25614_v61 }
 0x79d   : > { %v7479_v60 = vmul.f32 %v22139_v52, %v25617_v36 }
 0x79e   : > { %v7477_v25 = vmul.f32 %v22134_v46, %v25615_v16 }
 0x7a0   : > { %v7523_v21 = vadd.f32 %v7477_v25, %v7476_v42  ;;  %v16704_v29 = vpop.f32.mrb[8].mxu0 }
 0x7a1   : > { %v7091_v23 = vpop.f32.mrb[9].mxu0  ;;  %v22151_v38 = vadd.f32 %v16704_v29, %v22125_v9 }
 0x7a2   : > { %v7524_v26 = vadd.f32 %v7523_v21, %v7478_v54  ;;  %v22148_v17 = vadd.f32 %v22125_v9, %v7091_v23  ;;  %v16705_v6 = vpop.f32.mrb[10].mxu0  ;;  %v25625_v21 = vld [vmem:[#allocation24_spill] sm:$0xff] }
 0x7a3   : > { %v7094_v15 = vpop.f32.mrb[11].mxu0  ;;  %v22159_v45 = vadd.f32 %v16705_v6, %v22125_v9  ;;  %v7482_v47 = vmul.f32 %v22151_v38, %v25620_v49 }
 0x7a4   : > { %v7480_v22 = vmul.f32 %v22148_v17, %v25618_v30  ;;  %v7525_v51 = vadd.f32 %v7524_v26, %v7479_v60  ;;  %v22156_v43 = vadd.f32 %v22125_v9, %v7094_v15 }
 0x7a5   : > { %v7483_v39 = vmul.f32 %v22159_v45, %v25621_v37 }
 0x7a6   : > { %v7526_v11 = vadd.f32 %v7525_v51, %v7480_v22  ;;  %v7481_v55 = vmul.f32 %v22156_v43, %v25619_v12  ;;  %v25626_v22 = vld [vmem:[#allocation26_spill] sm:$0xff] }
 0x7a8   : > { %v7527_v4 = vadd.f32 %v7526_v11, %v7481_v55  ;;  %v16708_v50 = vpop.f32.mrb[12].mxu0 }
 0x7a9   : > { %v7107_v13 = vpop.f32.mrb[13].mxu0  ;;  %v22171_v27 = vadd.f32 %v16708_v50, %v22125_v9  ;;  %v25627_v50 = vld [vmem:[#allocation27_spill] sm:$0xff] }
 0x7aa   : > { %v7528_v1 = vadd.f32 %v7527_v4, %v7482_v47  ;;  %v22168_v58 = vadd.f32 %v22125_v9, %v7107_v13  ;;  %v16709_v10 = vpop.f32.mrb[14].mxu0 }
 0x7ab   : > { %v7110_v35 = vpop.f32.mrb[15].mxu0  ;;  %v22179_v63 = vadd.f32 %v16709_v10, %v22125_v9  ;;  %v7486_v41 = vmul.f32 %v22171_v27, %v25624_v5 }
 0x7ac   : > { %v7484_v40 = vmul.f32 %v22168_v58, %v25622_v18  ;;  %v7529_v0 = vadd.f32 %v7528_v1, %v7483_v39  ;;  %v22176_v2 = vadd.f32 %v22125_v9, %v7110_v35  ;;  %v25628_v39 = vld [vmem:[#allocation28_spill] sm:$0xff] }
 0x7ad   : > { %v7487_v29 = vmul.f32 %v22179_v63, %v25625_v21 }
 0x7ae   : > { %v7530_v34 = vadd.f32 %v7529_v0, %v7484_v40  ;;  %v7485_v19 = vmul.f32 %v22176_v2, %v25623_v53  ;;  %v25629_v0 = vld [vmem:[#allocation29_spill] sm:$0xff] }
 0x7b0   : > { %v7531_v42 = vadd.f32 %v7530_v34, %v7485_v19  ;;  %v16712_v25 = vpop.f32.mrb[16].mxu0 }
 0x7b1   : > { %v7123_v54 = vpop.f32.mrb[17].mxu0  ;;  %v22191_v15 = vadd.f32 %v16712_v25, %v22125_v9 }
 0x7b2   : > { %v7532_v23 = vadd.f32 %v7531_v42, %v7486_v41  ;;  %v22188_v60 = vadd.f32 %v22125_v9, %v7123_v54  ;;  %v16713_v26 = vpop.f32.mrb[18].mxu0 }
 0x7b3   : > { %v7126_v6 = vpop.f32.mrb[19].mxu0  ;;  %v22199_v4 = vadd.f32 %v16713_v26, %v22125_v9  ;;  %v7490_v1 = vmul.f32 %v22191_v15, %v25628_v39  ;;  %v25637_v39 = vld [vmem:[#allocation33_spill] sm:$0xff] }
 0x7b4   : > { %v7488_v51 = vmul.f32 %v22188_v60, %v25626_v22  ;;  %v7533_v11 = vadd.f32 %v7532_v23, %v7487_v29  ;;  %v22196_v55 = vadd.f32 %v22125_v9, %v7126_v6  ;;  %v25632_v29 = vld [vmem:[#allocation30_spill] sm:$0xff] }
 0x7b5   : > { %v7491_v34 = vmul.f32 %v22199_v4, %v25629_v0 }
 0x7b6   : > { %v7534_v47 = vadd.f32 %v7533_v11, %v7488_v51  ;;  %v7489_v13 = vmul.f32 %v22196_v55, %v25627_v50 }
 0x7b8   : > { %v7535_v10 = vadd.f32 %v7534_v47, %v7489_v13  ;;  %v16716_v35 = vpop.f32.mrb[20].mxu0  ;;  %v25635_v47 = vld [vmem:[#allocation31_spill] sm:$0xff] }
 0x7b9   : > { %v7139_v40 = vpop.f32.mrb[21].mxu0  ;;  %v22211_v54 = vadd.f32 %v16716_v35, %v22125_v9 }
 0x7ba   : > { %v7536_v19 = vadd.f32 %v7535_v10, %v7490_v1  ;;  %v22208_v41 = vadd.f32 %v22125_v9, %v7139_v40  ;;  %v16717_v42 = vpop.f32.mrb[22].mxu0  ;;  %v25636_v1 = vld [vmem:[#allocation32_spill] sm:$0xff] }
 0x7bb   : > { %v7142_v25 = vpop.f32.mrb[23].mxu0  ;;  %25631 = vst [vmem:[#allocation83_spill] sm:$0xff] %v22211_v54  ;;  %v22219_v11 = vadd.f32 %v16717_v42, %v22125_v9  ;;  %v7494_v10 = vmul.f32 %v22211_v54, %v25636_v1 }
 0x7bc   : > { %25630 = vst [vmem:[#allocation82_spill] sm:$0xff] %v22208_v41  ;;  %v7492_v23 = vmul.f32 %v22208_v41, %v25632_v29  ;;  %v7537_v26 = vadd.f32 %v7536_v19, %v7491_v34  ;;  %v22216_v6 = vadd.f32 %v22125_v9, %v7142_v25  ;;  %v25645_v41 = vld [vmem:[#allocation37_spill] sm:$0xff] }
 0x7bd   : > { %25634 = vst [vmem:[#allocation85_spill] sm:$0xff] %v22219_v11  ;;  %v7495_v29 = vmul.f32 %v22219_v11, %v25637_v39 }
 0x7be   : > { %25633 = vst [vmem:[#allocation84_spill] sm:$0xff] %v22216_v6  ;;  %v7538_v51 = vadd.f32 %v7537_v26, %v7492_v23  ;;  %v7493_v13 = vmul.f32 %v22216_v6, %v25635_v47  ;;  %v25640_v26 = vld [vmem:[#allocation34_spill] sm:$0xff] }
 0x7c0   : > { %v7539_v40 = vadd.f32 %v7538_v51, %v7493_v13  ;;  %v16720_v35 = vpop.f32.mrb[24].mxu0 }
 0x7c1   : > { %v7155_v0 = vpop.f32.mrb[25].mxu0  ;;  %v22231_v42 = vadd.f32 %v16720_v35, %v22125_v9 }
 0x7c2   : > { %v7540_v34 = vadd.f32 %v7539_v40, %v7494_v10  ;;  %v22228_v19 = vadd.f32 %v22125_v9, %v7155_v0  ;;  %v16721_v25 = vpop.f32.mrb[26].mxu0  ;;  %v25643_v10 = vld [vmem:[#allocation35_spill] sm:$0xff]  ;;  %v25644_v40 = vld [vmem:[#allocation36_spill] sm:$0xff] }
 0x7c3   : > { %v7158_v23 = vpop.f32.mrb[27].mxu0  ;;  %25639 = vst [vmem:[#allocation87_spill] sm:$0xff] %v22231_v42  ;;  %v22239_v1 = vadd.f32 %v16721_v25, %v22125_v9  ;;  %v7498_v39 = vmul.f32 %v22231_v42, %v25644_v40 }
 0x7c4   : > { %25638 = vst [vmem:[#allocation86_spill] sm:$0xff] %v22228_v19  ;;  %v7496_v47 = vmul.f32 %v22228_v19, %v25640_v26  ;;  %v7541_v6 = vadd.f32 %v7540_v34, %v7495_v29  ;;  %v22236_v51 = vadd.f32 %v22125_v9, %v7158_v23  ;;  %v25648_v23 = vld [vmem:[#allocation39_spill] sm:$0xff]  ;;  %v25653_v19 = vld [vmem:[#allocation45_spill] sm:$0xff] }
 0x7c5   : > { %25642 = vst [vmem:[#allocation89_spill] sm:$0xff] %v22239_v1  ;;  %v7499_v26 = vmul.f32 %v22239_v1, %v25645_v41 }
 0x7c6   : > { %25641 = vst [vmem:[#allocation88_spill] sm:$0xff] %v22236_v51  ;;  %v7542_v13 = vadd.f32 %v7541_v6, %v7496_v47  ;;  %v7497_v0 = vmul.f32 %v22236_v51, %v25643_v10 }
 0x7c8   : > { %v7543_v11 = vadd.f32 %v7542_v13, %v7497_v0  ;;  %v16724_v35 = vpop.f32.mrb[28].mxu0 }
 0x7c9   : > { %v7171_v54 = vpop.f32.mrb[29].mxu0  ;;  %v22251_v25 = vadd.f32 %v16724_v35, %v22125_v9 }
 0x7ca   : > { %v7544_v29 = vadd.f32 %v7543_v11, %v7498_v39  ;;  %v22248_v34 = vadd.f32 %v22125_v9, %v7171_v54  ;;  %v16725_v6 = vpop.f32.mrb[30].mxu0  ;;  %v25651_v39 = vld [vmem:[#allocation41_spill] sm:$0xff]  ;;  %v25652_v11 = vld [vmem:[#allocation43_spill] sm:$0xff] }
 0x7cb   : > { %v7174_v47 = vpop.f32.mrb[31].mxu0  ;;  %25647 = vst [vmem:[#allocation91_spill] sm:$0xff] %v22251_v25  ;;  %v22259_v40 = vadd.f32 %v16725_v6, %v22125_v9  ;;  %v7502_v41 = vmul.f32 %v22251_v25, %v25652_v11 }
 0x7cc   : > { %25646 = vst [vmem:[#allocation90_spill] sm:$0xff] %v22248_v34  ;;  %v7500_v10 = vmul.f32 %v22248_v34, %v25648_v23  ;;  %v7545_v51 = vadd.f32 %v7544_v29, %v7499_v26  ;;  %v22256_v13 = vadd.f32 %v22125_v9, %v7174_v47  ;;  %v25656_v47 = vld [vmem:[#allocation47_spill] sm:$0xff]  ;;  %v25661_v34 = vld [vmem:[#allocation53_spill] sm:$0xff] }
 0x7cd   : > { %25650 = vst [vmem:[#allocation93_spill] sm:$0xff] %v22259_v40  ;;  %v7503_v23 = vmul.f32 %v22259_v40, %v25653_v19 }
 0x7ce   : > { %25649 = vst [vmem:[#allocation92_spill] sm:$0xff] %v22256_v13  ;;  %v7546_v0 = vadd.f32 %v7545_v51, %v7500_v10  ;;  %v7501_v54 = vmul.f32 %v22256_v13, %v25651_v39 }
 0x7d0   : > { %v7547_v1 = vadd.f32 %v7546_v0, %v7501_v54  ;;  %v16728_v35 = vpop.f32.mrb[32].mxu0 }
 0x7d1   : > { %v7187_v42 = vpop.f32.mrb[33].mxu0  ;;  %v22271_v6 = vadd.f32 %v16728_v35, %v22125_v9 }
 0x7d2   : > { %v7548_v26 = vadd.f32 %v7547_v1, %v7502_v41  ;;  %v22268_v29 = vadd.f32 %v22125_v9, %v7187_v42  ;;  %v16729_v51 = vpop.f32.mrb[34].mxu0  ;;  %v25659_v41 = vld [vmem:[#allocation49_spill] sm:$0xff]  ;;  %v25660_v42 = vld [vmem:[#allocation51_spill] sm:$0xff] }
 0x7d3   : > { %v7190_v10 = vpop.f32.mrb[35].mxu0  ;;  %25655 = vst [vmem:[#allocation95_spill] sm:$0xff] %v22271_v6  ;;  %v22279_v11 = vadd.f32 %v16729_v51, %v22125_v9  ;;  %v7506_v19 = vmul.f32 %v22271_v6, %v25660_v42 }
 0x7d4   : > { %25654 = vst [vmem:[#allocation94_spill] sm:$0xff] %v22268_v29  ;;  %v7504_v39 = vmul.f32 %v22268_v29, %v25656_v47  ;;  %v7549_v13 = vadd.f32 %v7548_v26, %v7503_v23  ;;  %v22276_v0 = vadd.f32 %v22125_v9, %v7190_v10  ;;  %v25664_v10 = vld [vmem:[#allocation55_spill] sm:$0xff] }
 0x7d5   : > { %25658 = vst [vmem:[#allocation97_spill] sm:$0xff] %v22279_v11  ;;  %v7507_v47 = vmul.f32 %v22279_v11, %v25661_v34  ;;  %v25669_v29 = vld [vmem:[#allocation59_spill] sm:$0xff] }
 0x7d6   : > { %25657 = vst [vmem:[#allocation96_spill] sm:$0xff] %v22276_v0  ;;  %v7550_v54 = vadd.f32 %v7549_v13, %v7504_v39  ;;  %v7505_v1 = vmul.f32 %v22276_v0, %v25659_v41 }
 0x7d8   : > { %v7551_v40 = vadd.f32 %v7550_v54, %v7505_v1  ;;  %v16732_v35 = vpop.f32.mrb[36].mxu0 }
 0x7d9   : > { %v7203_v25 = vpop.f32.mrb[37].mxu0  ;;  %v22291_v51 = vadd.f32 %v16732_v35, %v22125_v9 }
 0x7da   : > { %v7552_v23 = vadd.f32 %v7551_v40, %v7506_v19  ;;  %v22288_v26 = vadd.f32 %v22125_v9, %v7203_v25  ;;  %v16733_v13 = vpop.f32.mrb[38].mxu0  ;;  %v25667_v19 = vld [vmem:[#allocation57_spill] sm:$0xff]  ;;  %v25668_v25 = vld [vmem:[#allocation58_spill] sm:$0xff] }
 0x7db   : > { %v7206_v39 = vpop.f32.mrb[39].mxu0  ;;  %25663 = vst [vmem:[#allocation99_spill] sm:$0xff] %v22291_v51  ;;  %v22299_v42 = vadd.f32 %v16733_v13, %v22125_v9  ;;  %v7510_v34 = vmul.f32 %v22291_v51, %v25668_v25 }
 0x7dc   : > { %25662 = vst [vmem:[#allocation98_spill] sm:$0xff] %v22288_v26  ;;  %v7508_v41 = vmul.f32 %v22288_v26, %v25664_v10  ;;  %v7553_v0 = vadd.f32 %v7552_v23, %v7507_v47  ;;  %v22296_v54 = vadd.f32 %v22125_v9, %v7206_v39  ;;  %v25672_v39 = vld [vmem:[#allocation60_spill] sm:$0xff]  ;;  %v25677_v26 = vld [vmem:[#allocation63_spill] sm:$0xff] }
 0x7dd   : > { %25666 = vst [vmem:[#allocation44_spill] sm:$0xff] %v22299_v42  ;;  %v7511_v10 = vmul.f32 %v22299_v42, %v25669_v29 }
 0x7de   : > { %25665 = vst [vmem:[#allocation40_spill] sm:$0xff] %v22296_v54  ;;  %v7554_v1 = vadd.f32 %v7553_v0, %v7508_v41  ;;  %v7509_v40 = vmul.f32 %v22296_v54, %v25667_v19 }
 0x7e0   : > { %v7555_v11 = vadd.f32 %v7554_v1, %v7509_v40  ;;  %v16736_v35 = vpop.f32.mrb[40].mxu0 }
 0x7e1   : > { %v7219_v6 = vpop.f32.mrb[41].mxu0  ;;  %v22311_v13 = vadd.f32 %v16736_v35, %v22125_v9 }
 0x7e2   : > { %v7556_v47 = vadd.f32 %v7555_v11, %v7510_v34  ;;  %v22308_v23 = vadd.f32 %v22125_v9, %v7219_v6  ;;  %v16737_v0 = vpop.f32.mrb[42].mxu0  ;;  %v25675_v34 = vld [vmem:[#allocation61_spill] sm:$0xff]  ;;  %v25676_v6 = vld [vmem:[#allocation62_spill] sm:$0xff] }
 0x7e3   : > { %v7222_v41 = vpop.f32.mrb[43].mxu0  ;;  %25671 = vst [vmem:[#allocation48_spill] sm:$0xff] %v22311_v13  ;;  %v22319_v25 = vadd.f32 %v16737_v0, %v22125_v9  ;;  %v7514_v29 = vmul.f32 %v22311_v13, %v25676_v6  ;;  %v25681_v6 = vld [vmem:[#allocation65_spill] sm:$0xff] }
 0x7e4   : > { %25670 = vst [vmem:[#allocation42_spill] sm:$0xff] %v22308_v23  ;;  %v7512_v19 = vmul.f32 %v22308_v23, %v25672_v39  ;;  %v7557_v54 = vadd.f32 %v7556_v47, %v7511_v10  ;;  %v22316_v1 = vadd.f32 %v22125_v9, %v7222_v41  ;;  %v25679_v41 = vld [vmem:[#allocation64_spill] sm:$0xff] }
 0x7e5   : > { %25674 = vst [vmem:[#allocation52_spill] sm:$0xff] %v22319_v25  ;;  %v7515_v39 = vmul.f32 %v22319_v25, %v25677_v26 }
 0x7e6   : > { %25673 = vst [vmem:[#allocation46_spill] sm:$0xff] %v22316_v1  ;;  %v7558_v40 = vadd.f32 %v7557_v54, %v7512_v19  ;;  %v7513_v11 = vmul.f32 %v22316_v1, %v25675_v34 }
 0x7e8   : > { %v7559_v42 = vadd.f32 %v7558_v40, %v7513_v11  ;;  %v16740_v35 = vpop.f32.mrb[44].mxu0 }
 0x7e9   : > { %v7235_v51 = vpop.f32.mrb[45].mxu0  ;;  %v22331_v0 = vadd.f32 %v16740_v35, %v22125_v9 }
 0x7ea   : > { %v7560_v10 = vadd.f32 %v7559_v42, %v7514_v29  ;;  %v22328_v47 = vadd.f32 %v22125_v9, %v7235_v51  ;;  %v16741_v54 = vpop.f32.mrb[46].mxu0  ;;  %v25682_v29 = vld [vmem:[#allocation66_spill] sm:$0xff] }
 0x7eb   : > { %v7238_v19 = vpop.f32.mrb[47].mxu0  ;;  %25678 = vst [vmem:[#allocation50_spill] sm:$0xff] %v22331_v0  ;;  %v7518_v42 = vmul.f32 %v22331_v0, %v25682_v29  ;;  %v22343_v51 = vadd.f32 %v16741_v54, %v22125_v9 }
 0x7ec   : > { %v7516_v34 = vmul.f32 %v22328_v47, %v25679_v41  ;;  %v7561_v1 = vadd.f32 %v7560_v10, %v7515_v39  ;;  %v22336_v40 = vadd.f32 %v22125_v9, %v7238_v19 }
 0x7ed   : > { %25683 = vst [vmem:[#allocation54_spill] sm:$0xff] %v22343_v51 }
 0x7ee   : > { %25680 = vst [vmem:[#allocation79_spill] sm:$0xff] %v22336_v40  ;;  %v7562_v11 = vadd.f32 %v7561_v1, %v7516_v34  ;;  %v7517_v26 = vmul.f32 %v22336_v40, %v25681_v6  ;;  %v25684_v1 = vld [vmem:[#allocation67_spill] sm:$0xff] }
 0x7ef   : > { %v7519_v34 = vmul.f32 %v22343_v51, %v25684_v1 }
 0x7f0   : > { %v7563_v25 = vadd.f32 %v7562_v11, %v7517_v26  ;;  %v16744_v35 = vpop.f32.mrb[80].mxu0  ;;  %v25685_v26 = vld [vmem:[#allocation68_spill] sm:$0xff] }
 0x7f1   : > { %v7311_v13 = vadd.f32 %v16744_v35, %v22118_v28  ;;  %v7251_v23 = vpop.f32.mrb[81].mxu0  ;;  %v25687_v35 = vld [vmem:[#allocation70_spill] sm:$0xff] }
 0x7f2   : > { %v7564_v41 = vadd.f32 %v7563_v25, %v7518_v42  ;;  %v7309_v39 = vadd.f32 %v7251_v23, %v22120_v56  ;;  %v16745_v10 = vpop.f32.mrb[82].mxu0  ;;  %v25686_v23 = vld [vmem:[#allocation69_spill] sm:$0xff] }
 0x7f3   : > { %v7254_v19 = vpop.f32.mrb[83].mxu0  ;;  %v22354_v54 = vadd.f32 %v22125_v9, %v7311_v13 }
 0x7f4   : > { %v22350_v6 = vadd.f32 %v22125_v9, %v7309_v39  ;;  %v7310_v29 = vadd.f32 %v7254_v19, %v22122_v20  ;;  %v7565_v11 = vadd.f32 %v7564_v41, %v7519_v34 }
 0x7f5   : > { %v7522_v39 = vmul.f32 %v22354_v54, %v25687_v35 }
 0x7f6   : > { %v7520_v28 = vmul.f32 %v22350_v6, %v25685_v26  ;;  %v22359_v25 = vadd.f32 %v22125_v9, %v7310_v29 }
 0x7f8   : > { %v7566_v56 = vadd.f32 %v7565_v11, %v7520_v28  ;;  %v7521_v42 = vmul.f32 %v22359_v25, %v25686_v23 }
 0x7fa   : > { %v7567_v10 = vadd.f32 %v7566_v56, %v7521_v42 }
 0x7fc   : > { %v7568_v1 = vadd.f32 %v7567_v10, %v7522_v39 }
 0x7fe   : > { %v7569_v20 = vrot.slane %v7568_v1, 4 }
 0x800   : > { %v7570_v19 = vadd.f32 %v7569_v20, %v7568_v1 }
 0x802   : > { %v7571_v13 = vrot.slane %v7570_v19, 2 }
 0x804   : > { %v7572_v51 = vadd.f32 %v7571_v13, %v7570_v19 }
 0x806   : > { %v7573_v0 = vrot.slane %v7572_v51, 1 }
 0x808   : > { %v7574_v40 = vadd.f32 %v7573_v0, %v7572_v51 }
 0x80a   : > { %v7575_v26 = vpack.c.bf16 %v7574_v40, %v7574_v40 }
 0x80c   : > { %v7576_v41 = vunpack.c.l.bf16 %v7575_v26 }
 0x80e   : > { %v7577_v34 = vsub.f32 %v7574_v40, %v7576_v41 }
 0x810   : > { %v7578_v9 = vpack.c.bf16 %v7577_v34, %v7577_v34 }
 0x812   : > { %16783 = vmatmul.mubr.bf16.vlgmr.msra.gmra.mrb[8].mxu1 %v7578_v9 }
 0x813   : > { %16787 = vmatpush3.bf16.msra.mxu1 %v21970_v44  ;;  %16802 = vmatprep.mubr.msk.bf16.mxu1 %vm19494_vm0, %v25588_v31 }
 0x814   : > { %16788 = vmatprep.subr.bf16.mxu1 %v25588_v31 }
 0x817   : > { %16789 = vmatpush3.bf16.msra.mxu1 %v21980_v48 }
 0x818   : > { %16790 = vmatprep.subr.bf16.mxu1 %v25588_v31 }
 0x81b   : > { %16791 = vmatpush3.bf16.msra.mxu1 %v21991_v59 }
 0x81c   : > { %16792 = vmatprep.subr.bf16.mxu1 %v25588_v31 }
 0x81f   : > { %16793 = vmatpush3.bf16.msra.mxu1 %v22001_v33 }
 0x820   : > { %16794 = vmatprep.subr.bf16.mxu1 %v25588_v31 }
 0x823   : > { %16795 = vmatpush3.bf16.msra.mxu1 %v22018_v32 }
 0x824   : > { %16796 = vmatprep.subr.bf16.mxu1 %v25588_v31 }
 0x827   : > { %16797 = vmatpush3.bf16.msra.mxu1 %v22025_v3 }
 0x828   : > { %16798 = vmatprep.subr.bf16.mxu1 %v25588_v31 }
 0x82b   : > { %16799 = vmatpush3.bf16.msra.mxu1 %v22036_v14 }
 0x82c   : > { %16800 = vmatprep.subr.bf16.mxu1 %v25588_v31 }
 0x82f   : > { %16801 = vmatpush3.bf16.msra.mxu1 %v22043_v24 }
 0x830   : > { %16806 = vmatprep.subr.bf16.mxu1 %v25588_v31 }
 0x832   : > { %16803 = vmatmul.mubr.bf16.vlgmr.msra.gmra.mrb[8].mxu1 %v7575_v26 }
 0x833   : > { %16807 = vmatpush3.bf16.msra.mxu1 %v21970_v44  ;;  %16822 = vmatprep.mubr.msk.bf16.mxu1 %vm19494_vm0, %v25588_v31 }
 0x834   : > { %16808 = vmatprep.subr.bf16.mxu1 %v25588_v31 }
 0x837   : > { %16809 = vmatpush3.bf16.msra.mxu1 %v21980_v48 }
 0x838   : > { %16810 = vmatprep.subr.bf16.mxu1 %v25588_v31 }
 0x83b   : > { %16811 = vmatpush3.bf16.msra.mxu1 %v21991_v59 }
 0x83c   : > { %16812 = vmatprep.subr.bf16.mxu1 %v25588_v31 }
 0x83f   : > { %16813 = vmatpush3.bf16.msra.mxu1 %v22001_v33 }
 0x840   : > { %16814 = vmatprep.subr.bf16.mxu1 %v25588_v31 }
 0x843   : > { %16815 = vmatpush3.bf16.msra.mxu1 %v22018_v32 }
 0x844   : > { %16816 = vmatprep.subr.bf16.mxu1 %v25588_v31 }
 0x847   : > { %16817 = vmatpush3.bf16.msra.mxu1 %v22025_v3 }
 0x848   : > { %16818 = vmatprep.subr.bf16.mxu1 %v25588_v31 }
 0x84b   : > { %16819 = vmatpush3.bf16.msra.mxu1 %v22036_v14 }
 0x84c   : > { %16820 = vmatprep.subr.bf16.mxu1 %v25588_v31 }
 0x84f   : > { %16821 = vmatpush3.bf16.msra.mxu1 %v22043_v24 }
 0x850   : > { %16826 = vmatprep.subr.bf16.mxu1 %v25588_v31 }
 0x905   : > { %v7653_v44 = vpop.f32.mrb[8].mxu1 }
 0x906   : > { %v16804_v48 = vpop.f32.mrb[9].mxu1  ;;  %v7659_v0 = vmul.f32 0.0009765625, %v7653_v44 }
 0x907   : > { %v7656_v59 = vpop.f32.mrb[10].mxu1 }
 0x908   : > { %v16805_v33 = vpop.f32.mrb[11].mxu1  ;;  %v22402_v32 = vrot.slane %v7659_v0, %v25613_v8 }
 0x90a   : > { %v7664_v3 = vsub.f32 %v22128_v7, %v22402_v32  ;;  %v7665_v14 = vsub.f32 %v22134_v46, %v22402_v32  ;;  %v7666_v40 = vsub.f32 %v22131_v57, %v22402_v32  ;;  %v7667_v51 = vsub.f32 %v22139_v52, %v22402_v32 }
 0x90b   : > { %v7668_v1 = vsub.f32 %v22148_v17, %v22402_v32  ;;  %v7669_v26 = vsub.f32 %v22156_v43, %v22402_v32  ;;  %v7670_v52 = vsub.f32 %v22151_v38, %v22402_v32  ;;  %v7671_v42 = vsub.f32 %v22159_v45, %v22402_v32 }
 0x90c   : > { %v22411_v24 = vmul.f32 %v7664_v3, %v25614_v61  ;;  %v22414_v29 = vmul.f32 %v7665_v14, %v25615_v16  ;;  %v22421_v7 = vmul.f32 %v7666_v40, %v25616_v62  ;;  %v22430_v28 = vmul.f32 %v7667_v51, %v25617_v36  ;;  %v25733_v36 = vld [vmem:[#allocation60_spill] sm:$0xff]  ;;  %v25736_v62 = vld [vmem:[#allocation61_spill] sm:$0xff]  ;;  %v25739_v16 = vld [vmem:[#allocation63_spill] sm:$0xff] }
 0x90d   : > { %v22435_v17 = vmul.f32 %v7668_v1, %v25618_v30  ;;  %v22442_v39 = vmul.f32 %v7669_v26, %v25619_v12  ;;  %v7672_v38 = vsub.f32 %v22168_v58, %v22402_v32  ;;  %v22449_v20 = vmul.f32 %v7670_v52, %v25620_v49  ;;  %v25727_v49 = vld [vmem:[#allocation57_spill] sm:$0xff]  ;;  %v25729_v12 = vld [vmem:[#allocation58_spill] sm:$0xff]  ;;  %v25731_v30 = vld [vmem:[#allocation59_spill] sm:$0xff] }
 0x90e   : > { %v7758_v46 = vmul.f32 %v22411_v24, %v22411_v24  ;;  %v7759_v57 = vmul.f32 %v22414_v29, %v22414_v29  ;;  %v7760_v11 = vmul.f32 %v22421_v7, %v22421_v7  ;;  %v7761_v43 = vmul.f32 %v22430_v28, %v22430_v28  ;;  %v25741_v61 = vld [vmem:[#allocation64_spill] sm:$0xff] }
 0x90f   : > { %v7762_v19 = vmul.f32 %v22435_v17, %v22435_v17  ;;  %v7673_v45 = vsub.f32 %v22176_v2, %v22402_v32  ;;  %v22456_v41 = vmul.f32 %v7671_v42, %v25621_v37  ;;  %v7763_v34 = vmul.f32 %v22442_v39, %v22442_v39  ;;  %v25725_v37 = vld [vmem:[#allocation55_spill] sm:$0xff] }
 0x910   : > { %v7805_v56 = vadd.f32 %v7759_v57, %v7758_v46  ;;  %v7674_v58 = vsub.f32 %v22171_v27, %v22402_v32  ;;  %v22463_v44 = vmul.f32 %v7672_v38, %v25622_v18  ;;  %v7764_v48 = vmul.f32 %v22449_v20, %v22449_v20  ;;  %v25689_v38 = vld [vmem:[#allocation28_spill] sm:$0xff]  ;;  %v25723_v18 = vld [vmem:[#allocation53_spill] sm:$0xff] }
 0x911   : > { %v7675_v2 = vsub.f32 %v22179_v63, %v22402_v32  ;;  %v22470_v33 = vmul.f32 %v7673_v45, %v25623_v53  ;;  %v7765_v0 = vmul.f32 %v22456_v41, %v22456_v41  ;;  %v7676_v27 = vsub.f32 %v22188_v60, %v22402_v32  ;;  %v25721_v53 = vld [vmem:[#allocation51_spill] sm:$0xff] }
 0x912   : > { %v7806_v10 = vadd.f32 %v7805_v56, %v7760_v11  ;;  %v22477_v14 = vmul.f32 %v7674_v58, %v25624_v5  ;;  %v7766_v40 = vmul.f32 %v22463_v44, %v22463_v44  ;;  %v7677_v63 = vsub.f32 %v22196_v55, %v22402_v32  ;;  %v25719_v5 = vld [vmem:[#allocation49_spill] sm:$0xff] }
 0x913   : > { %v22484_v1 = vmul.f32 %v7675_v2, %v25625_v21  ;;  %v7767_v46 = vmul.f32 %v22470_v33, %v22470_v33  ;;  %v7678_v60 = vsub.f32 %v22191_v15, %v22402_v32  ;;  %v22491_v26 = vmul.f32 %v7676_v27, %v25626_v22  ;;  %v25692_v2 = vld [vmem:[#allocation83_spill] sm:$0xff]  ;;  %v25715_v22 = vld [vmem:[#allocation45_spill] sm:$0xff] }
 0x914   : > { %v7807_v13 = vadd.f32 %v7806_v10, %v7761_v43  ;;  %v7768_v52 = vmul.f32 %v22477_v14, %v22477_v14  ;;  %v7679_v55 = vsub.f32 %v22199_v4, %v22402_v32  ;;  %v22498_v56 = vmul.f32 %v7677_v63, %v25627_v50  ;;  %v25688_v10 = vld [vmem:[#allocation82_spill] sm:$0xff]  ;;  %v25694_v63 = vld [vmem:[#allocation85_spill] sm:$0xff]  ;;  %v25713_v50 = vld [vmem:[#allocation43_spill] sm:$0xff] }
 0x915   : > { %v7769_v42 = vmul.f32 %v22484_v1, %v22484_v1  ;;  %v7680_v15 = vsub.f32 %v25688_v10, %v22402_v32  ;;  %v25717_v21 = vld [vmem:[#allocation47_spill] sm:$0xff] }
 0x916   : > { %v7808_v9 = vadd.f32 %v7807_v13, %v7762_v19  ;;  %v22505_v19 = vmul.f32 %v7678_v60, %v25689_v38  ;;  %v7770_v13 = vmul.f32 %v22491_v26, %v22491_v26  ;;  %v25711_v38 = vld [vmem:[#allocation41_spill] sm:$0xff] }
 0x918   : > { %v7809_v59 = vadd.f32 %v7808_v9, %v7763_v34  ;;  %v25690_v34 = vld [vmem:[#allocation84_spill] sm:$0xff]  ;;  %v25691_v9 = vld [vmem:[#allocation29_spill] sm:$0xff] }
 0x919   : > { %v7681_v4 = vsub.f32 %v25690_v34, %v22402_v32  ;;  %v22512_v58 = vmul.f32 %v7679_v55, %v25691_v9  ;;  %v25696_v55 = vld [vmem:[#allocation86_spill] sm:$0xff]  ;;  %v25709_v9 = vld [vmem:[#allocation39_spill] sm:$0xff] }
 0x91a   : > { %v7810_v3 = vadd.f32 %v7809_v59, %v7764_v48  ;;  %v7771_v48 = vmul.f32 %v22498_v56, %v22498_v56 }
 0x91c   : > { %v7811_v51 = vadd.f32 %v7810_v3, %v7765_v0  ;;  %v7682_v0 = vsub.f32 %v25692_v2, %v22402_v32  ;;  %v25693_v3 = vld [vmem:[#allocation30_spill] sm:$0xff] }
 0x91d   : > { %v22519_v27 = vmul.f32 %v7680_v15, %v25693_v3  ;;  %v25707_v3 = vld [vmem:[#allocation37_spill] sm:$0xff] }
 0x91e   : > { %v7812_v57 = vadd.f32 %v7811_v51, %v7766_v40  ;;  %v7772_v40 = vmul.f32 %v22505_v19, %v22505_v19 }
 0x91f   : > { %v7774_v15 = vmul.f32 %v22519_v27, %v22519_v27 }
 0x920   : > { %v7813_v11 = vadd.f32 %v7812_v57, %v7767_v46  ;;  %v7683_v46 = vsub.f32 %v25694_v63, %v22402_v32  ;;  %v25695_v57 = vld [vmem:[#allocation31_spill] sm:$0xff]  ;;  %v25701_v63 = vld [vmem:[#allocation34_spill] sm:$0xff] }
 0x921   : > { %v22526_v60 = vmul.f32 %v7681_v4, %v25695_v57  ;;  %v25705_v57 = vld [vmem:[#allocation36_spill] sm:$0xff] }
 0x922   : > { %v7814_v43 = vadd.f32 %v7813_v11, %v7768_v52  ;;  %v7773_v52 = vmul.f32 %v22512_v58, %v22512_v58 }
 0x924   : > { %v7815_v45 = vadd.f32 %v7814_v43, %v7769_v42  ;;  %v7684_v42 = vsub.f32 %v25696_v55, %v22402_v32  ;;  %v25697_v43 = vld [vmem:[#allocation32_spill] sm:$0xff] }
 0x925   : > { %v22533_v10 = vmul.f32 %v7682_v0, %v25697_v43  ;;  %v25703_v43 = vld [vmem:[#allocation35_spill] sm:$0xff] }
 0x926   : > { %v7816_v59 = vadd.f32 %v7815_v45, %v7770_v13  ;;  %v25698_v45 = vld [vmem:[#allocation88_spill] sm:$0xff]  ;;  %v22547_v0 = vmul.f32 %v7684_v42, %v25701_v63 }
 0x927   : > { %v7685_v34 = vsub.f32 %v25698_v45, %v22402_v32  ;;  %v7776_v55 = vmul.f32 %v22533_v10, %v22533_v10 }
 0x928   : > { %v7817_v51 = vadd.f32 %v7816_v59, %v7771_v48  ;;  %v25699_v48 = vld [vmem:[#allocation33_spill] sm:$0xff]  ;;  %v7775_v59 = vmul.f32 %v22526_v60, %v22526_v60  ;;  %v7778_v63 = vmul.f32 %v22547_v0, %v22547_v0 }
 0x929   : > { %v22540_v4 = vmul.f32 %v7683_v46, %v25699_v48  ;;  %v22554_v46 = vmul.f32 %v7685_v34, %v25703_v43 }
 0x92a   : > { %v7818_v11 = vadd.f32 %v7817_v51, %v7772_v40  ;;  %v25700_v40 = vld [vmem:[#allocation87_spill] sm:$0xff] }
 0x92b   : > { %v7686_v51 = vsub.f32 %v25700_v40, %v22402_v32  ;;  %v7777_v48 = vmul.f32 %v22540_v4, %v22540_v4  ;;  %v7779_v43 = vmul.f32 %v22554_v46, %v22554_v46 }
 0x92c   : > { %v7819_v13 = vadd.f32 %v7818_v11, %v7773_v52  ;;  %v25702_v11 = vld [vmem:[#allocation89_spill] sm:$0xff] }
 0x92d   : > { %v7687_v45 = vsub.f32 %v25702_v11, %v22402_v32  ;;  %v22561_v42 = vmul.f32 %v7686_v51, %v25705_v57 }
 0x92e   : > { %v7820_v2 = vadd.f32 %v7819_v13, %v7774_v15  ;;  %v25704_v13 = vld [vmem:[#allocation90_spill] sm:$0xff] }
 0x92f   : > { %v7688_v40 = vsub.f32 %v25704_v13, %v22402_v32  ;;  %v22568_v34 = vmul.f32 %v7687_v45, %v25707_v3  ;;  %v7780_v57 = vmul.f32 %v22561_v42, %v22561_v42 }
 0x930   : > { %v7821_v52 = vadd.f32 %v7820_v2, %v7775_v59  ;;  %v25706_v2 = vld [vmem:[#allocation92_spill] sm:$0xff] }
 0x931   : > { %v7689_v11 = vsub.f32 %v25706_v2, %v22402_v32  ;;  %v22575_v51 = vmul.f32 %v7688_v40, %v25709_v9  ;;  %v7781_v3 = vmul.f32 %v22568_v34, %v22568_v34 }
 0x932   : > { %v7822_v15 = vadd.f32 %v7821_v52, %v7776_v55  ;;  %v25708_v52 = vld [vmem:[#allocation91_spill] sm:$0xff] }
 0x933   : > { %v7690_v13 = vsub.f32 %v25708_v52, %v22402_v32  ;;  %v22582_v45 = vmul.f32 %v7689_v11, %v25711_v38  ;;  %v7782_v9 = vmul.f32 %v22575_v51, %v22575_v51 }
 0x934   : > { %v7823_v59 = vadd.f32 %v7822_v15, %v7777_v48  ;;  %v25710_v15 = vld [vmem:[#allocation93_spill] sm:$0xff] }
 0x935   : > { %v7691_v2 = vsub.f32 %v25710_v15, %v22402_v32  ;;  %v22589_v40 = vmul.f32 %v7690_v13, %v25713_v50  ;;  %v7783_v38 = vmul.f32 %v22582_v45, %v22582_v45 }
 0x936   : > { %v7824_v55 = vadd.f32 %v7823_v59, %v7778_v63  ;;  %v25712_v59 = vld [vmem:[#allocation94_spill] sm:$0xff] }
 0x937   : > { %v7692_v52 = vsub.f32 %v25712_v59, %v22402_v32  ;;  %v22596_v11 = vmul.f32 %v7691_v2, %v25715_v22  ;;  %v7784_v50 = vmul.f32 %v22589_v40, %v22589_v40 }
 0x938   : > { %v7825_v48 = vadd.f32 %v7824_v55, %v7779_v43  ;;  %v25714_v55 = vld [vmem:[#allocation96_spill] sm:$0xff] }
 0x939   : > { %v7693_v15 = vsub.f32 %v25714_v55, %v22402_v32  ;;  %v22603_v13 = vmul.f32 %v7692_v52, %v25717_v21  ;;  %v7785_v22 = vmul.f32 %v22596_v11, %v22596_v11 }
 0x93a   : > { %v7826_v63 = vadd.f32 %v7825_v48, %v7780_v57  ;;  %v25716_v48 = vld [vmem:[#allocation95_spill] sm:$0xff] }
 0x93b   : > { %v7694_v59 = vsub.f32 %v25716_v48, %v22402_v32  ;;  %v22610_v2 = vmul.f32 %v7693_v15, %v25719_v5  ;;  %v7786_v21 = vmul.f32 %v22603_v13, %v22603_v13 }
 0x93c   : > { %v7827_v43 = vadd.f32 %v7826_v63, %v7781_v3  ;;  %v25718_v63 = vld [vmem:[#allocation97_spill] sm:$0xff] }
 0x93d   : > { %v7695_v55 = vsub.f32 %v25718_v63, %v22402_v32  ;;  %v22617_v52 = vmul.f32 %v7694_v59, %v25721_v53  ;;  %v7787_v5 = vmul.f32 %v22610_v2, %v22610_v2 }
 0x93e   : > { %v7828_v57 = vadd.f32 %v7827_v43, %v7782_v9  ;;  %v25720_v43 = vld [vmem:[#allocation98_spill] sm:$0xff] }
 0x93f   : > { %v7696_v48 = vsub.f32 %v25720_v43, %v22402_v32  ;;  %v22624_v15 = vmul.f32 %v7695_v55, %v25723_v18  ;;  %v7788_v53 = vmul.f32 %v22617_v52, %v22617_v52 }
 0x940   : > { %v7829_v3 = vadd.f32 %v7828_v57, %v7783_v38  ;;  %v25722_v57 = vld [vmem:[#allocation40_spill] sm:$0xff] }
 0x941   : > { %v7697_v63 = vsub.f32 %v25722_v57, %v22402_v32  ;;  %v22631_v59 = vmul.f32 %v7696_v48, %v25725_v37  ;;  %v7789_v18 = vmul.f32 %v22624_v15, %v22624_v15 }
 0x942   : > { %v7830_v9 = vadd.f32 %v7829_v3, %v7784_v50  ;;  %v25724_v3 = vld [vmem:[#allocation99_spill] sm:$0xff] }
 0x943   : > { %v7698_v43 = vsub.f32 %v25724_v3, %v22402_v32  ;;  %v22638_v55 = vmul.f32 %v7697_v63, %v25727_v49  ;;  %v7790_v37 = vmul.f32 %v22631_v59, %v22631_v59 }
 0x944   : > { %v7831_v38 = vadd.f32 %v7830_v9, %v7785_v22  ;;  %v25726_v9 = vld [vmem:[#allocation44_spill] sm:$0xff] }
 0x945   : > { %v7699_v57 = vsub.f32 %v25726_v9, %v22402_v32  ;;  %v22645_v48 = vmul.f32 %v7698_v43, %v25729_v12  ;;  %v7791_v49 = vmul.f32 %v22638_v55, %v22638_v55 }
 0x946   : > { %v7832_v50 = vadd.f32 %v7831_v38, %v7786_v21  ;;  %v25728_v38 = vld [vmem:[#allocation42_spill] sm:$0xff] }
 0x947   : > { %v7700_v3 = vsub.f32 %v25728_v38, %v22402_v32  ;;  %v22652_v63 = vmul.f32 %v7699_v57, %v25731_v30  ;;  %v7792_v12 = vmul.f32 %v22645_v48, %v22645_v48 }
 0x948   : > { %v7833_v22 = vadd.f32 %v7832_v50, %v7787_v5  ;;  %v25730_v50 = vld [vmem:[#allocation46_spill] sm:$0xff] }
 0x949   : > { %v7701_v9 = vsub.f32 %v25730_v50, %v22402_v32  ;;  %v22659_v43 = vmul.f32 %v7700_v3, %v25733_v36  ;;  %v7793_v30 = vmul.f32 %v22652_v63, %v22652_v63 }
 0x94a   : > { %v7834_v21 = vadd.f32 %v7833_v22, %v7788_v53  ;;  %v25732_v22 = vld [vmem:[#allocation48_spill] sm:$0xff] }
 0x94b   : > { %v7702_v38 = vsub.f32 %v25732_v22, %v22402_v32  ;;  %25734 = vst [vmem:[#allocation71_spill] sm:$0xff] %v22659_v43  ;;  %v22666_v57 = vmul.f32 %v7701_v9, %v25736_v62  ;;  %v25737_v22 = vld [vmem:[#allocation62_spill] sm:$0xff]  ;;  %v7794_v36 = vmul.f32 %v22659_v43, %v22659_v43  ;;  %v25743_v43 = vld [vmem:[#allocation65_spill] sm:$0xff] }
 0x94c   : > { %v7835_v5 = vadd.f32 %v7834_v21, %v7789_v18  ;;  %v25735_v21 = vld [vmem:[#allocation52_spill] sm:$0xff] }
 0x94d   : > { %v7703_v50 = vsub.f32 %v25735_v21, %v22402_v32  ;;  %v22673_v3 = vmul.f32 %v7702_v38, %v25737_v22  ;;  %v7795_v62 = vmul.f32 %v22666_v57, %v22666_v57 }
 0x94e   : > { %v7836_v53 = vadd.f32 %v7835_v5, %v7790_v37  ;;  %v7704_v5 = vsub.f32 %v22328_v47, %v22402_v32 }
 0x94f   : > { %v22680_v9 = vmul.f32 %v7703_v50, %v25739_v16  ;;  %v7796_v22 = vmul.f32 %v22673_v3, %v22673_v3 }
 0x950   : > { %v7837_v18 = vadd.f32 %v7836_v53, %v7791_v49  ;;  %v25738_v53 = vld [vmem:[#allocation79_spill] sm:$0xff]  ;;  %v22687_v38 = vmul.f32 %v7704_v5, %v25741_v61 }
 0x951   : > { %v7705_v21 = vsub.f32 %v25738_v53, %v22402_v32  ;;  %v7797_v16 = vmul.f32 %v22680_v9, %v22680_v9 }
 0x952   : > { %v7838_v37 = vadd.f32 %v7837_v18, %v7792_v12  ;;  %v25740_v18 = vld [vmem:[#allocation50_spill] sm:$0xff]  ;;  %v7798_v61 = vmul.f32 %v22687_v38, %v22687_v38 }
 0x953   : > { %v7706_v47 = vsub.f32 %v25740_v18, %v22402_v32  ;;  %v22694_v50 = vmul.f32 %v7705_v21, %v25743_v43  ;;  %v25744_v18 = vld [vmem:[#allocation66_spill] sm:$0xff] }
 0x954   : > { %v7839_v49 = vadd.f32 %v7838_v37, %v7793_v30  ;;  %v25742_v37 = vld [vmem:[#allocation54_spill] sm:$0xff] }
 0x955   : > { %v7707_v53 = vsub.f32 %v25742_v37, %v22402_v32  ;;  %v22701_v5 = vmul.f32 %v7706_v47, %v25744_v18  ;;  %v25746_v37 = vld [vmem:[#allocation67_spill] sm:$0xff]  ;;  %v7799_v43 = vmul.f32 %v22694_v50, %v22694_v50 }
 0x956   : > { %v7840_v12 = vadd.f32 %v7839_v49, %v7794_v36  ;;  %v7708_v49 = vsub.f32 %v22350_v6, %v22402_v32  ;;  %v7710_v6 = vsub.f32 %v22354_v54, %v22402_v32 }
 0x957   : > { %25745 = vst [vmem:[#allocation56_spill] sm:$0xff] %v22701_v5  ;;  %v22708_v21 = vmul.f32 %v7707_v53, %v25746_v37  ;;  %v7800_v18 = vmul.f32 %v22701_v5, %v22701_v5 }
 0x958   : > { %v7841_v30 = vadd.f32 %v7840_v12, %v7795_v62  ;;  %v7709_v12 = vsub.f32 %v22359_v25, %v22402_v32  ;;  %v22725_v37 = vmul.f32 %v7710_v6, %v25687_v35 }
 0x959   : > { %25747 = vst [vmem:[#allocation72_spill] sm:$0xff] %v22708_v21  ;;  %v7801_v25 = vmul.f32 %v22708_v21, %v22708_v21 }
 0x95a   : > { %v7842_v36 = vadd.f32 %v7841_v30, %v7796_v22  ;;  %v25748_v30 = vld [vmem:[#allocation68_spill] sm:$0xff] }
 0x95b   : > { %v22715_v47 = vmul.f32 %v7708_v49, %v25748_v30 }
 0x95c   : > { %v7843_v62 = vadd.f32 %v7842_v36, %v7797_v16  ;;  %v22720_v36 = vmul.f32 %v7709_v12, %v25686_v23 }
 0x95d   : > { %25749 = vst [vmem:[#allocation38_spill] sm:$0xff] %v22715_v47 }
 0x95e   : > { %v7844_v22 = vadd.f32 %v7843_v62, %v7798_v61  ;;  %v7802_v61 = vmul.f32 %v22715_v47, %v22715_v47  ;;  %v7803_v32 = vmul.f32 %v22720_v36, %v22720_v36 }
 0x960   : > { %v7845_v16 = vadd.f32 %v7844_v22, %v7799_v43  ;;  %v7804_v43 = vmul.f32 %v22725_v37, %v22725_v37 }
 0x962   : > { %v7846_v53 = vadd.f32 %v7845_v16, %v7800_v18 }
 0x964   : > { %v7847_v54 = vadd.f32 %v7846_v53, %v7801_v25  ;;  %v19264_v25 = vld [vmem:[%s24995_s3] sm:$0xff]   ;;  %v19270_v53 = vld [vmem:[%s24995_s3 + $0x30] sm:$0xff]  }
 0x966   : > { %v7848_v49 = vadd.f32 %v7847_v54, %v7802_v61  ;;  %v19271_v61 = vld [vmem:[%s24995_s3 + $0x38] sm:$0xff]  }
 0x968   : > { %v7849_v62 = vadd.f32 %v7848_v49, %v7803_v32 }
 0x96a   : > { %v7850_v12 = vadd.f32 %v7849_v62, %v7804_v43 }
 0x96c   : > { %v7851_v22 = vrot.slane %v7850_v12, 4 }
 0x96e   : > { %v7852_v23 = vadd.f32 %v7851_v22, %v7850_v12 }
 0x970   : > { %v7853_v30 = vrot.slane %v7852_v23, 2 }
 0x972   : > { %v7854_v18 = vadd.f32 %v7853_v30, %v7852_v23  ;;  %v19265_v23 = vld [vmem:[%s24995_s3 + $0x8] sm:$0xff]   ;;  %v19268_v30 = vld [vmem:[%s24995_s3 + $0x20] sm:$0xff]  }
 0x974   : > { %v7855_v16 = vrot.slane %v7854_v18, 1 }
 0x976   : > { %v7856_v6 = vadd.f32 %v7855_v16, %v7854_v18  ;;  %v435_v18 = vld [vmem:[%s24996_s4 + $0x4] sm:$0x1] }
 0x978   : > { %v7857_v35 = vpack.c.bf16 %v7856_v6, %v7856_v6 }
 0x97a   : > { %v7858_v21 = vunpack.c.l.bf16 %v7857_v35 }
 0x97c   : > { %v7859_v5 = vsub.f32 %v7856_v6, %v7858_v21  ;;  %v19267_v21 = vld [vmem:[%s24995_s3 + $0x18] sm:$0xff]  }
 0x97e   : > { %v7860_v47 = vpack.c.bf16 %v7859_v5, %v7859_v5  ;;  %v19266_v5 = vld [vmem:[%s24995_s3 + $0x10] sm:$0xff]  }
 0x980   : > { %16823 = vmatmul.mubr.bf16.vlgmr.msra.gmra.mrb[12].mxu1 %v7860_v47  ;;  %v19269_v47 = vld [vmem:[%s24995_s3 + $0x28] sm:$0xff]  }
 0x981   : > { %16827 = vmatpush3.bf16.msra.mxu1 %v19264_v25  ;;  %16842 = vmatprep.mubr.msk.bf16.mxu1 %vm19494_vm0, %v25588_v31 }
 0x982   : > { %16828 = vmatprep.subr.bf16.mxu1 %v25588_v31 }
 0x985   : > { %16829 = vmatpush3.bf16.msra.mxu1 %v19265_v23 }
 0x986   : > { %16830 = vmatprep.subr.bf16.mxu1 %v25588_v31 }
 0x989   : > { %16831 = vmatpush3.bf16.msra.mxu1 %v19266_v5 }
 0x98a   : > { %16832 = vmatprep.subr.bf16.mxu1 %v25588_v31 }
 0x98d   : > { %16833 = vmatpush3.bf16.msra.mxu1 %v19267_v21 }
 0x98e   : > { %16834 = vmatprep.subr.bf16.mxu1 %v25588_v31 }
 0x991   : > { %16835 = vmatpush3.bf16.msra.mxu1 %v19268_v30  ;;  %v18545_v30 = vld [vmem:[#allocation8 + $0x48] sm:$0xff]  }
 0x992   : > { %16836 = vmatprep.subr.bf16.mxu1 %v25588_v31 }
 0x995   : > { %16837 = vmatpush3.bf16.msra.mxu1 %v19269_v47 }
 0x996   : > { %16838 = vmatprep.subr.bf16.mxu1 %v25588_v31 }
 0x999   : > { %16839 = vmatpush3.bf16.msra.mxu1 %v19270_v53 }
 0x99a   : > { %16840 = vmatprep.subr.bf16.mxu1 %v25588_v31 }
 0x99d   : > { %16841 = vmatpush3.bf16.msra.mxu1 %v19271_v61 }
 0x9a0   : > { %16843 = vmatmul.mubr.bf16.vlgmr.msra.gmra.mrb[12].mxu1 %v7857_v35 }
 0xa73   : > { %v7935_v54 = vpop.f32.mrb[12].mxu1 }
 0xa74   : > { %v16844_v32 = vpop.f32.mrb[13].mxu1  ;;  %v7941_v62 = vmul.f32 0.0009765625, %v7935_v54 }
 0xa75   : > { %v7938_v49 = vpop.f32.mrb[14].mxu1 }
 0xa76   : > { %v16845_v43 = vpop.f32.mrb[15].mxu1  ;;  %v7942_v12 = vadd.f32 1e-05, %v7941_v62  ;;  %v25752_v49 = vld [vmem:[#allocation71_spill] sm:$0xff] }
 0xa78   : > { %19026 = vrsqrt.f32 %v7942_v12 }
 0xa82   : > { %v19027_v22 = vpop.eup %19026 }
 0xa83   : > { %v7944_v16 = vmul.f32 %v19027_v22, %v435_v18  ;;  %v18553_v18 = vld [vmem:[#allocation8 + $0x218] sm:$0xff]  }
 0xa85   : > { %v22770_v31 = vrot.slane %v7944_v16, %v25613_v8  ;;  %v18544_v8 = vld [vmem:[#allocation8 + $0x40] sm:$0xff]  }
 0xa86   : > { %16846 = vmatprep.subr.bf16.mxu1 %v18544_v8 }
 0xa87   : > { %v7949_v6 = vmul.f32 %v22770_v31, %v22411_v24  ;;  %v7950_v35 = vmul.f32 %v22770_v31, %v22414_v29  ;;  %v7951_v25 = vmul.f32 %v22770_v31, %v22421_v7  ;;  %v7952_v23 = vmul.f32 %v22770_v31, %v22430_v28  ;;  %16847 = vmatpush3.bf16.msra.mxu1 %v18544_v8  ;;  %v25759_v8 = vld [vmem:[#allocation38_spill] sm:$0xff] }
 0xa88   : > { %v7953_v5 = vmul.f32 %v22770_v31, %v22435_v17  ;;  %v7954_v21 = vmul.f32 %v22770_v31, %v22442_v39  ;;  %v7955_v24 = vmul.f32 %v22770_v31, %v22449_v20  ;;  %v22788_v29 = vmul.f32 %v22770_v31, %v22456_v41  ;;  %v18547_v17 = vld [vmem:[#allocation8 + $0x200] sm:$0xff]   ;;  %16848 = vmatprep.subr.bf16.mxu1 %v18545_v30 }
 0xa89   : > { %v22792_v7 = vmul.f32 %v22770_v31, %v22463_v44  ;;  %v22796_v28 = vmul.f32 %v22770_v31, %v22470_v33  ;;  %v22800_v39 = vmul.f32 %v22770_v31, %v22477_v14  ;;  %v22804_v20 = vmul.f32 %v22770_v31, %v22484_v1  ;;  %v18549_v33 = vld [vmem:[#allocation8 + $0x208] sm:$0xff]   ;;  %17358 = vmatprep.subr.bf16.mxu0 %v18547_v17 }
 0xa8a   : > { %v22808_v41 = vmul.f32 %v22770_v31, %v22491_v26  ;;  %v22812_v44 = vmul.f32 %v22770_v31, %v22498_v56  ;;  %v22816_v47 = vmul.f32 %v22770_v31, %v22505_v19  ;;  %v22820_v14 = vmul.f32 %v22770_v31, %v22512_v58  ;;  %17359 = vmatpush3.bf16.msra.mxu0 %v18547_v17 }
 0xa8b   : > { %v22824_v1 = vmul.f32 %v22770_v31, %v22519_v27  ;;  %v22828_v26 = vmul.f32 %v22770_v31, %v22526_v60  ;;  %v22832_v56 = vmul.f32 %v22770_v31, %v22533_v10  ;;  %v22836_v19 = vmul.f32 %v22770_v31, %v22540_v4  ;;  %v18546_v27 = vld [vmem:[#allocation8 + $0x50] sm:$0xff]   ;;  %17360 = vmatprep.subr.bf16.mxu0 %v18549_v33 }
 0xa8c   : > { %v22840_v58 = vmul.f32 %v22770_v31, %v22547_v0  ;;  %v22845_v60 = vld [vmem:[%s24996_s4 + $0x5] ss:$0 sm:$0xff]  ;;  %v22849_v10 = vmul.f32 %v22770_v31, %v22554_v46  ;;  %v22853_v4 = vmul.f32 %v22770_v31, %v22561_v42  ;;  %v22857_v0 = vmul.f32 %v22770_v31, %v22568_v34  ;;  %16849 = vmatpush3.bf16.msra.mxu1 %v18545_v30 }
 0xa8d   : > { %v22861_v53 = vmul.f32 %v22770_v31, %v22575_v51  ;;  %v22865_v61 = vmul.f32 %v22770_v31, %v22582_v45  ;;  %v22869_v46 = vmul.f32 %v22770_v31, %v22589_v40  ;;  %v22873_v42 = vmul.f32 %v22770_v31, %v22596_v11  ;;  %v18551_v51 = vld [vmem:[#allocation8 + $0x210] sm:$0xff]   ;;  %16850 = vmatprep.subr.bf16.mxu1 %v18546_v27 }
 0xa8e   : > { %v22877_v34 = vmul.f32 %v22770_v31, %v22603_v13  ;;  %v22881_v54 = vmul.f32 %v22770_v31, %v22610_v2  ;;  %v22885_v45 = vmul.f32 %v22770_v31, %v22617_v52  ;;  %v22889_v40 = vmul.f32 %v22770_v31, %v22624_v15  ;;  %v18548_v15 = vld [vmem:[#allocation8 + $0x58] sm:$0xff]   ;;  %17361 = vmatpush3.bf16.msra.mxu0 %v18549_v33 }
 0xa8f   : > { %v22893_v11 = vmul.f32 %v22770_v31, %v22631_v59  ;;  %v22897_v13 = vmul.f32 %v22770_v31, %v22638_v55  ;;  %v22901_v2 = vmul.f32 %v22770_v31, %v22645_v48  ;;  %v22904_v52 = vadd.f32 %v22845_v60, %v7949_v6  ;;  %17362 = vmatprep.subr.bf16.mxu0 %v18551_v51  ;;  %v25756_v6 = vld [vmem:[#allocation56_spill] sm:$0xff] }
 0xa90   : > { %v22907_v32 = vadd.f32 %v22845_v60, %v7950_v35  ;;  %v22911_v59 = vmul.f32 %v22770_v31, %v22652_v63  ;;  %v22915_v55 = vmul.f32 %v22770_v31, %v25752_v49  ;;  %v22918_v43 = vadd.f32 %v22845_v60, %v7951_v25  ;;  %16851 = vmatpush3.bf16.msra.mxu1 %v18546_v27  ;;  %v25757_v35 = vld [vmem:[#allocation72_spill] sm:$0xff]  ;;  %v22974_v27 = vld [vmem:[#allocation2 + $0x8] sm:$0xf] }
 0xa91   : > { %25750 = vst [vmem:[#allocation74_spill] sm:$0xff] %v22904_v52  ;;  %v22921_v48 = vadd.f32 %v22845_v60, %v7952_v23  ;;  %v22925_v62 = vmul.f32 %v22770_v31, %v22666_v57  ;;  %v22929_v12 = vmul.f32 %v22770_v31, %v22673_v3  ;;  %v22933_v63 = vmul.f32 %v22770_v31, %v22680_v9 }
 0xa92   : > { %25751 = vst [vmem:[#allocation73_spill] sm:$0xff] %v22907_v32  ;;  %25753 = vst [vmem:[#allocation76_spill] sm:$0xff] %v22918_v43  ;;  %v22936_v22 = vadd.f32 %v22845_v60, %v7953_v5  ;;  %v22940_v16 = vmul.f32 %v22770_v31, %v22687_v38  ;;  %v22944_v57 = vmul.f32 %v22770_v31, %v22694_v50  ;;  %v8047_v38 = vsub.f32 0.0, %v22904_v52  ;;  %v18550_v5 = vld [vmem:[#allocation8 + $0x60] sm:$0xff]  }
 0xa93   : > { %25754 = vst [vmem:[#allocation75_spill] sm:$0xff] %v22921_v48  ;;  %v22948_v3 = vmul.f32 %v22770_v31, %v25756_v6  ;;  %v22951_v9 = vadd.f32 %v22845_v60, %v7954_v21  ;;  %v22955_v25 = vmul.f32 %v22770_v31, %v25757_v35  ;;  %v22958_v23 = vadd.f32 %v22845_v60, %v7955_v24  ;;  %v22972_v24 = vld [vmem:[#allocation2 + $0x4] sm:$0xf] }
 0xa94   : > { %25755 = vst [vmem:[#allocation80_spill] sm:$0xff] %v22936_v22  ;;  %v8048_v50 = vsub.f32 0.0, %v22907_v32  ;;  %16852 = vmatprep.subr.bf16.mxu1 %v18548_v15  ;;  %v22964_v30 = vmul.f32 %v22770_v31, %v25759_v8  ;;  %v22968_v21 = vadd.f32 %v22845_v60, %v22788_v29  ;;  %v8049_v17 = vsub.f32 0.0, %v22918_v43  ;;  %17363 = vmatpush3.bf16.msra.mxu0 %v18551_v51  ;;  %v18555_v51 = vld [vmem:[#allocation8 + $0x220] sm:$0xff]   ;;  %v18552_v43 = vld [vmem:[#allocation8 + $0x68] sm:$0xff]  }
 0xa95   : > { %25758 = vst [vmem:[#allocation78_spill] sm:$0xff] %v22958_v23  ;;  %v8050_v33 = vsub.f32 0.0, %v22921_v48  ;;  %v22978_v49 = vmul.f32 %v22770_v31, %v22720_v36  ;;  %v22982_v6 = vmul.f32 %v22770_v31, %v22725_v37  ;;  %v22986_v29 = vadd.f32 %v22845_v60, %v22792_v7  ;;  %17364 = vmatprep.subr.bf16.mxu0 %v18553_v18 }
 0xa96   : > { %25760 = vst [vmem:[#allocation77_spill] sm:$0xff] %v22968_v21  ;;  %v8051_v35 = vsub.f32 0.0, %v22936_v22  ;;  %v22991_v8 = vadd.f32 %v22845_v60, %v22796_v28  ;;  %v22995_v36 = vadd.f32 %v22845_v60, %v22800_v39  ;;  %v22999_v37 = vadd.f32 %v22845_v60, %v22804_v20  ;;  %16853 = vmatpush3.bf16.msra.mxu1 %v18548_v15 }
 0xa97   : > { %v8052_v31 = vsub.f32 0.0, %v22951_v9  ;;  %v8053_v7 = vsub.f32 0.0, %v22958_v23  ;;  %v8094_v22 = vmul.f32 1.442695, %v8047_v38  ;;  %v8096_v48 = vmul.f32 1.442695, %v8048_v50  ;;  %16854 = vmatprep.subr.bf16.mxu1 %v18550_v5 }
 0xa98   : > { %v14771_v28 = vcombine.low %v22972_v24, %v22974_v27  ;;  %v23007_v39 = vadd.f32 %v22845_v60, %v22808_v41  ;;  %v8054_v32 = vsub.f32 0.0, %v22968_v21  ;;  %v8098_v20 = vmul.f32 1.442695, %v8049_v17  ;;  %17365 = vmatpush3.bf16.msra.mxu0 %v18553_v18  ;;  %v18557_v23 = vld [vmem:[#allocation8 + $0x228] sm:$0xff]  }
 0xa99   : > { %v8100_v52 = vmul.f32 1.442695, %v8050_v33  ;;  %v23012_v15 = vadd.f32 %v22845_v60, %v22812_v44  ;;  %v8055_v38 = vsub.f32 0.0, %v22986_v29  ;;  %v8102_v50 = vmul.f32 1.442695, %v8051_v35  ;;  %17366 = vmatprep.subr.bf16.mxu0 %v18555_v51 }
 0xa9a   : > { %19028 = vpow2.f32 %v8094_v22  ;;  %16862 = vmatprep.mubr.bf16.mxu1 %v14771_v28  ;;  %v23017_v41 = vadd.f32 %v22845_v60, %v22816_v47  ;;  %v8056_v21 = vsub.f32 0.0, %v22991_v8  ;;  %v8104_v17 = vmul.f32 1.442695, %v8052_v31  ;;  %16855 = vmatpush3.bf16.msra.mxu1 %v18550_v5  ;;  %v18554_v22 = vld [vmem:[#allocation8 + $0x70] sm:$0xff]  }
 0xa9b   : > { %19030 = vpow2.f32 %v8096_v48  ;;  %v23022_v44 = vadd.f32 %v22845_v60, %v22820_v14  ;;  %v8057_v18 = vsub.f32 0.0, %v22995_v36  ;;  %v8106_v33 = vmul.f32 1.442695, %v8053_v7  ;;  %16856 = vmatprep.subr.bf16.mxu1 %v18552_v43  ;;  %v18563_v31 = vld [vmem:[#allocation8 + $0x230] sm:$0xff]  }
 0xa9c   : > { %19032 = vpow2.f32 %v8098_v20  ;;  %v23027_v35 = vadd.f32 %v22845_v60, %v22824_v1  ;;  %v8058_v47 = vsub.f32 0.0, %v22999_v37  ;;  %v8108_v28 = vmul.f32 1.442695, %v8054_v32  ;;  %17367 = vmatpush3.bf16.msra.mxu0 %v18555_v51  ;;  %v18556_v51 = vld [vmem:[#allocation8 + $0x78] sm:$0xff]  }
 0xa9d   : > { %19034 = vpow2.f32 %v8100_v52  ;;  %v23032_v48 = vadd.f32 %v22845_v60, %v22828_v26  ;;  %v8059_v14 = vsub.f32 0.0, %v23007_v39  ;;  %v8110_v5 = vmul.f32 1.442695, %v8055_v38  ;;  %17368 = vmatprep.subr.bf16.mxu0 %v18557_v23 }
 0xa9e   : > { %19036 = vpow2.f32 %v8102_v50  ;;  %v23037_v7 = vadd.f32 %v22845_v60, %v22832_v56  ;;  %v8060_v1 = vsub.f32 0.0, %v23012_v15  ;;  %v8112_v20 = vmul.f32 1.442695, %v8056_v21  ;;  %16857 = vmatpush3.bf16.msra.mxu1 %v18552_v43 }
 0xa9f   : > { %19038 = vpow2.f32 %v8104_v17  ;;  %v23042_v52 = vadd.f32 %v22845_v60, %v22836_v19  ;;  %v8061_v26 = vsub.f32 0.0, %v23017_v41  ;;  %v8114_v32 = vmul.f32 1.442695, %v8057_v18  ;;  %16858 = vmatprep.subr.bf16.mxu1 %v18554_v22  ;;  %v18566_v17 = vld [vmem:[#allocation8 + $0x238] sm:$0xff]  }
 0xaa0   : > { %25761 = vst [vmem:[#allocation81_spill] sm:$0xff] %v23037_v7  ;;  %19040 = vpow2.f32 %v8106_v33  ;;  %v23047_v38 = vadd.f32 %v22845_v60, %v22840_v58  ;;  %v8062_v56 = vsub.f32 0.0, %v23022_v44  ;;  %v8116_v50 = vmul.f32 1.442695, %v8058_v47  ;;  %17369 = vmatpush3.bf16.msra.mxu0 %v18557_v23 }
 0xaa1   : > { %25762 = vst [vmem:[#allocation25_spill] sm:$0xff] %v23042_v52  ;;  %19042 = vpow2.f32 %v8108_v28  ;;  %v23052_v43 = vadd.f32 %v22845_v60, %v22849_v10  ;;  %v8063_v19 = vsub.f32 0.0, %v23027_v35  ;;  %v8118_v21 = vmul.f32 1.442695, %v8059_v14  ;;  %17370 = vmatprep.subr.bf16.mxu0 %v18563_v31  ;;  %v23067_v14 = vld [vmem:[#allocation8] sm:$0xff]  }
 0xaa2   : > { %25763 = vst [vmem:[#allocation82_spill] sm:$0xff] %v23047_v38  ;;  %19044 = vpow2.f32 %v8110_v5  ;;  %v23057_v18 = vadd.f32 %v22845_v60, %v22853_v4  ;;  %v8064_v58 = vsub.f32 0.0, %v23032_v48  ;;  %v8120_v33 = vmul.f32 1.442695, %v8060_v1  ;;  %16859 = vmatpush3.bf16.msra.mxu1 %v18554_v22  ;;  %25767 = vst [vmem:[#allocation86_spill] sm:$0xff] %v23067_v14 }
 0xaa3   : > { %25764 = vst [vmem:[#allocation84_spill] sm:$0xff] %v23052_v43  ;;  %19046 = vpow2.f32 %v8112_v20  ;;  %v23064_v10 = vadd.f32 %v22845_v60, %v22857_v0  ;;  %v8065_v47 = vsub.f32 0.0, %v23037_v7  ;;  %v8122_v28 = vmul.f32 1.442695, %v8061_v26  ;;  %16860 = vmatprep.subr.bf16.mxu1 %v18556_v51  ;;  %v23083_v7 = vld [vmem:[#allocation2 + $0xc] sm:$0xf] }
 0xaa4   : > { %25765 = vst [vmem:[#allocation83_spill] sm:$0xff] %v23057_v18  ;;  %v23060_v23 = vpop.eup %19028  ;;  %19048 = vpow2.f32 %v8114_v32  ;;  %v23073_v5 = vadd.f32 %v22845_v60, %v22861_v53  ;;  %v8066_v22 = vsub.f32 0.0, %v23042_v52  ;;  %v8124_v1 = vmul.f32 1.442695, %v8062_v56  ;;  %17371 = vmatpush3.bf16.msra.mxu0 %v18563_v31 }
 0xaa5   : > { %25766 = vst [vmem:[#allocation85_spill] sm:$0xff] %v23064_v10  ;;  %v23069_v4 = vpop.eup %19030  ;;  %19050 = vpow2.f32 %v8116_v50  ;;  %v23080_v20 = vadd.f32 %v22845_v60, %v22865_v61  ;;  %v8067_v26 = vsub.f32 0.0, %v23047_v38  ;;  %v8126_v32 = vmul.f32 1.442695, %v8063_v19  ;;  %17372 = vmatprep.subr.bf16.mxu0 %v18566_v17 }
 0xaa6   : > { %25768 = vst [vmem:[#allocation88_spill] sm:$0xff] %v23073_v5  ;;  %v23076_v0 = vpop.eup %19032  ;;  %19052 = vpow2.f32 %v8118_v21  ;;  %v23089_v56 = vadd.f32 %v22845_v60, %v22869_v46  ;;  %v8068_v31 = vsub.f32 0.0, %v23052_v43  ;;  %v8128_v50 = vmul.f32 1.442695, %v8064_v58  ;;  %16861 = vmatpush3.bf16.msra.mxu1 %v18556_v51 }
 0xaa7   : > { %25769 = vst [vmem:[#allocation87_spill] sm:$0xff] %v23080_v20  ;;  %v23085_v53 = vpop.eup %19034  ;;  %19054 = vpow2.f32 %v8120_v33  ;;  %v23096_v19 = vadd.f32 %v22845_v60, %v22873_v42  ;;  %v8069_v21 = vsub.f32 0.0, %v23057_v18  ;;  %v8130_v38 = vmul.f32 1.442695, %v8065_v47  ;;  %16910 = vmatprep.subr.bf16.mxu1 %v23067_v14 }
 0xaa8   : > { %25770 = vst [vmem:[#allocation89_spill] sm:$0xff] %v23089_v56  ;;  %v23092_v61 = vpop.eup %19036  ;;  %19056 = vpow2.f32 %v8122_v28  ;;  %v8070_v46 = vsub.f32 0.0, %v23064_v10  ;;  %v8132_v43 = vmul.f32 1.442695, %v8066_v22  ;;  %v23105_v51 = vcombine.low %v22974_v27, %v23083_v7  ;;  %17373 = vmatpush3.bf16.msra.mxu0 %v18566_v17 }
 0xaa9   : > { %25771 = vst [vmem:[#allocation90_spill] sm:$0xff] %v23096_v19  ;;  %v23100_v52 = vpop.eup %19038  ;;  %19058 = vpow2.f32 %v8124_v1  ;;  %v23111_v42 = vadd.f32 %v22845_v60, %v22877_v34  ;;  %v8071_v33 = vsub.f32 0.0, %v23073_v5  ;;  %v8134_v47 = vmul.f32 1.442695, %v8067_v26 }
 0xaaa   : > { %v23107_v58 = vpop.eup %19040  ;;  %19060 = vpow2.f32 %v8126_v32  ;;  %v23118_v22 = vadd.f32 %v22845_v60, %v22881_v54  ;;  %v8072_v27 = vsub.f32 0.0, %v23080_v20  ;;  %v8136_v1 = vmul.f32 1.442695, %v8068_v31 }
 0xaab   : > { %25772 = vst [vmem:[#allocation92_spill] sm:$0xff] %v23111_v42  ;;  %v23114_v28 = vpop.eup %19042  ;;  %19062 = vpow2.f32 %v8128_v50  ;;  %v23125_v34 = vadd.f32 %v22845_v60, %v22885_v45  ;;  %v8073_v5 = vsub.f32 0.0, %v23089_v56  ;;  %v8138_v26 = vmul.f32 1.442695, %v8069_v21 }
 0xaac   : > { %25773 = vst [vmem:[#allocation91_spill] sm:$0xff] %v23118_v22  ;;  %v23121_v17 = vpop.eup %19044  ;;  %19064 = vpow2.f32 %v8130_v38  ;;  %v23132_v54 = vadd.f32 %v22845_v60, %v22889_v40  ;;  %v8074_v20 = vsub.f32 0.0, %v23096_v19  ;;  %v8140_v31 = vmul.f32 1.442695, %v8070_v46 }
 0xaad   : > { %25774 = vst [vmem:[#allocation93_spill] sm:$0xff] %v23125_v34  ;;  %v23128_v32 = vpop.eup %19046  ;;  %19066 = vpow2.f32 %v8132_v43  ;;  %v23139_v45 = vadd.f32 %v22845_v60, %v22893_v11  ;;  %v8075_v56 = vsub.f32 0.0, %v23111_v42  ;;  %v8142_v21 = vmul.f32 1.442695, %v8071_v33 }
 0xaae   : > { %25775 = vst [vmem:[#allocation94_spill] sm:$0xff] %v23132_v54  ;;  %v23135_v50 = vpop.eup %19048  ;;  %19068 = vpow2.f32 %v8134_v47  ;;  %v23146_v40 = vadd.f32 %v22845_v60, %v22897_v13  ;;  %v8076_v19 = vsub.f32 0.0, %v23118_v22  ;;  %v8144_v46 = vmul.f32 1.442695, %v8072_v27 }
 0xaaf   : > { %25776 = vst [vmem:[#allocation96_spill] sm:$0xff] %v23139_v45  ;;  %v23142_v38 = vpop.eup %19050  ;;  %19070 = vpow2.f32 %v8136_v1  ;;  %v23153_v11 = vadd.f32 %v22845_v60, %v22901_v2  ;;  %v8077_v42 = vsub.f32 0.0, %v23125_v34  ;;  %v8146_v33 = vmul.f32 1.442695, %v8073_v5 }
 0xab0   : > { %25777 = vst [vmem:[#allocation95_spill] sm:$0xff] %v23146_v40  ;;  %v23149_v43 = vpop.eup %19052  ;;  %19072 = vpow2.f32 %v8138_v26  ;;  %v23160_v13 = vadd.f32 %v22845_v60, %v22911_v59  ;;  %v8078_v22 = vsub.f32 0.0, %v23132_v54  ;;  %v8148_v27 = vmul.f32 1.442695, %v8074_v20 }
 0xab1   : > { %25778 = vst [vmem:[#allocation97_spill] sm:$0xff] %v23153_v11  ;;  %v23156_v47 = vpop.eup %19054  ;;  %19074 = vpow2.f32 %v8140_v31  ;;  %v23167_v2 = vadd.f32 %v22845_v60, %v22915_v55  ;;  %v8079_v34 = vsub.f32 0.0, %v23139_v45  ;;  %v8150_v5 = vmul.f32 1.442695, %v8075_v56 }
 0xab2   : > { %25779 = vst [vmem:[#allocation98_spill] sm:$0xff] %v23160_v13  ;;  %v23163_v1 = vpop.eup %19056  ;;  %19076 = vpow2.f32 %v8142_v21  ;;  %v23174_v59 = vadd.f32 %v22845_v60, %v22925_v62  ;;  %v8080_v54 = vsub.f32 0.0, %v23146_v40  ;;  %v8152_v20 = vmul.f32 1.442695, %v8076_v19 }
 0xab3   : > { %25780 = vst [vmem:[#allocation40_spill] sm:$0xff] %v23167_v2  ;;  %v23170_v26 = vpop.eup %19058  ;;  %19078 = vpow2.f32 %v8144_v46  ;;  %v23181_v55 = vadd.f32 %v22845_v60, %v22929_v12  ;;  %v8081_v45 = vsub.f32 0.0, %v23153_v11  ;;  %v8154_v56 = vmul.f32 1.442695, %v8077_v42 }
 0xab4   : > { %25781 = vst [vmem:[#allocation99_spill] sm:$0xff] %v23174_v59  ;;  %v23177_v31 = vpop.eup %19060  ;;  %19080 = vpow2.f32 %v8146_v33  ;;  %v23188_v62 = vadd.f32 %v22845_v60, %v22933_v63  ;;  %v8082_v40 = vsub.f32 0.0, %v23160_v13  ;;  %v8156_v19 = vmul.f32 1.442695, %v8078_v22 }
 0xab5   : > { %25782 = vst [vmem:[#allocation44_spill] sm:$0xff] %v23181_v55  ;;  %v23184_v21 = vpop.eup %19062  ;;  %19082 = vpow2.f32 %v8148_v27  ;;  %v23195_v12 = vadd.f32 %v22845_v60, %v22940_v16  ;;  %v8083_v11 = vsub.f32 0.0, %v23167_v2  ;;  %v8158_v42 = vmul.f32 1.442695, %v8079_v34 }
 0xab6   : > { %25783 = vst [vmem:[#allocation42_spill] sm:$0xff] %v23188_v62  ;;  %v23191_v46 = vpop.eup %19064  ;;  %19084 = vpow2.f32 %v8150_v5  ;;  %v23202_v63 = vadd.f32 %v22845_v60, %v22944_v57  ;;  %v8084_v13 = vsub.f32 0.0, %v23174_v59  ;;  %v8160_v22 = vmul.f32 1.442695, %v8080_v54 }
 0xab7   : > { %25784 = vst [vmem:[#allocation46_spill] sm:$0xff] %v23195_v12  ;;  %v23198_v33 = vpop.eup %19066  ;;  %19086 = vpow2.f32 %v8152_v20  ;;  %v23209_v16 = vadd.f32 %v22845_v60, %v22948_v3  ;;  %v8085_v2 = vsub.f32 0.0, %v23181_v55  ;;  %v8162_v34 = vmul.f32 1.442695, %v8081_v45 }
 0xab8   : > { %25785 = vst [vmem:[#allocation48_spill] sm:$0xff] %v23202_v63  ;;  %v23205_v27 = vpop.eup %19068  ;;  %19088 = vpow2.f32 %v8154_v56  ;;  %v23216_v57 = vadd.f32 %v22845_v60, %v22955_v25  ;;  %v8086_v59 = vsub.f32 0.0, %v23188_v62  ;;  %v8164_v54 = vmul.f32 1.442695, %v8082_v40 }
 0xab9   : > { %25786 = vst [vmem:[#allocation52_spill] sm:$0xff] %v23209_v16  ;;  %v23212_v5 = vpop.eup %19070  ;;  %19090 = vpow2.f32 %v8156_v19  ;;  %v23223_v3 = vadd.f32 %v22845_v60, %v22964_v30  ;;  %v8087_v55 = vsub.f32 0.0, %v23195_v12  ;;  %v8166_v45 = vmul.f32 1.442695, %v8083_v11 }
 0xaba   : > { %25787 = vst [vmem:[#allocation79_spill] sm:$0xff] %v23216_v57  ;;  %v23219_v20 = vpop.eup %19072  ;;  %19092 = vpow2.f32 %v8158_v42  ;;  %v23230_v25 = vadd.f32 %v22845_v60, %v22978_v49  ;;  %v8088_v62 = vsub.f32 0.0, %v23202_v63  ;;  %v8168_v40 = vmul.f32 1.442695, %v8084_v13 }
 0xabb   : > { %25788 = vst [vmem:[#allocation50_spill] sm:$0xff] %v23223_v3  ;;  %v23226_v56 = vpop.eup %19074  ;;  %19094 = vpow2.f32 %v8160_v22  ;;  %v23237_v30 = vadd.f32 %v22845_v60, %v22982_v6  ;;  %v8089_v12 = vsub.f32 0.0, %v23209_v16  ;;  %v8170_v11 = vmul.f32 1.442695, %v8085_v2 }
 0xabc   : > { %25789 = vst [vmem:[#allocation54_spill] sm:$0xff] %v23230_v25  ;;  %v23233_v19 = vpop.eup %19076  ;;  %19096 = vpow2.f32 %v8162_v34  ;;  %v8090_v10 = vsub.f32 0.0, %v23216_v57  ;;  %v8172_v49 = vmul.f32 1.442695, %v8086_v59  ;;  %v8091_v13 = vsub.f32 0.0, %v23223_v3 }
 0xabd   : > { %25790 = vst [vmem:[#allocation71_spill] sm:$0xff] %v23237_v30  ;;  %v23240_v42 = vpop.eup %19078  ;;  %19098 = vpow2.f32 %v8164_v54  ;;  %v8174_v22 = vmul.f32 1.442695, %v8087_v55  ;;  %v8092_v60 = vsub.f32 0.0, %v23230_v25  ;;  %v8176_v6 = vmul.f32 1.442695, %v8088_v62 }
 0xabe   : > { %v23243_v18 = vpop.eup %19080  ;;  %19100 = vpow2.f32 %v8166_v45  ;;  %v8093_v34 = vsub.f32 0.0, %v23237_v30  ;;  %v8178_v16 = vmul.f32 1.442695, %v8089_v12  ;;  %v8612_v59 = vld [vmem:[#allocation2] sm:$0x8] }
 0xabf   : > { %v23246_v63 = vpop.eup %19082  ;;  %19102 = vpow2.f32 %v8168_v40  ;;  %v8180_v57 = vmul.f32 1.442695, %v8090_v10  ;;  %v8182_v55 = vmul.f32 1.442695, %v8091_v13  ;;  %v8184_v25 = vmul.f32 1.442695, %v8092_v60 }
 0xac0   : > { %v23249_v2 = vpop.eup %19084  ;;  %19104 = vpow2.f32 %v8170_v11  ;;  %v14803_v62 = vcombine.low %v8612_v59, %v22972_v24  ;;  %v8186_v30 = vmul.f32 1.442695, %v8093_v34  ;;  %v8188_v10 = vadd.f32 1.0, %v23060_v23 }
 0xac1   : > { %v23252_v54 = vpop.eup %19086  ;;  %19106 = vpow2.f32 %v8172_v49  ;;  %v8189_v49 = vadd.f32 1.0, %v23069_v4  ;;  %v8190_v13 = vadd.f32 1.0, %v23076_v0  ;;  %v8192_v24 = vadd.f32 1.0, %v23092_v61 }
 0xac2   : > { %v23254_v3 = vpop.eup %19088  ;;  %19108 = vpow2.f32 %v8174_v22  ;;  %v8191_v22 = vadd.f32 1.0, %v23085_v53  ;;  %v8194_v23 = vadd.f32 1.0, %v23107_v58  ;;  %v9137_v34 = vshll.u32 %v14803_v62, 16 }
 0xac3   : > { %v23256_v45 = vpop.eup %19090  ;;  %19110 = vpow2.f32 %v8176_v6  ;;  %v9134_v6 = vshrl.u32 %v14803_v62, 16  ;;  %v9142_v4 = vshrl.u32 %v23105_v51, 16  ;;  %v8195_v0 = vadd.f32 1.0, %v23114_v28 }
 0xac4   : > { %v23259_v40 = vpop.eup %19092  ;;  %19112 = vpow2.f32 %v8178_v16  ;;  %v8193_v16 = vadd.f32 1.0, %v23100_v52  ;;  %v8196_v53 = vadd.f32 1.0, %v23121_v17  ;;  %v9145_v61 = vshll.u32 %v23105_v51, 16 }
 0xac5   : > { %v23261_v12 = vpop.eup %19094  ;;  %19114 = vpow2.f32 %v8180_v57  ;;  %v8197_v52 = vadd.f32 1.0, %v23128_v32  ;;  %v8199_v58 = vadd.f32 1.0, %v23142_v38  ;;  %v8200_v62 = vadd.f32 1.0, %v23149_v43 }
 0xac6   : > { %v23264_v11 = vpop.eup %19096  ;;  %19116 = vpow2.f32 %v8182_v55  ;;  %v8201_v28 = vadd.f32 1.0, %v23156_v47  ;;  %v8202_v17 = vadd.f32 1.0, %v23163_v1  ;;  %v8203_v51 = vadd.f32 1.0, %v23170_v26 }
 0xac7   : > { %v23269_v60 = vpop.eup %19098  ;;  %19118 = vpow2.f32 %v8184_v25  ;;  %v23296_v32 = vadd.f32 1.0, %v23177_v31  ;;  %v23304_v43 = vadd.f32 1.0, %v23191_v46  ;;  %v23307_v47 = vadd.f32 1.0, %v23198_v33 }
 0xac8   : > { %v23273_v57 = vpop.eup %19100  ;;  %19120 = vpow2.f32 %v8186_v30  ;;  %v8198_v30 = vadd.f32 1.0, %v23135_v50  ;;  %v23299_v50 = vadd.f32 1.0, %v23184_v21  ;;  %v23310_v1 = vadd.f32 1.0, %v23205_v27 }
 0xac9   : > { %v23277_v59 = vpop.eup %19102  ;;  %19122 = vrcp.f32 %v8188_v10  ;;  %v23315_v31 = vadd.f32 1.0, %v23212_v5  ;;  %v9136_v21 = vrot.slane %v9134_v6, 3  ;;  %v23320_v46 = vadd.f32 1.0, %v23219_v20 }
 0xaca   : > { %v23282_v25 = vpop.eup %19104  ;;  %19124 = vrcp.f32 %v8189_v49  ;;  %v9139_v49 = vrot.slane %v9137_v34, 4  ;;  %v9144_v33 = vrot.slane %v9142_v4, 3  ;;  %v23325_v27 = vadd.f32 1.0, %v23226_v56 }
 0xacb   : > { %v23287_v55 = vpop.eup %19106  ;;  %19126 = vrcp.f32 %v8190_v13  ;;  %v23333_v6 = vadd.f32 1.0, %v23240_v42  ;;  %v23336_v20 = vadd.f32 1.0, %v23243_v18  ;;  %v23343_v56 = vadd.f32 1.0, %v23246_v63 }
 0xacc   : > { %v23292_v10 = vpop.eup %19108  ;;  %19128 = vrcp.f32 %v8191_v22  ;;  %v9147_v22 = vrot.slane %v9145_v61, 4  ;;  %v9140_v5 = vor.u32 %v9139_v49, %v9136_v21  ;;  %v23349_v4 = vadd.f32 1.0, %v23252_v54  ;;  %v25793_v61 = vld [vmem:[#allocation74_spill] sm:$0xff] }
 0xacd   : > { %v23301_v38 = vpop.eup %19110  ;;  %19130 = vrcp.f32 %v8192_v24  ;;  %v23328_v24 = vadd.f32 1.0, %v23233_v19  ;;  %v23346_v19 = vadd.f32 1.0, %v23249_v2  ;;  %v23355_v18 = vadd.f32 1.0, %v23256_v45 }
 0xace   : > { %v23312_v26 = vpop.eup %19112  ;;  %19132 = vrcp.f32 %v8193_v16  ;;  %v23362_v2 = vadd.f32 1.0, %v23259_v40  ;;  %v23365_v54 = vadd.f32 1.0, %v23261_v12  ;;  %v23369_v21 = vadd.f32 1.0, %v23264_v11  ;;  %v25795_v12 = vld [vmem:[#allocation76_spill] sm:$0xff]  ;;  %v25797_v11 = vld [vmem:[#allocation75_spill] sm:$0xff] }
 0xacf   : > { %v23317_v13 = vpop.eup %19114  ;;  %19134 = vrcp.f32 %v8194_v23  ;;  %v23338_v23 = vor.u32 %v9147_v22, %v9144_v33  ;;  %v23372_v45 = vadd.f32 1.0, %v23269_v60  ;;  %v23376_v40 = vadd.f32 1.0, %v23273_v57  ;;  %v25799_v57 = vld [vmem:[#allocation80_spill] sm:$0xff] }
 0xad0   : > { %v23322_v14 = vpop.eup %19116  ;;  %19136 = vrcp.f32 %v8195_v0  ;;  %v23352_v0 = vadd.f32 1.0, %v23254_v3 }
 0xad1   : > { %v23330_v16 = vpop.eup %19118  ;;  %19138 = vrcp.f32 %v8196_v53  ;;  %25791 = vst [vmem:[#allocation56_spill] sm:$0xff] %v23338_v23  ;;  %v23359_v53 = vsel %vm2388_vm1, %v9140_v5, %v23338_v23 }
 0xad2   : > { %v23340_v34 = vpop.eup %19120  ;;  %19140 = vrcp.f32 %v8197_v52  ;;  %25792 = vst [vmem:[#allocation72_spill] sm:$0xff] %v23359_v53  ;;  %v25798_v53 = vld [vmem:[#allocation15_spill] sm:$0xff] }
 0xad3   : > { %v19123_v42 = vpop.eup %19122  ;;  %19142 = vrcp.f32 %v8198_v30  ;;  %v25794_v30 = vld [vmem:[#allocation73_spill] sm:$0xff] }
 0xad4   : > { %v19125_v63 = vpop.eup %19124  ;;  %19144 = vrcp.f32 %v8199_v58  ;;  %v8282_v52 = vmul.f32 %v19123_v42, %v25793_v61  ;;  %v25796_v58 = vld [vmem:[#allocation13_spill] sm:$0xff]  ;;  %v23381_v61 = vadd.f32 1.0, %v23277_v59 }
 0xad5   : > { %v19127_v3 = vpop.eup %19126  ;;  %19146 = vrcp.f32 %v8200_v62  ;;  %v8283_v49 = vmul.f32 %v19125_v63, %v25794_v30  ;;  %v23386_v63 = vadd.f32 1.0, %v23282_v25  ;;  %v25800_v30 = vld [vmem:[#allocation14_spill] sm:$0xff] }
 0xad6   : > { %v19129_v33 = vpop.eup %19128  ;;  %19148 = vrcp.f32 %v8201_v28  ;;  %v8284_v22 = vmul.f32 %v19127_v3, %v25795_v12  ;;  %v8329_v5 = vmul.f32 %v8282_v52, %v25796_v58  ;;  %v25801_v52 = vld [vmem:[#allocation16_spill] sm:$0xff]  ;;  %v25802_v25 = vld [vmem:[#allocation78_spill] sm:$0xff] }
 0xad7   : > { %v19131_v42 = vpop.eup %19130  ;;  %19150 = vrcp.f32 %v8202_v17  ;;  %v8285_v60 = vmul.f32 %v19129_v33, %v25797_v11  ;;  %v8330_v62 = vmul.f32 %v8283_v49, %v25798_v53  ;;  %v23394_v53 = vadd.f32 1.0, %v23287_v55  ;;  %v25803_v49 = vld [vmem:[#allocation17_spill] sm:$0xff] }
 0xad8   : > { %v19133_v23 = vpop.eup %19132  ;;  %19152 = vrcp.f32 %v8203_v51  ;;  %v8286_v28 = vmul.f32 %v19131_v42, %v25799_v57  ;;  %v8331_v3 = vmul.f32 %v8284_v22, %v25800_v30  ;;  %v25804_v22 = vld [vmem:[#allocation77_spill] sm:$0xff]  ;;  %v25805_v57 = vld [vmem:[#allocation18_spill] sm:$0xff]  ;;  %v25807_v30 = vld [vmem:[#allocation20_spill] sm:$0xff] }
 0xad9   : > { %v19135_v12 = vpop.eup %19134  ;;  %19154 = vrcp.f32 %v23296_v32  ;;  %v8287_v59 = vmul.f32 %v19133_v23, %v22951_v9  ;;  %v8332_v17 = vmul.f32 %v8285_v60, %v25801_v52  ;;  %v15275_v58 = vpack.c.bf16 %v8330_v62, %v8329_v5 }
 0xada   : > { %v19137_v33 = vpop.eup %19136  ;;  %19156 = vrcp.f32 %v23299_v50  ;;  %v8288_v51 = vmul.f32 %v19135_v12, %v25802_v25  ;;  %v8333_v42 = vmul.f32 %v8286_v28, %v25803_v49  ;;  %v23403_v60 = vadd.f32 1.0, %v23292_v10  ;;  %v25806_v50 = vld [vmem:[#allocation19_spill] sm:$0xff] }
 0xadb   : > { %v19139_v11 = vpop.eup %19138  ;;  %19158 = vrcp.f32 %v23304_v43  ;;  %v8289_v32 = vmul.f32 %v19137_v33, %v25804_v22  ;;  %v8334_v9 = vmul.f32 %v8287_v59, %v25805_v57  ;;  %v15280_v23 = vpack.c.bf16 %v8332_v17, %v8331_v3  ;;  %15410 = vst [vmem:[#allocation2 + $0x10] sm:$0xff] %v15275_v58  }
 0xadc   : > { %v19141_v5 = vpop.eup %19140  ;;  %19160 = vrcp.f32 %v23307_v47  ;;  %v8290_v55 = vmul.f32 %v19139_v11, %v22986_v29  ;;  %v8335_v62 = vmul.f32 %v8288_v51, %v25806_v50  ;;  %v23412_v52 = vadd.f32 1.0, %v23301_v38  ;;  %v25808_v29 = vld [vmem:[#allocation21_spill] sm:$0xff]  ;;  %v25814_v50 = vld [vmem:[#allocation28_spill] sm:$0xff] }
 0xadd   : > { %v19143_v28 = vpop.eup %19142  ;;  %19162 = vrcp.f32 %v23310_v1  ;;  %v8291_v43 = vmul.f32 %v19141_v5, %v22991_v8  ;;  %v8336_v12 = vmul.f32 %v8289_v32, %v25807_v30  ;;  %v15285_v59 = vpack.c.bf16 %v8334_v9, %v8333_v42  ;;  %15411 = vst [vmem:[#allocation2 + $0x18] sm:$0xff] %v15280_v23   ;;  %v25809_v8 = vld [vmem:[#allocation22_spill] sm:$0xff]  ;;  %v25813_v23 = vld [vmem:[#allocation27_spill] sm:$0xff] }
 0xade   : > { %v19145_v3 = vpop.eup %19144  ;;  %19164 = vrcp.f32 %v23315_v31  ;;  %v8292_v10 = vmul.f32 %v19143_v28, %v22995_v36  ;;  %v8337_v47 = vmul.f32 %v8290_v55, %v25808_v29  ;;  %v23421_v51 = vadd.f32 1.0, %v23312_v26  ;;  %v25810_v36 = vld [vmem:[#allocation23_spill] sm:$0xff]  ;;  %v25812_v32 = vld [vmem:[#allocation26_spill] sm:$0xff] }
 0xadf   : > { %v19147_v17 = vpop.eup %19146  ;;  %19166 = vrcp.f32 %v23320_v46  ;;  %v8293_v1 = vmul.f32 %v19145_v3, %v22999_v37  ;;  %v8338_v58 = vmul.f32 %v8291_v43, %v25809_v8  ;;  %v15290_v33 = vpack.c.bf16 %v8336_v12, %v8335_v62  ;;  %15412 = vst [vmem:[#allocation2 + $0x20] sm:$0xff] %v15285_v59   ;;  %v25811_v37 = vld [vmem:[#allocation24_spill] sm:$0xff] }
 0xae0   : > { %v19149_v25 = vpop.eup %19148  ;;  %19168 = vrcp.f32 %v23325_v27  ;;  %v8294_v38 = vmul.f32 %v19147_v17, %v23007_v39  ;;  %v8339_v31 = vmul.f32 %v8292_v10, %v25810_v36  ;;  %v18575_v43 = vld [vmem:[#allocation8 + $0x8] sm:$0xff]   ;;  %v25817_v10 = vld [vmem:[#allocation30_spill] sm:$0xff] }
 0xae1   : > { %v19151_v49 = vpop.eup %19150  ;;  %19170 = vrcp.f32 %v23328_v24  ;;  %v8295_v46 = vmul.f32 %v19149_v25, %v23012_v15  ;;  %v8340_v42 = vmul.f32 %v8293_v1, %v25811_v37  ;;  %v15295_v11 = vpack.c.bf16 %v8338_v58, %v8337_v47  ;;  %15413 = vst [vmem:[#allocation2 + $0x28] sm:$0xff] %v15290_v33   ;;  %v25820_v58 = vld [vmem:[#allocation86_spill] sm:$0xff] }
 0xae2   : > { %v19153_v22 = vpop.eup %19152  ;;  %19172 = vrcp.f32 %v23333_v6  ;;  %v8296_v26 = vmul.f32 %v19151_v49, %v23017_v41  ;;  %v8341_v27 = vmul.f32 %v8294_v38, %v25812_v32  ;;  %v8616_v57 = vld [vmem:[#allocation2 + $0x10] sm:$0xf]  ;;  %v8617_v39 = vld [vmem:[#allocation2 + $0x14] sm:$0xf]  ;;  %v25822_v38 = vld [vmem:[#allocation32_spill] sm:$0xff] }
 0xae3   : > { %v19155_v9 = vpop.eup %19154  ;;  %19174 = vrcp.f32 %v23336_v20  ;;  %v8297_v24 = vmul.f32 %v19153_v22, %v23022_v44  ;;  %v8342_v15 = vmul.f32 %v8295_v46, %v25813_v23  ;;  %v15300_v5 = vpack.c.bf16 %v8340_v42, %v8339_v31  ;;  %15414 = vst [vmem:[#allocation2 + $0x30] sm:$0xff] %v15295_v11   ;;  %v25815_v20 = vld [vmem:[#allocation29_spill] sm:$0xff]  ;;  %v25823_v46 = vld [vmem:[#allocation84_spill] sm:$0xff]  ;;  %v25825_v32 = vld [vmem:[#allocation83_spill] sm:$0xff] }
 0xae4   : > { %v19157_v55 = vpop.eup %19156  ;;  %19176 = vrcp.f32 %v23343_v56  ;;  %v8298_v6 = vmul.f32 %v19155_v9, %v23027_v35  ;;  %v8343_v41 = vmul.f32 %v8296_v26, %v25814_v50  ;;  %v14772_v62 = vcombine.low %v23083_v7, %v8616_v57  ;;  %v23439_v28 = vld [vmem:[#allocation2 + $0x18] sm:$0xf]  ;;  %v25816_v35 = vld [vmem:[#allocation81_spill] sm:$0xff]  ;;  %v25830_v50 = vld [vmem:[#allocation36_spill] sm:$0xff] }
 0xae5   : > { %v19159_v30 = vpop.eup %19158  ;;  %19178 = vrcp.f32 %v23346_v19  ;;  %v8299_v44 = vmul.f32 %v19157_v55, %v23032_v48  ;;  %v8344_v12 = vmul.f32 %v8297_v24, %v25815_v20  ;;  %v15305_v59 = vpack.c.bf16 %v8342_v15, %v8341_v27  ;;  %15415 = vst [vmem:[#allocation2 + $0x38] sm:$0xff] %v15300_v5   ;;  %v25818_v19 = vld [vmem:[#allocation25_spill] sm:$0xff]  ;;  %v25819_v48 = vld [vmem:[#allocation31_spill] sm:$0xff] }
 0xae6   : > { %v19161_v3 = vpop.eup %19160  ;;  %19180 = vrcp.f32 %v23349_v4  ;;  %v8300_v56 = vmul.f32 %v19159_v30, %v25816_v35  ;;  %v8345_v29 = vmul.f32 %v8298_v6, %v25817_v10  ;;  %16863 = vmatmul.mubr.bf16.vlgmr.msra.gmra.mrb[16].mxu1 %v14772_v62  ;;  %v14773_v7 = vcombine.low %v8617_v39, %v23439_v28  ;;  %v25821_v4 = vld [vmem:[#allocation82_spill] sm:$0xff]  ;;  %v25824_v42 = vld [vmem:[#allocation33_spill] sm:$0xff]  ;;  %v25828_v23 = vld [vmem:[#allocation35_spill] sm:$0xff] }
 0xae7   : > { %v19163_v47 = vpop.eup %19162  ;;  %19182 = vrcp.f32 %v23352_v0  ;;  %v8301_v17 = vmul.f32 %v19161_v3, %v25818_v19  ;;  %v8346_v1 = vmul.f32 %v8299_v44, %v25819_v48  ;;  %v15310_v8 = vpack.c.bf16 %v8344_v12, %v8343_v41  ;;  %15416 = vst [vmem:[#allocation2 + $0x40] sm:$0xff] %v15305_v59   ;;  %16911 = vmatpush3.bf16.msra.mxu1 %v25820_v58  ;;  %v18582_v0 = vld [vmem:[#allocation8 + $0x10] sm:$0xff]   ;;  %v18595_v62 = vld [vmem:[#allocation8 + $0x18] sm:$0xff]   ;;  %v25834_v35 = vld [vmem:[#allocation39_spill] sm:$0xff] }
 0xae8   : > { %v19165_v33 = vpop.eup %19164  ;;  %19184 = vrcp.f32 %v23355_v18  ;;  %v8302_v25 = vmul.f32 %v19163_v47, %v25821_v4  ;;  %v8347_v36 = vmul.f32 %v8300_v56, %v25822_v38  ;;  %16866 = vmatprep.mubr.bf16.mxu1 %v14773_v7  ;;  %v23455_v31 = vcombine.low %v8616_v57, %v8617_v39  ;;  %16912 = vmatprep.subr.bf16.mxu1 %v18575_v43  ;;  %v25826_v57 = vld [vmem:[#allocation34_spill] sm:$0xff]  ;;  %v25832_v20 = vld [vmem:[#allocation37_spill] sm:$0xff]  ;;  %v23480_v10 = vld [vmem:[#allocation2 + $0x1c] sm:$0xff]  }
 0xae9   : > { %v19167_v49 = vpop.eup %19166  ;;  %19186 = vrcp.f32 %v23362_v2  ;;  %v8303_v37 = vmul.f32 %v19165_v33, %v25823_v46  ;;  %v8348_v11 = vmul.f32 %v8301_v17, %v25824_v42  ;;  %v15315_v22 = vpack.c.bf16 %v8346_v1, %v8345_v29  ;;  %15417 = vst [vmem:[#allocation2 + $0x48] sm:$0xff] %v15310_v8   ;;  %v25827_v2 = vld [vmem:[#allocation85_spill] sm:$0xff]  ;;  %v25838_v8 = vld [vmem:[#allocation43_spill] sm:$0xff] }
 0xaea   : > { %v19169_v26 = vpop.eup %19168  ;;  %v23461_v18 = vadd.f32 1.0, %v23317_v13  ;;  %19188 = vrcp.f32 %v23365_v54  ;;  %v8304_v27 = vmul.f32 %v19167_v49, %v25825_v32  ;;  %v8349_v39 = vmul.f32 %v8302_v25, %v25826_v57  ;;  %v25829_v54 = vld [vmem:[#allocation88_spill] sm:$0xff]  ;;  %v25836_v47 = vld [vmem:[#allocation41_spill] sm:$0xff]  ;;  %v18602_v33 = vld [vmem:[#allocation8 + $0x20] sm:$0xff]  }
 0xaeb   : > { %v19171_v9 = vpop.eup %19170  ;;  %19190 = vrcp.f32 %v23369_v21  ;;  %v8305_v24 = vmul.f32 %v19169_v26, %v25827_v2  ;;  %v8350_v15 = vmul.f32 %v8303_v37, %v25828_v23  ;;  %v15320_v5 = vpack.c.bf16 %v8348_v11, %v8347_v36  ;;  %15418 = vst [vmem:[#allocation2 + $0x50] sm:$0xff] %v15315_v22   ;;  %16913 = vmatpush3.bf16.msra.mxu1 %v18575_v43  ;;  %v25831_v21 = vld [vmem:[#allocation87_spill] sm:$0xff]  ;;  %v25840_v38 = vld [vmem:[#allocation45_spill] sm:$0xff]  ;;  %v25843_v22 = vld [vmem:[#allocation94_spill] sm:$0xff] }
 0xaec   : > { %v19173_v55 = vpop.eup %19172  ;;  %v8232_v13 = vadd.f32 1.0, %v23322_v14  ;;  %19192 = vrcp.f32 %v23372_v45  ;;  %v8306_v6 = vmul.f32 %v19171_v9, %v25829_v54  ;;  %v8351_v41 = vmul.f32 %v8304_v27, %v25830_v50  ;;  %16914 = vmatprep.subr.bf16.mxu1 %v18582_v0  ;;  %v25833_v45 = vld [vmem:[#allocation89_spill] sm:$0xff]  ;;  %v25842_v46 = vld [vmem:[#allocation47_spill] sm:$0xff]  ;;  %v18615_v57 = vld [vmem:[#allocation8 + $0x28] sm:$0xff]  }
 0xaed   : > { %v19175_v30 = vpop.eup %19174  ;;  %19194 = vrcp.f32 %v23376_v40  ;;  %v8307_v44 = vmul.f32 %v19173_v55, %v25831_v21  ;;  %v8352_v12 = vmul.f32 %v8305_v24, %v25832_v20  ;;  %v15325_v59 = vpack.c.bf16 %v8350_v15, %v8349_v39  ;;  %15419 = vst [vmem:[#allocation2 + $0x58] sm:$0xff] %v15320_v5   ;;  %v25835_v40 = vld [vmem:[#allocation90_spill] sm:$0xff]  ;;  %v25844_v26 = vld [vmem:[#allocation49_spill] sm:$0xff]  ;;  %v25846_v2 = vld [vmem:[#allocation51_spill] sm:$0xff] }
 0xaee   : > { %v19177_v43 = vpop.eup %19176  ;;  %v8233_v14 = vadd.f32 1.0, %v23330_v16  ;;  %19196 = vrcp.f32 %v23381_v61  ;;  %v8308_v3 = vmul.f32 %v19175_v30, %v25833_v45  ;;  %v8353_v56 = vmul.f32 %v8306_v6, %v25834_v35  ;;  %v25837_v61 = vld [vmem:[#allocation92_spill] sm:$0xff]  ;;  %v23502_v23 = vld [vmem:[#allocation2 + $0x24] sm:$0xff]   ;;  %v25847_v5 = vld [vmem:[#allocation95_spill] sm:$0xff] }
 0xaef   : > { %v19179_v29 = vpop.eup %19178  ;;  %19198 = vrcp.f32 %v23386_v63  ;;  %v8309_v7 = vmul.f32 %v19177_v43, %v25835_v40  ;;  %v8354_v19 = vmul.f32 %v8307_v44, %v25836_v47  ;;  %v15330_v17 = vpack.c.bf16 %v8352_v12, %v8351_v41  ;;  %15420 = vst [vmem:[#allocation2 + $0x60] sm:$0xff] %v15325_v59   ;;  %16915 = vmatpush3.bf16.msra.mxu1 %v18582_v0  ;;  %v25839_v63 = vld [vmem:[#allocation91_spill] sm:$0xff]  ;;  %v25848_v54 = vld [vmem:[#allocation53_spill] sm:$0xff]  ;;  %v25851_v12 = vld [vmem:[#allocation98_spill] sm:$0xff] }
 0xaf0   : > { %v19181_v48 = vpop.eup %19180  ;;  %v8234_v16 = vadd.f32 1.0, %v23340_v34  ;;  %19200 = vrcp.f32 %v23394_v53  ;;  %v8310_v1 = vmul.f32 %v19179_v29, %v25837_v61  ;;  %v8355_v58 = vmul.f32 %v8308_v3, %v25838_v8  ;;  %16916 = vmatprep.subr.bf16.mxu1 %v18595_v62  ;;  %v25841_v34 = vld [vmem:[#allocation93_spill] sm:$0xff]  ;;  %v25850_v30 = vld [vmem:[#allocation55_spill] sm:$0xff]  ;;  %v8619_v3 = vld [vmem:[#allocation2 + $0x1c] sm:$0xf] }
 0xaf1   : > { %v19183_v4 = vpop.eup %19182  ;;  %19202 = vrcp.f32 %v23403_v60  ;;  %v8311_v25 = vmul.f32 %v19181_v48, %v25839_v63  ;;  %v8356_v36 = vmul.f32 %v8309_v7, %v25840_v38  ;;  %v15335_v49 = vpack.c.bf16 %v8354_v19, %v8353_v56  ;;  %15421 = vst [vmem:[#allocation2 + $0x68] sm:$0xff] %v15330_v17   ;;  %v25852_v43 = vld [vmem:[#allocation57_spill] sm:$0xff]  ;;  %v8620_v35 = vld [vmem:[#allocation2 + $0x20] sm:$0xf]  ;;  %v25855_v17 = vld [vmem:[#allocation99_spill] sm:$0xff] }
 0xaf2   : > { %v19185_v0 = vpop.eup %19184  ;;  %19204 = vrcp.f32 %v23412_v52  ;;  %v8312_v53 = vmul.f32 %v19183_v4, %v25841_v34  ;;  %v8357_v37 = vmul.f32 %v8310_v1, %v25842_v46  ;;  %v13522_v42 = vshrl.u32 %v23480_v10, 16  ;;  %v25845_v52 = vld [vmem:[#allocation96_spill] sm:$0xff]  ;;  %v18622_v8 = vld [vmem:[#allocation8 + $0x30] sm:$0xff]   ;;  %v25859_v34 = vld [vmem:[#allocation42_spill] sm:$0xff] }
 0xaf3   : > { %v19187_v11 = vpop.eup %19186  ;;  %19206 = vrcp.f32 %v23421_v51  ;;  %v8313_v60 = vmul.f32 %v19185_v0, %v25843_v22  ;;  %v8358_v32 = vmul.f32 %v8311_v25, %v25844_v26  ;;  %v15340_v27 = vpack.c.bf16 %v8356_v36, %v8355_v58  ;;  %15422 = vst [vmem:[#allocation2 + $0x70] sm:$0xff] %v15335_v49   ;;  %16917 = vmatpush3.bf16.msra.mxu1 %v18595_v62  ;;  %v25857_v4 = vld [vmem:[#allocation44_spill] sm:$0xff]  ;;  %v23518_v49 = vld [vmem:[#allocation2 + $0x2c] sm:$0xff]   ;;  %v25860_v46 = vld [vmem:[#allocation61_spill] sm:$0xff] }
 0xaf4   : > { %v19189_v39 = vpop.eup %19188  ;;  %19208 = vrcp.f32 %v23461_v18  ;;  %v8314_v9 = vmul.f32 %v19187_v11, %v25845_v52  ;;  %v8359_v24 = vmul.f32 %v8312_v53, %v25846_v2  ;;  %v13524_v15 = vshll.u32 %v23480_v10, 16  ;;  %16918 = vmatprep.subr.bf16.mxu1 %v18602_v33  ;;  %v25849_v18 = vld [vmem:[#allocation97_spill] sm:$0xff]  ;;  %v25853_v10 = vld [vmem:[#allocation40_spill] sm:$0xff] }
 0xaf5   : > { %v19191_v51 = vpop.eup %19190  ;;  %19210 = vrcp.f32 %v8232_v13  ;;  %v8315_v55 = vmul.f32 %v19189_v39, %v25847_v5  ;;  %v8360_v6 = vmul.f32 %v8313_v60, %v25848_v54  ;;  %v15345_v50 = vpack.c.bf16 %v8358_v32, %v8357_v37  ;;  %15423 = vst [vmem:[#allocation2 + $0x78] sm:$0xff] %v15340_v27   ;;  %v25858_v63 = vld [vmem:[#allocation60_spill] sm:$0xff]  ;;  %v8621_v22 = vld [vmem:[#allocation2 + $0x24] sm:$0xf]  ;;  %v8622_v60 = vld [vmem:[#allocation2 + $0x28] sm:$0xf] }
 0xaf6   : > { %v19193_v41 = vpop.eup %19192  ;;  %19212 = vrcp.f32 %v8233_v14  ;;  %v8316_v62 = vmul.f32 %v19191_v51, %v25849_v18  ;;  %v8361_v21 = vmul.f32 %v8314_v9, %v25850_v30  ;;  %v13526_v44 = vrot.slane %v13524_v15, 1  ;;  %v25854_v14 = vld [vmem:[#allocation58_spill] sm:$0xff]  ;;  %v25863_v51 = vld [vmem:[#allocation48_spill] sm:$0xff] }
 0xaf7   : > { %v19195_v20 = vpop.eup %19194  ;;  %19214 = vrcp.f32 %v8234_v16  ;;  %v8317_v59 = vmul.f32 %v19193_v41, %v25851_v12  ;;  %v8362_v45 = vmul.f32 %v8315_v55, %v25852_v43  ;;  %v15350_v13 = vpack.c.bf16 %v8360_v6, %v8359_v24  ;;  %15424 = vst [vmem:[#allocation2 + $0x80] sm:$0xff] %v15345_v50   ;;  %16919 = vmatpush3.bf16.msra.mxu1 %v18602_v33  ;;  %v25856_v16 = vld [vmem:[#allocation59_spill] sm:$0xff]  ;;  %v25861_v32 = vld [vmem:[#allocation46_spill] sm:$0xff]  ;;  %v25865_v6 = vld [vmem:[#allocation52_spill] sm:$0xff] }
 0xaf8   : > { %v19197_v56 = vpop.eup %19196  ;;  %v8318_v29 = vmul.f32 %v19195_v20, %v25853_v10  ;;  %v8363_v40 = vmul.f32 %v8316_v62, %v25854_v14  ;;  %v13527_v7 = vor.u32 %v13526_v44, %v13522_v42  ;;  %v13529_v47 = vshll.u32 %v23502_v23, 16  ;;  %16920 = vmatprep.subr.bf16.mxu1 %v18615_v57  ;;  %v25862_v39 = vld [vmem:[#allocation62_spill] sm:$0xff]  ;;  %v25864_v55 = vld [vmem:[#allocation63_spill] sm:$0xff]  ;;  %v25866_v41 = vld [vmem:[#allocation64_spill] sm:$0xff] }
 0xaf9   : > { %v19199_v19 = vpop.eup %19198  ;;  %v8319_v48 = vmul.f32 %v19197_v56, %v25855_v17  ;;  %v8364_v61 = vmul.f32 %v8317_v59, %v25856_v16  ;;  %v15355_v1 = vpack.c.bf16 %v8362_v45, %v8361_v21  ;;  %15425 = vst [vmem:[#allocation2 + $0x88] sm:$0xff] %v15350_v13   ;;  %v14774_v36 = vcombine.low %v8619_v3, %v8620_v35  ;;  %v18634_v24 = vld [vmem:[#allocation8 + $0x38] sm:$0xff]   ;;  %v25867_v21 = vld [vmem:[#allocation79_spill] sm:$0xff]  ;;  %v25868_v20 = vld [vmem:[#allocation65_spill] sm:$0xff] }
 0xafa   : > { %v19201_v58 = vpop.eup %19200  ;;  %v8320_v33 = vmul.f32 %v19199_v19, %v25857_v4  ;;  %v8365_v25 = vmul.f32 %v8318_v29, %v25858_v63  ;;  %v13531_v38 = vrot.slane %v13529_v47, 1  ;;  %v23523_v11 = vcombine.low %v23439_v28, %v8619_v3  ;;  %v8623_v45 = vld [vmem:[#allocation2 + $0x2c] sm:$0xf]  ;;  %v23536_v13 = vld [vmem:[#allocation8 + $0x80] sm:$0xff]   ;;  %v18578_v4 = vld [vmem:[#allocation2 + $0x3c] sm:$0xff]  }
 0xafb   : > { %v19203_v0 = vpop.eup %19202  ;;  %v8321_v53 = vmul.f32 %v19201_v58, %v25859_v34  ;;  %v8366_v37 = vmul.f32 %v8319_v48, %v25860_v46  ;;  %v15360_v42 = vpack.c.bf16 %v8364_v61, %v8363_v40  ;;  %15426 = vst [vmem:[#allocation2 + $0x90] sm:$0xff] %v15355_v1   ;;  %16921 = vmatpush3.bf16.msra.mxu1 %v18615_v57  ;;  %v13533_v2 = vshrl.u32 %v23502_v23, 16  ;;  %v25869_v56 = vld [vmem:[#allocation50_spill] sm:$0xff]  ;;  %v18574_v47 = vld [vmem:[#allocation2 + $0x34] sm:$0xff]   ;;  %v25875_v34 = vld [vmem:[#allocation69_spill] sm:$0xff] }
 0xafc   : > { %v19205_v26 = vpop.eup %19204  ;;  %v8322_v27 = vmul.f32 %v19203_v0, %v25861_v32  ;;  %v8367_v52 = vmul.f32 %v8320_v33, %v25862_v39  ;;  %v13532_v9 = vsel %vm3085_vm2, %v13527_v7, %v13531_v38  ;;  %16867 = vmatmul.mubr.bf16.gmra.mrb[20].mxu1 %v14774_v36  ;;  %16922 = vmatprep.subr.bf16.mxu1 %v18622_v8  ;;  %v13537_v30 = vshll.u32 %v23518_v49, 16  ;;  %v25870_v29 = vld [vmem:[#allocation66_spill] sm:$0xff]  ;;  %v25872_v16 = vld [vmem:[#allocation67_spill] sm:$0xff] }
 0xafd   : > { %v19207_v15 = vpop.eup %19206  ;;  %v8323_v5 = vmul.f32 %v19205_v26, %v25863_v51  ;;  %v8368_v28 = vmul.f32 %v8321_v53, %v25864_v55  ;;  %v15365_v54 = vpack.c.bf16 %v8366_v37, %v8365_v25  ;;  %15427 = vst [vmem:[#allocation2 + $0x98] sm:$0xff] %v15360_v42   ;;  %17374 = vmatprep.mubr.bf16.mxu0 %v13532_v9  ;;  %v25871_v17 = vld [vmem:[#allocation54_spill] sm:$0xff]  ;;  %v8625_v33 = vld [vmem:[#allocation2 + $0x34] sm:$0xf]  ;;  %v8626_v0 = vld [vmem:[#allocation2 + $0x38] sm:$0xf] }
 0xafe   : > { %v19209_v57 = vpop.eup %19208  ;;  %v8324_v50 = vmul.f32 %v19207_v15, %v25865_v6  ;;  %v8369_v18 = vmul.f32 %v8322_v27, %v25866_v41  ;;  %v13535_v62 = vor.u32 %v13533_v2, %v13531_v38  ;;  %v14775_v43 = vcombine.low %v8621_v22, %v8622_v60  ;;  %v8624_v58 = vld [vmem:[#allocation2 + $0x30] sm:$0xf]  ;;  %v25873_v63 = vld [vmem:[#allocation71_spill] sm:$0xff]  ;;  %v25874_v38 = vld [vmem:[#allocation68_spill] sm:$0xff] }
 0xaff   : > { %v19211_v23 = vpop.eup %19210  ;;  %v8325_v44 = vmul.f32 %v19209_v57, %v25867_v21  ;;  %v8370_v12 = vmul.f32 %v8323_v5, %v25868_v20  ;;  %v15370_v59 = vpack.c.bf16 %v8368_v28, %v8367_v52  ;;  %15428 = vst [vmem:[#allocation2 + $0xa0] sm:$0xff] %v15365_v54   ;;  %16923 = vmatpush3.bf16.msra.mxu1 %v18622_v8  ;;  %v13539_v40 = vrot.slane %v13537_v30, 1  ;;  %v8627_v51 = vld [vmem:[#allocation2 + $0x3c] sm:$0xf]  ;;  %v8629_v54 = vld [vmem:[#allocation2 + $0x44] sm:$0xf] }
 0xb00   : > { %v19213_v3 = vpop.eup %19212  ;;  %v8326_v10 = vmul.f32 %v19211_v23, %v25869_v56  ;;  %v8371_v14 = vmul.f32 %v8324_v50, %v25870_v29  ;;  %v23540_v7 = vcombine.low %v8620_v35, %v8621_v22  ;;  %16924 = vmatprep.subr.bf16.mxu1 %v18634_v24  ;;  %16870 = vmatprep.mubr.bf16.mxu1 %v14775_v43  ;;  %v13541_v8 = vshrl.u32 %v23518_v49, 16  ;;  %v23550_v22 = vld [vmem:[#allocation2 + $0x44] sm:$0xff]   ;;  %v25876_v49 = vld [vmem:[#allocation70_spill] sm:$0xff]  ;;  %v23565_v21 = vld [vmem:[#allocation2 + $0x54] sm:$0xff]  }
 0xb01   : > { %v19215_v19 = vpop.eup %19214  ;;  %v8327_v48 = vmul.f32 %v19213_v3, %v25871_v17  ;;  %v8372_v61 = vmul.f32 %v8325_v44, %v25872_v16  ;;  %v15375_v1 = vpack.c.bf16 %v8370_v12, %v8369_v18  ;;  %15429 = vst [vmem:[#allocation2 + $0xa8] sm:$0xff] %v15370_v59   ;;  %v13540_v36 = vsel %vm3085_vm2, %v13535_v62, %v13539_v40  ;;  %v18585_v41 = vld [vmem:[#allocation2 + $0x4c] sm:$0xff]   ;;  %v8630_v23 = vld [vmem:[#allocation2 + $0x48] sm:$0xf]  ;;  %v23579_v17 = vld [vmem:[#allocation2 + $0x54] sm:$0xf] }
 0xb02   : > { %v8328_v25 = vmul.f32 %v19215_v19, %v25873_v63  ;;  %v8373_v35 = vmul.f32 %v8326_v10, %v25874_v38  ;;  %v9151_v37 = vshrl.u32 %v23455_v31, 16  ;;  %17375 = vmatmul.mubr.bf16.vlgmr.msra.gmra.mrb[84].mxu0 %v13540_v36  ;;  %v13543_v42 = vor.u32 %v13541_v8, %v13539_v40  ;;  %v23569_v59 = vld [vmem:[#allocation2 + $0x4c] sm:$0xf]  ;;  %v18591_v10 = vld [vmem:[#allocation2 + $0x5c] sm:$0xff]   ;;  %v8632_v19 = vld [vmem:[#allocation2 + $0x50] sm:$0xf] }
 0xb03   : > { %v8374_v53 = vmul.f32 %v8327_v48, %v25875_v34  ;;  %v15380_v46 = vpack.c.bf16 %v8372_v61, %v8371_v14  ;;  %15430 = vst [vmem:[#allocation2 + $0xb0] sm:$0xff] %v15375_v1   ;;  %16925 = vmatpush3.bf16.msra.mxu1 %v18634_v24  ;;  %v13545_v32 = vshll.u32 %v18574_v47, 16  ;;  %v14776_v27 = vcombine.low %v8623_v45, %v8624_v58  ;;  %v8628_v24 = vld [vmem:[#allocation2 + $0x40] sm:$0xf]  ;;  %v18594_v63 = vld [vmem:[#allocation2 + $0x64] sm:$0xff]  }
 0xb04   : > { %v8375_v26 = vmul.f32 %v8328_v25, %v25876_v49  ;;  %v23553_v39 = vcombine.low %v8622_v60, %v8623_v45  ;;  %16974 = vmatprep.subr.bf16.mxu1 %v23536_v13  ;;  %v9154_v9 = vshll.u32 %v23455_v31, 16  ;;  %v13553_v2 = vshll.u32 %v18578_v4, 16 }
 0xb05   : > { %v15385_v52 = vpack.c.bf16 %v8374_v53, %v8373_v35  ;;  %15431 = vst [vmem:[#allocation2 + $0xb8] sm:$0xff] %v15380_v46   ;;  %v14777_v15 = vcombine.low %v8625_v33, %v8626_v0  ;;  %v13547_v55 = vrot.slane %v13545_v32, 1  ;;  %16871 = vmatmul.mubr.bf16.gmra.mrb[24].mxu1 %v14776_v27  ;;  %v13549_v28 = vshrl.u32 %v18574_v47, 16  ;;  %v18598_v32 = vld [vmem:[#allocation2 + $0x6c] sm:$0xff]   ;;  %v23599_v27 = vld [vmem:[#allocation2 + $0x64] sm:$0xf] }
 0xb06   : > { %v15156_v5 = vpack.c.bf16 %v8375_v26, %v8375_v26  ;;  %v13555_v57 = vrot.slane %v13553_v2, 1  ;;  %v23557_v60 = vcombine.low %v8624_v58, %v8625_v33  ;;  %v13557_v6 = vshrl.u32 %v18578_v4, 16  ;;  %v8634_v33 = vld [vmem:[#allocation2 + $0x58] sm:$0xf] }
 0xb07   : > { %15432 = vst [vmem:[#allocation2 + $0xc0] sm:$0xff] %v15385_v52   ;;  %16874 = vmatprep.mubr.bf16.mxu1 %v14777_v15  ;;  %v13561_v50 = vshll.u32 %v23550_v22, 16  ;;  %v23560_v31 = vrot.slane %v9151_v37, 3  ;;  %v13548_v18 = vsel %vm3085_vm2, %v13543_v42, %v13547_v55  ;;  %v13551_v62 = vor.u32 %v13549_v28, %v13547_v55  ;;  %v23592_v37 = vld [vmem:[#allocation2 + $0x60] sm:$0xf] }
 0xb08   : > { %8611 = vst [vmem:[#allocation2 + $0xc8] sm:$0xf] %v15156_v5  ;;  %v23563_v30 = vcombine.low %v8626_v0, %v8627_v51  ;;  %v23567_v44 = vrot.slane %v9154_v9, 4  ;;  %17378 = vmatprep.mubr.bf16.mxu0 %v13548_v18  ;;  %v13559_v20 = vor.u32 %v13557_v6, %v13555_v57  ;;  %v9160_v43 = vshrl.u32 %v23523_v11, 16  ;;  %v23588_v0 = vld [vmem:[#allocation2 + $0x5c] sm:$0xf] }
 0xb09   : > { %v13563_v12 = vrot.slane %v13561_v50, 1  ;;  %v9163_v45 = vshll.u32 %v23523_v11, 16  ;;  %v13556_v56 = vsel %vm3085_vm2, %v13551_v62, %v13555_v57  ;;  %v13569_v40 = vshll.u32 %v18585_v41, 16  ;;  %v23607_v5 = vld [vmem:[#allocation2 + $0x74] sm:$0xff]   ;;  %v23609_v55 = vld [vmem:[#allocation2 + $0x6c] sm:$0xf] }
 0xb0a   : > { %17379 = vmatmul.mubr.bf16.gmra.mrb[88].mxu0 %v13556_v56  ;;  %v23577_v47 = vcombine.low %v8628_v24, %v8629_v54  ;;  %v14778_v48 = vcombine.low %v8627_v51, %v8628_v24  ;;  %v13565_v16 = vshrl.u32 %v23550_v22, 16  ;;  %v13577_v61 = vshll.u32 %v23565_v21, 16  ;;  %v23605_v51 = vld [vmem:[#allocation2 + $0x68] sm:$0xf]  ;;  %v23617_v62 = vld [vmem:[#allocation2 + $0x7c] sm:$0xff]   ;;  %v18625_v42 = vld [vmem:[#allocation2 + $0xac] sm:$0xff]  }
 0xb0b   : > { %v13564_v14 = vsel %vm3085_vm2, %v13559_v20, %v13563_v12  ;;  %v13571_v1 = vrot.slane %v13569_v40, 1  ;;  %v14779_v8 = vcombine.low %v8629_v54, %v8630_v23  ;;  %v13573_v58 = vshrl.u32 %v18585_v41, 16  ;;  %v23733_v3 = vld [vmem:[#allocation2 + $0xac] sm:$0xf] }
 0xb0c   : > { %17382 = vmatprep.mubr.bf16.mxu0 %v13564_v14  ;;  %v23584_v4 = vcombine.low %v8630_v23, %v23569_v59  ;;  %v13567_v35 = vor.u32 %v13565_v16, %v13563_v12  ;;  %v13585_v36 = vshll.u32 %v18591_v10, 16  ;;  %v13579_v49 = vrot.slane %v13577_v61, 1  ;;  %v23632_v16 = vld [vmem:[#allocation2 + $0x7c] sm:$0xf] }
 0xb0d   : > { %16875 = vmatmul.mubr.bf16.gmra.mrb[28].mxu1 %v14778_v48  ;;  %v13575_v46 = vor.u32 %v13573_v58, %v13571_v1  ;;  %v23597_v26 = vcombine.low %v8632_v19, %v23579_v17  ;;  %v13593_v2 = vshll.u32 %v18594_v63, 16  ;;  %v23603_v15 = vcombine.low %v8634_v33, %v23588_v0  ;;  %v23630_v48 = vld [vmem:[#allocation2 + $0x78] sm:$0xf] }
 0xb0e   : > { %16878 = vmatprep.mubr.bf16.mxu1 %v14779_v8  ;;  %v13587_v9 = vrot.slane %v13585_v36, 1  ;;  %v13572_v28 = vsel %vm3085_vm2, %v13567_v35, %v13571_v1  ;;  %v14780_v54 = vcombine.low %v23569_v59, %v8632_v19  ;;  %v13581_v57 = vshrl.u32 %v23565_v21, 16  ;;  %v23624_v59 = vld [vmem:[#allocation2 + $0x70] sm:$0xf]  ;;  %v23626_v21 = vld [vmem:[#allocation2 + $0x74] sm:$0xf] }
 0xb0f   : > { %v13580_v6 = vsel %vm3085_vm2, %v13575_v46, %v13579_v49  ;;  %v13589_v41 = vshrl.u32 %v18591_v10, 16  ;;  %v13595_v18 = vrot.slane %v13593_v2, 1  ;;  %v13601_v12 = vshll.u32 %v18598_v32, 16  ;;  %v23644_v46 = vld [vmem:[#allocation2 + $0x8c] sm:$0xff]   ;;  %v23703_v35 = vld [vmem:[#allocation2 + $0xa0] sm:$0xf] }
 0xb10   : > { %v13583_v20 = vor.u32 %v13581_v57, %v13579_v49  ;;  %v23622_v56 = vcombine.low %v23592_v37, %v23599_v27  ;;  %v14781_v14 = vcombine.low %v23579_v17, %v8634_v33  ;;  %v13597_v10 = vshrl.u32 %v18594_v63, 16  ;;  %v18608_v17 = vld [vmem:[#allocation2 + $0x84] sm:$0xff]  }
 0xb11   : > { %v13591_v40 = vor.u32 %v13589_v41, %v13587_v9  ;;  %v13609_v19 = vshll.u32 %v23607_v5, 16  ;;  %v14782_v1 = vcombine.low %v23588_v0, %v23592_v37  ;;  %v13603_v8 = vrot.slane %v13601_v12, 1 }
 0xb12   : > { %17383 = vmatmul.mubr.bf16.gmra.mrb[92].mxu0 %v13572_v28  ;;  %v23639_v58 = vcombine.low %v23605_v51, %v23609_v55  ;;  %v13599_v36 = vor.u32 %v13597_v10, %v13595_v18  ;;  %v13588_v49 = vsel %vm3085_vm2, %v13583_v20, %v13587_v9  ;;  %v14783_v0 = vcombine.low %v23599_v27, %v23605_v51  ;;  %v23650_v28 = vld [vmem:[#allocation2 + $0x80] sm:$0xf]  ;;  %v18614_v9 = vld [vmem:[#allocation2 + $0x94] sm:$0xff]  }
 0xb13   : > { %17386 = vmatprep.mubr.bf16.mxu0 %v13580_v6  ;;  %v13605_v37 = vshrl.u32 %v18598_v32, 16  ;;  %v13617_v2 = vshll.u32 %v23617_v62, 16  ;;  %v13596_v57 = vsel %vm3085_vm2, %v13591_v40, %v13595_v18  ;;  %v13611_v6 = vrot.slane %v13609_v19, 1  ;;  %v23668_v18 = vld [vmem:[#allocation2 + $0x8c] sm:$0xf] }
 0xb14   : > { %v14784_v41 = vcombine.low %v23609_v55, %v23624_v59  ;;  %v23659_v12 = vcombine.low %v23624_v59, %v23626_v21  ;;  %v13625_v51 = vshll.u32 %v18608_v17, 16  ;;  %v23664_v20 = vcombine.low %v23630_v48, %v23632_v16  ;;  %v23685_v10 = vld [vmem:[#allocation2 + $0x94] sm:$0xf] }
 0xb15   : > { %16879 = vmatmul.mubr.bf16.gmra.mrb[32].mxu1 %v14780_v54  ;;  %v23652_v54 = vld [vmem:[#allocation2 + $0x84] sm:$0xf]  ;;  %v13607_v32 = vor.u32 %v13605_v37, %v13603_v8  ;;  %v13604_v40 = vsel %vm3085_vm2, %v13599_v36, %v13603_v8  ;;  %v13613_v19 = vshrl.u32 %v23607_v5, 16  ;;  %v14785_v27 = vcombine.low %v23626_v21, %v23630_v48  ;;  %v18618_v37 = vld [vmem:[#allocation2 + $0x9c] sm:$0xff]   ;;  %v23683_v5 = vld [vmem:[#allocation2 + $0x90] sm:$0xf] }
 0xb16   : > { %16882 = vmatprep.mubr.bf16.mxu1 %v14781_v14  ;;  %v23666_v14 = vld [vmem:[#allocation2 + $0x88] sm:$0xf]  ;;  %v13619_v33 = vrot.slane %v13617_v2, 1  ;;  %v13621_v61 = vshrl.u32 %v23617_v62, 16  ;;  %v13633_v8 = vshll.u32 %v23644_v46, 16  ;;  %v23681_v36 = vcombine.low %v23650_v28, %v23652_v54 }
 0xb17   : > { %v13615_v23 = vor.u32 %v13613_v19, %v13611_v6  ;;  %v14786_v62 = vcombine.low %v23632_v16, %v23650_v28  ;;  %v13641_v2 = vshll.u32 %v18614_v9, 16  ;;  %v23693_v19 = vld [vmem:[#allocation2 + $0x9c] sm:$0xf]  ;;  %v13629_v50 = vshrl.u32 %v18608_v17, 16 }
 0xb18   : > { %v13635_v24 = vrot.slane %v13633_v8, 1  ;;  %v13649_v22 = vshll.u32 %v18618_v37, 16  ;;  %v13645_v38 = vshrl.u32 %v18614_v9, 16  ;;  %v23718_v9 = vld [vmem:[#allocation2 + $0xa8] sm:$0xf]  ;;  %v14788_v63 = vcombine.low %v23668_v18, %v23683_v5  ;;  %v23724_v8 = vld [vmem:[#allocation2 + $0xb4] sm:$0xff]  }
 0xb19   : > { %v13643_v52 = vrot.slane %v13641_v2, 1  ;;  %v13620_v53 = vsel %vm3085_vm2, %v13615_v23, %v13619_v33  ;;  %v23712_v2 = vld [vmem:[#allocation2 + $0xa4] sm:$0xf]  ;;  %v13653_v29 = vshrl.u32 %v18618_v37, 16  ;;  %v23763_v21 = vcombine.low %v23718_v9, %v23733_v3 }
 0xb1a   : > { %17387 = vmatmul.mubr.bf16.gmra.mrb[96].mxu0 %v13588_v49  ;;  %v13627_v49 = vrot.slane %v13625_v51, 1  ;;  %v23691_v51 = vld [vmem:[#allocation2 + $0x98] sm:$0xf]  ;;  %v13651_v25 = vrot.slane %v13649_v22, 1  ;;  %v25881_v28 = vshrl.u32 %v23553_v39, 16 }
 0xb1b   : > { %17390 = vmatprep.mubr.bf16.mxu0 %v13596_v57  ;;  %v13612_v57 = vsel %vm3085_vm2, %v13607_v32, %v13611_v6  ;;  %v18621_v6 = vld [vmem:[#allocation2 + $0xa4] sm:$0xff]   ;;  %v13623_v32 = vor.u32 %v13621_v61, %v13619_v33  ;;  %v23710_v61 = vcombine.low %v23683_v5, %v23685_v10  ;;  %v25900_v5 = vshrl.u32 %v23659_v12, 16 }
 0xb1c   : > { %v13631_v34 = vor.u32 %v13629_v50, %v13627_v49  ;;  %v13647_v50 = vor.u32 %v13645_v38, %v13643_v52  ;;  %v13657_v33 = vshll.u32 %v18621_v6, 16  ;;  %v13661_v22 = vshrl.u32 %v18621_v6, 16 }
 0xb1d   : > { %16883 = vmatmul.mubr.bf16.gmra.mrb[36].mxu1 %v14782_v1  ;;  %v23698_v1 = vcombine.low %v23666_v14, %v23668_v18  ;;  %v13628_v17 = vsel %vm3085_vm2, %v13623_v32, %v13627_v49  ;;  %v13655_v49 = vor.u32 %v13653_v29, %v13651_v25  ;;  %v13665_v32 = vshll.u32 %v18625_v42, 16 }
 0xb1e   : > { %16886 = vmatprep.mubr.bf16.mxu1 %v14783_v0  ;;  %v13637_v0 = vshrl.u32 %v23644_v46, 16  ;;  %v23716_v46 = vcombine.low %v23691_v51, %v23693_v19  ;;  %v23727_v38 = vsel %vm3085_vm2, %v13631_v34, %v13635_v24  ;;  %v13659_v37 = vrot.slane %v13657_v33, 1 }
 0xb1f   : > { %v23740_v34 = vcombine.low %v23703_v35, %v23712_v2  ;;  %v23752_v29 = vsel %vm3085_vm2, %v13647_v50, %v13651_v25  ;;  %v25879_v6 = vcombine.low %v23652_v54, %v23666_v14  ;;  %v25885_v33 = vshrl.u32 %v23563_v30, 16 }
 0xb20   : > { %v13639_v23 = vor.u32 %v13637_v0, %v13635_v24  ;;  %v23742_v24 = vld [vmem:[#allocation2 + $0xb0] sm:$0xf]  ;;  %v23771_v50 = vsel %vm3085_vm2, %v13655_v49, %v13659_v37  ;;  %v23773_v59 = vor.u32 %v13661_v22, %v13659_v37  ;;  %v9162_v37 = vrot.slane %v9160_v43, 3 }
 0xb21   : > { %v9198_v54 = vrot.slane %v25885_v33, 3  ;;  %v25886_v14 = vshll.u32 %v23563_v30, 16 }
 0xb22   : > { %17391 = vmatmul.mubr.bf16.gmra.mrb[100].mxu0 %v13604_v40  ;;  %v23744_v40 = vld [vmem:[#allocation2 + $0xb4] sm:$0xf]  ;;  %v13644_v0 = vsel %vm3085_vm2, %v13639_v23, %v13643_v52  ;;  %v23768_v23 = vld [vmem:[#allocation2 + $0xbc] sm:$0xf]  ;;  %v25884_v52 = vshll.u32 %v23557_v60, 16 }
 0xb23   : > { %17394 = vmatprep.mubr.bf16.mxu0 %v13612_v57  ;;  %v23759_v57 = vrot.slane %v13665_v32, 1 }
 0xb25   : > { %16887 = vmatmul.mubr.bf16.gmra.mrb[40].mxu1 %v14784_v41  ;;  %v23756_v41 = vld [vmem:[#allocation2 + $0xb8] sm:$0xf] }
 0xb26   : > { %16890 = vmatprep.mubr.bf16.mxu1 %v14785_v27  ;;  %v13669_v27 = vshrl.u32 %v18625_v42, 16  ;;  %v23785_v42 = vcombine.low %v23742_v24, %v23744_v40  ;;  %v23790_v49 = vcombine.low %v23756_v41, %v23768_v23 }
 0xb28   : > { %v23781_v25 = vor.u32 %v13669_v27, %v23759_v57  ;;  %v25878_v27 = vshrl.u32 %v23540_v7, 16 }
 0xb2a   : > { %17395 = vmatmul.mubr.bf16.gmra.mrb[104].mxu0 %v13620_v53  ;;  %v9157_v53 = vor.u32 %v23567_v44, %v23560_v31  ;;  %v25877_v44 = vld [vmem:[#allocation56_spill] sm:$0xff]  ;;  %v9171_v32 = vrot.slane %v25878_v27, 3  ;;  %v25882_v31 = vshll.u32 %v23553_v39, 16  ;;  %v9192_v27 = vrot.slane %v25884_v52, 4 }
 0xb2b   : > { %17398 = vmatprep.mubr.bf16.mxu0 %v13628_v17  ;;  %v9165_v17 = vrot.slane %v9163_v45, 4  ;;  %v25880_v45 = vshll.u32 %v23540_v7, 16  ;;  %v25887_v39 = vshrl.u32 %v23577_v47, 16  ;;  %v25889_v52 = vshrl.u32 %v23584_v4, 16 }
 0xb2c   : > { %v23808_v43 = vsel %vm2388_vm1, %v25877_v44, %v9157_v53  ;;  %v9183_v22 = vrot.slane %v25882_v31, 4  ;;  %v25883_v44 = vshrl.u32 %v23557_v60, 16 }
 0xb2d   : > { %16891 = vmatmul.mubr.bf16.gmra.mrb[44].mxu1 %v14786_v62  ;;  %v9166_v11 = vor.u32 %v9165_v17, %v9162_v37  ;;  %v9174_v16 = vrot.slane %v25880_v45, 4  ;;  %v9180_v62 = vrot.slane %v25881_v28, 3  ;;  %v9207_v31 = vrot.slane %v25887_v39, 3 }
 0xb2e   : > { %16894 = vmatprep.mubr.bf16.mxu1 %v25879_v6  ;;  %v9189_v48 = vrot.slane %v25883_v44, 3  ;;  %v9201_v6 = vrot.slane %v25886_v14, 4  ;;  %v25888_v44 = vshll.u32 %v23577_v47, 16  ;;  %v9216_v55 = vrot.slane %v25889_v52, 3 }
 0xb2f   : > { %v23830_v7 = vsel %vm2388_vm1, %v9157_v53, %v9166_v11  ;;  %v9175_v37 = vor.u32 %v9174_v16, %v9171_v32  ;;  %v9184_v17 = vor.u32 %v9183_v22, %v9180_v62  ;;  %v25890_v32 = vshll.u32 %v23584_v4, 16 }
 0xb30   : > { %v9193_v45 = vor.u32 %v9192_v27, %v9189_v48  ;;  %v9202_v28 = vor.u32 %v9201_v6, %v9198_v54  ;;  %v9210_v60 = vrot.slane %v25888_v44, 4  ;;  %v25891_v48 = vshrl.u32 %v23597_v26, 16 }
 0xb31   : > { %v23840_v30 = vsel %vm2388_vm1, %v9166_v11, %v9175_v37  ;;  %v23843_v33 = vsel %vm2388_vm1, %v9175_v37, %v9184_v17  ;;  %v9219_v22 = vrot.slane %v25890_v32, 4  ;;  %v25892_v11 = vshll.u32 %v23597_v26, 16 }
 0xb32   : > { %17399 = vmatmul.mubr.bf16.gmra.mrb[108].mxu0 %v23727_v38  ;;  %v9225_v53 = vrot.slane %v25891_v48, 3  ;;  %v23850_v47 = vsel %vm2388_vm1, %v9184_v17, %v9193_v45  ;;  %v23853_v16 = vsel %vm2388_vm1, %v9193_v45, %v9202_v28  ;;  %v9211_v38 = vor.u32 %v9210_v60, %v9207_v31 }
 0xb33   : > { %17402 = vmatprep.mubr.bf16.mxu0 %v13644_v0  ;;  %v9228_v62 = vrot.slane %v25892_v11, 4  ;;  %v9220_v27 = vor.u32 %v9219_v22, %v9216_v55  ;;  %v25893_v54 = vshrl.u32 %v23603_v15, 16  ;;  %v25894_v4 = vshll.u32 %v23603_v15, 16 }
 0xb34   : > { %v25895_v37 = vshrl.u32 %v23622_v56, 16  ;;  %v23867_v17 = vsel %vm2388_vm1, %v9202_v28, %v9211_v38  ;;  %v25896_v26 = vshll.u32 %v23622_v56, 16  ;;  %v25897_v31 = vshrl.u32 %v23639_v58, 16 }
 0xb35   : > { %v9234_v14 = vrot.slane %v25893_v54, 3  ;;  %v9237_v6 = vrot.slane %v25894_v4, 4  ;;  %16895 = vmatmul.mubr.bf16.gmra.mrb[48].mxu1 %v14788_v63  ;;  %v9229_v39 = vor.u32 %v9228_v62, %v9225_v53  ;;  %v25898_v15 = vcombine.low %v23685_v10, %v23691_v51 }
 0xb36   : > { %v9243_v0 = vrot.slane %v25895_v37, 3  ;;  %v9246_v55 = vrot.slane %v25896_v26, 4  ;;  %v9252_v45 = vrot.slane %v25897_v31, 3  ;;  %v23877_v44 = vsel %vm2388_vm1, %v9211_v38, %v9220_v27 }
 0xb37   : > { %16898 = vmatprep.mubr.bf16.mxu1 %v25898_v15  ;;  %v9238_v60 = vor.u32 %v9237_v6, %v9234_v14  ;;  %v25899_v63 = vshll.u32 %v23639_v58, 16  ;;  %v9261_v28 = vrot.slane %v25900_v5, 3  ;;  %v23884_v56 = vsel %vm2388_vm1, %v9220_v27, %v9229_v39 }
 0xb38   : > { %v9247_v52 = vor.u32 %v9246_v55, %v9243_v0  ;;  %v25901_v32 = vshll.u32 %v23659_v12, 16  ;;  %v25902_v10 = vshrl.u32 %v23664_v20, 16  ;;  %v25903_v58 = vshll.u32 %v23664_v20, 16 }
 0xb39   : > { %v9255_v18 = vrot.slane %v25899_v63, 4  ;;  %v23891_v48 = vsel %vm2388_vm1, %v9229_v39, %v9238_v60  ;;  %v25904_v11 = vshrl.u32 %v23681_v36, 16  ;;  %v25905_v12 = vshll.u32 %v23681_v36, 16 }
 0xb3a   : > { %v9264_v22 = vrot.slane %v25901_v32, 4  ;;  %v9270_v51 = vrot.slane %v25902_v10, 3  ;;  %v9273_v38 = vrot.slane %v25903_v58, 4  ;;  %v23898_v27 = vsel %vm2388_vm1, %v9238_v60, %v9247_v52  ;;  %17403 = vmatmul.mubr.bf16.gmra.mrb[112].mxu0 %v23752_v29 }
 0xb3b   : > { %v9256_v53 = vor.u32 %v9255_v18, %v9252_v45  ;;  %v9279_v62 = vrot.slane %v25904_v11, 3  ;;  %v9282_v14 = vrot.slane %v25905_v12, 4  ;;  %v25906_v4 = vshrl.u32 %v23698_v1, 16  ;;  %17406 = vmatprep.mubr.bf16.mxu0 %v23771_v50 }
 0xb3c   : > { %v9265_v54 = vor.u32 %v9264_v22, %v9261_v28  ;;  %v9274_v20 = vor.u32 %v9273_v38, %v9270_v51  ;;  %v25907_v0 = vshll.u32 %v23698_v1, 16  ;;  %v25908_v26 = vshrl.u32 %v23710_v61, 16 }
 0xb3d   : > { %v9288_v6 = vrot.slane %v25906_v4, 3  ;;  %v23906_v37 = vsel %vm2388_vm1, %v9247_v52, %v9256_v53  ;;  %v9283_v31 = vor.u32 %v9282_v14, %v9279_v62  ;;  %v25909_v45 = vshll.u32 %v23710_v61, 16 }
 0xb3e   : > { %v9291_v39 = vrot.slane %v25907_v0, 4  ;;  %v9297_v55 = vrot.slane %v25908_v26, 3  ;;  %v23914_v36 = vsel %vm2388_vm1, %v9256_v53, %v9265_v54  ;;  %v25910_v29 = vshrl.u32 %v23716_v46, 16 }
 0xb3f   : > { %v9300_v15 = vrot.slane %v25909_v45, 4  ;;  %v23921_v63 = vsel %vm2388_vm1, %v9265_v54, %v9274_v20  ;;  %v25911_v18 = vshll.u32 %v23716_v46, 16  ;;  %v25912_v28 = vshrl.u32 %v23740_v34, 16  ;;  %v18631_v54 = vld [vmem:[#allocation2 + $0xbc] sm:$0xff]  }
 0xb40   : > { %v9306_v60 = vrot.slane %v25910_v29, 3  ;;  %v9292_v1 = vor.u32 %v9291_v39, %v9288_v6  ;;  %v25913_v52 = vcombine.low %v23693_v19, %v23703_v35  ;;  %v23931_v61 = vsel %vm2388_vm1, %v9274_v20, %v9283_v31 }
 0xb41   : > { %v9309_v5 = vrot.slane %v25911_v18, 4  ;;  %v9315_v50 = vrot.slane %v25912_v28, 3  ;;  %v9301_v32 = vor.u32 %v9300_v15, %v9297_v55  ;;  %v25914_v22 = vshll.u32 %v23740_v34, 16  ;;  %v18640_v28 = vld [vmem:[#allocation8 + $0x98] sm:$0xff]  }
 0xb42   : > { %16899 = vmatmul.mubr.bf16.gmra.mrb[52].mxu1 %v25913_v52  ;;  %v25915_v51 = vshrl.u32 %v23763_v21, 16  ;;  %v25916_v46 = vcombine.low %v23712_v2, %v23718_v9  ;;  %v23941_v58 = vsel %vm2388_vm1, %v9283_v31, %v9292_v1  ;;  %v25917_v35 = vshll.u32 %v23763_v21, 16  ;;  %v24021_v52 = vld [vmem:[#allocation2 + $0x28] sm:$0xf] }
 0xb43   : > { %v9318_v10 = vrot.slane %v25914_v22, 4  ;;  %v9310_v38 = vor.u32 %v9309_v5, %v9306_v60  ;;  %v25918_v11 = vshrl.u32 %v23785_v42, 16  ;;  %v23948_v34 = vsel %vm2388_vm1, %v9292_v1, %v9301_v32  ;;  %v24034_v22 = vld [vmem:[#allocation2 + $0x40] sm:$0xf] }
 0xb44   : > { %v9324_v53 = vrot.slane %v25915_v51, 3  ;;  %16902 = vmatprep.mubr.bf16.mxu1 %v25916_v46  ;;  %v9327_v19 = vrot.slane %v25917_v35, 4  ;;  %v25919_v14 = vshll.u32 %v23785_v42, 16  ;;  %v25920_v2 = vshrl.u32 %v23790_v49, 16  ;;  %v24043_v46 = vld [vmem:[#allocation2 + $0x4c] sm:$0xf] }
 0xb45   : > { %v9333_v62 = vrot.slane %v25918_v11, 3  ;;  %v9319_v12 = vor.u32 %v9318_v10, %v9315_v50  ;;  %v25921_v6 = vshll.u32 %v23724_v8, 16  ;;  %v23957_v21 = vsel %vm2388_vm1, %v9301_v32, %v9310_v38  ;;  %v18642_v50 = vld [vmem:[#allocation8 + $0xa8] sm:$0xff]   ;;  %v24036_v10 = vld [vmem:[#allocation2 + $0x44] sm:$0xf]  ;;  %25925 = vst [vmem:[#allocation74_spill] sm:$0xff] %v24043_v46 }
 0xb46   : > { %v9336_v4 = vrot.slane %v25919_v14, 4  ;;  %v9342_v9 = vrot.slane %v25920_v2, 3  ;;  %v9328_v0 = vor.u32 %v9327_v19, %v9324_v53  ;;  %v25922_v39 = vshll.u32 %v23790_v49, 16  ;;  %v24032_v32 = vld [vmem:[#allocation2 + $0x3c] sm:$0xf] }
 0xb47   : > { %v13675_v20 = vrot.slane %v25921_v6, 1  ;;  %v13668_v55 = vsel %vm3085_vm2, %v23773_v59, %v23759_v57  ;;  %v23965_v42 = vsel %vm2388_vm1, %v9310_v38, %v9319_v12  ;;  %v14792_v49 = vcombine.low %v23733_v3, %v23742_v24  ;;  %v25924_v24 = vld [vmem:[#allocation72_spill] sm:$0xff]  ;;  %v24041_v53 = vld [vmem:[#allocation2 + $0x48] sm:$0xf]  ;;  %v24045_v38 = vld [vmem:[#allocation2 + $0x50] sm:$0xf] }
 0xb48   : > { %v9345_v26 = vrot.slane %v25922_v39, 4  ;;  %v9337_v31 = vor.u32 %v9336_v4, %v9333_v62  ;;  %17407 = vmatmul.mubr.bf16.gmra.mrb[116].mxu0 %v13668_v55  ;;  %v23970_v15 = vsel %vm2388_vm1, %v9319_v12, %v9328_v0  ;;  %v13677_v60 = vshrl.u32 %v23724_v8, 16  ;;  %25926 = vst [vmem:[#allocation73_spill] sm:$0xff] %v24045_v38  ;;  %v24049_v35 = vld [vmem:[#allocation2 + $0x58] sm:$0xf] }
 0xb49   : > { %v13676_v45 = vsel %vm3085_vm2, %v23781_v25, %v13675_v20  ;;  %v13681_v57 = vshll.u32 %v18631_v54, 16  ;;  %v14793_v1 = vcombine.low %v23744_v40, %v23756_v41  ;;  %v14794_v8 = vcombine.low %v23768_v23, %v23768_v23  ;;  %v18638_v40 = vld [vmem:[#allocation8 + $0x88] sm:$0xff]   ;;  %v18639_v41 = vld [vmem:[#allocation8 + $0x90] sm:$0xff]   ;;  %v18641_v23 = vld [vmem:[#allocation8 + $0xa0] sm:$0xff]   ;;  %25928 = vst [vmem:[#allocation13_spill] sm:$0xff] %v24049_v35 }
 0xb4a   : > { %v23972_v29 = vor.u32 %v9345_v26, %v9342_v9  ;;  %17410 = vmatprep.mubr.bf16.mxu0 %v13676_v45  ;;  %v23978_v59 = vsel %vm2388_vm1, %v9328_v0, %v9337_v31  ;;  %16903 = vmatmul.mubr.bf16.gmra.mrb[56].mxu1 %v14792_v49  ;;  %v13679_v18 = vor.u32 %v13677_v60, %v13675_v20  ;;  %v24051_v19 = vld [vmem:[#allocation2 + $0x5c] sm:$0xf]  ;;  %v24053_v11 = vld [vmem:[#allocation2 + $0x60] sm:$0xf]  ;;  %v24055_v62 = vld [vmem:[#allocation2 + $0x64] sm:$0xf] }
 0xb4b   : > { %16906 = vmatprep.mubr.bf16.mxu1 %v14793_v1  ;;  %v23986_v5 = vrot.slane %v13681_v57, 1  ;;  %25929 = vst [vmem:[#allocation75_spill] sm:$0xff] %v24051_v19  ;;  %25930 = vst [vmem:[#allocation15_spill] sm:$0xff] %v24053_v11  ;;  %v24057_v54 = vld [vmem:[#allocation2 + $0x68] sm:$0xf]  ;;  %v18648_v4 = vld [vmem:[#allocation2 + $0x14] sm:$0xff]  }
 0xb4c   : > { %v23984_v25 = vsel %vm2388_vm1, %v9337_v31, %v23972_v29  ;;  %25931 = vst [vmem:[#allocation80_spill] sm:$0xff] %v24055_v62  ;;  %25932 = vst [vmem:[#allocation14_spill] sm:$0xff] %v24057_v54  ;;  %v24059_v12 = vld [vmem:[#allocation2 + $0x6c] sm:$0xf]  ;;  %v24063_v14 = vld [vmem:[#allocation2 + $0x74] sm:$0xf] }
 0xb4d   : > { %25923 = vst [vmem:[#allocation38_spill] sm:$0xff] %v23986_v5  ;;  %v13684_v3 = vsel %vm3085_vm2, %v13679_v18, %v23986_v5  ;;  %25933 = vst [vmem:[#allocation16_spill] sm:$0xff] %v24059_v12  ;;  %v24067_v2 = vld [vmem:[#allocation2 + $0x78] sm:$0xf]  ;;  %v24069_v9 = vld [vmem:[#allocation2 + $0x7c] sm:$0xf] }
 0xb4e   : > { %25935 = vst [vmem:[#allocation17_spill] sm:$0xff] %v24063_v14  ;;  %25936 = vst [vmem:[#allocation77_spill] sm:$0xff] %v24067_v2  ;;  %v24071_v6 = vld [vmem:[#allocation2 + $0x80] sm:$0xf]  ;;  %v24073_v20 = vld [vmem:[#allocation2 + $0x84] sm:$0xf] }
 0xb4f   : > { %25937 = vst [vmem:[#allocation18_spill] sm:$0xff] %v24069_v9  ;;  %25938 = vst [vmem:[#allocation19_spill] sm:$0xff] %v24071_v6  ;;  %v24075_v0 = vld [vmem:[#allocation2 + $0x88] sm:$0xf]  ;;  %v24077_v39 = vld [vmem:[#allocation2 + $0x8c] sm:$0xf] }
 0xb50   : > { %17411 = vmatmul.mubr.bf16.gmra.mrb[120].mxu0 %v13684_v3  ;;  %25939 = vst [vmem:[#allocation20_spill] sm:$0xff] %v24073_v20  ;;  %25940 = vst [vmem:[#allocation21_spill] sm:$0xff] %v24075_v0  ;;  %v24081_v55 = vld [vmem:[#allocation2 + $0x90] sm:$0xf]  ;;  %v24083_v31 = vld [vmem:[#allocation2 + $0x94] sm:$0xf] }
 0xb51   : > { %25941 = vst [vmem:[#allocation22_spill] sm:$0xff] %v24077_v39  ;;  %25942 = vst [vmem:[#allocation23_spill] sm:$0xff] %v24081_v55  ;;  %v24085_v45 = vld [vmem:[#allocation2 + $0x98] sm:$0xf]  ;;  %v24087_v49 = vld [vmem:[#allocation2 + $0x9c] sm:$0xf] }
 0xb52   : > { %16907 = vmatmul.mubr.bf16.gmra.mrb[60].mxu1 %v14794_v8  ;;  %25943 = vst [vmem:[#allocation24_spill] sm:$0xff] %v24083_v31  ;;  %25944 = vst [vmem:[#allocation26_spill] sm:$0xff] %v24085_v45  ;;  %v24089_v60 = vld [vmem:[#allocation2 + $0xa0] sm:$0xf]  ;;  %v24095_v18 = vld [vmem:[#allocation2 + $0xa4] sm:$0xf] }
 0xb53   : > { %16926 = vmatprep.mubr.bf16.mxu1 %v25924_v24  ;;  %25945 = vst [vmem:[#allocation27_spill] sm:$0xff] %v24087_v49  ;;  %25946 = vst [vmem:[#allocation28_spill] sm:$0xff] %v24089_v60  ;;  %v24097_v3 = vld [vmem:[#allocation2 + $0xa8] sm:$0xf]  ;;  %v24099_v8 = vld [vmem:[#allocation2 + $0xac] sm:$0xf] }
 0xb54   : > { %25947 = vst [vmem:[#allocation29_spill] sm:$0xff] %v24095_v18  ;;  %25948 = vst [vmem:[#allocation81_spill] sm:$0xff] %v24097_v3  ;;  %v24117_v1 = vld [vmem:[#allocation2 + $0xbc] sm:$0xf]  ;;  %v24119_v24 = vld [vmem:[#allocation2 + $0xc0] sm:$0xf] }
 0xb55   : > { %25949 = vst [vmem:[#allocation30_spill] sm:$0xff] %v24099_v8  ;;  %25953 = vst [vmem:[#allocation82_spill] sm:$0xff] %v24117_v1  ;;  %v18645_v26 = vld [vmem:[#allocation2 + $0x4] sm:$0xff]   ;;  %v18649_v5 = vld [vmem:[#allocation2 + $0x1c] sm:$0xff]  }
 0xb56   : > { %25954 = vst [vmem:[#allocation32_spill] sm:$0xff] %v24119_v24  ;;  %v9849_v24 = vshrl.u32 %v18648_v4, 16  ;;  %v24180_v8 = vld [vmem:[#allocation2 + $0x1c] sm:$0xf]  ;;  %v24211_v18 = vld [vmem:[#allocation2 + $0x54] sm:$0xf] }
 0xb57   : > { %25956 = vst [vmem:[#allocation33_spill] sm:$0xff] %v24180_v8  ;;  %25970 = vst [vmem:[#allocation43_spill] sm:$0xff] %v24211_v18  ;;  %v24213_v3 = vld [vmem:[#allocation2 + $0x58] sm:$0xf]  ;;  %v24216_v49 = vld [vmem:[#allocation2 + $0x5c] sm:$0xf] }
 0xb58   : > { %25971 = vst [vmem:[#allocation91_spill] sm:$0xff] %v24213_v3  ;;  %25972 = vst [vmem:[#allocation45_spill] sm:$0xff] %v24216_v49  ;;  %v24218_v60 = vld [vmem:[#allocation2 + $0x60] sm:$0xf]  ;;  %v24220_v31 = vld [vmem:[#allocation2 + $0x64] sm:$0xf] }
 0xb59   : > { %25973 = vst [vmem:[#allocation93_spill] sm:$0xff] %v24218_v60  ;;  %25974 = vst [vmem:[#allocation47_spill] sm:$0xff] %v24220_v31  ;;  %v24222_v45 = vld [vmem:[#allocation2 + $0x68] sm:$0xf]  ;;  %v24224_v39 = vld [vmem:[#allocation2 + $0x6c] sm:$0xf] }
 0xb5a   : > { %16927 = vmatmul.mubr.bf16.vlgmr.msra.gmra.mrb[16].mxu1 %v23808_v43  ;;  %v18644_v43 = vld [vmem:[#allocation8 + $0xb8] sm:$0xff]   ;;  %25975 = vst [vmem:[#allocation94_spill] sm:$0xff] %v24222_v45  ;;  %25976 = vst [vmem:[#allocation49_spill] sm:$0xff] %v24224_v39  ;;  %v24233_v9 = vld [vmem:[#allocation2 + $0x74] sm:$0xf] }
 0xb5b   : > { %16975 = vmatpush3.bf16.msra.mxu1 %v23536_v13  ;;  %16930 = vmatprep.mubr.bf16.mxu1 %v23830_v7  ;;  %v18643_v13 = vld [vmem:[#allocation8 + $0xb0] sm:$0xff]   ;;  %v24002_v7 = vld [vmem:[#allocation8 + $0xc0] sm:$0xff]   ;;  %v24226_v55 = vld [vmem:[#allocation2 + $0x70] sm:$0xf]  ;;  %25979 = vst [vmem:[#allocation95_spill] sm:$0xff] %v24233_v9 }
 0xb5c   : > { %16976 = vmatprep.subr.bf16.mxu1 %v18638_v40  ;;  %25977 = vst [vmem:[#allocation96_spill] sm:$0xff] %v24226_v55  ;;  %v24235_v6 = vld [vmem:[#allocation2 + $0x78] sm:$0xf]  ;;  %v24237_v14 = vld [vmem:[#allocation2 + $0x7c] sm:$0xf]  ;;  %v26059_v18 = vld [vmem:[#allocation26_spill] sm:$0xff] }
 0xb5d   : > { %25980 = vst [vmem:[#allocation53_spill] sm:$0xff] %v24235_v6  ;;  %25981 = vst [vmem:[#allocation97_spill] sm:$0xff] %v24237_v14  ;;  %v24239_v2 = vld [vmem:[#allocation2 + $0x80] sm:$0xf]  ;;  %v24241_v12 = vld [vmem:[#allocation2 + $0x84] sm:$0xf] }
 0xb5e   : > { %25982 = vst [vmem:[#allocation55_spill] sm:$0xff] %v24239_v2  ;;  %25983 = vst [vmem:[#allocation98_spill] sm:$0xff] %v24241_v12  ;;  %v24245_v62 = vld [vmem:[#allocation2 + $0x8c] sm:$0xf]  ;;  %v24247_v20 = vld [vmem:[#allocation2 + $0x90] sm:$0xf] }
 0xb5f   : > { %16977 = vmatpush3.bf16.msra.mxu1 %v18638_v40  ;;  %v24121_v40 = vld [vmem:[#allocation2 + $0xc4] sm:$0xf]  ;;  %25985 = vst [vmem:[#allocation40_spill] sm:$0xff] %v24245_v62  ;;  %25986 = vst [vmem:[#allocation58_spill] sm:$0xff] %v24247_v20  ;;  %v24258_v8 = vld [vmem:[#allocation2 + $0x9c] sm:$0xf] }
 0xb60   : > { %16978 = vmatprep.subr.bf16.mxu1 %v18639_v41  ;;  %25955 = vst [vmem:[#allocation84_spill] sm:$0xff] %v24121_v40  ;;  %25990 = vst [vmem:[#allocation60_spill] sm:$0xff] %v24258_v8  ;;  %v24260_v54 = vld [vmem:[#allocation2 + $0xa0] sm:$0xf]  ;;  %v24262_v19 = vld [vmem:[#allocation2 + $0xa4] sm:$0xf] }
 0xb61   : > { %25991 = vst [vmem:[#allocation42_spill] sm:$0xff] %v24260_v54  ;;  %25992 = vst [vmem:[#allocation61_spill] sm:$0xff] %v24262_v19  ;;  %v24264_v11 = vld [vmem:[#allocation2 + $0xa8] sm:$0xf]  ;;  %v24277_v35 = vld [vmem:[#allocation2 + $0xb4] sm:$0xf] }
 0xb62   : > { %16931 = vmatmul.mubr.bf16.gmra.mrb[20].mxu1 %v23840_v30  ;;  %v24009_v30 = vld [vmem:[#allocation2 + $0x10] sm:$0xf]  ;;  %25993 = vst [vmem:[#allocation46_spill] sm:$0xff] %v24264_v11  ;;  %25997 = vst [vmem:[#allocation52_spill] sm:$0xff] %v24277_v35  ;;  %v24295_v46 = vld [vmem:[#allocation2 + $0xc0] sm:$0xf] }
 0xb63   : > { %16934 = vmatprep.mubr.bf16.mxu1 %v23843_v33  ;;  %16979 = vmatpush3.bf16.msra.mxu1 %v18639_v41  ;;  %v24011_v33 = vld [vmem:[#allocation2 + $0x14] sm:$0xf]  ;;  %v24105_v41 = vld [vmem:[#allocation2 + $0xb0] sm:$0xf]  ;;  %26002 = vst [vmem:[#allocation50_spill] sm:$0xff] %v24295_v46  ;;  %v18665_v60 = vld [vmem:[#allocation2 + $0x7c] sm:$0xff]  }
 0xb64   : > { %16980 = vmatprep.subr.bf16.mxu1 %v18640_v28  ;;  %25950 = vst [vmem:[#allocation25_spill] sm:$0xff] %v24105_v41  ;;  %v24209_v41 = vld [vmem:[#allocation2 + $0x50] sm:$0xf]  ;;  %v18666_v54 = vld [vmem:[#allocation2 + $0x84] sm:$0xff]   ;;  %v9949_v3 = vshll.u32 %v18665_v60, 16  ;;  %v26045_v8 = vld [vmem:[#allocation15_spill] sm:$0xff] }
 0xb65   : > { %25969 = vst [vmem:[#allocation92_spill] sm:$0xff] %v24209_v41  ;;  %v26050_v12 = vld [vmem:[#allocation16_spill] sm:$0xff]  ;;  %v26054_v6 = vld [vmem:[#allocation18_spill] sm:$0xff]  ;;  %v26057_v31 = vld [vmem:[#allocation23_spill] sm:$0xff] }
 0xb67   : > { %16981 = vmatpush3.bf16.msra.mxu1 %v18640_v28  ;;  %v24107_v28 = vld [vmem:[#allocation2 + $0xb4] sm:$0xf] }
 0xb68   : > { %16982 = vmatprep.subr.bf16.mxu1 %v18641_v23  ;;  %25951 = vst [vmem:[#allocation31_spill] sm:$0xff] %v24107_v28 }
 0xb6a   : > { %16935 = vmatmul.mubr.bf16.gmra.mrb[24].mxu1 %v23850_v47  ;;  %v24013_v47 = vld [vmem:[#allocation2 + $0x18] sm:$0xf] }
 0xb6b   : > { %16938 = vmatprep.mubr.bf16.mxu1 %v23853_v16  ;;  %16983 = vmatpush3.bf16.msra.mxu1 %v18641_v23  ;;  %v24015_v16 = vld [vmem:[#allocation2 + $0x1c] sm:$0xf]  ;;  %v24109_v23 = vld [vmem:[#allocation2 + $0xb8] sm:$0xf] }
 0xb6c   : > { %16984 = vmatprep.subr.bf16.mxu1 %v18642_v50  ;;  %25952 = vst [vmem:[#allocation86_spill] sm:$0xff] %v24109_v23  ;;  %v18651_v23 = vld [vmem:[#allocation2 + $0x2c] sm:$0xff]  }
 0xb6f   : > { %16985 = vmatpush3.bf16.msra.mxu1 %v18642_v50 }
 0xb70   : > { %16986 = vmatprep.subr.bf16.mxu1 %v18643_v13 }
 0xb72   : > { %16939 = vmatmul.mubr.bf16.gmra.mrb[28].mxu1 %v23867_v17  ;;  %v24017_v17 = vld [vmem:[#allocation2 + $0x20] sm:$0xf] }
 0xb73   : > { %16942 = vmatprep.mubr.bf16.mxu1 %v23877_v44  ;;  %16987 = vmatpush3.bf16.msra.mxu1 %v18643_v13  ;;  %v24019_v44 = vld [vmem:[#allocation2 + $0x24] sm:$0xf]  ;;  %v9830_v13 = vshrl.u32 %v18645_v26, 16 }
 0xb74   : > { %16988 = vmatprep.subr.bf16.mxu1 %v18644_v43 }
 0xb77   : > { %16989 = vmatpush3.bf16.msra.mxu1 %v18644_v43  ;;  %v9832_v43 = vshll.u32 %v18645_v26, 16 }
 0xb78   : > { %17038 = vmatprep.subr.bf16.mxu1 %v24002_v7 }
 0xb79   : > { %v9834_v57 = vrot.slane %v9832_v43, 1 }
 0xb7a   : > { %16943 = vmatmul.mubr.bf16.gmra.mrb[32].mxu1 %v23884_v56  ;;  %v24023_v56 = vld [vmem:[#allocation2 + $0x2c] sm:$0xf] }
 0xb7b   : > { %16946 = vmatprep.mubr.bf16.mxu1 %v23891_v48  ;;  %v24025_v48 = vld [vmem:[#allocation2 + $0x30] sm:$0xf] }
 0xb82   : > { %16947 = vmatmul.mubr.bf16.gmra.mrb[36].mxu1 %v23898_v27  ;;  %v24027_v27 = vld [vmem:[#allocation2 + $0x34] sm:$0xf] }
 0xb83   : > { %16950 = vmatprep.mubr.bf16.mxu1 %v23906_v37  ;;  %v24030_v37 = vld [vmem:[#allocation2 + $0x38] sm:$0xf] }
 0xb8a   : > { %16951 = vmatmul.mubr.bf16.gmra.mrb[40].mxu1 %v23914_v36  ;;  %v24047_v36 = vld [vmem:[#allocation2 + $0x54] sm:$0xf] }
 0xb8b   : > { %16954 = vmatprep.mubr.bf16.mxu1 %v23921_v63  ;;  %25927 = vst [vmem:[#allocation76_spill] sm:$0xff] %v24047_v36  ;;  %v24061_v63 = vld [vmem:[#allocation2 + $0x70] sm:$0xf] }
 0xb8c   : > { %25934 = vst [vmem:[#allocation78_spill] sm:$0xff] %v24061_v63  ;;  %v24243_v63 = vld [vmem:[#allocation2 + $0x88] sm:$0xf]  ;;  %v24275_v36 = vld [vmem:[#allocation2 + $0xb0] sm:$0xf] }
 0xb8d   : > { %25984 = vst [vmem:[#allocation57_spill] sm:$0xff] %v24243_v63  ;;  %25996 = vst [vmem:[#allocation63_spill] sm:$0xff] %v24275_v36 }
 0xb92   : > { %16955 = vmatmul.mubr.bf16.gmra.mrb[44].mxu1 %v23931_v61  ;;  %v18646_v61 = vld [vmem:[#allocation2 + $0xc] sm:$0xff]  }
 0xb93   : > { %16958 = vmatprep.mubr.bf16.mxu1 %v23941_v58  ;;  %v9837_v50 = vshll.u32 %v18646_v61, 16  ;;  %v9835_v58 = vor.u32 %v9834_v57, %v9830_v13  ;;  %v9841_v40 = vshrl.u32 %v18646_v61, 16  ;;  %v18653_v13 = vld [vmem:[#allocation2 + $0x34] sm:$0xff]   ;;  %v9857_v61 = vshrl.u32 %v18649_v5, 16  ;;  %v26049_v63 = vld [vmem:[#allocation78_spill] sm:$0xff] }
 0xb94   : > { %v14879_v2 = vcombine.low %v26050_v12, %v26049_v63 }
 0xb95   : > { %v9839_v51 = vrot.slane %v9837_v50, 1 }
 0xb97   : > { %v9843_v26 = vor.u32 %v9841_v40, %v9839_v51 }
 0xb9a   : > { %16959 = vmatmul.mubr.bf16.gmra.mrb[48].mxu1 %v23948_v34  ;;  %v9845_v34 = vshll.u32 %v18648_v4, 16  ;;  %v9869_v4 = vshll.u32 %v18651_v23, 16 }
 0xb9b   : > { %16962 = vmatprep.mubr.bf16.mxu1 %v23957_v21  ;;  %v9840_v21 = vsel %vm3085_vm2, %v9835_v58, %v9839_v51  ;;  %v18655_v51 = vld [vmem:[#allocation8 + $0xd0] sm:$0xff]  }
 0xba2   : > { %16963 = vmatmul.mubr.bf16.gmra.mrb[52].mxu1 %v23965_v42  ;;  %v9847_v42 = vrot.slane %v9845_v34, 1  ;;  %v9877_v34 = vshll.u32 %v18653_v13, 16 }
 0xba3   : > { %16966 = vmatprep.mubr.bf16.mxu1 %v23970_v15  ;;  %v18650_v15 = vld [vmem:[#allocation2 + $0x24] sm:$0xff]  }
 0xba4   : > { %v9851_v43 = vor.u32 %v9849_v24, %v9847_v42  ;;  %v9861_v1 = vshll.u32 %v18650_v15, 16  ;;  %v9848_v57 = vsel %vm3085_vm2, %v9843_v26, %v9847_v42  ;;  %v9865_v58 = vshrl.u32 %v18650_v15, 16  ;;  %v18660_v42 = vld [vmem:[#allocation8 + $0xd8] sm:$0xff]  }
 0xba5   : > { %v9881_v15 = vshrl.u32 %v18653_v13, 16 }
 0xbaa   : > { %16967 = vmatmul.mubr.bf16.gmra.mrb[56].mxu1 %v23978_v59  ;;  %v9853_v59 = vshll.u32 %v18649_v5, 16  ;;  %v9873_v5 = vshrl.u32 %v18651_v23, 16  ;;  %v18658_v23 = vld [vmem:[#allocation2 + $0x54] sm:$0xff]  }
 0xbab   : > { %16970 = vmatprep.mubr.bf16.mxu1 %v23984_v25  ;;  %v18652_v25 = vld [vmem:[#allocation8 + $0xc8] sm:$0xff]  }
 0xbac   : > { %v9855_v28 = vrot.slane %v9853_v59, 1  ;;  %v18654_v59 = vld [vmem:[#allocation2 + $0x3c] sm:$0xff]  }
 0xbad   : > { %v9889_v13 = vshrl.u32 %v18654_v59, 16 }
 0xbae   : > { %v9856_v50 = vsel %vm3085_vm2, %v9851_v43, %v9855_v28  ;;  %v9859_v24 = vor.u32 %v9857_v61, %v9855_v28  ;;  %v18656_v43 = vld [vmem:[#allocation2 + $0x44] sm:$0xff]   ;;  %v18663_v28 = vld [vmem:[#allocation8 + $0xe0] sm:$0xff]  }
 0xbaf   : > { %v9893_v61 = vshll.u32 %v18656_v43, 16 }
 0xbb2   : > { %16971 = vmatmul.mubr.bf16.gmra.mrb[64].mxu1 %v23972_v29  ;;  %v9863_v29 = vrot.slane %v9861_v1, 1 }
 0xbb3   : > { %16990 = vmatprep.mubr.bf16.mxu1 %v9840_v21  ;;  %v9871_v21 = vrot.slane %v9869_v4, 1  ;;  %v18657_v4 = vld [vmem:[#allocation2 + $0x4c] sm:$0xff]  }
 0xbb4   : > { %v9867_v40 = vor.u32 %v9865_v58, %v9863_v29  ;;  %v9864_v26 = vsel %vm3085_vm2, %v9859_v24, %v9863_v29  ;;  %v18668_v29 = vld [vmem:[#allocation8 + $0xe8] sm:$0xff]  }
 0xbb6   : > { %v9872_v1 = vsel %vm3085_vm2, %v9867_v40, %v9871_v21 }
 0xbba   : > { %16991 = vmatmul.mubr.bf16.vlgmr.msra.gmra.mrb[16].mxu1 %v9848_v57  ;;  %v9885_v57 = vshll.u32 %v18654_v59, 16  ;;  %v18676_v59 = vld [vmem:[#allocation8 + $0xf8] sm:$0xff]  }
 0xbbb   : > { %17039 = vmatpush3.bf16.msra.mxu1 %v24002_v7  ;;  %16994 = vmatprep.mubr.bf16.mxu1 %v9856_v50  ;;  %v9879_v7 = vrot.slane %v9877_v34, 1  ;;  %v9875_v50 = vor.u32 %v9873_v5, %v9871_v21  ;;  %v9895_v34 = vrot.slane %v9893_v61, 1  ;;  %v24166_v21 = vld [vmem:[#allocation2 + $0x5c] sm:$0xff]  }
 0xbbc   : > { %17040 = vmatprep.subr.bf16.mxu1 %v18652_v25  ;;  %v9887_v58 = vrot.slane %v9885_v57, 1 }
 0xbbd   : > { %v9880_v24 = vsel %vm3085_vm2, %v9875_v50, %v9879_v7  ;;  %v24169_v50 = vld [vmem:[#allocation2 + $0x64] sm:$0xff]  }
 0xbbf   : > { %17041 = vmatpush3.bf16.msra.mxu1 %v18652_v25  ;;  %v9883_v25 = vor.u32 %v9881_v15, %v9879_v7  ;;  %v9909_v15 = vshll.u32 %v18658_v23, 16  ;;  %v9917_v7 = vshll.u32 %v24166_v21, 16 }
 0xbc0   : > { %17042 = vmatprep.subr.bf16.mxu1 %v18655_v51 }
 0xbc1   : > { %v9888_v40 = vsel %vm3085_vm2, %v9883_v25, %v9887_v58  ;;  %v24171_v25 = vld [vmem:[#allocation2 + $0x6c] sm:$0xff]   ;;  %v9911_v61 = vrot.slane %v9909_v15, 1 }
 0xbc2   : > { %16995 = vmatmul.mubr.bf16.gmra.mrb[20].mxu1 %v9864_v26  ;;  %v9901_v26 = vshll.u32 %v18657_v4, 16  ;;  %v24192_v15 = vld [vmem:[#allocation2 + $0x30] sm:$0xf] }
 0xbc3   : > { %16998 = vmatprep.mubr.bf16.mxu1 %v9872_v1  ;;  %17043 = vmatpush3.bf16.msra.mxu1 %v18655_v51  ;;  %v9897_v51 = vshrl.u32 %v18656_v43, 16  ;;  %v9891_v1 = vor.u32 %v9889_v13, %v9887_v58  ;;  %v9905_v58 = vshrl.u32 %v18657_v4, 16  ;;  %v9925_v13 = vshll.u32 %v24169_v50, 16  ;;  %v24186_v4 = vld [vmem:[#allocation2 + $0x28] sm:$0xf]  ;;  %25961 = vst [vmem:[#allocation88_spill] sm:$0xff] %v24192_v15 }
 0xbc4   : > { %17044 = vmatprep.subr.bf16.mxu1 %v18660_v42  ;;  %v9903_v57 = vrot.slane %v9901_v26, 1  ;;  %v24178_v26 = vld [vmem:[#allocation8 + $0x100] sm:$0xff]   ;;  %25959 = vst [vmem:[#allocation85_spill] sm:$0xff] %v24186_v4 }
 0xbc5   : > { %v9899_v5 = vor.u32 %v9897_v51, %v9895_v34  ;;  %v9896_v43 = vsel %vm3085_vm2, %v9891_v1, %v9895_v34  ;;  %v24182_v1 = vld [vmem:[#allocation2 + $0x20] sm:$0xf]  ;;  %v24207_v51 = vld [vmem:[#allocation2 + $0x4c] sm:$0xf] }
 0xbc6   : > { %v9907_v34 = vor.u32 %v9905_v58, %v9903_v57  ;;  %25957 = vst [vmem:[#allocation83_spill] sm:$0xff] %v24182_v1  ;;  %v24203_v58 = vld [vmem:[#allocation2 + $0x44] sm:$0xf]  ;;  %25968 = vst [vmem:[#allocation41_spill] sm:$0xff] %v24207_v51  ;;  %v24256_v1 = vld [vmem:[#allocation2 + $0x98] sm:$0xf] }
 0xbc7   : > { %17045 = vmatpush3.bf16.msra.mxu1 %v18660_v42  ;;  %v18671_v42 = vld [vmem:[#allocation8 + $0xf0] sm:$0xff]   ;;  %25966 = vst [vmem:[#allocation39_spill] sm:$0xff] %v24203_v58  ;;  %25989 = vst [vmem:[#allocation44_spill] sm:$0xff] %v24256_v1  ;;  %v26046_v1 = vld [vmem:[#allocation75_spill] sm:$0xff] }
 0xbc8   : > { %17046 = vmatprep.subr.bf16.mxu1 %v18663_v28  ;;  %v26061_v51 = vld [vmem:[#allocation28_spill] sm:$0xff]  ;;  %v26063_v58 = vld [vmem:[#allocation81_spill] sm:$0xff] }
 0xbca   : > { %16999 = vmatmul.mubr.bf16.gmra.mrb[24].mxu1 %v9880_v24  ;;  %v9913_v24 = vshrl.u32 %v18658_v23, 16 }
 0xbcb   : > { %17002 = vmatprep.mubr.bf16.mxu1 %v9888_v40  ;;  %17047 = vmatpush3.bf16.msra.mxu1 %v18663_v28  ;;  %v9904_v28 = vsel %vm3085_vm2, %v9899_v5, %v9903_v57  ;;  %v9919_v40 = vrot.slane %v9917_v7, 1  ;;  %v24184_v5 = vld [vmem:[#allocation2 + $0x24] sm:$0xf]  ;;  %v24194_v7 = vld [vmem:[#allocation2 + $0x34] sm:$0xf] }
 0xbcc   : > { %17048 = vmatprep.subr.bf16.mxu1 %v18668_v29  ;;  %25958 = vst [vmem:[#allocation34_spill] sm:$0xff] %v24184_v5  ;;  %v9915_v23 = vor.u32 %v9913_v24, %v9911_v61  ;;  %25962 = vst [vmem:[#allocation36_spill] sm:$0xff] %v24194_v7  ;;  %v24200_v57 = vld [vmem:[#allocation2 + $0x40] sm:$0xf]  ;;  %v24205_v24 = vld [vmem:[#allocation2 + $0x48] sm:$0xf] }
 0xbcd   : > { %25965 = vst [vmem:[#allocation89_spill] sm:$0xff] %v24200_v57  ;;  %25967 = vst [vmem:[#allocation90_spill] sm:$0xff] %v24205_v24  ;;  %v24273_v5 = vld [vmem:[#allocation2 + $0xac] sm:$0xf]  ;;  %v24299_v57 = vld [vmem:[#allocation2 + $0xc8] sm:$0xf] }
 0xbce   : > { %25995 = vst [vmem:[#allocation48_spill] sm:$0xff] %v24273_v5  ;;  %26004 = vst [vmem:[#allocation54_spill] sm:$0xff] %v24299_v57 }
 0xbcf   : > { %17049 = vmatpush3.bf16.msra.mxu1 %v18668_v29  ;;  %v9921_v29 = vshrl.u32 %v24166_v21, 16  ;;  %v24188_v21 = vld [vmem:[#allocation2 + $0x74] sm:$0xff]  }
 0xbd0   : > { %17050 = vmatprep.subr.bf16.mxu1 %v18671_v42  ;;  %v9941_v4 = vshll.u32 %v24188_v21, 16 }
 0xbd2   : > { %17003 = vmatmul.mubr.bf16.gmra.mrb[28].mxu1 %v9896_v43  ;;  %v24196_v43 = vld [vmem:[#allocation2 + $0x38] sm:$0xf] }
 0xbd3   : > { %17006 = vmatprep.mubr.bf16.mxu1 %v9904_v28  ;;  %17051 = vmatpush3.bf16.msra.mxu1 %v18671_v42  ;;  %v24190_v42 = vld [vmem:[#allocation2 + $0x2c] sm:$0xf]  ;;  %25963 = vst [vmem:[#allocation87_spill] sm:$0xff] %v24196_v43  ;;  %v24198_v28 = vld [vmem:[#allocation2 + $0x3c] sm:$0xf]  ;;  %v9945_v43 = vshrl.u32 %v24188_v21, 16 }
 0xbd4   : > { %17052 = vmatprep.subr.bf16.mxu1 %v18676_v59  ;;  %25960 = vst [vmem:[#allocation35_spill] sm:$0xff] %v24190_v42  ;;  %25964 = vst [vmem:[#allocation37_spill] sm:$0xff] %v24198_v28  ;;  %v9943_v28 = vrot.slane %v9941_v4, 1  ;;  %v9953_v21 = vshrl.u32 %v18665_v60, 16  ;;  %v18672_v60 = vld [vmem:[#allocation2 + $0xa4] sm:$0xff]  }
 0xbd5   : > { %v24230_v0 = vpop.f32.mrb[84].mxu0 }
 0xbd6   : > { %25978 = vst [vmem:[#allocation51_spill] sm:$0xff] %v24230_v0  ;;  %v24254_v0 = vld [vmem:[#allocation2 + $0x94] sm:$0xf]  ;;  %v9947_v57 = vor.u32 %v9945_v43, %v9943_v28 }
 0xbd7   : > { %17053 = vmatpush3.bf16.msra.mxu1 %v18676_v59  ;;  %v9912_v59 = vsel %vm3085_vm2, %v9907_v34, %v9911_v61  ;;  %v9920_v61 = vsel %vm3085_vm2, %v9915_v23, %v9919_v40  ;;  %v9927_v34 = vrot.slane %v9925_v13, 1  ;;  %v24251_v13 = vpop.f32.mrb[85].mxu0  ;;  %25988 = vst [vmem:[#allocation59_spill] sm:$0xff] %v24254_v0  ;;  %v25999_v23 = vshll.u32 %v24171_v25, 16 }
 0xbd8   : > { %17102 = vmatprep.subr.bf16.mxu1 %v24178_v26  ;;  %25987 = vst [vmem:[#allocation99_spill] sm:$0xff] %v24251_v13  ;;  %v24270_v13 = vpop.f32.mrb[86].mxu0 }
 0xbd9   : > { %25994 = vst [vmem:[#allocation62_spill] sm:$0xff] %v24270_v13  ;;  %v24281_v38 = vpop.f32.mrb[87].mxu0  ;;  %v9935_v15 = vrot.slane %v25999_v23, 1  ;;  %v24287_v13 = vld [vmem:[#allocation2 + $0xbc] sm:$0xf] }
 0xbda   : > { %17007 = vmatmul.mubr.bf16.gmra.mrb[32].mxu1 %v9912_v59  ;;  %v9929_v59 = vshrl.u32 %v24169_v50, 16  ;;  %v9923_v50 = vor.u32 %v9921_v29, %v9919_v40  ;;  %25998 = vst [vmem:[#allocation64_spill] sm:$0xff] %v24281_v38  ;;  %26001 = vst [vmem:[#allocation65_spill] sm:$0xff] %v24287_v13  ;;  %v24297_v38 = vld [vmem:[#allocation2 + $0xc4] sm:$0xf] }
 0xbdb   : > { %17010 = vmatprep.mubr.bf16.mxu1 %v9920_v61  ;;  %v24285_v61 = vld [vmem:[#allocation2 + $0xb8] sm:$0xf]  ;;  %26003 = vst [vmem:[#allocation66_spill] sm:$0xff] %v24297_v38  ;;  %v18667_v38 = vld [vmem:[#allocation2 + $0x8c] sm:$0xff]  }
 0xbdc   : > { %26000 = vst [vmem:[#allocation79_spill] sm:$0xff] %v24285_v61  ;;  %v9931_v7 = vor.u32 %v9929_v59, %v9927_v34  ;;  %v9928_v23 = vsel %vm3085_vm2, %v9923_v50, %v9927_v34  ;;  %v9937_v59 = vshrl.u32 %v24171_v25, 16  ;;  %v9965_v43 = vshll.u32 %v18667_v38, 16  ;;  %v18675_v61 = vld [vmem:[#allocation2 + $0xbc] sm:$0x1f]  }
 0xbdd   : > { %v24330_v50 = vpop.f32.mrb[88].mxu0 }
 0xbde   : > { %26005 = vst [vmem:[#allocation67_spill] sm:$0xff] %v24330_v50  ;;  %v9936_v29 = vsel %vm3085_vm2, %v9931_v7, %v9935_v15  ;;  %v24333_v40 = vpop.f32.mrb[89].mxu0  ;;  %v9939_v34 = vor.u32 %v9937_v59, %v9935_v15  ;;  %v9957_v50 = vshll.u32 %v18666_v54, 16  ;;  %v9961_v15 = vshrl.u32 %v18666_v54, 16 }
 0xbdf   : > { %26006 = vst [vmem:[#allocation71_spill] sm:$0xff] %v24333_v40  ;;  %v24336_v36 = vpop.f32.mrb[90].mxu0  ;;  %v18669_v40 = vld [vmem:[#allocation2 + $0x94] sm:$0xff]   ;;  %v9969_v54 = vshrl.u32 %v18667_v38, 16 }
 0xbe0   : > { %26007 = vst [vmem:[#allocation68_spill] sm:$0xff] %v24336_v36  ;;  %v24339_v46 = vpop.f32.mrb[91].mxu0  ;;  %v9944_v4 = vsel %vm3085_vm2, %v9939_v34, %v9943_v28  ;;  %v9959_v25 = vrot.slane %v9957_v50, 1  ;;  %v9973_v28 = vshll.u32 %v18669_v40, 16  ;;  %v9967_v34 = vrot.slane %v9965_v43, 1 }
 0xbe1   : > { %26008 = vst [vmem:[#allocation69_spill] sm:$0xff] %v24339_v46 }
 0xbe2   : > { %17011 = vmatmul.mubr.bf16.gmra.mrb[36].mxu1 %v9928_v23  ;;  %v9951_v23 = vrot.slane %v9949_v3, 1  ;;  %v9963_v46 = vor.u32 %v9961_v15, %v9959_v25  ;;  %v9971_v43 = vor.u32 %v9969_v54, %v9967_v34 }
 0xbe3   : > { %17014 = vmatprep.mubr.bf16.mxu1 %v9936_v29 }
 0xbe4   : > { %v9952_v29 = vsel %vm3085_vm2, %v9947_v57, %v9951_v23  ;;  %v9955_v3 = vor.u32 %v9953_v21, %v9951_v23  ;;  %v9968_v50 = vsel %vm3085_vm2, %v9963_v46, %v9967_v34  ;;  %v9977_v23 = vshrl.u32 %v18669_v40, 16  ;;  %v18674_v46 = vld [vmem:[#allocation2 + $0xb4] sm:$0xff]  }
 0xbe5   : > { %v24342_v7 = vpop.f32.mrb[92].mxu0  ;;  %v9993_v34 = vshrl.u32 %v18672_v60, 16 }
 0xbe6   : > { %26009 = vst [vmem:[#allocation70_spill] sm:$0xff] %v24342_v7  ;;  %v24345_v36 = vpop.f32.mrb[93].mxu0  ;;  %v18670_v7 = vld [vmem:[#allocation2 + $0x9c] sm:$0xff]  }
 0xbe7   : > { %26010 = vst [vmem:[#allocation56_spill] sm:$0xff] %v24345_v36  ;;  %v24347_v13 = vpop.f32.mrb[94].mxu0  ;;  %v9981_v21 = vshll.u32 %v18670_v7, 16  ;;  %v9985_v40 = vshrl.u32 %v18670_v7, 16 }
 0xbe8   : > { %26011 = vst [vmem:[#allocation72_spill] sm:$0xff] %v24347_v13  ;;  %v24349_v59 = vpop.f32.mrb[95].mxu0 }
 0xbe9   : > { %26012 = vst [vmem:[#allocation100_spill] sm:$0xff] %v24349_v59 }
 0xbea   : > { %17015 = vmatmul.mubr.bf16.gmra.mrb[40].mxu1 %v9944_v4  ;;  %v9960_v4 = vsel %vm3085_vm2, %v9955_v3, %v9959_v25  ;;  %v9989_v25 = vshll.u32 %v18672_v60, 16  ;;  %v9983_v3 = vrot.slane %v9981_v21, 1  ;;  %v14868_v60 = vcombine.low %v24011_v33, %v24013_v47 }
 0xbeb   : > { %17018 = vmatprep.mubr.bf16.mxu1 %v9952_v29  ;;  %v9975_v29 = vrot.slane %v9973_v28, 1 }
 0xbec   : > { %v9991_v38 = vrot.slane %v9989_v25, 1  ;;  %v9987_v21 = vor.u32 %v9985_v40, %v9983_v3  ;;  %v10009_v40 = vshrl.u32 %v18674_v46, 16 }
 0xbed   : > { %v24352_v57 = vpop.f32.mrb[96].mxu0  ;;  %v9979_v59 = vor.u32 %v9977_v23, %v9975_v29 }
 0xbee   : > { %26013 = vst [vmem:[#allocation101_spill] sm:$0xff] %v24352_v57  ;;  %v24355_v36 = vpop.f32.mrb[97].mxu0  ;;  %v18673_v57 = vld [vmem:[#allocation2 + $0xac] sm:$0xff]  }
 0xbef   : > { %26014 = vst [vmem:[#allocation102_spill] sm:$0xff] %v24355_v36  ;;  %v24357_v13 = vpop.f32.mrb[98].mxu0  ;;  %v9997_v54 = vshll.u32 %v18673_v57, 16 }
 0xbf0   : > { %26015 = vst [vmem:[#allocation103_spill] sm:$0xff] %v24357_v13  ;;  %v24359_v15 = vpop.f32.mrb[99].mxu0 }
 0xbf1   : > { %26016 = vst [vmem:[#allocation104_spill] sm:$0xff] %v24359_v15  ;;  %v10005_v15 = vshll.u32 %v18674_v46, 16 }
 0xbf2   : > { %17019 = vmatmul.mubr.bf16.gmra.mrb[44].mxu1 %v9960_v4  ;;  %v9976_v4 = vsel %vm3085_vm2, %v9971_v43, %v9975_v29  ;;  %v9995_v29 = vor.u32 %v9993_v34, %v9991_v38  ;;  %v10363_v43 = vld [vmem:[#allocation2 + $0xc] sm:$0x8]  ;;  %v10013_v34 = vshll.u32 %v18675_v61, 16 }
 0xbf3   : > { %17022 = vmatprep.mubr.bf16.mxu1 %v9968_v50  ;;  %v9984_v50 = vsel %vm3085_vm2, %v9979_v59, %v9983_v3  ;;  %v10007_v59 = vrot.slane %v10005_v15, 1  ;;  %v14867_v25 = vcombine.low %v10363_v43, %v24009_v30  ;;  %v10001_v3 = vshrl.u32 %v18673_v57, 16 }
 0xbf4   : > { %v14869_v57 = vcombine.low %v24015_v16, %v24017_v17 }
 0xbf5   : > { %v24362_v28 = vpop.f32.mrb[100].mxu0  ;;  %v10549_v43 = vshrl.u32 %v14867_v25, 16 }
 0xbf6   : > { %26017 = vst [vmem:[#allocation105_spill] sm:$0xff] %v24362_v28  ;;  %v24365_v36 = vpop.f32.mrb[101].mxu0  ;;  %v9999_v28 = vrot.slane %v9997_v54, 1 }
 0xbf7   : > { %26018 = vst [vmem:[#allocation106_spill] sm:$0xff] %v24365_v36  ;;  %v24367_v13 = vpop.f32.mrb[102].mxu0 }
 0xbf8   : > { %26019 = vst [vmem:[#allocation107_spill] sm:$0xff] %v24367_v13  ;;  %v24369_v23 = vpop.f32.mrb[103].mxu0  ;;  %v10000_v7 = vsel %vm3085_vm2, %v9995_v29, %v9999_v28  ;;  %v10003_v15 = vor.u32 %v10001_v3, %v9999_v28  ;;  %v10015_v29 = vrot.slane %v10013_v34, 1  ;;  %v10566_v34 = vshrl.u32 %v14869_v57, 16 }
 0xbf9   : > { %26020 = vst [vmem:[#allocation108_spill] sm:$0xff] %v24369_v23  ;;  %v10560_v23 = vshll.u32 %v14868_v60, 16 }
 0xbfa   : > { %17023 = vmatmul.mubr.bf16.gmra.mrb[48].mxu1 %v9976_v4  ;;  %v9992_v4 = vsel %vm3085_vm2, %v9987_v21, %v9991_v38  ;;  %v10011_v21 = vor.u32 %v10009_v40, %v10007_v59  ;;  %v10008_v13 = vsel %vm3085_vm2, %v10003_v15, %v10007_v59  ;;  %v10017_v40 = vshrl.u32 %v18675_v61, 16 }
 0xbfb   : > { %17026 = vmatprep.mubr.bf16.mxu1 %v9984_v50  ;;  %v10562_v28 = vrot.slane %v10560_v23, 4  ;;  %v10569_v15 = vshll.u32 %v14869_v57, 16  ;;  %v14872_v61 = vcombine.low %v24027_v27, %v24030_v37 }
 0xbfc   : > { %v10016_v35 = vsel %vm3085_vm2, %v10011_v21, %v10015_v29 }
 0xbfd   : > { %v24373_v36 = vpop.f32.mrb[104].mxu0  ;;  %v10571_v23 = vrot.slane %v10569_v15, 4  ;;  %v18684_v15 = vld [vmem:[#allocation8 + $0x108] sm:$0xff]  }
 0xbfe   : > { %26021 = vst [vmem:[#allocation109_spill] sm:$0xff] %v24373_v36  ;;  %v24378_v50 = vpop.f32.mrb[105].mxu0  ;;  %v10552_v36 = vshll.u32 %v14867_v25, 16  ;;  %v14870_v25 = vcombine.low %v24019_v44, %v24021_v52 }
 0xbff   : > { %26022 = vst [vmem:[#allocation110_spill] sm:$0xff] %v24378_v50  ;;  %v24380_v54 = vpop.f32.mrb[106].mxu0  ;;  %v10551_v50 = vrot.slane %v10549_v43, 3 }
 0xc00   : > { %26023 = vst [vmem:[#allocation111_spill] sm:$0xff] %v24380_v54  ;;  %v24382_v38 = vpop.f32.mrb[107].mxu0  ;;  %v14871_v54 = vcombine.low %v24023_v56, %v24025_v48 }
 0xc01   : > { %26024 = vst [vmem:[#allocation112_spill] sm:$0xff] %v24382_v38 }
 0xc02   : > { %17027 = vmatmul.mubr.bf16.gmra.mrb[52].mxu1 %v9992_v4  ;;  %v10557_v4 = vshrl.u32 %v14868_v60, 16 }
 0xc03   : > { %17030 = vmatprep.mubr.bf16.mxu1 %v10000_v7  ;;  %v10554_v7 = vrot.slane %v10552_v36, 4  ;;  %v10019_v36 = vor.u32 %v10017_v40, %v10015_v29  ;;  %v10593_v40 = vshrl.u32 %v14872_v61, 16 }
 0xc04   : > { %v10559_v38 = vrot.slane %v10557_v4, 3  ;;  %v10568_v4 = vrot.slane %v10566_v34, 3  ;;  %v10596_v34 = vshll.u32 %v14872_v61, 16 }
 0xc05   : > { %v24388_v46 = vpop.f32.mrb[108].mxu0  ;;  %v10555_v21 = vor.u32 %v10554_v7, %v10551_v50  ;;  %v10584_v7 = vshrl.u32 %v14871_v54, 16 }
 0xc06   : > { %26025 = vst [vmem:[#allocation113_spill] sm:$0xff] %v24388_v46  ;;  %v24392_v3 = vpop.f32.mrb[109].mxu0  ;;  %v10563_v43 = vor.u32 %v10562_v28, %v10559_v38  ;;  %v10575_v46 = vshrl.u32 %v14870_v25, 16  ;;  %v10572_v57 = vor.u32 %v10571_v23, %v10568_v4  ;;  %v10587_v28 = vshll.u32 %v14871_v54, 16 }
 0xc07   : > { %26026 = vst [vmem:[#allocation114_spill] sm:$0xff] %v24392_v3  ;;  %v24394_v60 = vpop.f32.mrb[110].mxu0  ;;  %v10598_v4 = vrot.slane %v10596_v34, 4  ;;  %v14874_v54 = vcombine.low %v24036_v10, %v24041_v53 }
 0xc08   : > { %26027 = vst [vmem:[#allocation115_spill] sm:$0xff] %v24394_v60  ;;  %v24396_v59 = vpop.f32.mrb[111].mxu0  ;;  %v10577_v60 = vrot.slane %v10575_v46, 3  ;;  %v10573_v46 = vsel %vm2388_vm1, %v10563_v43, %v10572_v57 }
 0xc09   : > { %26028 = vst [vmem:[#allocation116_spill] sm:$0xff] %v24396_v59  ;;  %v10614_v34 = vshll.u32 %v14874_v54, 16 }
 0xc0a   : > { %17031 = vmatmul.mubr.bf16.gmra.mrb[56].mxu1 %v10008_v13  ;;  %v10578_v13 = vshll.u32 %v14870_v25, 16 }
 0xc0b   : > { %17034 = vmatprep.mubr.bf16.mxu1 %v10016_v35  ;;  %v10564_v35 = vsel %vm2388_vm1, %v10555_v21, %v10563_v43  ;;  %v10586_v21 = vrot.slane %v10584_v7, 3  ;;  %v18687_v43 = vld [vmem:[#allocation8 + $0x110] sm:$0xff]  }
 0xc0c   : > { %v10580_v59 = vrot.slane %v10578_v13, 4  ;;  %v10589_v13 = vrot.slane %v10587_v28, 4 }
 0xc0d   : > { %v24400_v5 = vpop.f32.mrb[112].mxu0 }
 0xc0e   : > { %26029 = vst [vmem:[#allocation117_spill] sm:$0xff] %v24400_v5  ;;  %v24405_v50 = vpop.f32.mrb[113].mxu0  ;;  %v10581_v25 = vor.u32 %v10580_v59, %v10577_v60  ;;  %v10590_v61 = vor.u32 %v10589_v13, %v10586_v21 }
 0xc0f   : > { %26030 = vst [vmem:[#allocation118_spill] sm:$0xff] %v24405_v50  ;;  %v24407_v38 = vpop.f32.mrb[114].mxu0 }
 0xc10   : > { %26031 = vst [vmem:[#allocation119_spill] sm:$0xff] %v24407_v38  ;;  %v24409_v29 = vpop.f32.mrb[115].mxu0  ;;  %v26038_v38 = vld [vmem:[#allocation74_spill] sm:$0xff] }
 0xc11   : > { %26032 = vst [vmem:[#allocation120_spill] sm:$0xff] %v24409_v29  ;;  %v10595_v29 = vrot.slane %v10593_v40, 3  ;;  %v10611_v40 = vshrl.u32 %v14874_v54, 16 }
 0xc12   : > { %17035 = vmatmul.mubr.bf16.gmra.mrb[68].mxu1 %v10019_v36  ;;  %v14873_v36 = vcombine.low %v24032_v32, %v24034_v22 }
 0xc13   : > { %17054 = vmatprep.mubr.bf16.mxu1 %v10564_v35  ;;  %v10582_v35 = vsel %vm2388_vm1, %v10572_v57, %v10581_v25  ;;  %v10599_v57 = vor.u32 %v10598_v4, %v10595_v29  ;;  %v10613_v13 = vrot.slane %v10611_v40, 3  ;;  %v26040_v29 = vld [vmem:[#allocation13_spill] sm:$0xff]  ;;  %v26041_v4 = vld [vmem:[#allocation76_spill] sm:$0xff] }
 0xc14   : > { %v10602_v7 = vshrl.u32 %v14873_v36, 16  ;;  %v10605_v28 = vshll.u32 %v14873_v36, 16  ;;  %v10616_v36 = vrot.slane %v10614_v34, 4  ;;  %v14876_v54 = vcombine.low %v26041_v4, %v26040_v29 }
 0xc15   : > { %v10600_v21 = vsel %vm2388_vm1, %v10590_v61, %v10599_v57 }
 0xc16   : > { %v10617_v34 = vor.u32 %v10616_v36, %v10613_v13  ;;  %v10629_v3 = vshrl.u32 %v14876_v54, 16  ;;  %v10632_v11 = vshll.u32 %v14876_v54, 16  ;;  %v26047_v36 = vld [vmem:[#allocation14_spill] sm:$0xff]  ;;  %v26048_v54 = vld [vmem:[#allocation80_spill] sm:$0xff] }
 0xc18   : > { %v10634_v13 = vrot.slane %v10632_v11, 4 }
 0xc1a   : > { %17055 = vmatmul.mubr.bf16.vlgmr.msra.gmra.mrb[16].mxu1 %v10573_v46  ;;  %v18692_v46 = vld [vmem:[#allocation8 + $0x118] sm:$0xff]  }
 0xc1b   : > { %v24414_v50 = vpop.f32.mrb[116].mxu0  ;;  %17103 = vmatpush3.bf16.msra.mxu1 %v24178_v26  ;;  %17058 = vmatprep.mubr.bf16.mxu1 %v10582_v35  ;;  %v10607_v26 = vrot.slane %v10605_v28, 4  ;;  %v26037_v35 = vld [vmem:[#allocation73_spill] sm:$0xff] }
 0xc1c   : > { %26033 = vst [vmem:[#allocation121_spill] sm:$0xff] %v24414_v50  ;;  %v24419_v60 = vpop.f32.mrb[117].mxu0  ;;  %17104 = vmatprep.subr.bf16.mxu1 %v18684_v15  ;;  %v10604_v50 = vrot.slane %v10602_v7, 3  ;;  %v18695_v7 = vld [vmem:[#allocation8 + $0x120] sm:$0xff]  }
 0xc1d   : > { %26034 = vst [vmem:[#allocation122_spill] sm:$0xff] %v24419_v60  ;;  %v24422_v59 = vpop.f32.mrb[118].mxu0  ;;  %v10591_v60 = vsel %vm2388_vm1, %v10581_v25, %v10590_v61 }
 0xc1e   : > { %26035 = vst [vmem:[#allocation123_spill] sm:$0xff] %v24422_v59  ;;  %v24424_v23 = vpop.f32.mrb[119].mxu0  ;;  %v14875_v59 = vcombine.low %v26038_v38, %v26037_v35 }
 0xc1f   : > { %26036 = vst [vmem:[#allocation124_spill] sm:$0xff] %v24424_v23  ;;  %17105 = vmatpush3.bf16.msra.mxu1 %v18684_v15 }
 0xc20   : > { %17106 = vmatprep.subr.bf16.mxu1 %v18687_v43  ;;  %v10623_v61 = vshll.u32 %v14875_v59, 16 }
 0xc22   : > { %17059 = vmatmul.mubr.bf16.gmra.mrb[20].mxu1 %v10591_v60  ;;  %v10608_v60 = vor.u32 %v10607_v26, %v10604_v50  ;;  %v14877_v50 = vcombine.low %v26046_v1, %v26045_v8  ;;  %v10631_v26 = vrot.slane %v10629_v3, 3 }
 0xc23   : > { %v24429_v5 = vpop.f32.mrb[120].mxu0  ;;  %17062 = vmatprep.mubr.bf16.mxu1 %v10600_v21  ;;  %17107 = vmatpush3.bf16.msra.mxu1 %v18687_v43  ;;  %v18700_v43 = vld [vmem:[#allocation8 + $0x128] sm:$0xff]  }
 0xc24   : > { %26039 = vst [vmem:[#allocation73_spill] sm:$0xff] %v24429_v5  ;;  %v24434_v15 = vpop.f32.mrb[121].mxu0  ;;  %17108 = vmatprep.subr.bf16.mxu1 %v18692_v46  ;;  %v10620_v5 = vshrl.u32 %v14875_v59, 16  ;;  %v10618_v59 = vsel %vm2388_vm1, %v10608_v60, %v10617_v34  ;;  %v10638_v20 = vshrl.u32 %v14877_v50, 16 }
 0xc25   : > { %26042 = vst [vmem:[#allocation74_spill] sm:$0xff] %v24434_v15  ;;  %v24436_v25 = vpop.f32.mrb[122].mxu0  ;;  %v24440_v23 = vpop.f32.mrb[60].mxu1 }
 0xc26   : > { %26043 = vst [vmem:[#allocation13_spill] sm:$0xff] %v24436_v25  ;;  %v24438_v28 = vpop.f32.mrb[123].mxu0  ;;  %v24442_v40 = vpop.f32.mrb[61].mxu1  ;;  %v10609_v25 = vsel %vm2388_vm1, %v10599_v57, %v10608_v60  ;;  %v10622_v15 = vrot.slane %v10620_v5, 3  ;;  %v10641_v57 = vshll.u32 %v14877_v50, 16  ;;  %v10635_v5 = vor.u32 %v10634_v13, %v10631_v26  ;;  %v26052_v50 = vld [vmem:[#allocation17_spill] sm:$0xff] }
 0xc27   : > { %26044 = vst [vmem:[#allocation76_spill] sm:$0xff] %v24438_v28  ;;  %v16909_v19 = vpop.f32.mrb[62].mxu1  ;;  %17109 = vmatpush3.bf16.msra.mxu1 %v18692_v46  ;;  %v10625_v28 = vrot.slane %v10623_v61, 4  ;;  %v18703_v46 = vld [vmem:[#allocation8 + $0x130] sm:$0xff]   ;;  %v10640_v3 = vrot.slane %v10638_v20, 3  ;;  %v10659_v20 = vshll.u32 %v14879_v2, 16 }
 0xc28   : > { %v24444_v21 = vpop.f32.mrb[63].mxu1  ;;  %17110 = vmatprep.subr.bf16.mxu1 %v18695_v7  ;;  %v14878_v19 = vcombine.low %v26048_v54, %v26047_v36  ;;  %v10643_v11 = vrot.slane %v10641_v57, 4 }
 0xc29   : > { %v10626_v0 = vor.u32 %v10625_v28, %v10622_v15  ;;  %v26051_v28 = vld [vmem:[#allocation77_spill] sm:$0xff] }
 0xc2a   : > { %17063 = vmatmul.mubr.bf16.gmra.mrb[24].mxu1 %v10609_v25  ;;  %v10647_v61 = vshrl.u32 %v14878_v19, 16  ;;  %v10650_v62 = vshll.u32 %v14878_v19, 16  ;;  %v18708_v25 = vld [vmem:[#allocation8 + $0x138] sm:$0xff]   ;;  %v14880_v26 = vcombine.low %v26052_v50, %v26051_v28  ;;  %v10644_v13 = vor.u32 %v10643_v11, %v10640_v3  ;;  %v26055_v11 = vld [vmem:[#allocation21_spill] sm:$0xff] }
 0xc2b   : > { %17066 = vmatprep.mubr.bf16.mxu1 %v10618_v59  ;;  %17111 = vmatpush3.bf16.msra.mxu1 %v18695_v7  ;;  %v10627_v60 = vsel %vm2388_vm1, %v10617_v34, %v10626_v0  ;;  %v10636_v7 = vsel %vm2388_vm1, %v10626_v0, %v10635_v5  ;;  %v10656_v34 = vshrl.u32 %v14879_v2, 16  ;;  %v26056_v2 = vld [vmem:[#allocation20_spill] sm:$0xff] }
 0xc2c   : > { %17112 = vmatprep.subr.bf16.mxu1 %v18700_v43  ;;  %v10649_v59 = vrot.slane %v10647_v61, 3  ;;  %v10652_v15 = vrot.slane %v10650_v62, 4  ;;  %v10665_v57 = vshrl.u32 %v14880_v26, 16  ;;  %v10668_v14 = vshll.u32 %v14880_v26, 16 }
 0xc2d   : > { %v10645_v0 = vsel %vm2388_vm1, %v10635_v5, %v10644_v13  ;;  %v10658_v62 = vrot.slane %v10656_v34, 3  ;;  %v10661_v61 = vrot.slane %v10659_v20, 4 }
 0xc2e   : > { %v10653_v19 = vor.u32 %v10652_v15, %v10649_v59  ;;  %v10667_v9 = vrot.slane %v10665_v57, 3  ;;  %v10670_v3 = vrot.slane %v10668_v14, 4  ;;  %v14882_v59 = vcombine.low %v26056_v2, %v26055_v11 }
 0xc2f   : > { %17113 = vmatpush3.bf16.msra.mxu1 %v18700_v43  ;;  %v24458_v43 = vld [vmem:[#allocation8 + $0x140] sm:$0xff]   ;;  %v10662_v15 = vor.u32 %v10661_v61, %v10658_v62 }
 0xc30   : > { %17114 = vmatprep.subr.bf16.mxu1 %v18703_v46  ;;  %v10671_v55 = vor.u32 %v10670_v3, %v10667_v9  ;;  %v10683_v39 = vshrl.u32 %v14882_v59, 16  ;;  %v10686_v5 = vshll.u32 %v14882_v59, 16 }
 0xc31   : > { %v10663_v34 = vsel %vm2388_vm1, %v10653_v19, %v10662_v15 }
 0xc32   : > { %17067 = vmatmul.mubr.bf16.gmra.mrb[28].mxu1 %v10627_v60  ;;  %v26053_v60 = vld [vmem:[#allocation19_spill] sm:$0xff]  ;;  %v10672_v14 = vsel %vm2388_vm1, %v10662_v15, %v10671_v55  ;;  %v10688_v57 = vrot.slane %v10686_v5, 4 }
 0xc33   : > { %17070 = vmatprep.mubr.bf16.mxu1 %v10636_v7  ;;  %17115 = vmatpush3.bf16.msra.mxu1 %v18703_v46  ;;  %v14881_v7 = vcombine.low %v26054_v6, %v26053_v60  ;;  %v10654_v46 = vsel %vm2388_vm1, %v10644_v13, %v10653_v19  ;;  %v10685_v13 = vrot.slane %v10683_v39, 3 }
 0xc34   : > { %17116 = vmatprep.subr.bf16.mxu1 %v18708_v25 }
 0xc35   : > { %v10677_v26 = vshll.u32 %v14881_v7, 16  ;;  %v10689_v3 = vor.u32 %v10688_v57, %v10685_v13 }
 0xc37   : > { %17117 = vmatpush3.bf16.msra.mxu1 %v18708_v25  ;;  %v10674_v25 = vshrl.u32 %v14881_v7, 16  ;;  %v10679_v45 = vrot.slane %v10677_v26, 4 }
 0xc38   : > { %17166 = vmatprep.subr.bf16.mxu1 %v24458_v43 }
 0xc39   : > { %v10676_v20 = vrot.slane %v10674_v25, 3 }
 0xc3a   : > { %17071 = vmatmul.mubr.bf16.gmra.mrb[32].mxu1 %v10645_v0  ;;  %v26058_v0 = vld [vmem:[#allocation22_spill] sm:$0xff] }
 0xc3b   : > { %17074 = vmatprep.mubr.bf16.mxu1 %v10654_v46  ;;  %v14883_v49 = vcombine.low %v26058_v0, %v26057_v31  ;;  %v26060_v46 = vld [vmem:[#allocation24_spill] sm:$0xff]  ;;  %v10680_v61 = vor.u32 %v10679_v45, %v10676_v20 }
 0xc3c   : > { %v14884_v62 = vcombine.low %v26060_v46, %v26059_v18 }
 0xc3d   : > { %v10692_v9 = vshrl.u32 %v14883_v49, 16  ;;  %v10695_v7 = vshll.u32 %v14883_v49, 16  ;;  %v10681_v25 = vsel %vm2388_vm1, %v10671_v55, %v10680_v61  ;;  %v10690_v39 = vsel %vm2388_vm1, %v10680_v61, %v10689_v3 }
 0xc3e   : > { %v10701_v59 = vshrl.u32 %v14884_v62, 16  ;;  %v10704_v19 = vshll.u32 %v14884_v62, 16 }
 0xc3f   : > { %v10694_v26 = vrot.slane %v10692_v9, 3  ;;  %v10697_v41 = vrot.slane %v10695_v7, 4 }
 0xc40   : > { %v10703_v15 = vrot.slane %v10701_v59, 3  ;;  %v10706_v5 = vrot.slane %v10704_v19, 4 }
 0xc41   : > { %v10698_v49 = vor.u32 %v10697_v41, %v10694_v26 }
 0xc42   : > { %17075 = vmatmul.mubr.bf16.gmra.mrb[36].mxu1 %v10663_v34  ;;  %v26062_v34 = vld [vmem:[#allocation27_spill] sm:$0xff]  ;;  %v10707_v57 = vor.u32 %v10706_v5, %v10703_v15 }
 0xc43   : > { %17078 = vmatprep.mubr.bf16.mxu1 %v10672_v14  ;;  %v14885_v24 = vcombine.low %v26062_v34, %v26061_v51  ;;  %v26064_v14 = vld [vmem:[#allocation29_spill] sm:$0xff]  ;;  %v10699_v9 = vsel %vm2388_vm1, %v10689_v3, %v10698_v49 }
 0xc44   : > { %v14886_v45 = vcombine.low %v26064_v14, %v26063_v58  ;;  %v26065_v51 = vld [vmem:[#allocation25_spill] sm:$0xff]  ;;  %v10708_v61 = vsel %vm2388_vm1, %v10698_v49, %v10707_v57  ;;  %v26067_v58 = vld [vmem:[#allocation86_spill] sm:$0xff]  ;;  %v19273_v49 = vld [vmem:[#allocation2 + $0xc0] sm:$0xf] }
 0xc45   : > { %v10710_v20 = vshrl.u32 %v14885_v24, 16  ;;  %v10713_v13 = vshll.u32 %v14885_v24, 16 }
 0xc46   : > { %v10719_v62 = vshrl.u32 %v14886_v45, 16  ;;  %v10722_v55 = vshll.u32 %v14886_v45, 16 }
 0xc47   : > { %v10712_v7 = vrot.slane %v10710_v20, 3  ;;  %v10715_v42 = vrot.slane %v10713_v13, 4  ;;  %v24485_v20 = vld [vmem:[#allocation2 + $0xc8] sm:$0xf] }
 0xc48   : > { %v10721_v59 = vrot.slane %v10719_v62, 3  ;;  %v10724_v19 = vrot.slane %v10722_v55, 4 }
 0xc49   : > { %v10716_v24 = vor.u32 %v10715_v42, %v10712_v7  ;;  %v19274_v42 = vld [vmem:[#allocation2 + $0xc4] sm:$0xf] }
 0xc4a   : > { %17079 = vmatmul.mubr.bf16.gmra.mrb[40].mxu1 %v10681_v25  ;;  %v26066_v25 = vld [vmem:[#allocation30_spill] sm:$0xff]  ;;  %v10725_v5 = vor.u32 %v10724_v19, %v10721_v59 }
 0xc4b   : > { %17082 = vmatprep.mubr.bf16.mxu1 %v10690_v39  ;;  %v14887_v34 = vcombine.low %v26066_v25, %v26065_v51  ;;  %v26068_v39 = vld [vmem:[#allocation31_spill] sm:$0xff]  ;;  %v10717_v13 = vsel %vm2388_vm1, %v10707_v57, %v10716_v24  ;;  %v19272_v25 = vld [vmem:[#allocation2 + $0xbc] sm:$0xf] }
 0xc4c   : > { %v14888_v41 = vcombine.low %v26068_v39, %v26067_v58  ;;  %v14889_v62 = vcombine.low %v19272_v25, %v19273_v49  ;;  %v10726_v55 = vsel %vm2388_vm1, %v10716_v24, %v10725_v5 }
 0xc4d   : > { %v10728_v26 = vshrl.u32 %v14887_v34, 16  ;;  %v10731_v15 = vshll.u32 %v14887_v34, 16  ;;  %v14890_v34 = vcombine.low %v19274_v42, %v24485_v20  ;;  %v26076_v42 = vcombine.low %v24041_v53, %v26038_v38 }
 0xc4e   : > { %v10737_v45 = vshrl.u32 %v14888_v41, 16  ;;  %v10740_v3 = vshll.u32 %v14888_v41, 16  ;;  %v10746_v59 = vshrl.u32 %v14889_v62, 16  ;;  %v10749_v19 = vshll.u32 %v14889_v62, 16  ;;  %v18723_v62 = vld [vmem:[#allocation8 + $0x158] sm:$0xff]  }
 0xc4f   : > { %v10730_v51 = vrot.slane %v10728_v26, 3  ;;  %v10755_v39 = vshrl.u32 %v14890_v34, 16  ;;  %v10758_v57 = vshll.u32 %v14890_v34, 16  ;;  %v26081_v53 = vcombine.low %v26049_v63, %v26052_v50  ;;  %v18741_v50 = vld [vmem:[#allocation2 + $0x10] sm:$0xff]  }
 0xc50   : > { %v10739_v58 = vrot.slane %v10737_v45, 3  ;;  %v10751_v14 = vrot.slane %v10749_v19, 4  ;;  %v26082_v38 = vcombine.low %v26051_v28, %v26054_v6  ;;  %v26098_v34 = vld [vmem:[#allocation82_spill] sm:$0xff]  ;;  %v26100_v19 = vld [vmem:[#allocation32_spill] sm:$0xff] }
 0xc51   : > { %v10757_v24 = vrot.slane %v10755_v39, 3  ;;  %v10760_v45 = vrot.slane %v10758_v57, 4  ;;  %v18718_v39 = vld [vmem:[#allocation8 + $0x150] sm:$0xff]  }
 0xc52   : > { %17083 = vmatmul.mubr.bf16.gmra.mrb[44].mxu1 %v10699_v9  ;;  %v10733_v9 = vrot.slane %v10731_v15, 4  ;;  %v10748_v15 = vrot.slane %v10746_v59, 3  ;;  %v18744_v59 = vld [vmem:[#allocation2 + $0x20] sm:$0xff]  }
 0xc53   : > { %17086 = vmatprep.mubr.bf16.mxu1 %v10708_v61  ;;  %v10742_v61 = vrot.slane %v10740_v3, 4 }
 0xc54   : > { %v10734_v7 = vor.u32 %v10733_v9, %v10730_v51  ;;  %v10752_v3 = vor.u32 %v10751_v14, %v10748_v15  ;;  %v26070_v9 = vcombine.low %v24013_v47, %v24015_v16  ;;  %v26071_v14 = vcombine.low %v24017_v17, %v24019_v44  ;;  %v18726_v47 = vld [vmem:[#allocation8 + $0x160] sm:$0xff]  }
 0xc55   : > { %v10743_v41 = vor.u32 %v10742_v61, %v10739_v58  ;;  %v26069_v58 = vcombine.low %v24009_v30, %v24011_v33  ;;  %v26072_v30 = vcombine.low %v24021_v52, %v24023_v56  ;;  %v26073_v33 = vcombine.low %v24025_v48, %v24027_v27  ;;  %v18731_v52 = vld [vmem:[#allocation8 + $0x168] sm:$0xff]  }
 0xc56   : > { %v10735_v26 = vsel %vm2388_vm1, %v10725_v5, %v10734_v7  ;;  %v18715_v5 = vld [vmem:[#allocation8 + $0x148] sm:$0xff]   ;;  %v26074_v48 = vcombine.low %v24030_v37, %v24032_v32  ;;  %v26075_v27 = vcombine.low %v24034_v22, %v24036_v10  ;;  %v18743_v37 = vld [vmem:[#allocation8 + $0x180] sm:$0xff]   ;;  %v26078_v32 = vcombine.low %v26040_v29, %v26046_v1 }
 0xc57   : > { %v10744_v25 = vsel %vm2388_vm1, %v10734_v7, %v10743_v41  ;;  %v10753_v49 = vsel %vm2388_vm1, %v10743_v41, %v10752_v3  ;;  %v26079_v22 = vcombine.low %v26045_v8, %v26048_v54  ;;  %v26080_v10 = vcombine.low %v26047_v36, %v26050_v12  ;;  %v26088_v29 = vld [vmem:[#allocation28_spill] sm:$0xff]  ;;  %v26091_v36 = vld [vmem:[#allocation81_spill] sm:$0xff]  ;;  %v26092_v54 = vld [vmem:[#allocation30_spill] sm:$0xff] }
 0xc58   : > { %v26083_v1 = vcombine.low %v26053_v60, %v26056_v2  ;;  %v26084_v8 = vcombine.low %v26055_v11, %v26058_v0  ;;  %v26085_v12 = vcombine.low %v26057_v31, %v26060_v46  ;;  %v26093_v28 = vcombine.low %v26091_v36, %v26092_v54  ;;  %v26094_v60 = vld [vmem:[#allocation25_spill] sm:$0xff]  ;;  %v26095_v11 = vld [vmem:[#allocation31_spill] sm:$0xff]  ;;  %v26097_v46 = vld [vmem:[#allocation86_spill] sm:$0xff] }
 0xc59   : > { %v26096_v2 = vcombine.low %v26094_v60, %v26095_v11  ;;  %v11678_v0 = vshll.u32 %v18741_v50, 16  ;;  %v18742_v31 = vld [vmem:[#allocation2 + $0x18] sm:$0xff]   ;;  %v26099_v7 = vcombine.low %v26097_v46, %v26098_v34 }
 0xc5a   : > { %17087 = vmatmul.mubr.bf16.gmra.mrb[48].mxu1 %v10717_v13  ;;  %v10761_v13 = vor.u32 %v10760_v45, %v10757_v24  ;;  %v26101_v41 = vld [vmem:[#allocation84_spill] sm:$0xff]  ;;  %v11683_v15 = vshll.u32 %v18742_v31, 16  ;;  %v11691_v24 = vshll.u32 %v18744_v59, 16  ;;  %v14922_v45 = vcombine.low %v24485_v20, %v24485_v20 }
 0xc5b   : > { %17090 = vmatprep.mubr.bf16.mxu1 %v10726_v55  ;;  %v26102_v57 = vcombine.low %v26100_v19, %v26101_v41  ;;  %v18767_v41 = vld [vmem:[#allocation8 + $0x1b0] sm:$0xff]  }
 0xc5c   : > { %v10762_v51 = vsel %vm2388_vm1, %v10752_v3, %v10761_v13  ;;  %v11685_v3 = vrot.slane %v11683_v15, 1 }
 0xc62   : > { %17091 = vmatmul.mubr.bf16.gmra.mrb[52].mxu1 %v10735_v26  ;;  %v11676_v26 = vshrl.u32 %v18741_v50, 16 }
 0xc63   : > { %17094 = vmatprep.mubr.bf16.mxu1 %v10744_v25 }
 0xc6a   : > { %17095 = vmatmul.mubr.bf16.gmra.mrb[56].mxu1 %v10753_v49 }
 0xc6b   : > { %17098 = vmatprep.mubr.bf16.mxu1 %v10762_v51  ;;  %v11693_v51 = vrot.slane %v11691_v24, 1  ;;  %v18772_v24 = vld [vmem:[#allocation8 + $0x1b8] sm:$0xff]  }
 0xc72   : > { %17099 = vmatmul.mubr.bf16.gmra.mrb[72].mxu1 %v10761_v13  ;;  %v18745_v13 = vld [vmem:[#allocation2 + $0x28] sm:$0xff]  }
 0xc73   : > { %17118 = vmatprep.mubr.bf16.mxu1 %v26069_v58  ;;  %v18746_v58 = vld [vmem:[#allocation2 + $0x30] sm:$0xff]  }
 0xc7a   : > { %17119 = vmatmul.mubr.bf16.vlgmr.msra.gmra.mrb[16].mxu1 %v26070_v9  ;;  %v11695_v9 = vshrl.u32 %v18744_v59, 16 }
 0xc7b   : > { %17167 = vmatpush3.bf16.msra.mxu1 %v24458_v43  ;;  %17122 = vmatprep.mubr.bf16.mxu1 %v26071_v14  ;;  %v11699_v14 = vshll.u32 %v18745_v13, 16 }
 0xc7c   : > { %17168 = vmatprep.subr.bf16.mxu1 %v18715_v5 }
 0xc7f   : > { %17169 = vmatpush3.bf16.msra.mxu1 %v18715_v5  ;;  %v11687_v5 = vshrl.u32 %v18742_v31, 16  ;;  %v18764_v31 = vld [vmem:[#allocation8 + $0x1a8] sm:$0xff]  }
 0xc80   : > { %17170 = vmatprep.subr.bf16.mxu1 %v18718_v39 }
 0xc82   : > { %17123 = vmatmul.mubr.bf16.gmra.mrb[20].mxu1 %v26072_v30  ;;  %v11707_v30 = vshll.u32 %v18746_v58, 16 }
 0xc83   : > { %17126 = vmatprep.mubr.bf16.mxu1 %v26073_v33  ;;  %17171 = vmatpush3.bf16.msra.mxu1 %v18718_v39  ;;  %v11689_v39 = vor.u32 %v11687_v5, %v11685_v3  ;;  %v11701_v33 = vrot.slane %v11699_v14, 1 }
 0xc84   : > { %17172 = vmatprep.subr.bf16.mxu1 %v18723_v62 }
 0xc85   : > { %v16972_v16 = vpop.f32.mrb[64].mxu1 }
 0xc86   : > { %v24511_v17 = vadd.f32 %v16972_v16, %v24440_v23  ;;  %v9630_v44 = vpop.f32.mrb[65].mxu1  ;;  %v18734_v23 = vld [vmem:[#allocation8 + $0x170] sm:$0xff]   ;;  %v18748_v16 = vld [vmem:[#allocation8 + $0x188] sm:$0xff]  }
 0xc87   : > { %v24514_v43 = vadd.f32 %v9630_v44, %v24442_v40  ;;  %v16973_v55 = vpop.f32.mrb[66].mxu1  ;;  %17173 = vmatpush3.bf16.msra.mxu1 %v18723_v62  ;;  %v18739_v40 = vld [vmem:[#allocation8 + $0x178] sm:$0xff]   ;;  %v11697_v62 = vor.u32 %v11695_v9, %v11693_v51  ;;  %v11694_v44 = vsel %vm3085_vm2, %v11689_v39, %v11693_v51  ;;  %v24593_v9 = vld [vmem:[#allocation8 + $0x1c0] sm:$0xff]  }
 0xc88   : > { %v9633_v61 = vpop.f32.mrb[67].mxu1  ;;  %17174 = vmatprep.subr.bf16.mxu1 %v18726_v47  ;;  %v11709_v55 = vrot.slane %v11707_v30, 1 }
 0xc89   : > { %v24517_v56 = vadd.f32 %v9633_v61, %v24444_v21  ;;  %v26077_v21 = vcombine.low %v26037_v35, %v26041_v4  ;;  %v26086_v35 = vld [vmem:[#allocation27_spill] sm:$0xff]  ;;  %v26089_v4 = vld [vmem:[#allocation29_spill] sm:$0xff]  ;;  %v11702_v20 = vsel %vm3085_vm2, %v11697_v62, %v11701_v33 }
 0xc8a   : > { %17127 = vmatmul.mubr.bf16.gmra.mrb[24].mxu1 %v26074_v48  ;;  %v26087_v63 = vcombine.low %v26059_v18, %v26086_v35  ;;  %v26090_v6 = vcombine.low %v26088_v29, %v26089_v4  ;;  %v11680_v18 = vrot.slane %v11678_v0, 1  ;;  %v18749_v61 = vld [vmem:[#allocation2 + $0x40] sm:$0xff]   ;;  %v11711_v48 = vshrl.u32 %v18746_v58, 16  ;;  %v18753_v0 = vld [vmem:[#allocation2 + $0x58] sm:$0xff]  }
 0xc8b   : > { %17130 = vmatprep.mubr.bf16.mxu1 %v26075_v27  ;;  %17175 = vmatpush3.bf16.msra.mxu1 %v18726_v47  ;;  %v18747_v47 = vld [vmem:[#allocation2 + $0x38] sm:$0xff]   ;;  %v11747_v19 = vshll.u32 %v18753_v0, 16  ;;  %v11751_v51 = vshrl.u32 %v18753_v0, 16 }
 0xc8c   : > { %17176 = vmatprep.subr.bf16.mxu1 %v18731_v52  ;;  %v11681_v25 = vor.u32 %v11680_v18, %v11676_v26  ;;  %v11715_v27 = vshll.u32 %v18747_v47, 16  ;;  %v18754_v18 = vld [vmem:[#allocation2 + $0x60] sm:$0xff]  }
 0xc8d   : > { %v11755_v15 = vshll.u32 %v18754_v18, 16  ;;  %v11759_v58 = vshrl.u32 %v18754_v18, 16 }
 0xc8e   : > { %v11686_v49 = vsel %vm3085_vm2, %v11681_v25, %v11685_v3  ;;  %v18755_v25 = vld [vmem:[#allocation2 + $0x68] sm:$0xff]  }
 0xc8f   : > { %17177 = vmatpush3.bf16.msra.mxu1 %v18731_v52  ;;  %v11703_v52 = vshrl.u32 %v18745_v13, 16  ;;  %v11757_v13 = vrot.slane %v11755_v15, 1  ;;  %v11763_v5 = vshll.u32 %v18755_v25, 16 }
 0xc90   : > { %17178 = vmatprep.subr.bf16.mxu1 %v18734_v23 }
 0xc91   : > { %v11761_v39 = vor.u32 %v11759_v58, %v11757_v13  ;;  %v11765_v30 = vrot.slane %v11763_v5, 1 }
 0xc92   : > { %17131 = vmatmul.mubr.bf16.gmra.mrb[28].mxu1 %v26076_v42  ;;  %v11713_v42 = vor.u32 %v11711_v48, %v11709_v55 }
 0xc93   : > { %17134 = vmatprep.mubr.bf16.mxu1 %v26077_v21  ;;  %17179 = vmatpush3.bf16.msra.mxu1 %v18734_v23  ;;  %v18751_v23 = vld [vmem:[#allocation8 + $0x190] sm:$0xff]   ;;  %v11723_v21 = vshll.u32 %v18749_v61, 16 }
 0xc94   : > { %17180 = vmatprep.subr.bf16.mxu1 %v18739_v40 }
 0xc97   : > { %17181 = vmatpush3.bf16.msra.mxu1 %v18739_v40  ;;  %v11705_v40 = vor.u32 %v11703_v52, %v11701_v33  ;;  %v18758_v33 = vld [vmem:[#allocation2 + $0x78] sm:$0xff]  }
 0xc98   : > { %17230 = vmatprep.subr.bf16.mxu1 %v18743_v37  ;;  %v11779_v52 = vshll.u32 %v18758_v33, 16 }
 0xc9a   : > { %17135 = vmatmul.mubr.bf16.gmra.mrb[32].mxu1 %v26078_v32  ;;  %v11717_v32 = vrot.slane %v11715_v27, 1 }
 0xc9b   : > { %17138 = vmatprep.mubr.bf16.mxu1 %v26079_v22  ;;  %v18750_v22 = vld [vmem:[#allocation2 + $0x48] sm:$0xff]  }
 0xc9c   : > { %v11731_v35 = vshll.u32 %v18750_v22, 16 }
 0xca2   : > { %17139 = vmatmul.mubr.bf16.gmra.mrb[36].mxu1 %v26080_v10  ;;  %v18756_v10 = vld [vmem:[#allocation8 + $0x198] sm:$0xff]  }
 0xca3   : > { %17142 = vmatprep.mubr.bf16.mxu1 %v26081_v53  ;;  %v11710_v53 = vsel %vm3085_vm2, %v11705_v40, %v11709_v55  ;;  %v11767_v55 = vshrl.u32 %v18755_v25, 16  ;;  %v11781_v40 = vrot.slane %v11779_v52, 1  ;;  %v19276_v52 = vld [vmem:[#allocation2 + $0x20] sm:$0xf] }
 0xca5   : > { %v11769_v48 = vor.u32 %v11767_v55, %v11765_v30  ;;  %v19275_v55 = vld [vmem:[#allocation2 + $0x1c] sm:$0xf] }
 0xcaa   : > { %17143 = vmatmul.mubr.bf16.gmra.mrb[40].mxu1 %v26082_v38  ;;  %v11718_v38 = vsel %vm3085_vm2, %v11713_v42, %v11717_v32  ;;  %v18761_v42 = vld [vmem:[#allocation2 + $0x88] sm:$0xff]  }
 0xcab   : > { %17146 = vmatprep.mubr.bf16.mxu1 %v26083_v1  ;;  %v18752_v1 = vld [vmem:[#allocation2 + $0x50] sm:$0xff]  }
 0xcac   : > { %v11743_v59 = vshrl.u32 %v18752_v1, 16 }
 0xcb2   : > { %17147 = vmatmul.mubr.bf16.gmra.mrb[44].mxu1 %v26084_v8  ;;  %v11719_v8 = vshrl.u32 %v18747_v47, 16 }
 0xcb3   : > { %17150 = vmatprep.mubr.bf16.mxu1 %v26085_v12  ;;  %v11727_v12 = vshrl.u32 %v18749_v61, 16 }
 0xcb4   : > { %v11721_v4 = vor.u32 %v11719_v8, %v11717_v32 }
 0xcba   : > { %17151 = vmatmul.mubr.bf16.gmra.mrb[48].mxu1 %v26087_v63  ;;  %v18759_v63 = vld [vmem:[#allocation8 + $0x1a0] sm:$0xff]  }
 0xcbb   : > { %17154 = vmatprep.mubr.bf16.mxu1 %v26090_v6 }
 0xcc2   : > { %17155 = vmatmul.mubr.bf16.gmra.mrb[52].mxu1 %v26093_v28  ;;  %v11739_v28 = vshll.u32 %v18752_v1, 16 }
 0xcc3   : > { %17158 = vmatprep.mubr.bf16.mxu1 %v26096_v2  ;;  %v11733_v2 = vrot.slane %v11731_v35, 1 }
 0xcca   : > { %17159 = vmatmul.mubr.bf16.gmra.mrb[56].mxu1 %v26099_v7  ;;  %v11741_v7 = vrot.slane %v11739_v28, 1  ;;  %v11799_v28 = vshrl.u32 %v18761_v42, 16 }
 0xccb   : > { %17162 = vmatprep.mubr.bf16.mxu1 %v26102_v57 }
 0xccc   : > { %v11745_v26 = vor.u32 %v11743_v59, %v11741_v7  ;;  %v18768_v59 = vld [vmem:[#allocation2 + $0xb0] sm:$0xff]  }
 0xccd   : > { %v11839_v58 = vshrl.u32 %v18768_v59, 16 }
 0xcd2   : > { %17163 = vmatmul.mubr.bf16.gmra.mrb[76].mxu1 %v14922_v45 }
 0xcd3   : > { %17182 = vmatprep.mubr.bf16.mxu1 %v11686_v49  ;;  %v18757_v49 = vld [vmem:[#allocation2 + $0x70] sm:$0xff]  }
 0xcd4   : > { %v11771_v62 = vshll.u32 %v18757_v49, 16  ;;  %v11775_v61 = vshrl.u32 %v18757_v49, 16 }
 0xcda   : > { %17183 = vmatmul.mubr.bf16.vlgmr.msra.gmra.mrb[16].mxu1 %v11694_v44  ;;  %v11773_v44 = vrot.slane %v11771_v62, 1 }
 0xcdb   : > { %17231 = vmatpush3.bf16.msra.mxu1 %v18743_v37  ;;  %17186 = vmatprep.mubr.bf16.mxu1 %v11702_v20  ;;  %v11725_v37 = vrot.slane %v11723_v21, 1  ;;  %v18760_v20 = vld [vmem:[#allocation2 + $0x80] sm:$0xff]  }
 0xcdc   : > { %17232 = vmatprep.subr.bf16.mxu1 %v18748_v16  ;;  %v11777_v27 = vor.u32 %v11775_v61, %v11773_v44  ;;  %v11774_v21 = vsel %vm3085_vm2, %v11769_v48, %v11773_v44  ;;  %v19277_v48 = vld [vmem:[#allocation2 + $0x24] sm:$0xf] }
 0xcdd   : > { %v11729_v54 = vor.u32 %v11727_v12, %v11725_v37  ;;  %v11726_v34 = vsel %vm3085_vm2, %v11721_v4, %v11725_v37  ;;  %v11795_v37 = vshll.u32 %v18761_v42, 16 }
 0xcde   : > { %v11782_v32 = vsel %vm3085_vm2, %v11777_v27, %v11781_v40  ;;  %v14964_v27 = vcombine.low %v19276_v52, %v19277_v48  ;;  %v19288_v52 = vld [vmem:[#allocation2 + $0x50] sm:$0xf]  ;;  %v19289_v48 = vld [vmem:[#allocation2 + $0x54] sm:$0xf] }
 0xcdf   : > { %17233 = vmatpush3.bf16.msra.mxu1 %v18748_v16  ;;  %v11766_v16 = vsel %vm3085_vm2, %v11761_v39, %v11765_v30  ;;  %v11797_v35 = vrot.slane %v11795_v37, 1  ;;  %v18771_v30 = vld [vmem:[#allocation2 + $0xc8] sm:$0x1f]  }
 0xce0   : > { %17234 = vmatprep.subr.bf16.mxu1 %v18751_v23  ;;  %v11859_v42 = vshll.u32 %v18771_v30, 16 }
 0xce2   : > { %17187 = vmatmul.mubr.bf16.gmra.mrb[20].mxu1 %v11710_v53  ;;  %v11783_v53 = vshrl.u32 %v18758_v33, 16  ;;  %v12209_v33 = vld [vmem:[#allocation2 + $0x18] sm:$0x8]  ;;  %v11861_v37 = vrot.slane %v11859_v42, 1 }
 0xce3   : > { %17190 = vmatprep.mubr.bf16.mxu1 %v11718_v38  ;;  %17235 = vmatpush3.bf16.msra.mxu1 %v18751_v23  ;;  %v11787_v23 = vshll.u32 %v18760_v20, 16  ;;  %v11791_v38 = vshrl.u32 %v18760_v20, 16  ;;  %v14963_v61 = vcombine.low %v12209_v33, %v19275_v55 }
 0xce4   : > { %17236 = vmatprep.subr.bf16.mxu1 %v18756_v10  ;;  %v11785_v1 = vor.u32 %v11783_v53, %v11781_v40  ;;  %v12403_v53 = vshrl.u32 %v14964_v27, 16 }
 0xce5   : > { %v17036_v29 = vpop.f32.mrb[68].mxu1 }
 0xce6   : > { %v24581_v6 = vadd.f32 %v17036_v29, %v24511_v17  ;;  %v10302_v36 = vpop.f32.mrb[69].mxu1  ;;  %v11734_v17 = vsel %vm3085_vm2, %v11729_v54, %v11733_v2  ;;  %v18765_v54 = vld [vmem:[#allocation2 + $0xa0] sm:$0xff]  }
 0xce7   : > { %v24584_v50 = vadd.f32 %v10302_v36, %v24514_v43  ;;  %v17037_v60 = vpop.f32.mrb[70].mxu1  ;;  %17237 = vmatpush3.bf16.msra.mxu1 %v18756_v10  ;;  %v11735_v43 = vshrl.u32 %v18750_v22, 16  ;;  %v11789_v22 = vrot.slane %v11787_v23, 1  ;;  %v18762_v10 = vld [vmem:[#allocation2 + $0x90] sm:$0xff]  }
 0xce8   : > { %v10305_v11 = vpop.f32.mrb[71].mxu1  ;;  %17238 = vmatprep.subr.bf16.mxu1 %v18759_v63  ;;  %v11803_v12 = vshll.u32 %v18762_v10, 16  ;;  %v11807_v60 = vshrl.u32 %v18762_v10, 16  ;;  %v12398_v10 = vshll.u32 %v14963_v61, 16 }
 0xce9   : > { %v24587_v46 = vadd.f32 %v10305_v11, %v24517_v56  ;;  %v11737_v57 = vor.u32 %v11735_v43, %v11733_v2  ;;  %v11749_v56 = vrot.slane %v11747_v19, 1  ;;  %v11793_v8 = vor.u32 %v11791_v38, %v11789_v22 }
 0xcea   : > { %17191 = vmatmul.mubr.bf16.gmra.mrb[24].mxu1 %v11726_v34  ;;  %v11790_v29 = vsel %vm3085_vm2, %v11785_v1, %v11789_v22  ;;  %v11805_v36 = vrot.slane %v11803_v12, 1  ;;  %v11801_v2 = vor.u32 %v11799_v28, %v11797_v35  ;;  %v12395_v22 = vshrl.u32 %v14963_v61, 16  ;;  %v19278_v12 = vld [vmem:[#allocation2 + $0x28] sm:$0xf] }
 0xceb   : > { %17194 = vmatprep.mubr.bf16.mxu1 %v11734_v17  ;;  %17239 = vmatpush3.bf16.msra.mxu1 %v18759_v63  ;;  %v11742_v45 = vsel %vm3085_vm2, %v11737_v57, %v11741_v7  ;;  %v11750_v3 = vsel %vm3085_vm2, %v11745_v26, %v11749_v56  ;;  %v11753_v14 = vor.u32 %v11751_v51, %v11749_v56  ;;  %v18763_v63 = vld [vmem:[#allocation2 + $0x98] sm:$0xff]   ;;  %v18766_v17 = vld [vmem:[#allocation2 + $0xa8] sm:$0xff]   ;;  %v11835_v56 = vshll.u32 %v18768_v59, 16 }
 0xcec   : > { %17240 = vmatprep.subr.bf16.mxu1 %v18764_v31  ;;  %v11798_v4 = vsel %vm3085_vm2, %v11793_v8, %v11797_v35  ;;  %v11811_v11 = vshll.u32 %v18763_v63, 16  ;;  %v11809_v0 = vor.u32 %v11807_v60, %v11805_v36  ;;  %v11806_v7 = vsel %vm3085_vm2, %v11801_v2, %v11805_v36  ;;  %v19279_v35 = vld [vmem:[#allocation2 + $0x2c] sm:$0xf] }
 0xced   : > { %v11758_v47 = vsel %vm3085_vm2, %v11753_v14, %v11757_v13  ;;  %v11815_v19 = vshrl.u32 %v18763_v63, 16  ;;  %v11827_v57 = vshll.u32 %v18766_v17, 16  ;;  %v11837_v49 = vrot.slane %v11835_v56, 1 }
 0xcee   : > { %v11813_v34 = vrot.slane %v11811_v11, 1  ;;  %v11831_v51 = vshrl.u32 %v18766_v17, 16  ;;  %v12406_v38 = vshll.u32 %v14964_v27, 16  ;;  %v14965_v63 = vcombine.low %v19278_v12, %v19279_v35  ;;  %v19291_v12 = vld [vmem:[#allocation2 + $0x5c] sm:$0xf] }
 0xcef   : > { %17241 = vmatpush3.bf16.msra.mxu1 %v18764_v31  ;;  %v11819_v31 = vshll.u32 %v18765_v54, 16  ;;  %v11829_v25 = vrot.slane %v11827_v57, 1  ;;  %v11841_v62 = vor.u32 %v11839_v58, %v11837_v49  ;;  %v12400_v28 = vrot.slane %v12398_v10, 4  ;;  %v19283_v57 = vld [vmem:[#allocation2 + $0x3c] sm:$0xf] }
 0xcf0   : > { %17242 = vmatprep.subr.bf16.mxu1 %v18767_v41  ;;  %v11814_v18 = vsel %vm3085_vm2, %v11809_v0, %v11813_v34  ;;  %v11817_v26 = vor.u32 %v11815_v19, %v11813_v34  ;;  %v12405_v60 = vrot.slane %v12403_v53, 3  ;;  %v12408_v11 = vrot.slane %v12406_v38, 4  ;;  %v18788_v53 = vld [vmem:[#allocation8 + $0x1d8] sm:$0xff]  }
 0xcf1   : > { %v11821_v43 = vrot.slane %v11819_v31, 1  ;;  %v11833_v14 = vor.u32 %v11831_v51, %v11829_v25  ;;  %v11863_v2 = vshrl.u32 %v18771_v30, 16  ;;  %v12412_v0 = vshrl.u32 %v14965_v63, 16 }
 0xcf2   : > { %17195 = vmatmul.mubr.bf16.gmra.mrb[28].mxu1 %v11742_v45  ;;  %v12415_v31 = vshll.u32 %v14965_v63, 16  ;;  %v12409_v17 = vor.u32 %v12408_v11, %v12405_v60  ;;  %v14970_v27 = vcombine.low %v19288_v52, %v19289_v48 }
 0xcf3   : > { %17198 = vmatprep.mubr.bf16.mxu1 %v11750_v3  ;;  %17243 = vmatpush3.bf16.msra.mxu1 %v18767_v41  ;;  %v11823_v41 = vshrl.u32 %v18765_v54, 16  ;;  %v11822_v45 = vsel %vm3085_vm2, %v11817_v26, %v11821_v43  ;;  %v18770_v3 = vld [vmem:[#allocation2 + $0xc0] sm:$0xff]   ;;  %v12397_v54 = vrot.slane %v12395_v22, 3  ;;  %v12414_v59 = vrot.slane %v12412_v0, 3 }
 0xcf4   : > { %17244 = vmatprep.subr.bf16.mxu1 %v18772_v24  ;;  %v11851_v39 = vshll.u32 %v18770_v3, 16  ;;  %v11855_v40 = vshrl.u32 %v18770_v3, 16  ;;  %v12417_v19 = vrot.slane %v12415_v31, 4  ;;  %v12457_v22 = vshrl.u32 %v14970_v27, 16 }
 0xcf5   : > { %v11825_v15 = vor.u32 %v11823_v41, %v11821_v43  ;;  %v12401_v34 = vor.u32 %v12400_v28, %v12397_v54  ;;  %v11865_v43 = vor.u32 %v11863_v2, %v11861_v37  ;;  %v19282_v41 = vld [vmem:[#allocation2 + $0x38] sm:$0xf]  ;;  %v12460_v10 = vshll.u32 %v14970_v27, 16 }
 0xcf6   : > { %v11853_v44 = vrot.slane %v11851_v39, 1  ;;  %v14967_v26 = vcombine.low %v19282_v41, %v19283_v57  ;;  %v18780_v39 = vld [vmem:[#allocation8 + $0x1c8] sm:$0xff]   ;;  %v12459_v63 = vrot.slane %v12457_v22, 3  ;;  %v18791_v28 = vld [vmem:[#allocation8 + $0x1e0] sm:$0xff]   ;;  %v19294_v41 = vld [vmem:[#allocation2 + $0x68] sm:$0xf] }
 0xcf7   : > { %17245 = vmatpush3.bf16.msra.mxu1 %v18772_v24  ;;  %v18769_v24 = vld [vmem:[#allocation2 + $0xb8] sm:$0xff]   ;;  %v11830_v13 = vsel %vm3085_vm2, %v11825_v15, %v11829_v25  ;;  %v12410_v15 = vsel %vm2388_vm1, %v12401_v34, %v12409_v17  ;;  %v19295_v57 = vld [vmem:[#allocation2 + $0x6c] sm:$0xf] }
 0xcf8   : > { %17294 = vmatprep.subr.bf16.mxu1 %v24593_v9  ;;  %v11843_v5 = vshll.u32 %v18769_v24, 16  ;;  %v11847_v23 = vshrl.u32 %v18769_v24, 16  ;;  %v19284_v24 = vld [vmem:[#allocation2 + $0x40] sm:$0xf]  ;;  %v12433_v51 = vshll.u32 %v14967_v26, 16 }
 0xcfa   : > { %17199 = vmatmul.mubr.bf16.gmra.mrb[32].mxu1 %v11758_v47  ;;  %v11845_v47 = vrot.slane %v11843_v5, 1  ;;  %v12435_v33 = vrot.slane %v12433_v51, 4 }
 0xcfb   : > { %17202 = vmatprep.mubr.bf16.mxu1 %v11766_v16  ;;  %v11838_v16 = vsel %vm3085_vm2, %v11833_v14, %v11837_v49  ;;  %v12430_v49 = vshrl.u32 %v14967_v26, 16  ;;  %v14973_v26 = vcombine.low %v19294_v41, %v19295_v57  ;;  %v19307_v41 = vld [vmem:[#allocation2 + $0x98] sm:$0xf]  ;;  %v19308_v57 = vld [vmem:[#allocation2 + $0x9c] sm:$0xf] }
 0xcfc   : > { %v11846_v20 = vsel %vm3085_vm2, %v11841_v62, %v11845_v47 }
 0xcfd   : > { %v12432_v30 = vrot.slane %v12430_v49, 3  ;;  %v19297_v49 = vld [vmem:[#allocation2 + $0x74] sm:$0xf] }
 0xd02   : > { %17203 = vmatmul.mubr.bf16.gmra.mrb[36].mxu1 %v11774_v21  ;;  %v11849_v21 = vor.u32 %v11847_v23, %v11845_v47  ;;  %v19286_v47 = vld [vmem:[#allocation2 + $0x48] sm:$0xf] }
 0xd03   : > { %17206 = vmatprep.mubr.bf16.mxu1 %v11782_v32  ;;  %v11857_v32 = vor.u32 %v11855_v40, %v11853_v44  ;;  %v18783_v23 = vld [vmem:[#allocation8 + $0x1d0] sm:$0xff]   ;;  %v12436_v40 = vor.u32 %v12435_v33, %v12432_v30  ;;  %v18804_v33 = vld [vmem:[#allocation8 + $0x1f8] sm:$0xff]  }
 0xd04   : > { %v11854_v1 = vsel %vm3085_vm2, %v11849_v21, %v11853_v44 }
 0xd05   : > { %v11862_v8 = vsel %vm3085_vm2, %v11857_v32, %v11861_v37 }
 0xd0a   : > { %17207 = vmatmul.mubr.bf16.gmra.mrb[40].mxu1 %v11790_v29  ;;  %v19280_v29 = vld [vmem:[#allocation2 + $0x30] sm:$0xf] }
 0xd0b   : > { %17210 = vmatprep.mubr.bf16.mxu1 %v11798_v4  ;;  %v19281_v4 = vld [vmem:[#allocation2 + $0x34] sm:$0xf] }
 0xd0c   : > { %v14966_v36 = vcombine.low %v19280_v29, %v19281_v4  ;;  %v12462_v29 = vrot.slane %v12460_v10, 4  ;;  %v19292_v4 = vld [vmem:[#allocation2 + $0x60] sm:$0xf] }
 0xd12   : > { %17211 = vmatmul.mubr.bf16.gmra.mrb[44].mxu1 %v11806_v7  ;;  %v12421_v7 = vshrl.u32 %v14966_v36, 16 }
 0xd13   : > { %17214 = vmatprep.mubr.bf16.mxu1 %v11814_v18  ;;  %v12424_v18 = vshll.u32 %v14966_v36, 16  ;;  %v19293_v36 = vld [vmem:[#allocation2 + $0x64] sm:$0xf] }
 0xd14   : > { %v12423_v56 = vrot.slane %v12421_v7, 3  ;;  %v14972_v54 = vcombine.low %v19292_v4, %v19293_v36 }
 0xd15   : > { %v12426_v25 = vrot.slane %v12424_v18, 4 }
 0xd16   : > { %v12475_v7 = vshrl.u32 %v14972_v54, 16  ;;  %v12478_v18 = vshll.u32 %v14972_v54, 16  ;;  %v19305_v54 = vld [vmem:[#allocation2 + $0x90] sm:$0xf] }
 0xd17   : > { %v12427_v58 = vor.u32 %v12426_v25, %v12423_v56 }
 0xd19   : > { %v12437_v38 = vsel %vm2388_vm1, %v12427_v58, %v12436_v40 }
 0xd1a   : > { %17215 = vmatmul.mubr.bf16.gmra.mrb[48].mxu1 %v11822_v45  ;;  %v19285_v45 = vld [vmem:[#allocation2 + $0x44] sm:$0xf] }
 0xd1b   : > { %17218 = vmatprep.mubr.bf16.mxu1 %v11830_v13  ;;  %v14968_v3 = vcombine.low %v19284_v24, %v19285_v45  ;;  %v12418_v13 = vor.u32 %v12417_v19, %v12414_v59 }
 0xd1d   : > { %v12439_v5 = vshrl.u32 %v14968_v3, 16  ;;  %v12442_v14 = vshll.u32 %v14968_v3, 16  ;;  %v12419_v62 = vsel %vm2388_vm1, %v12409_v17, %v12418_v13  ;;  %v12463_v17 = vor.u32 %v12462_v29, %v12459_v63 }
 0xd1e   : > { %v12480_v3 = vrot.slane %v12478_v18, 4 }
 0xd1f   : > { %v12441_v55 = vrot.slane %v12439_v5, 3  ;;  %v12444_v61 = vrot.slane %v12442_v14, 4  ;;  %v12484_v14 = vshrl.u32 %v14973_v26, 16 }
 0xd21   : > { %v12445_v32 = vor.u32 %v12444_v61, %v12441_v55  ;;  %v19299_v55 = vld [vmem:[#allocation2 + $0x7c] sm:$0xf] }
 0xd22   : > { %17219 = vmatmul.mubr.bf16.gmra.mrb[52].mxu1 %v11838_v16  ;;  %v19287_v16 = vld [vmem:[#allocation2 + $0x4c] sm:$0xf] }
 0xd23   : > { %17222 = vmatprep.mubr.bf16.mxu1 %v11846_v20  ;;  %v14969_v44 = vcombine.low %v19286_v47, %v19287_v16  ;;  %v12428_v20 = vsel %vm2388_vm1, %v12418_v13, %v12427_v58  ;;  %v19296_v13 = vld [vmem:[#allocation2 + $0x70] sm:$0xf]  ;;  %v18799_v58 = vld [vmem:[#allocation8 + $0x1f0] sm:$0xff]   ;;  %v12486_v16 = vrot.slane %v12484_v14, 3 }
 0xd24   : > { %v14974_v51 = vcombine.low %v19296_v13, %v19297_v49 }
 0xd25   : > { %v12448_v42 = vshrl.u32 %v14969_v44, 16  ;;  %v12451_v21 = vshll.u32 %v14969_v44, 16 }
 0xd26   : > { %v12496_v30 = vshll.u32 %v14974_v51, 16 }
 0xd27   : > { %v12450_v37 = vrot.slane %v12448_v42, 3 }
 0xd28   : > { %v12498_v27 = vrot.slane %v12496_v30, 4  ;;  %v19312_v30 = vld [vmem:[#allocation2 + $0xac] sm:$0xf] }
 0xd2a   : > { %17223 = vmatmul.mubr.bf16.gmra.mrb[56].mxu1 %v11854_v1  ;;  %v12453_v1 = vrot.slane %v12451_v21, 4 }
 0xd2b   : > { %17226 = vmatprep.mubr.bf16.mxu1 %v11862_v8  ;;  %v19290_v8 = vld [vmem:[#allocation2 + $0x58] sm:$0xf] }
 0xd2c   : > { %v14971_v35 = vcombine.low %v19290_v8, %v19291_v12  ;;  %v12454_v11 = vor.u32 %v12453_v1, %v12450_v37  ;;  %v24629_v37 = vld [vmem:[#allocation8 + $0x200] sm:$0xff]  }
 0xd2e   : > { %v12466_v2 = vshrl.u32 %v14971_v35, 16  ;;  %v12469_v0 = vshll.u32 %v14971_v35, 16  ;;  %v12464_v45 = vsel %vm2388_vm1, %v12454_v11, %v12463_v17  ;;  %v19303_v35 = vld [vmem:[#allocation2 + $0x88] sm:$0xf] }
 0xd30   : > { %v12468_v25 = vrot.slane %v12466_v2, 3  ;;  %v12471_v24 = vrot.slane %v12469_v0, 4 }
 0xd32   : > { %17227 = vmatmul.mubr.bf16.gmra.mrb[80].mxu1 %v11865_v43  ;;  %v12472_v5 = vor.u32 %v12471_v24, %v12468_v25  ;;  %v19309_v24 = vld [vmem:[#allocation2 + $0xa0] sm:$0xf] }
 0xd33   : > { %17246 = vmatprep.mubr.bf16.mxu1 %v12410_v15  ;;  %v18796_v15 = vld [vmem:[#allocation8 + $0x1e8] sm:$0xff]  }
 0xd34   : > { %v12473_v47 = vsel %vm2388_vm1, %v12463_v17, %v12472_v5 }
 0xd3a   : > { %17247 = vmatmul.mubr.bf16.vlgmr.msra.gmra.mrb[16].mxu1 %v12419_v62  ;;  %v12493_v62 = vshrl.u32 %v14974_v51, 16 }
 0xd3b   : > { %17295 = vmatpush3.bf16.msra.mxu1 %v24593_v9  ;;  %17250 = vmatprep.mubr.bf16.mxu1 %v12428_v20  ;;  %v12446_v9 = vsel %vm2388_vm1, %v12436_v40, %v12445_v32  ;;  %v19298_v20 = vld [vmem:[#allocation2 + $0x78] sm:$0xf]  ;;  %v19301_v40 = vld [vmem:[#allocation2 + $0x84] sm:$0xf] }
 0xd3c   : > { %17296 = vmatprep.subr.bf16.mxu1 %v18780_v39  ;;  %v14975_v61 = vcombine.low %v19298_v20, %v19299_v55  ;;  %v12495_v48 = vrot.slane %v12493_v62, 3  ;;  %v19311_v62 = vld [vmem:[#allocation2 + $0xa8] sm:$0xf]  ;;  %v19313_v20 = vld [vmem:[#allocation2 + $0xb0] sm:$0xf] }
 0xd3d   : > { %v19314_v55 = vld [vmem:[#allocation2 + $0xb4] sm:$0xf] }
 0xd3e   : > { %v12505_v22 = vshll.u32 %v14975_v61, 16  ;;  %v12499_v10 = vor.u32 %v12498_v27, %v12495_v48 }
 0xd3f   : > { %17297 = vmatpush3.bf16.msra.mxu1 %v18780_v39 }
 0xd40   : > { %17298 = vmatprep.subr.bf16.mxu1 %v18783_v23  ;;  %v12507_v12 = vrot.slane %v12505_v22, 4 }
 0xd42   : > { %17251 = vmatmul.mubr.bf16.gmra.mrb[20].mxu1 %v12437_v38 }
 0xd43   : > { %17254 = vmatprep.mubr.bf16.mxu1 %v12446_v9  ;;  %17299 = vmatpush3.bf16.msra.mxu1 %v18783_v23  ;;  %v19300_v23 = vld [vmem:[#allocation2 + $0x80] sm:$0xf]  ;;  %v19304_v9 = vld [vmem:[#allocation2 + $0x8c] sm:$0xf] }
 0xd44   : > { %17300 = vmatprep.subr.bf16.mxu1 %v18788_v53  ;;  %v14976_v42 = vcombine.low %v19300_v23, %v19301_v40  ;;  %v14977_v63 = vcombine.low %v19303_v35, %v19304_v9  ;;  %v19317_v35 = vld [vmem:[#allocation2 + $0xc0] sm:$0xf]  ;;  %v19318_v9 = vld [vmem:[#allocation2 + $0xc4] sm:$0xf] }
 0xd45   : > { %v17100_v60 = vpop.f32.mrb[72].mxu1 }
 0xd46   : > { %v24617_v31 = vadd.f32 %v17100_v60, %v24581_v6  ;;  %v11045_v34 = vpop.f32.mrb[73].mxu1  ;;  %v12455_v6 = vsel %vm2388_vm1, %v12445_v32, %v12454_v11  ;;  %v12502_v32 = vshrl.u32 %v14975_v61, 16  ;;  %v12514_v38 = vshll.u32 %v14976_v42, 16 }
 0xd47   : > { %v24620_v43 = vadd.f32 %v11045_v34, %v24584_v50  ;;  %v17101_v59 = vpop.f32.mrb[74].mxu1  ;;  %17301 = vmatpush3.bf16.msra.mxu1 %v18788_v53  ;;  %v12477_v50 = vrot.slane %v12475_v7, 3  ;;  %v12511_v53 = vshrl.u32 %v14976_v42, 16  ;;  %v12520_v2 = vshrl.u32 %v14977_v63, 16 }
 0xd48   : > { %v11048_v19 = vpop.f32.mrb[75].mxu1  ;;  %17302 = vmatprep.subr.bf16.mxu1 %v18791_v28  ;;  %v12504_v8 = vrot.slane %v12502_v32, 3  ;;  %v12516_v36 = vrot.slane %v12514_v38, 4  ;;  %v12523_v0 = vshll.u32 %v14977_v63, 16  ;;  %v14982_v61 = vcombine.low %v19313_v20, %v19314_v55  ;;  %v26109_v55 = vld [vmem:[#allocation35_spill] sm:$0xff] }
 0xd49   : > { %v24623_v56 = vadd.f32 %v11048_v19, %v24587_v46  ;;  %v12487_v46 = vshll.u32 %v14973_v26, 16  ;;  %v12481_v39 = vor.u32 %v12480_v3, %v12477_v50  ;;  %v12513_v4 = vrot.slane %v12511_v53, 3  ;;  %v19316_v53 = vld [vmem:[#allocation2 + $0xbc] sm:$0xf] }
 0xd4a   : > { %17255 = vmatmul.mubr.bf16.gmra.mrb[24].mxu1 %v12455_v6  ;;  %v12508_v11 = vor.u32 %v12507_v12, %v12504_v8  ;;  %v12522_v59 = vrot.slane %v12520_v2, 3  ;;  %v12525_v19 = vrot.slane %v12523_v0, 4  ;;  %v14979_v26 = vcombine.low %v19307_v41, %v19308_v57  ;;  %v24642_v2 = vld [vmem:[#allocation2 + $0xd0] sm:$0xf]  ;;  %v24644_v0 = vld [vmem:[#allocation2 + $0xd4] sm:$0xf] }
 0xd4b   : > { %17258 = vmatprep.mubr.bf16.mxu1 %v12464_v45  ;;  %17303 = vmatpush3.bf16.msra.mxu1 %v18791_v28  ;;  %v12489_v44 = vrot.slane %v12487_v46, 4  ;;  %v12482_v52 = vsel %vm2388_vm1, %v12472_v5, %v12481_v39  ;;  %v19306_v28 = vld [vmem:[#allocation2 + $0x94] sm:$0xf]  ;;  %v12517_v34 = vor.u32 %v12516_v36, %v12513_v4  ;;  %v19310_v45 = vld [vmem:[#allocation2 + $0xa4] sm:$0xf]  ;;  %v12565_v40 = vshrl.u32 %v14982_v61, 16 }
 0xd4c   : > { %17304 = vmatprep.subr.bf16.mxu1 %v18796_v15  ;;  %v14978_v60 = vcombine.low %v19305_v54, %v19306_v28  ;;  %v12509_v18 = vsel %vm2388_vm1, %v12499_v10, %v12508_v11  ;;  %v14980_v50 = vcombine.low %v19309_v24, %v19310_v45  ;;  %v12526_v3 = vor.u32 %v12525_v19, %v12522_v59 }
 0xd4d   : > { %v12490_v21 = vor.u32 %v12489_v44, %v12486_v16  ;;  %v12538_v13 = vshrl.u32 %v14979_v26, 16  ;;  %v12541_v49 = vshll.u32 %v14979_v26, 16  ;;  %v12568_v42 = vshll.u32 %v14982_v61, 16  ;;  %v26110_v61 = vld [vmem:[#allocation88_spill] sm:$0xff] }
 0xd4e   : > { %v12529_v17 = vshrl.u32 %v14978_v60, 16  ;;  %v12532_v7 = vshll.u32 %v14978_v60, 16  ;;  %v12550_v5 = vshll.u32 %v14980_v50, 16  ;;  %v12527_v14 = vsel %vm2388_vm1, %v12517_v34, %v12526_v3 }
 0xd4f   : > { %17305 = vmatpush3.bf16.msra.mxu1 %v18796_v15  ;;  %v12491_v1 = vsel %vm2388_vm1, %v12481_v39, %v12490_v21  ;;  %v12500_v29 = vsel %vm2388_vm1, %v12490_v21, %v12499_v10  ;;  %v12518_v15 = vsel %vm2388_vm1, %v12508_v11, %v12517_v34  ;;  %v12540_v46 = vrot.slane %v12538_v13, 3  ;;  %v19315_v10 = vld [vmem:[#allocation2 + $0xb8] sm:$0xf]  ;;  %v24640_v11 = vld [vmem:[#allocation2 + $0xcc] sm:$0xf] }
 0xd50   : > { %17306 = vmatprep.subr.bf16.mxu1 %v18799_v58  ;;  %v12531_v6 = vrot.slane %v12529_v17, 3  ;;  %v12534_v25 = vrot.slane %v12532_v7, 4  ;;  %v12543_v39 = vrot.slane %v12541_v49, 4  ;;  %v12552_v44 = vrot.slane %v12550_v5, 4 }
 0xd51   : > { %v14983_v38 = vcombine.low %v19315_v10, %v19316_v53  ;;  %v12567_v8 = vrot.slane %v12565_v40, 3  ;;  %v12570_v12 = vrot.slane %v12568_v42, 4  ;;  %v14984_v63 = vcombine.low %v19317_v35, %v19318_v9  ;;  %v26113_v40 = vld [vmem:[#allocation87_spill] sm:$0xff]  ;;  %v19322_v10 = vld [vmem:[#allocation8 + $0x218] sm:$0xff]  }
 0xd52   : > { %17259 = vmatmul.mubr.bf16.gmra.mrb[28].mxu1 %v12473_v47  ;;  %v12535_v51 = vor.u32 %v12534_v25, %v12531_v6  ;;  %v14986_v26 = vcombine.low %v24642_v2, %v24644_v0  ;;  %v19323_v35 = vld [vmem:[#allocation8 + $0x220] sm:$0xff]  }
 0xd53   : > { %17262 = vmatprep.mubr.bf16.mxu1 %v12482_v52  ;;  %17307 = vmatpush3.bf16.msra.mxu1 %v18799_v58  ;;  %v12547_v58 = vshrl.u32 %v14980_v50, 16  ;;  %v12544_v52 = vor.u32 %v12543_v39, %v12540_v46  ;;  %v12574_v4 = vshrl.u32 %v14983_v38, 16  ;;  %v12577_v36 = vshll.u32 %v14983_v38, 16 }
 0xd54   : > { %17308 = vmatprep.subr.bf16.mxu1 %v18804_v33  ;;  %v12536_v47 = vsel %vm2388_vm1, %v12526_v3, %v12535_v51  ;;  %v12571_v54 = vor.u32 %v12570_v12, %v12567_v8  ;;  %v12583_v28 = vshrl.u32 %v14984_v63, 16  ;;  %v12586_v60 = vshll.u32 %v14984_v63, 16  ;;  %v26118_v63 = vld [vmem:[#allocation39_spill] sm:$0xff] }
 0xd55   : > { %v12549_v16 = vrot.slane %v12547_v58, 3  ;;  %v12545_v21 = vsel %vm2388_vm1, %v12535_v51, %v12544_v52  ;;  %v12576_v17 = vrot.slane %v12574_v4, 3  ;;  %v12579_v7 = vrot.slane %v12577_v36, 4  ;;  %v26121_v36 = vld [vmem:[#allocation41_spill] sm:$0xff] }
 0xd56   : > { %v12585_v41 = vrot.slane %v12583_v28, 3  ;;  %v12588_v57 = vrot.slane %v12586_v60, 4  ;;  %v12601_v45 = vshrl.u32 %v14986_v26, 16  ;;  %v12604_v50 = vshll.u32 %v14986_v26, 16  ;;  %v19324_v28 = vld [vmem:[#allocation8 + $0x228] sm:$0xff]   ;;  %v26124_v60 = vld [vmem:[#allocation43_spill] sm:$0xff] }
 0xd57   : > { %17309 = vmatpush3.bf16.msra.mxu1 %v18804_v33  ;;  %v14981_v33 = vcombine.low %v19311_v62, %v19312_v30  ;;  %v12553_v23 = vor.u32 %v12552_v44, %v12549_v16  ;;  %v26103_v30 = vld [vmem:[#allocation33_spill] sm:$0xff]  ;;  %v26106_v16 = vld [vmem:[#allocation34_spill] sm:$0xff] }
 0xd58   : > { %17422 = vmatprep.subr.bf16.mxu1 %v24629_v37  ;;  %v12589_v24 = vor.u32 %v12588_v57, %v12585_v41  ;;  %v12603_v58 = vrot.slane %v12601_v45, 3  ;;  %v12606_v5 = vrot.slane %v12604_v50, 4  ;;  %v26107_v44 = vld [vmem:[#allocation85_spill] sm:$0xff]  ;;  %v26131_v41 = vld [vmem:[#allocation94_spill] sm:$0xff] }
 0xd59   : > { %v12556_v48 = vshrl.u32 %v14981_v33, 16  ;;  %v12559_v27 = vshll.u32 %v14981_v33, 16  ;;  %v26104_v33 = vld [vmem:[#allocation83_spill] sm:$0xff]  ;;  %v26108_v20 = vcombine.low %v26106_v16, %v26107_v44  ;;  %v26133_v26 = vld [vmem:[#allocation49_spill] sm:$0xff] }
 0xd5a   : > { %17263 = vmatmul.mubr.bf16.gmra.mrb[32].mxu1 %v12491_v1  ;;  %v12554_v1 = vsel %vm2388_vm1, %v12544_v52, %v12553_v23  ;;  %v12607_v46 = vor.u32 %v12606_v5, %v12603_v58  ;;  %v26111_v52 = vcombine.low %v26109_v55, %v26110_v61  ;;  %v26139_v50 = vld [vmem:[#allocation97_spill] sm:$0xff]  ;;  %v26145_v5 = vld [vmem:[#allocation40_spill] sm:$0xff] }
 0xd5b   : > { %17266 = vmatprep.mubr.bf16.mxu1 %v12500_v29  ;;  %v12558_v32 = vrot.slane %v12556_v48, 3  ;;  %v12561_v22 = vrot.slane %v12559_v27, 4  ;;  %v19320_v48 = vld [vmem:[#allocation8 + $0x208] sm:$0xff]   ;;  %v19321_v27 = vld [vmem:[#allocation8 + $0x210] sm:$0xff]  }
 0xd5c   : > { %v26154_v44 = vld [vmem:[#allocation61_spill] sm:$0xff]  ;;  %v26157_v61 = vld [vmem:[#allocation48_spill] sm:$0xff] }
 0xd5d   : > { %v12562_v29 = vor.u32 %v12561_v22, %v12558_v32  ;;  %v26116_v32 = vld [vmem:[#allocation89_spill] sm:$0xff] }
 0xd5f   : > { %v12563_v34 = vsel %vm2388_vm1, %v12553_v23, %v12562_v29  ;;  %v12572_v19 = vsel %vm2388_vm1, %v12562_v29, %v12571_v54  ;;  %v26112_v23 = vld [vmem:[#allocation36_spill] sm:$0xff]  ;;  %v26119_v29 = vld [vmem:[#allocation90_spill] sm:$0xff] }
 0xd60   : > { %v26114_v42 = vcombine.low %v26112_v23, %v26113_v40  ;;  %v26120_v4 = vcombine.low %v26118_v63, %v26119_v29  ;;  %v26161_v23 = vld [vmem:[#allocation79_spill] sm:$0xff] }
 0xd62   : > { %17267 = vmatmul.mubr.bf16.gmra.mrb[36].mxu1 %v12509_v18  ;;  %v19319_v18 = vld [vmem:[#allocation2 + $0xc8] sm:$0xf] }
 0xd63   : > { %17270 = vmatprep.mubr.bf16.mxu1 %v12518_v15  ;;  %v14985_v59 = vcombine.low %v19319_v18, %v24640_v11  ;;  %v12580_v15 = vor.u32 %v12579_v7, %v12576_v17  ;;  %v26128_v7 = vld [vmem:[#allocation93_spill] sm:$0xff] }
 0xd65   : > { %v12592_v6 = vshrl.u32 %v14985_v59, 16  ;;  %v12595_v25 = vshll.u32 %v14985_v59, 16  ;;  %v12581_v3 = vsel %vm2388_vm1, %v12571_v54, %v12580_v15  ;;  %v12590_v51 = vsel %vm2388_vm1, %v12580_v15, %v12589_v24  ;;  %v26122_v54 = vld [vmem:[#allocation92_spill] sm:$0xff]  ;;  %v19326_v59 = vld [vmem:[#allocation8 + $0x238] sm:$0xff]  }
 0xd66   : > { %v26134_v15 = vld [vmem:[#allocation96_spill] sm:$0xff] }
 0xd67   : > { %v12594_v13 = vrot.slane %v12592_v6, 3  ;;  %v12597_v49 = vrot.slane %v12595_v25, 4  ;;  %v26135_v6 = vcombine.low %v26133_v26, %v26134_v15  ;;  %v26136_v25 = vld [vmem:[#allocation95_spill] sm:$0xff] }
 0xd6a   : > { %17271 = vmatmul.mubr.bf16.gmra.mrb[40].mxu1 %v12527_v14  ;;  %v12598_v14 = vor.u32 %v12597_v49, %v12594_v13  ;;  %v26142_v49 = vld [vmem:[#allocation98_spill] sm:$0xff] }
 0xd6b   : > { %17274 = vmatprep.mubr.bf16.mxu1 %v12536_v47  ;;  %v26105_v47 = vcombine.low %v26103_v30, %v26104_v33  ;;  %v26151_v33 = vld [vmem:[#allocation60_spill] sm:$0xff] }
 0xd6c   : > { %v12599_v39 = vsel %vm2388_vm1, %v12589_v24, %v12598_v14  ;;  %v12608_v62 = vsel %vm2388_vm1, %v12598_v14, %v12607_v46  ;;  %v26137_v24 = vld [vmem:[#allocation53_spill] sm:$0xff]  ;;  %v26146_v14 = vld [vmem:[#allocation58_spill] sm:$0xff] }
 0xd6d   : > { %v26138_v45 = vcombine.low %v26136_v25, %v26137_v24 }
 0xd72   : > { %17275 = vmatmul.mubr.bf16.gmra.mrb[44].mxu1 %v12545_v21  ;;  %v26115_v21 = vld [vmem:[#allocation37_spill] sm:$0xff] }
 0xd73   : > { %17278 = vmatprep.mubr.bf16.mxu1 %v12554_v1  ;;  %v26117_v22 = vcombine.low %v26115_v21, %v26116_v32  ;;  %v26164_v21 = vld [vmem:[#allocation50_spill] sm:$0xff] }
 0xd7a   : > { %17279 = vmatmul.mubr.bf16.gmra.mrb[48].mxu1 %v12563_v34  ;;  %v26125_v34 = vld [vmem:[#allocation91_spill] sm:$0xff] }
 0xd7b   : > { %17282 = vmatprep.mubr.bf16.mxu1 %v12572_v19  ;;  %v26126_v17 = vcombine.low %v26124_v60, %v26125_v34  ;;  %v26130_v19 = vld [vmem:[#allocation47_spill] sm:$0xff] }
 0xd7c   : > { %v26132_v57 = vcombine.low %v26130_v19, %v26131_v41 }
 0xd82   : > { %17283 = vmatmul.mubr.bf16.gmra.mrb[52].mxu1 %v12581_v3  ;;  %v26140_v3 = vld [vmem:[#allocation55_spill] sm:$0xff] }
 0xd83   : > { %17286 = vmatprep.mubr.bf16.mxu1 %v12590_v51  ;;  %v26141_v13 = vcombine.low %v26139_v50, %v26140_v3  ;;  %v26143_v51 = vld [vmem:[#allocation57_spill] sm:$0xff] }
 0xd84   : > { %v26144_v58 = vcombine.low %v26142_v49, %v26143_v51 }
 0xd8a   : > { %17287 = vmatmul.mubr.bf16.gmra.mrb[56].mxu1 %v12599_v39  ;;  %v26148_v39 = vld [vmem:[#allocation59_spill] sm:$0xff] }
 0xd8b   : > { %17290 = vmatprep.mubr.bf16.mxu1 %v12608_v62  ;;  %v26149_v62 = vld [vmem:[#allocation44_spill] sm:$0xff] }
 0xd8c   : > { %v26150_v30 = vcombine.low %v26148_v39, %v26149_v62  ;;  %v14057_v39 = vld [vmem:[%s19722_s24 + $0x10] sm:$0xff] }
 0xd8d   : > { %v26171_v62 = vld [vmem:[#allocation99_spill] sm:$0xff] }
 0xd92   : > { %17291 = vmatmul.mubr.bf16.gmra.mrb[84].mxu1 %v12607_v46  ;;  %v26147_v46 = vcombine.low %v26145_v5, %v26146_v14 }
 0xd93   : > { %17310 = vmatprep.mubr.bf16.mxu1 %v26105_v47  ;;  %v26152_v47 = vld [vmem:[#allocation42_spill] sm:$0xff] }
 0xd94   : > { %v26153_v16 = vcombine.low %v26151_v33, %v26152_v47 }
 0xd9a   : > { %17311 = vmatmul.mubr.bf16.vlgmr.msra.gmra.mrb[16].mxu1 %v26108_v20  ;;  %v26155_v20 = vld [vmem:[#allocation46_spill] sm:$0xff] }
 0xd9b   : > { %17430 = vmatpush3.bf16.msra.mxu1 %v24629_v37  ;;  %17314 = vmatprep.mubr.bf16.mxu1 %v26111_v52  ;;  %v26156_v55 = vcombine.low %v26154_v44, %v26155_v20  ;;  %v26158_v52 = vld [vmem:[#allocation63_spill] sm:$0xff]  ;;  %v26172_v44 = vld [vmem:[#allocation62_spill] sm:$0xff] }
 0xd9c   : > { %17423 = vmatprep.subr.bf16.mxu1 %v19320_v48 }
 0xd9f   : > { %17431 = vmatpush3.bf16.msra.mxu1 %v19320_v48  ;;  %v26159_v48 = vcombine.low %v26157_v61, %v26158_v52  ;;  %v14058_v52 = vld [vmem:[%s19722_s24 + $0x18] sm:$0xff] }
 0xda0   : > { %17424 = vmatprep.subr.bf16.mxu1 %v19321_v27 }
 0xda2   : > { %17315 = vmatmul.mubr.bf16.gmra.mrb[20].mxu1 %v26114_v42  ;;  %v26163_v42 = vld [vmem:[#allocation65_spill] sm:$0xff] }
 0xda3   : > { %17318 = vmatprep.mubr.bf16.mxu1 %v26117_v22  ;;  %17432 = vmatpush3.bf16.msra.mxu1 %v19321_v27  ;;  %v26160_v27 = vld [vmem:[#allocation52_spill] sm:$0xff]  ;;  %v26165_v32 = vcombine.low %v26163_v42, %v26164_v21  ;;  %v15017_v22 = vcombine.low %v24640_v11, %v24642_v2  ;;  %v14056_v42 = vld [vmem:[%s19722_s24 + $0x8] sm:$0xff] }
 0xda4   : > { %17425 = vmatprep.subr.bf16.mxu1 %v19322_v10  ;;  %v26162_v40 = vcombine.low %v26160_v27, %v26161_v23 }
 0xda5   : > { %v17164_v37 = vpop.f32.mrb[76].mxu1 }
 0xda6   : > { %v24672_v53 = vadd.f32 %v17164_v37, %v24617_v31  ;;  %v11429_v38 = vpop.f32.mrb[77].mxu1  ;;  %v26123_v31 = vcombine.low %v26121_v36, %v26122_v54  ;;  %v26166_v37 = vld [vmem:[#allocation66_spill] sm:$0xff]  ;;  %v15018_v36 = vcombine.low %v24644_v0, %v24644_v0 }
 0xda7   : > { %v24675_v1 = vadd.f32 %v11429_v38, %v24620_v43  ;;  %v17165_v8 = vpop.f32.mrb[78].mxu1  ;;  %17433 = vmatpush3.bf16.msra.mxu1 %v19322_v10  ;;  %v19325_v43 = vld [vmem:[#allocation8 + $0x230] sm:$0xff]   ;;  %v26167_v38 = vld [vmem:[#allocation54_spill] sm:$0xff] }
 0xda8   : > { %v11432_v12 = vpop.f32.mrb[79].mxu1  ;;  %17426 = vmatprep.subr.bf16.mxu1 %v19323_v35  ;;  %v18829_v10 = vld [vmem:[#allocation2 + $0xc4] sm:$0xff]   ;;  %v26168_v8 = vcombine.low %v26166_v37, %v26167_v38  ;;  %v26169_v54 = vld [vmem:[#allocation38_spill] sm:$0xff]  ;;  %v26174_v38 = vld [vmem:[#allocation67_spill] sm:$0xff] }
 0xda9   : > { %v24678_v9 = vadd.f32 %v11432_v12, %v24623_v56  ;;  %v26127_v56 = vld [vmem:[#allocation45_spill] sm:$0xff]  ;;  %v18830_v12 = vld [vmem:[#allocation2 + $0xcc] sm:$0xff]   ;;  %v13689_v29 = vshll.u32 %v18829_v10, 16 }
 0xdaa   : > { %17319 = vmatmul.mubr.bf16.gmra.mrb[24].mxu1 %v26120_v4  ;;  %v26129_v18 = vcombine.low %v26127_v56, %v26128_v7  ;;  %v18831_v4 = vld [vmem:[#allocation2 + $0xd4] sm:$0x1f]   ;;  %v13701_v60 = vshrl.u32 %v18830_v12, 16 }
 0xdab   : > { %17322 = vmatprep.mubr.bf16.mxu1 %v26123_v31  ;;  %17434 = vmatpush3.bf16.msra.mxu1 %v19323_v35  ;;  %v19327_v35 = vld [vmem:[#allocation2 + $0xbc] sm:$0xff]   ;;  %v13705_v11 = vshll.u32 %v18831_v4, 16  ;;  %v13709_v0 = vshrl.u32 %v18831_v4, 16 }
 0xdac   : > { %17427 = vmatprep.subr.bf16.mxu1 %v19324_v28  ;;  %v13685_v63 = vshrl.u32 %v19327_v35, 16  ;;  %v14061_v35 = vld [vmem:[%s19722_s24 + $0x30] sm:$0xff] }
 0xdad   : > { %v13707_v7 = vrot.slane %v13705_v11, 1  ;;  %v14062_v11 = vld [vmem:[%s19722_s24 + $0x38] sm:$0xff] }
 0xdae   : > { %v13687_v31 = vor.u32 %v13685_v63, %v26169_v54  ;;  %v26175_v63 = vld [vmem:[#allocation71_spill] sm:$0xff]  ;;  %v14059_v54 = vld [vmem:[%s19722_s24 + $0x20] sm:$0xff] }
 0xdaf   : > { %17435 = vmatpush3.bf16.msra.mxu1 %v19324_v28  ;;  %v13697_v28 = vshll.u32 %v18830_v12, 16  ;;  %v13711_v41 = vor.u32 %v13709_v0, %v13707_v7 }
 0xdb0   : > { %17428 = vmatprep.subr.bf16.mxu1 %v19325_v43 }
 0xdb1   : > { %v13699_v34 = vrot.slane %v13697_v28, 1 }
 0xdb2   : > { %17323 = vmatmul.mubr.bf16.gmra.mrb[28].mxu1 %v26126_v17  ;;  %v13693_v17 = vshrl.u32 %v18829_v10, 16 }
 0xdb3   : > { %17326 = vmatprep.mubr.bf16.mxu1 %v26129_v18  ;;  %17436 = vmatpush3.bf16.msra.mxu1 %v19325_v43  ;;  %v13691_v43 = vrot.slane %v13689_v29, 1  ;;  %v13703_v56 = vor.u32 %v13701_v60, %v13699_v34 }
 0xdb4   : > { %17429 = vmatprep.subr.bf16.mxu1 %v19326_v59 }
 0xdb5   : > { %v13692_v2 = vsel %vm3085_vm2, %v13687_v31, %v13691_v43  ;;  %v13695_v18 = vor.u32 %v13693_v17, %v13691_v43  ;;  %v26176_v31 = vld [vmem:[#allocation68_spill] sm:$0xff] }
 0xdb7   : > { %17437 = vmatpush3.bf16.msra.mxu1 %v19326_v59  ;;  %v13708_v59 = vsel %vm3085_vm2, %v13703_v56, %v13707_v7  ;;  %v13700_v19 = vsel %vm3085_vm2, %v13695_v18, %v13699_v34  ;;  %v14060_v7 = vld [vmem:[%s19722_s24 + $0x28] sm:$0xff] }
 0xdba   : > { %17327 = vmatmul.mubr.bf16.gmra.mrb[32].mxu1 %v26132_v57 }
 0xdbb   : > { %17330 = vmatprep.mubr.bf16.mxu1 %v26135_v6 }
 0xdc2   : > { %17331 = vmatmul.mubr.bf16.gmra.mrb[36].mxu1 %v26138_v45 }
 0xdc3   : > { %17334 = vmatprep.mubr.bf16.mxu1 %v26141_v13 }
 0xdca   : > { %17335 = vmatmul.mubr.bf16.gmra.mrb[40].mxu1 %v26144_v58 }
 0xdcb   : > { %17338 = vmatprep.mubr.bf16.mxu1 %v26147_v46 }
 0xdd2   : > { %17339 = vmatmul.mubr.bf16.gmra.mrb[44].mxu1 %v26150_v30 }
 0xdd3   : > { %17342 = vmatprep.mubr.bf16.mxu1 %v26153_v16  ;;  %v14055_v16 = vld [vmem:[%s19722_s24] sm:$0xff] }
 0xdda   : > { %17343 = vmatmul.mubr.bf16.gmra.mrb[48].mxu1 %v26156_v55 }
 0xddb   : > { %17346 = vmatprep.mubr.bf16.mxu1 %v26159_v48  ;;  %v26173_v48 = vld [vmem:[#allocation64_spill] sm:$0xff] }
 0xde2   : > { %17347 = vmatmul.mubr.bf16.gmra.mrb[52].mxu1 %v26162_v40 }
 0xde3   : > { %17350 = vmatprep.mubr.bf16.mxu1 %v26165_v32 }
 0xdea   : > { %17351 = vmatmul.mubr.bf16.gmra.mrb[56].mxu1 %v26168_v8 }
 0xdeb   : > { %17354 = vmatprep.mubr.bf16.mxu1 %v15017_v22 }
 0xdf2   : > { %17355 = vmatmul.mubr.bf16.gmra.mrb[88].mxu1 %v15018_v36 }
 0xdf3   : > { %17414 = vmatprep.mubr.bf16.mxu1 %v13692_v2  ;;  %v26177_v2 = vld [vmem:[#allocation69_spill] sm:$0xff] }
 0xdfa   : > { %17415 = vmatmul.mubr.bf16.vlgmr.msra.gmra.mrb[56].mxu1 %v13700_v19 }
 0xdfb   : > { %17418 = vmatprep.mubr.bf16.mxu1 %v13708_v59 }
 0xe02   : > { %17419 = vmatmul.mubr.bf16.gmra.mrb[92].mxu1 %v13711_v41 }
 0xe05   : > { %v17228_v57 = vpop.f32.mrb[80].mxu1 }
 0xe06   : > { %v12208_v26 = vadd.f32 %v17228_v57, %v24672_v53  ;;  %v12148_v15 = vpop.f32.mrb[81].mxu1  ;;  %v24751_v53 = vld [vmem:[%s24996_s4 + $0x6] ss:$0 sm:$0xff]  ;;  %v26178_v57 = vld [vmem:[#allocation70_spill] sm:$0xff] }
 0xe07   : > { %v12206_v6 = vadd.f32 %v12148_v15, %v24675_v1  ;;  %v17229_v25 = vpop.f32.mrb[82].mxu1 }
 0xe08   : > { %v12151_v24 = vpop.f32.mrb[83].mxu1  ;;  %v26179_v25 = vld [vmem:[#allocation56_spill] sm:$0xff] }
 0xe09   : > { %v12207_v45 = vadd.f32 %v12151_v24, %v24678_v9  ;;  %v26170_v9 = vld [vmem:[#allocation51_spill] sm:$0xff] }
 0xe65   : > { %v17292_v50 = vpop.f32.mrb[84].mxu1 }
 0xe66   : > { %v24742_v3 = vadd.f32 %v17292_v50, %v12208_v26  ;;  %v12891_v13 = vpop.f32.mrb[85].mxu1 }
 0xe67   : > { %v24744_v49 = vadd.f32 %v12891_v13, %v12206_v6  ;;  %v17293_v51 = vpop.f32.mrb[86].mxu1  ;;  %v14065_v6 = vld [vmem:[%s19722_s24 + $0x50] sm:$0xff]  ;;  %v14063_v13 = vld [vmem:[%s19722_s24 + $0x40] sm:$0xff] }
 0xe68   : > { %v12894_v58 = vpop.f32.mrb[87].mxu1  ;;  %v26180_v51 = vld [vmem:[#allocation72_spill] sm:$0xff] }
 0xe69   : > { %v24746_v5 = vadd.f32 %v12894_v58, %v12207_v45 }
 0xe6d   : > { %v17312_v1 = vpop.f32.mrb[16].mxu1 }
 0xe6e   : > { %v17438_v14 = vadd.f32 %v26170_v9, %v17312_v1  ;;  %v13099_v46 = vpop.f32.mrb[17].mxu1 }
 0xe6f   : > { %v17439_v30 = vadd.f32 %v26171_v62, %v13099_v46  ;;  %v17313_v33 = vpop.f32.mrb[18].mxu1  ;;  %v26181_v46 = vld [vmem:[#allocation100_spill] sm:$0xff] }
 0xe70   : > { %v14108_v47 = vadd.f32 %v17438_v14, %v24751_v53  ;;  %v17440_v20 = vadd.f32 %v26172_v44, %v17313_v33  ;;  %v13102_v55 = vpop.f32.mrb[19].mxu1  ;;  %v14066_v14 = vld [vmem:[%s19722_s24 + $0x58] sm:$0xff]  ;;  %v14064_v33 = vld [vmem:[%s19722_s24 + $0x48] sm:$0xff] }
 0xe71   : > { %v14106_v61 = vadd.f32 %v17439_v30, %v24751_v53  ;;  %v17441_v27 = vadd.f32 %v26173_v48, %v13102_v55 }
 0xe72   : > { %v14155_v23 = vadd.f32 %v14108_v47, %v14057_v39  ;;  %v14109_v40 = vadd.f32 %v17440_v20, %v24751_v53 }
 0xe73   : > { %v14153_v21 = vadd.f32 %v14106_v61, %v14055_v16  ;;  %v14107_v32 = vadd.f32 %v17441_v27, %v24751_v53  ;;  %v26182_v61 = vld [vmem:[#allocation101_spill] sm:$0xff]  ;;  %v14069_v27 = vld [vmem:[%s19722_s24 + $0x70] sm:$0xff] }
 0xe74   : > { %14202 = vst [vmem:[%s24767_s11 + $0x10] sm:$0xff] %v14155_v23  ;;  %v14156_v22 = vadd.f32 %v14109_v40, %v14058_v52  ;;  %v26183_v23 = vld [vmem:[#allocation102_spill] sm:$0xff] }
 0xe75   : > { %14200 = vst [vmem:[%s24767_s11] sm:$0xff] %v14153_v21  ;;  %v14154_v10 = vadd.f32 %v14107_v32, %v14056_v42  ;;  %v17316_v37 = vpop.f32.mrb[20].mxu1  ;;  %v14067_v32 = vld [vmem:[%s19722_s24 + $0x60] sm:$0xff] }
 0xe76   : > { %14203 = vst [vmem:[%s24767_s11 + $0x18] sm:$0xff] %v14156_v22  ;;  %v17442_v8 = vadd.f32 %v26174_v38, %v17316_v37  ;;  %v13115_v12 = vpop.f32.mrb[21].mxu1  ;;  %v26184_v22 = vld [vmem:[#allocation103_spill] sm:$0xff] }
 0xe77   : > { %14201 = vst [vmem:[%s24767_s11 + $0x8] sm:$0xff] %v14154_v10  ;;  %v17443_v29 = vadd.f32 %v26175_v63, %v13115_v12  ;;  %v17317_v4 = vpop.f32.mrb[22].mxu1  ;;  %v26185_v12 = vld [vmem:[#allocation104_spill] sm:$0xff] }
 0xe78   : > { %v14112_v36 = vadd.f32 %v17442_v8, %v24751_v53  ;;  %v17444_v28 = vadd.f32 %v26176_v31, %v17317_v4  ;;  %v13118_v43 = vpop.f32.mrb[23].mxu1  ;;  %v14070_v8 = vld [vmem:[%s19722_s24 + $0x78] sm:$0xff]  ;;  %v14068_v4 = vld [vmem:[%s19722_s24 + $0x68] sm:$0xff] }
 0xe79   : > { %v14110_v60 = vadd.f32 %v17443_v29, %v24751_v53  ;;  %v17445_v34 = vadd.f32 %v26177_v2, %v13118_v43 }
 0xe7a   : > { %v14159_v17 = vadd.f32 %v14112_v36, %v14061_v35  ;;  %v14113_v56 = vadd.f32 %v17444_v28, %v24751_v53 }
 0xe7b   : > { %v14157_v18 = vadd.f32 %v14110_v60, %v14059_v54  ;;  %v14111_v59 = vadd.f32 %v17445_v34, %v24751_v53  ;;  %v26186_v60 = vld [vmem:[#allocation105_spill] sm:$0xff]  ;;  %v14073_v34 = vld [vmem:[%s19722_s24 + $0x90] sm:$0xff] }
 0xe7c   : > { %14206 = vst [vmem:[%s24767_s11 + $0x30] sm:$0xff] %v14159_v17  ;;  %v14160_v19 = vadd.f32 %v14113_v56, %v14062_v11  ;;  %v26187_v17 = vld [vmem:[#allocation106_spill] sm:$0xff] }
 0xe7d   : > { %14204 = vst [vmem:[%s24767_s11 + $0x20] sm:$0xff] %v14157_v18  ;;  %v14158_v0 = vadd.f32 %v14111_v59, %v14060_v7  ;;  %v17320_v41 = vpop.f32.mrb[24].mxu1  ;;  %v14071_v59 = vld [vmem:[%s19722_s24 + $0x80] sm:$0xff] }
 0xe7e   : > { %14207 = vst [vmem:[%s24767_s11 + $0x38] sm:$0xff] %v14160_v19  ;;  %v17446_v26 = vadd.f32 %v26178_v57, %v17320_v41  ;;  %v13131_v15 = vpop.f32.mrb[25].mxu1  ;;  %v26188_v19 = vld [vmem:[#allocation107_spill] sm:$0xff] }
 0xe7f   : > { %14205 = vst [vmem:[%s24767_s11 + $0x28] sm:$0xff] %v14158_v0  ;;  %v17447_v24 = vadd.f32 %v26179_v25, %v13131_v15  ;;  %v17321_v45 = vpop.f32.mrb[26].mxu1  ;;  %v26189_v15 = vld [vmem:[#allocation108_spill] sm:$0xff] }
 0xe80   : > { %v14116_v50 = vadd.f32 %v17446_v26, %v24751_v53  ;;  %v17448_v58 = vadd.f32 %v26180_v51, %v17321_v45  ;;  %v13134_v1 = vpop.f32.mrb[27].mxu1  ;;  %v14074_v26 = vld [vmem:[%s19722_s24 + $0x98] sm:$0xff]  ;;  %v14072_v45 = vld [vmem:[%s19722_s24 + $0x88] sm:$0xff] }
 0xe81   : > { %v14114_v9 = vadd.f32 %v17447_v24, %v24751_v53  ;;  %v17449_v39 = vadd.f32 %v26181_v46, %v13134_v1 }
 0xe82   : > { %v14163_v62 = vadd.f32 %v14116_v50, %v14065_v6  ;;  %v14117_v30 = vadd.f32 %v17448_v58, %v24751_v53 }
 0xe83   : > { %v14161_v47 = vadd.f32 %v14114_v9, %v14063_v13  ;;  %v14115_v16 = vadd.f32 %v17449_v39, %v24751_v53  ;;  %v26190_v9 = vld [vmem:[#allocation109_spill] sm:$0xff]  ;;  %v14077_v39 = vld [vmem:[%s19722_s24 + $0xb0] sm:$0xff] }
 0xe84   : > { %14210 = vst [vmem:[%s24767_s11 + $0x50] sm:$0xff] %v14163_v62  ;;  %v14164_v44 = vadd.f32 %v14117_v30, %v14066_v14  ;;  %v26191_v62 = vld [vmem:[#allocation110_spill] sm:$0xff] }
 0xe85   : > { %14208 = vst [vmem:[%s24767_s11 + $0x40] sm:$0xff] %v14161_v47  ;;  %v14162_v20 = vadd.f32 %v14115_v16, %v14064_v33  ;;  %v17324_v55 = vpop.f32.mrb[28].mxu1  ;;  %v14075_v16 = vld [vmem:[%s19722_s24 + $0xa0] sm:$0xff] }
 0xe86   : > { %14211 = vst [vmem:[%s24767_s11 + $0x58] sm:$0xff] %v14164_v44  ;;  %v17450_v52 = vadd.f32 %v26182_v61, %v17324_v55  ;;  %v13147_v48 = vpop.f32.mrb[29].mxu1  ;;  %v26192_v44 = vld [vmem:[#allocation111_spill] sm:$0xff] }
 0xe87   : > { %14209 = vst [vmem:[%s24767_s11 + $0x48] sm:$0xff] %v14162_v20  ;;  %v17451_v40 = vadd.f32 %v26183_v23, %v13147_v48  ;;  %v17325_v42 = vpop.f32.mrb[30].mxu1  ;;  %v26193_v48 = vld [vmem:[#allocation112_spill] sm:$0xff] }
 0xe88   : > { %v14120_v21 = vadd.f32 %v17450_v52, %v24751_v53  ;;  %v17452_v10 = vadd.f32 %v26184_v22, %v17325_v42  ;;  %v13150_v37 = vpop.f32.mrb[31].mxu1  ;;  %v14078_v52 = vld [vmem:[%s19722_s24 + $0xb8] sm:$0xff]  ;;  %v14076_v42 = vld [vmem:[%s19722_s24 + $0xa8] sm:$0xff] }
 0xe89   : > { %v14118_v38 = vadd.f32 %v17451_v40, %v24751_v53  ;;  %v17453_v35 = vadd.f32 %v26185_v12, %v13150_v37 }
 0xe8a   : > { %v14167_v63 = vadd.f32 %v14120_v21, %v14069_v27  ;;  %v14121_v29 = vadd.f32 %v17452_v10, %v24751_v53 }
 0xe8b   : > { %v14165_v36 = vadd.f32 %v14118_v38, %v14067_v32  ;;  %v14119_v54 = vadd.f32 %v17453_v35, %v24751_v53  ;;  %v26194_v38 = vld [vmem:[#allocation113_spill] sm:$0xff]  ;;  %v14081_v35 = vld [vmem:[%s19722_s24 + $0xd0] sm:$0xff] }
 0xe8c   : > { %14214 = vst [vmem:[%s24767_s11 + $0x70] sm:$0xff] %v14167_v63  ;;  %v14168_v31 = vadd.f32 %v14121_v29, %v14070_v8  ;;  %v26195_v63 = vld [vmem:[#allocation114_spill] sm:$0xff] }
 0xe8d   : > { %14212 = vst [vmem:[%s24767_s11 + $0x60] sm:$0xff] %v14165_v36  ;;  %v14166_v28 = vadd.f32 %v14119_v54, %v14068_v4  ;;  %v17328_v43 = vpop.f32.mrb[32].mxu1  ;;  %v14079_v54 = vld [vmem:[%s19722_s24 + $0xc0] sm:$0xff] }
 0xe8e   : > { %14215 = vst [vmem:[%s24767_s11 + $0x78] sm:$0xff] %v14168_v31  ;;  %v17454_v11 = vadd.f32 %v26186_v60, %v17328_v43  ;;  %v13163_v2 = vpop.f32.mrb[33].mxu1  ;;  %v26196_v31 = vld [vmem:[#allocation115_spill] sm:$0xff] }
 0xe8f   : > { %14213 = vst [vmem:[%s24767_s11 + $0x68] sm:$0xff] %v14166_v28  ;;  %v17455_v56 = vadd.f32 %v26187_v17, %v13163_v2  ;;  %v17329_v7 = vpop.f32.mrb[34].mxu1  ;;  %v26197_v2 = vld [vmem:[#allocation116_spill] sm:$0xff] }
 0xe90   : > { %v14124_v18 = vadd.f32 %v17454_v11, %v24751_v53  ;;  %v17456_v0 = vadd.f32 %v26188_v19, %v17329_v7  ;;  %v13166_v41 = vpop.f32.mrb[35].mxu1  ;;  %v14082_v11 = vld [vmem:[%s19722_s24 + $0xd8] sm:$0xff]  ;;  %v14080_v7 = vld [vmem:[%s19722_s24 + $0xc8] sm:$0xff] }
 0xe91   : > { %v14122_v57 = vadd.f32 %v17455_v56, %v24751_v53  ;;  %v17457_v6 = vadd.f32 %v26189_v15, %v13166_v41 }
 0xe92   : > { %v14171_v25 = vadd.f32 %v14124_v18, %v14073_v34  ;;  %v14125_v24 = vadd.f32 %v17456_v0, %v24751_v53 }
 0xe93   : > { %v14169_v50 = vadd.f32 %v14122_v57, %v14071_v59  ;;  %v14123_v13 = vadd.f32 %v17457_v6, %v24751_v53  ;;  %v26198_v57 = vld [vmem:[#allocation117_spill] sm:$0xff]  ;;  %v14085_v6 = vld [vmem:[%s19722_s24 + $0xf0] sm:$0xff] }
 0xe94   : > { %14218 = vst [vmem:[%s24767_s11 + $0x90] sm:$0xff] %v14171_v25  ;;  %v14172_v51 = vadd.f32 %v14125_v24, %v14074_v26  ;;  %v26199_v25 = vld [vmem:[#allocation118_spill] sm:$0xff] }
 0xe95   : > { %14216 = vst [vmem:[%s24767_s11 + $0x80] sm:$0xff] %v14169_v50  ;;  %v14170_v58 = vadd.f32 %v14123_v13, %v14072_v45  ;;  %v17332_v1 = vpop.f32.mrb[36].mxu1  ;;  %v14083_v13 = vld [vmem:[%s19722_s24 + $0xe0] sm:$0xff] }
 0xe96   : > { %14219 = vst [vmem:[%s24767_s11 + $0x98] sm:$0xff] %v14172_v51  ;;  %v17458_v14 = vadd.f32 %v26190_v9, %v17332_v1  ;;  %v13179_v46 = vpop.f32.mrb[37].mxu1  ;;  %v26200_v51 = vld [vmem:[#allocation119_spill] sm:$0xff] }
 0xe97   : > { %14217 = vst [vmem:[%s24767_s11 + $0x88] sm:$0xff] %v14170_v58  ;;  %v17459_v30 = vadd.f32 %v26191_v62, %v13179_v46  ;;  %v17333_v33 = vpop.f32.mrb[38].mxu1  ;;  %v26201_v46 = vld [vmem:[#allocation120_spill] sm:$0xff] }
 0xe98   : > { %v14128_v47 = vadd.f32 %v17458_v14, %v24751_v53  ;;  %v17460_v20 = vadd.f32 %v26192_v44, %v17333_v33  ;;  %v13182_v55 = vpop.f32.mrb[39].mxu1  ;;  %v14086_v14 = vld [vmem:[%s19722_s24 + $0xf8] sm:$0xff]  ;;  %v14084_v33 = vld [vmem:[%s19722_s24 + $0xe8] sm:$0xff] }
 0xe99   : > { %v14126_v61 = vadd.f32 %v17459_v30, %v24751_v53  ;;  %v17461_v27 = vadd.f32 %v26193_v48, %v13182_v55 }
 0xe9a   : > { %v14175_v23 = vadd.f32 %v14128_v47, %v14077_v39  ;;  %v14129_v40 = vadd.f32 %v17460_v20, %v24751_v53 }
 0xe9b   : > { %v14173_v21 = vadd.f32 %v14126_v61, %v14075_v16  ;;  %v14127_v32 = vadd.f32 %v17461_v27, %v24751_v53  ;;  %v26202_v61 = vld [vmem:[#allocation121_spill] sm:$0xff]  ;;  %v14089_v27 = vld [vmem:[%s19722_s24 + $0x110] sm:$0xff] }
 0xe9c   : > { %14222 = vst [vmem:[%s24767_s11 + $0xb0] sm:$0xff] %v14175_v23  ;;  %v14176_v22 = vadd.f32 %v14129_v40, %v14078_v52  ;;  %v26203_v23 = vld [vmem:[#allocation122_spill] sm:$0xff] }
 0xe9d   : > { %14220 = vst [vmem:[%s24767_s11 + $0xa0] sm:$0xff] %v14173_v21  ;;  %v14174_v10 = vadd.f32 %v14127_v32, %v14076_v42  ;;  %v17336_v37 = vpop.f32.mrb[40].mxu1  ;;  %v14087_v32 = vld [vmem:[%s19722_s24 + $0x100] sm:$0xff] }
 0xe9e   : > { %14223 = vst [vmem:[%s24767_s11 + $0xb8] sm:$0xff] %v14176_v22  ;;  %v17462_v8 = vadd.f32 %v26194_v38, %v17336_v37  ;;  %v13195_v12 = vpop.f32.mrb[41].mxu1  ;;  %v26204_v22 = vld [vmem:[#allocation123_spill] sm:$0xff] }
 0xe9f   : > { %14221 = vst [vmem:[%s24767_s11 + $0xa8] sm:$0xff] %v14174_v10  ;;  %v17463_v29 = vadd.f32 %v26195_v63, %v13195_v12  ;;  %v17337_v4 = vpop.f32.mrb[42].mxu1  ;;  %v26205_v12 = vld [vmem:[#allocation124_spill] sm:$0xff] }
 0xea0   : > { %v14132_v36 = vadd.f32 %v17462_v8, %v24751_v53  ;;  %v17464_v28 = vadd.f32 %v26196_v31, %v17337_v4  ;;  %v13198_v43 = vpop.f32.mrb[43].mxu1  ;;  %v14090_v8 = vld [vmem:[%s19722_s24 + $0x118] sm:$0xff]  ;;  %v14088_v4 = vld [vmem:[%s19722_s24 + $0x108] sm:$0xff] }
 0xea1   : > { %v14130_v60 = vadd.f32 %v17463_v29, %v24751_v53  ;;  %v17465_v34 = vadd.f32 %v26197_v2, %v13198_v43 }
 0xea2   : > { %v14179_v17 = vadd.f32 %v14132_v36, %v14081_v35  ;;  %v14133_v56 = vadd.f32 %v17464_v28, %v24751_v53 }
 0xea3   : > { %v14177_v18 = vadd.f32 %v14130_v60, %v14079_v54  ;;  %v14131_v59 = vadd.f32 %v17465_v34, %v24751_v53  ;;  %v26206_v60 = vld [vmem:[#allocation73_spill] sm:$0xff]  ;;  %v14093_v34 = vld [vmem:[%s19722_s24 + $0x130] sm:$0xff] }
 0xea4   : > { %14226 = vst [vmem:[%s24767_s11 + $0xd0] sm:$0xff] %v14179_v17  ;;  %v14180_v19 = vadd.f32 %v14133_v56, %v14082_v11  ;;  %v26207_v17 = vld [vmem:[#allocation74_spill] sm:$0xff] }
 0xea5   : > { %14224 = vst [vmem:[%s24767_s11 + $0xc0] sm:$0xff] %v14177_v18  ;;  %v14178_v0 = vadd.f32 %v14131_v59, %v14080_v7  ;;  %v17340_v41 = vpop.f32.mrb[44].mxu1  ;;  %v14091_v59 = vld [vmem:[%s19722_s24 + $0x120] sm:$0xff] }
 0xea6   : > { %14227 = vst [vmem:[%s24767_s11 + $0xd8] sm:$0xff] %v14180_v19  ;;  %v17466_v26 = vadd.f32 %v26198_v57, %v17340_v41  ;;  %v13211_v15 = vpop.f32.mrb[45].mxu1  ;;  %v26208_v19 = vld [vmem:[#allocation13_spill] sm:$0xff] }
 0xea7   : > { %14225 = vst [vmem:[%s24767_s11 + $0xc8] sm:$0xff] %v14178_v0  ;;  %v17467_v24 = vadd.f32 %v26199_v25, %v13211_v15  ;;  %v17341_v45 = vpop.f32.mrb[46].mxu1  ;;  %v26209_v15 = vld [vmem:[#allocation76_spill] sm:$0xff] }
 0xea8   : > { %v14136_v50 = vadd.f32 %v17466_v26, %v24751_v53  ;;  %v17468_v58 = vadd.f32 %v26200_v51, %v17341_v45  ;;  %v13214_v1 = vpop.f32.mrb[47].mxu1  ;;  %v14094_v26 = vld [vmem:[%s19722_s24 + $0x138] sm:$0xff]  ;;  %v14092_v45 = vld [vmem:[%s19722_s24 + $0x128] sm:$0xff] }
 0xea9   : > { %v14134_v9 = vadd.f32 %v17467_v24, %v24751_v53  ;;  %v17469_v39 = vadd.f32 %v26201_v46, %v13214_v1 }
 0xeaa   : > { %v14183_v62 = vadd.f32 %v14136_v50, %v14085_v6  ;;  %v14137_v30 = vadd.f32 %v17468_v58, %v24751_v53 }
 0xeab   : > { %v14181_v47 = vadd.f32 %v14134_v9, %v14083_v13  ;;  %v14135_v16 = vadd.f32 %v17469_v39, %v24751_v53 }
 0xeac   : > { %14230 = vst [vmem:[%s24767_s11 + $0xf0] sm:$0xff] %v14183_v62  ;;  %v14184_v44 = vadd.f32 %v14137_v30, %v14086_v14 }
 0xead   : > { %14228 = vst [vmem:[%s24767_s11 + $0xe0] sm:$0xff] %v14181_v47  ;;  %v14182_v20 = vadd.f32 %v14135_v16, %v14084_v33  ;;  %v17344_v55 = vpop.f32.mrb[48].mxu1  ;;  %v14097_v47 = vld [vmem:[%s19722_s24 + $0x150] sm:$0xff] }
 0xeae   : > { %14231 = vst [vmem:[%s24767_s11 + $0xf8] sm:$0xff] %v14184_v44  ;;  %v17470_v52 = vadd.f32 %v26202_v61, %v17344_v55  ;;  %v13227_v48 = vpop.f32.mrb[49].mxu1  ;;  %v14098_v61 = vld [vmem:[%s19722_s24 + $0x158] sm:$0xff] }
 0xeaf   : > { %14229 = vst [vmem:[%s24767_s11 + $0xe8] sm:$0xff] %v14182_v20  ;;  %v17471_v40 = vadd.f32 %v26203_v23, %v13227_v48  ;;  %v17345_v42 = vpop.f32.mrb[50].mxu1  ;;  %v14095_v20 = vld [vmem:[%s19722_s24 + $0x140] sm:$0xff] }
 0xeb0   : > { %v14140_v21 = vadd.f32 %v17470_v52, %v24751_v53  ;;  %v17472_v10 = vadd.f32 %v26204_v22, %v17345_v42  ;;  %v13230_v37 = vpop.f32.mrb[51].mxu1 }
 0xeb1   : > { %v14138_v38 = vadd.f32 %v17471_v40, %v24751_v53  ;;  %v17473_v35 = vadd.f32 %v26205_v12, %v13230_v37  ;;  %v14099_v12 = vld [vmem:[%s19722_s24 + $0x160] sm:$0xff] }
 0xeb2   : > { %v14187_v63 = vadd.f32 %v14140_v21, %v14089_v27  ;;  %v14141_v29 = vadd.f32 %v17472_v10, %v24751_v53  ;;  %v14096_v27 = vld [vmem:[%s19722_s24 + $0x148] sm:$0xff]  ;;  %v14101_v10 = vld [vmem:[%s19722_s24 + $0x170] sm:$0xff] }
 0xeb3   : > { %v14185_v36 = vadd.f32 %v14138_v38, %v14087_v32  ;;  %v14139_v54 = vadd.f32 %v17473_v35, %v24751_v53 }
 0xeb4   : > { %14234 = vst [vmem:[%s24767_s11 + $0x110] sm:$0xff] %v14187_v63  ;;  %v14188_v31 = vadd.f32 %v14141_v29, %v14090_v8 }
 0xeb5   : > { %14232 = vst [vmem:[%s24767_s11 + $0x100] sm:$0xff] %v14185_v36  ;;  %v14186_v28 = vadd.f32 %v14139_v54, %v14088_v4  ;;  %v17348_v43 = vpop.f32.mrb[52].mxu1  ;;  %v14100_v36 = vld [vmem:[%s19722_s24 + $0x168] sm:$0xff]  ;;  %s19414_s24 = scalar_lea.vmem %s24947_s13, 6016 }
 0xeb6   : > { %14235 = vst [vmem:[%s24767_s11 + $0x118] sm:$0xff] %v14188_v31  ;;  %v17474_v11 = vadd.f32 %v26206_v60, %v17348_v43  ;;  %v13243_v2 = vpop.f32.mrb[53].mxu1  ;;  %p19415_p0 = scmp.ne.s32.totalorder %s24947_s13, %s19414_s24  ;;  %p19422_p12 = scmp.lt.s32.totalorder %s19420_s17, %s19414_s24 }
 0xeb7   : > { %14233 = vst [vmem:[%s24767_s11 + $0x108] sm:$0xff] %v14186_v28  ;;  %v17475_v56 = vadd.f32 %v26207_v17, %v13243_v2  ;;  %v17349_v7 = vpop.f32.mrb[54].mxu1 }
 0xeb8   : > { %v14144_v18 = vadd.f32 %v17474_v11, %v24751_v53  ;;  %v17476_v0 = vadd.f32 %v26208_v19, %v17349_v7  ;;  %v13246_v41 = vpop.f32.mrb[55].mxu1  ;;  %p19416_p3 = pnand %p19415_p0, %p26210_p1  ;;  %p19423_p2 = por %p19422_p12, %p19421_p9 }
 0xeb9   : > { %v14142_v57 = vadd.f32 %v17475_v56, %v24751_v53  ;;  %v17477_v6 = vadd.f32 %v26209_v15, %v13246_v41 }
 0xeba   : > { %v14191_v25 = vadd.f32 %v14144_v18, %v14093_v34  ;;  %v14145_v24 = vadd.f32 %v17476_v0, %v24751_v53  ;;  %p19417_p7 = pneg %p19416_p3 }
 0xebb   : > { %v14189_v50 = vadd.f32 %v14142_v57, %v14091_v59  ;;  %v14143_v13 = vadd.f32 %v17477_v6, %v24751_v53 }
 0xebc   : > { %14238 = vst [vmem:[%s24767_s11 + $0x130] sm:$0xff] %v14191_v25  ;;  %v14192_v51 = vadd.f32 %v14145_v24, %v14094_v26  ;;  %p19424_p13 = pnand %p19423_p2, %p19417_p7 }
 0xebd   : > { %14236 = vst [vmem:[%s24767_s11 + $0x120] sm:$0xff] %v14189_v50  ;;  %v14190_v58 = vadd.f32 %v14143_v13, %v14092_v45 }
 0xebe   : > { %14239 = vst [vmem:[%s24767_s11 + $0x138] sm:$0xff] %v14192_v51 }
 0xebf   : > { %14237 = vst [vmem:[%s24767_s11 + $0x128] sm:$0xff] %v14190_v58 }
 0xec5   : > { %v17356_v1 = vpop.f32.mrb[88].mxu1 }
 0xec6   : > { %v13335_v9 = vadd.f32 %v17356_v1, %v24742_v3  ;;  %v13275_v14 = vpop.f32.mrb[89].mxu1 }
 0xec7   : > { %v13333_v46 = vadd.f32 %v13275_v14, %v24744_v49  ;;  %v17357_v39 = vpop.f32.mrb[90].mxu1 }
 0xec8   : > { %v13278_v62 = vpop.f32.mrb[91].mxu1 }
 0xec9   : > { %v13334_v30 = vadd.f32 %v13278_v62, %v24746_v5 }
 0xecd   : > { %v17416_v33 = vpop.f32.mrb[56].mxu1 }
 0xece   : > { %v14148_v16 = vadd.f32 %v17416_v33, %v24751_v53  ;;  %v13978_v44 = vpop.f32.mrb[57].mxu1 }
 0xecf   : > { %v14146_v3 = vadd.f32 %v24751_v53, %v13978_v44  ;;  %v17417_v55 = vpop.f32.mrb[58].mxu1 }
 0xed0   : > { %v14195_v49 = vadd.f32 %v14148_v16, %v14097_v47  ;;  %v14149_v52 = vadd.f32 %v17417_v55, %v24751_v53  ;;  %v13981_v48 = vpop.f32.mrb[59].mxu1 }
 0xed1   : > { %v14193_v5 = vadd.f32 %v14146_v3, %v14095_v20  ;;  %v14147_v23 = vadd.f32 %v24751_v53, %v13981_v48 }
 0xed2   : > { %14242 = vst [vmem:[%s24767_s11 + $0x150] sm:$0xff] %v14195_v49  ;;  %v14196_v40 = vadd.f32 %v14149_v52, %v14098_v61 }
 0xed3   : > { %14240 = vst [vmem:[%s24767_s11 + $0x140] sm:$0xff] %v14193_v5  ;;  %v14194_v42 = vadd.f32 %v14147_v23, %v14096_v27 }
 0xed4   : > { %14243 = vst [vmem:[%s24767_s11 + $0x158] sm:$0xff] %v14196_v40 }
 0xed5   : > { %14241 = vst [vmem:[%s24767_s11 + $0x148] sm:$0xff] %v14194_v42  ;;  %v17420_v21 = vpop.f32.mrb[92].mxu1 }
 0xed6   : > { %v14054_v32 = vadd.f32 %v17420_v21, %v13335_v9  ;;  %v13994_v22 = vpop.f32.mrb[93].mxu1 }
 0xed7   : > { %v14052_v37 = vadd.f32 %v13994_v22, %v13333_v46  ;;  %v17421_v38 = vpop.f32.mrb[94].mxu1 }
 0xed8   : > { %v14152_v8 = vadd.f32 %v24751_v53, %v14054_v32  ;;  %v13997_v35 = vpop.f32.mrb[95].mxu1 }
 0xed9   : > { %v14150_v63 = vadd.f32 %v24751_v53, %v14052_v37  ;;  %v14053_v29 = vadd.f32 %v13997_v35, %v13334_v30 }
 0xeda   : > { %v14199_v4 = vadd.f32 %v14152_v8, %v14101_v10 }
 0xedb   : > { %v14197_v54 = vadd.f32 %v14150_v63, %v14099_v12  ;;  %v14151_v31 = vadd.f32 %v24751_v53, %v14053_v29 }
 0xedc   : > { %14246 = vst [vmem:[%s24767_s11 + $0x170] sm:$0xff] %v14199_v4 }
 0xedd   : > { %14244 = vst [vmem:[%s24767_s11 + $0x160] sm:$0xff] %v14197_v54  ;;  %v14198_v28 = vadd.f32 %v14151_v31, %v14100_v36 }
 0xedf   : > { %14245 = vst [vmem:[%s24767_s11 + $0x168] sm:$0xff] %v14198_v28 }
 0xee0   : > { %19427 = shalt.err (!%p19424_p13)
}
 0xee1   : > { %s19428_s5 = scalar_lea.hbm %s24944_s19, 6016  ;;  %s19432_s26 = scalar_lea.hbm %s25000_s8, 12032 }
 0xee2   : > { %p19429_p6 = scmp.ne.s32.totalorder %s24944_s19, %s19428_s5  ;;  %p19433_p5 = scmp.lt.u32.totalorder %s24944_s19, %s25000_s8 }
 0xee3   : > { %p19434_p8 = scmp.lt.u32.totalorder %s19432_s26, %s19428_s5  ;;  %p19436_p0 = scmp.lt.u32.totalorder %s19428_s5, %s24944_s19 }
 0xee4   : > { %p19430_p10 = pnand %p19429_p6, %p26210_p1 }
 0xee5   : > { %p19435_p11 = por %p19434_p8, %p19433_p5 }
 0xee6   : > { %p19431_p4 = pneg %p19430_p10 }
 0xee7   : > { %p19437_p3 = por %p19436_p0, %p19435_p11 }
 0xee9   : > { %p19438_p7 = pnand %p19437_p3, %p19431_p4 }
 0xeeb   : > { %19441 = shalt.err (!%p19438_p7)
}
 0xeec   : > { %s19497_s10 = smov 128   ;;  %s19498_s15 = smov 8  }
 0xeed   : > { %18172 = dma.vmem_to_hbm [thread:$0]  (%p26210_p1), %s24947_s13, 6016, %s24944_s19, %s14248_s9, %s19497_s10, %s19497_s10, %s19498_s15  }
 0xeee PF: > { %s14276_s24 = sand.u32 1, %s19472_s27   ;;  %p26211_p9 = scmp.ne.s32.totalorder %s25365_s12, 0 }
 0xeef   : > { %p26212_p12 = scmp.ge.s32.totalorder %s19484_s30, 2  ;;  %s14277_s16 = scalar_lea.sflag [#allocation5], %s14276_s24 }
 0xef1   : > { %p18186_p2 = pnand %p26212_p12, %p26211_p9 }
 0xef3   : > { %19467 = dma.done.wait (!%p18186_p2), %s14277_s16, 6016  }
 0xef4   : > { %19469 = vsyncadd (!%p18186_p2), %s14277_s16, 4294961280  ;;  %p22_p13 = scmp.ge.s32.totalorder %s19654_s20, 4   ;;  %s26213_s27 = smov %s19476_s28 }
 0xef5   : > { %s26214_s28 = smov %s19480_s29  ;;  %s26215_s29 = smov %s19670_s23 }
 0xef6   : > { %s26216_s30 = smov %s19654_s20  ;;  %24 = sbr.rel (!%p22_p13) target bundleno = 9 (0x9), region = 124 }
 0xefd   :  { %14282 = vsyncpa [#allocation4], 1 }
 0xefe   :  { %14284 = vsyncpa [#allocation4 + $0x1], 1 }
 0xeff   :  { %14285 = vsyncpa [#allocation7], 1 }
 0xf00   :  { %14286 = vsyncpa [#allocation5], 1 }
 0xf01   :  { %14288 = vsyncpa [#allocation5 + $0x1], 1 }

</bundles_post_ra>
